<compile_context>
chip_gen: v7x
topology: tpu7x:2x2x1
jax: 0.10.0
libtpu: 0.0.40
codegen_flags: <defaults>
</compile_context>

<pallas_src>
import functools

import jax
import jax.numpy as jnp
from jax.experimental import pallas as pl
from jax.experimental.pallas import tpu as pltpu

LANE = 128


def _round_up(x, m):
    return (x + m - 1) // m * m


# ----------------------------------------------------------------------------
# Pallas kernels
# ----------------------------------------------------------------------------
def _mm_bn_relu_kernel(x_ref, w_ref, scale_ref, shift_ref, o_ref):
    """(tm, K) @ (K, N) in bf16 on the MXU, f32 accumulate, fused affine+ReLU."""
    acc = jnp.dot(x_ref[...], w_ref[...], preferred_element_type=jnp.float32)
    y = jnp.maximum(acc * scale_ref[...] + shift_ref[...], 0.0)
    o_ref[...] = y.astype(o_ref.dtype)


def _conv3x3_taps(x_ref, w_ref, rows, stride):
    """3x3 conv as 3 accumulated KH-tap matmuls.

    x_ref: ((H+2)*W, 3*Cin) bf16 — H-padded, KW-im2col'd, row-flattened image.
    w_ref: (3, 3*Cin, Cout) bf16 — tap = KH, K ordering = (KW, Cin).
    Tap kh uses rows [kh*W, kh*W + H*W): offsets 0/W/2W are sublane aligned.
    Returns (H*W, Cout) f32.
    """
    acc = None
    for kh in range(3):
        patch = x_ref[pl.ds(kh * stride, rows), :]
        part = jnp.dot(patch, w_ref[kh], preferred_element_type=jnp.float32)
        acc = part if acc is None else acc + part
    return acc


def _conv3x3_bn_relu_kernel(x_ref, w_ref, scale_ref, shift_ref, o_ref, *,
                            rows, stride):
    acc = _conv3x3_taps(x_ref, w_ref, rows, stride)
    y = jnp.maximum(acc * scale_ref[...] + shift_ref[...], 0.0)
    o_ref[...] = y.astype(o_ref.dtype)


def _conv3x3_bn_relu_cls_kernel(x_ref, w_ref, scale_ref, shift_ref,
                                wcls_ref, bcls_ref, o_ref, *, rows, stride):
    """conv3x3 + BN + ReLU with the final 1x1 classifier fused in the epilogue."""
    acc = _conv3x3_taps(x_ref, w_ref, rows, stride)
    y = jnp.maximum(acc * scale_ref[...] + shift_ref[...], 0.0)
    y = y.astype(jnp.bfloat16)
    out = jnp.dot(y, wcls_ref[...], preferred_element_type=jnp.float32)
    out = out + bcls_ref[...]
    o_ref[...] = out.astype(o_ref.dtype)


# ----------------------------------------------------------------------------
# Kernel wrappers
# ----------------------------------------------------------------------------
def conv1x1_bn_relu(x2d, w, scale, shift):
    """x2d: (M, K) bf16; w: (K, N) bf16 with N a multiple of 128 (lane dense)."""
    M, K = x2d.shape
    N = w.shape[1]
    if M % 256 == 0:
        tm = 256          # 2 parallel steps -> both v7x TensorCores busy
    elif M % 128 == 0:
        tm = 128
    else:
        tm = M
    return pl.pallas_call(
        _mm_bn_relu_kernel,
        out_shape=jax.ShapeDtypeStruct((M, N), jnp.bfloat16),
        grid_spec=pltpu.PrefetchScalarGridSpec(
            num_scalar_prefetch=0,
            grid=(M // tm,),
            in_specs=[
                pl.BlockSpec((tm, K), lambda i: (i, 0)),
                pl.BlockSpec((K, N), lambda i: (0, 0)),
                pl.BlockSpec((1, N), lambda i: (0, 0)),
                pl.BlockSpec((1, N), lambda i: (0, 0)),
            ],
            out_specs=pl.BlockSpec((tm, N), lambda i: (i, 0)),
        ),
        compiler_params=pltpu.CompilerParams(
            dimension_semantics=("parallel",)),
    )(x2d, w, scale, shift)


def _kw_im2col(x_nhwc):
    """(N,H,W,C) -> (N, (H+2)*W, 3C) bf16: pad H/W by 1, concat the 3 KW-shifted
    views along channels (partial im2col over KW only; KH handled in-kernel)."""
    n, h, w, c = x_nhwc.shape
    xp = jnp.pad(x_nhwc, ((0, 0), (1, 1), (1, 1), (0, 0)))
    xw = jnp.concatenate([xp[:, :, kw:kw + w, :] for kw in range(3)], axis=-1)
    return xw.reshape(n, (h + 2) * w, 3 * c).astype(jnp.bfloat16)


def conv3x3_bn_relu(x_nhwc, w, scale, shift):
    """3x3 conv (stride 1, pad 1, no bias) + folded BN + ReLU, bf16 out."""
    n, h, wd, _ = x_nhwc.shape
    _, kc, cout = w.shape
    rows = h * wd
    lrows = (h + 2) * wd
    xf = _kw_im2col(x_nhwc)
    kern = functools.partial(_conv3x3_bn_relu_kernel, rows=rows, stride=wd)
    out = pl.pallas_call(
        kern,
        out_shape=jax.ShapeDtypeStruct((n, rows, cout), jnp.bfloat16),
        grid_spec=pltpu.PrefetchScalarGridSpec(
            num_scalar_prefetch=0,
            grid=(n,),
            in_specs=[
                pl.BlockSpec((pl.Squeezed(), lrows, kc), lambda b: (b, 0, 0)),
                pl.BlockSpec((3, kc, cout), lambda b: (0, 0, 0)),
                pl.BlockSpec((1, cout), lambda b: (0, 0)),
                pl.BlockSpec((1, cout), lambda b: (0, 0)),
            ],
            out_specs=pl.BlockSpec((pl.Squeezed(), rows, cout),
                                   lambda b: (b, 0, 0)),
        ),
        compiler_params=pltpu.CompilerParams(
            dimension_semantics=("parallel",)),
    )(xf, w, scale, shift)
    return out.reshape(n, h, wd, cout)


def conv3x3_bn_relu_cls(x_nhwc, w, scale, shift, wcls, bcls):
    """3x3 conv + BN + ReLU + fused 1x1 classifier (bias), f32 out (padded N)."""
    n, h, wd, _ = x_nhwc.shape
    _, kc, cout = w.shape
    ncls_pad = wcls.shape[1]
    rows = h * wd
    lrows = (h + 2) * wd
    xf = _kw_im2col(x_nhwc)
    kern = functools.partial(_conv3x3_bn_relu_cls_kernel, rows=rows, stride=wd)
    out = pl.pallas_call(
        kern,
        out_shape=jax.ShapeDtypeStruct((n, rows, ncls_pad), jnp.float32),
        grid_spec=pltpu.PrefetchScalarGridSpec(
            num_scalar_prefetch=0,
            grid=(n,),
            in_specs=[
                pl.BlockSpec((pl.Squeezed(), lrows, kc), lambda b: (b, 0, 0)),
                pl.BlockSpec((3, kc, cout), lambda b: (0, 0, 0)),
                pl.BlockSpec((1, cout), lambda b: (0, 0)),
                pl.BlockSpec((1, cout), lambda b: (0, 0)),
                pl.BlockSpec((cout, ncls_pad), lambda b: (0, 0)),
                pl.BlockSpec((1, ncls_pad), lambda b: (0, 0)),
            ],
            out_specs=pl.BlockSpec((pl.Squeezed(), rows, ncls_pad),
                                   lambda b: (b, 0, 0)),
        ),
        compiler_params=pltpu.CompilerParams(
            dimension_semantics=("parallel",)),
    )(xf, w, scale, shift, wcls, bcls)
    return out.reshape(n, h, wd, ncls_pad)


# ----------------------------------------------------------------------------
# Glue (plain JAX): bilinear resize (align_corners=True), weight layout, init.
# ----------------------------------------------------------------------------
def bilinear_resize_align_corners(x, out_h, out_w):
    """x: (N,H,W,C); matches F.interpolate(mode='bilinear', align_corners=True)."""
    n, h, w, c = x.shape

    def coords(out_dim, in_dim):
        if out_dim == 1:
            return jnp.zeros((1,), jnp.float32)
        return jnp.arange(out_dim, dtype=jnp.float32) * (in_dim - 1) / (out_dim - 1)

    ys, xs = coords(out_h, h), coords(out_w, w)
    y0 = jnp.floor(ys).astype(jnp.int32)
    x0 = jnp.floor(xs).astype(jnp.int32)
    y1 = jnp.minimum(y0 + 1, h - 1)
    x1 = jnp.minimum(x0 + 1, w - 1)
    wy = (ys - y0.astype(jnp.float32))[None, :, None, None]
    wx = (xs - x0.astype(jnp.float32))[None, None, :, None]

    def g(yi, xi):
        return x[:, yi][:, :, xi]

    return (g(y0, x0) * (1 - wy) * (1 - wx) + g(y0, x1) * (1 - wy) * wx +
            g(y1, x0) * wy * (1 - wx) + g(y1, x1) * wy * wx)


def fold_bn(gamma, beta, mean, var, eps=1e-5):
    scale = gamma / jnp.sqrt(var + eps)
    shift = beta - mean * scale
    return scale, shift


def kaiming_normal(key, shape):
    # PyTorch kaiming_normal_ default: fan_in, gain=sqrt(2).
    fan_in = shape[1] * shape[2] * shape[3]
    std = (2.0 / fan_in) ** 0.5
    return jax.random.normal(key, shape, jnp.float32) * std


def w3x3_to_taps(w):
    """PyTorch (Cout,Cin,3,3) -> (3, 3*Cin, Cout); tap = KH, K order = (KW, Cin)."""
    cout, cin = w.shape[0], w.shape[1]
    return jnp.transpose(w, (2, 3, 1, 0)).reshape(3, 3 * cin, cout)


def w1x1_to_mat(w):
    """PyTorch (Cout,Cin,1,1) -> (Cin, Cout)."""
    cout, cin = w.shape[0], w.shape[1]
    return jnp.transpose(w.reshape(cout, cin), (1, 0))


def init_params(key, num_classes, backbone='Resnet', with_height=False):
    low_level_inplanes = 256  # Resnet / drn
    if with_height:
        low_level_inplanes += 1
    last_conv_inchannel = 304
    k = jax.random.split(key, 5)
    w1 = kaiming_normal(k[0], (48, low_level_inplanes, 1, 1))
    w2 = kaiming_normal(k[1], (256, last_conv_inchannel, 3, 3))
    w3 = kaiming_normal(k[2], (256, 256, 3, 3))
    w4 = kaiming_normal(k[3], (num_classes, 256, 1, 1))
    b4 = jax.random.uniform(k[4], (num_classes,), jnp.float32,
                            -1.0 / (256 ** 0.5), 1.0 / (256 ** 0.5))

    c1_pad = _round_up(48, LANE)            # conv1 output channels padded -> 128
    ncls_pad = _round_up(num_classes, LANE) # classifier output padded -> 128

    # conv1 (1x1): (256, 48) -> pad output channels to 128 (zero columns).
    w1m = jnp.pad(w1x1_to_mat(w1), ((0, 0), (0, c1_pad - 48)))

    # conv2 (3x3): pad input channels 304 -> 256 + c1_pad so the (zero) padded
    # conv1 channels in the concat are consumed by zero weight rows.
    w2p = jnp.pad(w2, ((0, 0), (0, 256 + c1_pad - last_conv_inchannel),
                       (0, 0), (0, 0)))
    w2m = w3x3_to_taps(w2p)                 # (3, 3*384, 256)
    w3m = w3x3_to_taps(w3)                  # (3, 3*256, 256)

    # classifier 1x1 (fused into conv3 kernel): pad out channels to 128 lanes.
    w4m = jnp.pad(w1x1_to_mat(w4), ((0, 0), (0, ncls_pad - num_classes)))
    b4p = jnp.pad(b4, (0, ncls_pad - num_classes)).reshape(1, ncls_pad)

    ones48, zeros48 = jnp.ones((48,), jnp.float32), jnp.zeros((48,), jnp.float32)
    ones256, zeros256 = jnp.ones((256,), jnp.float32), jnp.zeros((256,), jnp.float32)
    bn1_scale, bn1_shift = fold_bn(ones48, zeros48, zeros48, ones48)
    bn2_scale, bn2_shift = fold_bn(ones256, zeros256, zeros256, ones256)
    bn3_scale, bn3_shift = fold_bn(ones256, zeros256, zeros256, ones256)
    # Padded conv1 channels: scale=1, shift=0 so they stay exactly zero.
    bn1_scale = jnp.pad(bn1_scale, (0, c1_pad - 48), constant_values=1.0)
    bn1_shift = jnp.pad(bn1_shift, (0, c1_pad - 48))

    return {
        'w1': w1m.astype(jnp.bfloat16),
        'bn1_scale': bn1_scale.reshape(1, c1_pad),
        'bn1_shift': bn1_shift.reshape(1, c1_pad),
        'w2': w2m.astype(jnp.bfloat16),
        'bn2_scale': bn2_scale.reshape(1, 256),
        'bn2_shift': bn2_shift.reshape(1, 256),
        'w3': w3m.astype(jnp.bfloat16),
        'bn3_scale': bn3_scale.reshape(1, 256),
        'bn3_shift': bn3_shift.reshape(1, 256),
        'w4': w4m.astype(jnp.bfloat16),
        'b4': b4p,
    }


# ----------------------------------------------------------------------------
# Decoder forward (eval mode). Inputs/outputs are NCHW like PyTorch.
# ----------------------------------------------------------------------------
def decoder_forward(params, num_classes, x, low_level_feat):
    # TODO(synk): optional `h` height branch (with_height=True) not implemented.
    x = jnp.transpose(x, (0, 2, 3, 1))                    # NHWC f32
    low = jnp.transpose(low_level_feat, (0, 2, 3, 1))     # NHWC f32
    n, hl, wl, cl = low.shape

    # conv1 (1x1, no bias) + bn1 + relu  -> 128 lane-padded bf16 output
    low2 = conv1x1_bn_relu(low.reshape(n * hl * wl, cl).astype(jnp.bfloat16),
                           params['w1'], params['bn1_scale'], params['bn1_shift'])
    low2 = low2.reshape(n, hl, wl, -1)

    # upsample x to low-level spatial size (align_corners=True), concat channels
    # TODO(synk): bilinear upsample + concat kept in XLA (bf16) rather than fused
    # into the conv2 kernel; tensors involved are tiny.
    xu = bilinear_resize_align_corners(x, hl, wl).astype(jnp.bfloat16)
    cat = jnp.concatenate([xu, low2], axis=-1)            # (n, hl, wl, 384) bf16

    # last_conv[0..3]: conv3x3 + bn + relu (Dropout(0.5) -> identity in eval)
    y = conv3x3_bn_relu(cat, params['w2'], params['bn2_scale'], params['bn2_shift'])

    # last_conv[4..8]: conv3x3 + bn + relu (Dropout(0.1) -> identity) + fused
    # 1x1 classifier with bias (output padded to 128 lanes, sliced below).
    out = conv3x3_bn_relu_cls(y, params['w3'], params['bn3_scale'],
                              params['bn3_shift'], params['w4'], params['b4'])
    out = out[..., :num_classes]
    return jnp.transpose(out, (0, 3, 1, 2))               # back to NCHW, f32


if __name__ == "__main__":
    key = jax.random.PRNGKey(0)
    kx, kl, kp = jax.random.split(key, 3)
    num_classes = 8
    # x: high-level features (256 ch, coarse); low_level_feat: 256 ch (Resnet), finer.
    x = jax.random.normal(kx, (2, 256, 8, 8), jnp.float32)
    low_level_feat = jax.random.normal(kl, (2, 256, 16, 16), jnp.float32)
    params = init_params(kp, num_classes)

    fwd = jax.jit(functools.partial(decoder_forward, params, num_classes))
    out = jax.block_until_ready(fwd(x, low_level_feat))
    assert out.shape == (2, num_classes, 16, 16), out.shape
    assert jnp.all(jnp.isfinite(out))
    print("KERNEL_OK")
</pallas_src>

<mosaic_0001>
module attributes {stable_mosaic.version = 11 : i64} {
  func.func @_mm_bn_relu_kernel(%arg0: i32, %arg1: memref<256x256xbf16, #tpu.memory_space<vmem>>, %arg2: memref<256x128xbf16, #tpu.memory_space<vmem>>, %arg3: memref<1x128xf32, #tpu.memory_space<vmem>>, %arg4: memref<1x128xf32, #tpu.memory_space<vmem>>, %arg5: memref<256x128xbf16, #tpu.memory_space<vmem>>) attributes {dimension_semantics = [#tpu.dimension_semantics<parallel>], iteration_bounds = array<i64: 2>, scalar_prefetch = 0 : i64, scratch_operands = 0 : i64, tpu.core_type = #tpu.core_type<tc>, window_params = [{transform_indices = @transform_0, window_bounds = array<i64: 256, 256>}, {pipeline_mode = #tpu.pipeline_mode<synchronous>, transform_indices = @transform_1, window_bounds = array<i64: 256, 128>}, {pipeline_mode = #tpu.pipeline_mode<synchronous>, transform_indices = @transform_2, window_bounds = array<i64: 1, 128>}, {pipeline_mode = #tpu.pipeline_mode<synchronous>, transform_indices = @transform_3, window_bounds = array<i64: 1, 128>}, {transform_indices = @transform_4, window_bounds = array<i64: 256, 128>}]} {
    %c0 = arith.constant 0 : index
    %c0_0 = arith.constant 0 : index
    %0 = vector.load %arg1[%c0, %c0_0] : memref<256x256xbf16, #tpu.memory_space<vmem>>, vector<256x256xbf16>
    %c0_1 = arith.constant 0 : index
    %c0_2 = arith.constant 0 : index
    %1 = vector.load %arg2[%c0_1, %c0_2] : memref<256x128xbf16, #tpu.memory_space<vmem>>, vector<256x128xbf16>
    %cst = arith.constant dense<0.000000e+00> : vector<256x128xf32>
    %2 = tpu.matmul %0, %1, %cst {dimension_numbers = #tpu.dot_dimension_numbers<[1], [0], [0], [1], [0, 0, 1, 1], [], []>} : vector<256x256xbf16>, vector<256x128xbf16>, vector<256x128xf32> -> vector<256x128xf32>
    %c0_3 = arith.constant 0 : index
    %c0_4 = arith.constant 0 : index
    %3 = vector.load %arg3[%c0_3, %c0_4] : memref<1x128xf32, #tpu.memory_space<vmem>>, vector<1x128xf32>
    %4 = vector.broadcast %3 : vector<1x128xf32> to vector<256x128xf32>
    %5 = arith.mulf %2, %4 : vector<256x128xf32>
    %c0_5 = arith.constant 0 : index
    %c0_6 = arith.constant 0 : index
    %6 = vector.load %arg4[%c0_5, %c0_6] : memref<1x128xf32, #tpu.memory_space<vmem>>, vector<1x128xf32>
    %7 = vector.broadcast %6 : vector<1x128xf32> to vector<256x128xf32>
    %8 = arith.addf %5, %7 : vector<256x128xf32>
    %cst_7 = arith.constant 0.000000e+00 : f32
    %9 = vector.broadcast %cst_7 : f32 to vector<256x128xf32>
    %10 = arith.maximumf %8, %9 : vector<256x128xf32>
    %11 = arith.truncf %10 : vector<256x128xf32> to vector<256x128xbf16>
    %c0_8 = arith.constant 0 : index
    %c0_9 = arith.constant 0 : index
    %12 = vector.load %arg5[%c0_8, %c0_9] : memref<256x128xbf16, #tpu.memory_space<vmem>>, vector<256x128xbf16>
    tpu.vector_store %arg5[%c0_8, %c0_9], %11 {strides = array<i32>} : memref<256x128xbf16, #tpu.memory_space<vmem>>, vector<256x128xbf16>,
    return
  }
  func.func @transform_0(%arg0: i32) -> (i32, i32) {
    %c0_i32 = arith.constant 0 : i32
    %c0_i32_0 = arith.constant 0 : i32
    return %arg0, %c0_i32 : i32, i32
  }
  func.func @transform_1(%arg0: i32) -> (i32, i32) {
    %c0_i32 = arith.constant 0 : i32
    %c0_i32_0 = arith.constant 0 : i32
    %c0_i32_1 = arith.constant 0 : i32
    return %c0_i32, %c0_i32_0 : i32, i32
  }
  func.func @transform_2(%arg0: i32) -> (i32, i32) {
    %c0_i32 = arith.constant 0 : i32
    %c0_i32_0 = arith.constant 0 : i32
    %c0_i32_1 = arith.constant 0 : i32
    return %c0_i32, %c0_i32_0 : i32, i32
  }
  func.func @transform_3(%arg0: i32) -> (i32, i32) {
    %c0_i32 = arith.constant 0 : i32
    %c0_i32_0 = arith.constant 0 : i32
    %c0_i32_1 = arith.constant 0 : i32
    return %c0_i32, %c0_i32_0 : i32, i32
  }
  func.func @transform_4(%arg0: i32) -> (i32, i32) {
    %c0_i32 = arith.constant 0 : i32
    %c0_i32_0 = arith.constant 0 : i32
    return %arg0, %c0_i32 : i32, i32
  }
}

module attributes {stable_mosaic.version = 11 : i64} {
  func.func @_conv3x3_bn_relu_kernel(%arg0: i32, %arg1: memref<1x288x1152xbf16, #tpu.memory_space<vmem>>, %arg2: memref<3x1152x256xbf16, #tpu.memory_space<vmem>>, %arg3: memref<1x256xf32, #tpu.memory_space<vmem>>, %arg4: memref<1x256xf32, #tpu.memory_space<vmem>>, %arg5: memref<1x256x256xbf16, #tpu.memory_space<vmem>>) attributes {dimension_semantics = [#tpu.dimension_semantics<parallel>], iteration_bounds = array<i64: 2>, scalar_prefetch = 0 : i64, scratch_operands = 0 : i64, tpu.core_type = #tpu.core_type<tc>, window_params = [{transform_indices = @transform_0, window_bounds = array<i64: 1, 288, 1152>}, {pipeline_mode = #tpu.pipeline_mode<synchronous>, transform_indices = @transform_1, window_bounds = array<i64: 3, 1152, 256>}, {pipeline_mode = #tpu.pipeline_mode<synchronous>, transform_indices = @transform_2, window_bounds = array<i64: 1, 256>}, {pipeline_mode = #tpu.pipeline_mode<synchronous>, transform_indices = @transform_3, window_bounds = array<i64: 1, 256>}, {transform_indices = @transform_4, window_bounds = array<i64: 1, 256, 256>}]} {
    %c0 = arith.constant 0 : index
    %c0_0 = arith.constant 0 : index
    %c0_1 = arith.constant 0 : index
    %0 = vector.load %arg1[%c0, %c0_0, %c0_1] : memref<1x288x1152xbf16, #tpu.memory_space<vmem>>, vector<1x256x1152xbf16>
    %1 = vector.shape_cast %0 : vector<1x256x1152xbf16> to vector<256x1152xbf16>
    %c0_2 = arith.constant 0 : index
    %c0_3 = arith.constant 0 : index
    %c0_4 = arith.constant 0 : index
    %2 = vector.load %arg2[%c0_2, %c0_3, %c0_4] : memref<3x1152x256xbf16, #tpu.memory_space<vmem>>, vector<1x1152x256xbf16>
    %3 = vector.shape_cast %2 : vector<1x1152x256xbf16> to vector<1152x256xbf16>
    %cst = arith.constant dense<0.000000e+00> : vector<256x256xf32>
    %4 = tpu.matmul %1, %3, %cst {dimension_numbers = #tpu.dot_dimension_numbers<[1], [0], [0], [1], [0, 0, 1, 1], [], []>} : vector<256x1152xbf16>, vector<1152x256xbf16>, vector<256x256xf32> -> vector<256x256xf32>
    %c0_5 = arith.constant 0 : index
    %c16 = arith.constant 16 : index
    %c0_6 = arith.constant 0 : index
    %5 = vector.load %arg1[%c0_5, %c16, %c0_6] : memref<1x288x1152xbf16, #tpu.memory_space<vmem>>, vector<1x256x1152xbf16>
    %6 = vector.shape_cast %5 : vector<1x256x1152xbf16> to vector<256x1152xbf16>
    %c1 = arith.constant 1 : index
    %c0_7 = arith.constant 0 : index
    %c0_8 = arith.constant 0 : index
    %7 = vector.load %arg2[%c1, %c0_7, %c0_8] : memref<3x1152x256xbf16, #tpu.memory_space<vmem>>, vector<1x1152x256xbf16>
    %8 = vector.shape_cast %7 : vector<1x1152x256xbf16> to vector<1152x256xbf16>
    %cst_9 = arith.constant dense<0.000000e+00> : vector<256x256xf32>
    %9 = tpu.matmul %6, %8, %cst_9 {dimension_numbers = #tpu.dot_dimension_numbers<[1], [0], [0], [1], [0, 0, 1, 1], [], []>} : vector<256x1152xbf16>, vector<1152x256xbf16>, vector<256x256xf32> -> vector<256x256xf32>
    %10 = arith.addf %4, %9 : vector<256x256xf32>
    %c0_10 = arith.constant 0 : index
    %c32 = arith.constant 32 : index
    %c0_11 = arith.constant 0 : index
    %11 = vector.load %arg1[%c0_10, %c32, %c0_11] : memref<1x288x1152xbf16, #tpu.memory_space<vmem>>, vector<1x256x1152xbf16>
    %12 = vector.shape_cast %11 : vector<1x256x1152xbf16> to vector<256x1152xbf16>
    %c2 = arith.constant 2 : index
    %c0_12 = arith.constant 0 : index
    %c0_13 = arith.constant 0 : index
    %13 = vector.load %arg2[%c2, %c0_12, %c0_13] : memref<3x1152x256xbf16, #tpu.memory_space<vmem>>, vector<1x1152x256xbf16>
    %14 = vector.shape_cast %13 : vector<1x1152x256xbf16> to vector<1152x256xbf16>
    %cst_14 = arith.constant dense<0.000000e+00> : vector<256x256xf32>
    %15 = tpu.matmul %12, %14, %cst_14 {dimension_numbers = #tpu.dot_dimension_numbers<[1], [0], [0], [1], [0, 0, 1, 1], [], []>} : vector<256x1152xbf16>, vector<1152x256xbf16>, vector<256x256xf32> -> vector<256x256xf32>
    %16 = arith.addf %10, %15 : vector<256x256xf32>
    %c0_15 = arith.constant 0 : index
    %c0_16 = arith.constant 0 : index
    %17 = vector.load %arg3[%c0_15, %c0_16] : memref<1x256xf32, #tpu.memory_space<vmem>>, vector<1x256xf32>
    %18 = vector.broadcast %17 : vector<1x256xf32> to vector<256x256xf32>
    %19 = arith.mulf %16, %18 : vector<256x256xf32>
    %c0_17 = arith.constant 0 : index
    %c0_18 = arith.constant 0 : index
    %20 = vector.load %arg4[%c0_17, %c0_18] : memref<1x256xf32, #tpu.memory_space<vmem>>, vector<1x256xf32>
    %21 = vector.broadcast %20 : vector<1x256xf32> to vector<256x256xf32>
    %22 = arith.addf %19, %21 : vector<256x256xf32>
    %cst_19 = arith.constant 0.000000e+00 : f32
    %23 = vector.broadcast %cst_19 : f32 to vector<256x256xf32>
    %24 = arith.maximumf %22, %23 : vector<256x256xf32>
    %25 = arith.truncf %24 : vector<256x256xf32> to vector<256x256xbf16>
    %c0_20 = arith.constant 0 : index
    %c0_21 = arith.constant 0 : index
    %c0_22 = arith.constant 0 : index
    %26 = vector.load %arg5[%c0_20, %c0_21, %c0_22] : memref<1x256x256xbf16, #tpu.memory_space<vmem>>, vector<1x256x256xbf16>
    %27 = vector.shape_cast %26 : vector<1x256x256xbf16> to vector<256x256xbf16>
    %28 = vector.shape_cast %25 : vector<256x256xbf16> to vector<1x256x256xbf16>
    tpu.vector_store %arg5[%c0_20, %c0_21, %c0_22], %28 {strides = array<i32>} : memref<1x256x256xbf16, #tpu.memory_space<vmem>>, vector<1x256x256xbf16>,
    return
  }
  func.func @transform_0(%arg0: i32) -> (i32, i32, i32) {
    %c0_i32 = arith.constant 0 : i32
    %c0_i32_0 = arith.constant 0 : i32
    %c0_i32_1 = arith.constant 0 : i32
    return %arg0, %c0_i32, %c0_i32_0 : i32, i32, i32
  }
  func.func @transform_1(%arg0: i32) -> (i32, i32, i32) {
    %c0_i32 = arith.constant 0 : i32
    %c0_i32_0 = arith.constant 0 : i32
    %c0_i32_1 = arith.constant 0 : i32
    %c0_i32_2 = arith.constant 0 : i32
    return %c0_i32, %c0_i32_0, %c0_i32_1 : i32, i32, i32
  }
  func.func @transform_2(%arg0: i32) -> (i32, i32) {
    %c0_i32 = arith.constant 0 : i32
    %c0_i32_0 = arith.constant 0 : i32
    %c0_i32_1 = arith.constant 0 : i32
    return %c0_i32, %c0_i32_0 : i32, i32
  }
  func.func @transform_3(%arg0: i32) -> (i32, i32) {
    %c0_i32 = arith.constant 0 : i32
    %c0_i32_0 = arith.constant 0 : i32
    %c0_i32_1 = arith.constant 0 : i32
    return %c0_i32, %c0_i32_0 : i32, i32
  }
  func.func @transform_4(%arg0: i32) -> (i32, i32, i32) {
    %c0_i32 = arith.constant 0 : i32
    %c0_i32_0 = arith.constant 0 : i32
    %c0_i32_1 = arith.constant 0 : i32
    return %arg0, %c0_i32, %c0_i32_0 : i32, i32, i32
  }
}

module attributes {stable_mosaic.version = 11 : i64} {
  func.func @_conv3x3_bn_relu_cls_kernel(%arg0: i32, %arg1: memref<1x288x768xbf16, #tpu.memory_space<vmem>>, %arg2: memref<3x768x256xbf16, #tpu.memory_space<vmem>>, %arg3: memref<1x256xf32, #tpu.memory_space<vmem>>, %arg4: memref<1x256xf32, #tpu.memory_space<vmem>>, %arg5: memref<256x128xbf16, #tpu.memory_space<vmem>>, %arg6: memref<1x128xf32, #tpu.memory_space<vmem>>, %arg7: memref<1x256x128xf32, #tpu.memory_space<vmem>>) attributes {dimension_semantics = [#tpu.dimension_semantics<parallel>], iteration_bounds = array<i64: 2>, scalar_prefetch = 0 : i64, scratch_operands = 0 : i64, tpu.core_type = #tpu.core_type<tc>, window_params = [{transform_indices = @transform_0, window_bounds = array<i64: 1, 288, 768>}, {pipeline_mode = #tpu.pipeline_mode<synchronous>, transform_indices = @transform_1, window_bounds = array<i64: 3, 768, 256>}, {pipeline_mode = #tpu.pipeline_mode<synchronous>, transform_indices = @transform_2, window_bounds = array<i64: 1, 256>}, {pipeline_mode = #tpu.pipeline_mode<synchronous>, transform_indices = @transform_3, window_bounds = array<i64: 1, 256>}, {pipeline_mode = #tpu.pipeline_mode<synchronous>, transform_indices = @transform_4, window_bounds = array<i64: 256, 128>}, {pipeline_mode = #tpu.pipeline_mode<synchronous>, transform_indices = @transform_5, window_bounds = array<i64: 1, 128>}, {transform_indices = @transform_6, window_bounds = array<i64: 1, 256, 128>}]} {
    %c0 = arith.constant 0 : index
    %c0_0 = arith.constant 0 : index
    %c0_1 = arith.constant 0 : index
    %0 = vector.load %arg1[%c0, %c0_0, %c0_1] : memref<1x288x768xbf16, #tpu.memory_space<vmem>>, vector<1x256x768xbf16>
    %1 = vector.shape_cast %0 : vector<1x256x768xbf16> to vector<256x768xbf16>
    %c0_2 = arith.constant 0 : index
    %c0_3 = arith.constant 0 : index
    %c0_4 = arith.constant 0 : index
    %2 = vector.load %arg2[%c0_2, %c0_3, %c0_4] : memref<3x768x256xbf16, #tpu.memory_space<vmem>>, vector<1x768x256xbf16>
    %3 = vector.shape_cast %2 : vector<1x768x256xbf16> to vector<768x256xbf16>
    %cst = arith.constant dense<0.000000e+00> : vector<256x256xf32>
    %4 = tpu.matmul %1, %3, %cst {dimension_numbers = #tpu.dot_dimension_numbers<[1], [0], [0], [1], [0, 0, 1, 1], [], []>} : vector<256x768xbf16>, vector<768x256xbf16>, vector<256x256xf32> -> vector<256x256xf32>
    %c0_5 = arith.constant 0 : index
    %c16 = arith.constant 16 : index
    %c0_6 = arith.constant 0 : index
    %5 = vector.load %arg1[%c0_5, %c16, %c0_6] : memref<1x288x768xbf16, #tpu.memory_space<vmem>>, vector<1x256x768xbf16>
    %6 = vector.shape_cast %5 : vector<1x256x768xbf16> to vector<256x768xbf16>
    %c1 = arith.constant 1 : index
    %c0_7 = arith.constant 0 : index
    %c0_8 = arith.constant 0 : index
    %7 = vector.load %arg2[%c1, %c0_7, %c0_8] : memref<3x768x256xbf16, #tpu.memory_space<vmem>>, vector<1x768x256xbf16>
    %8 = vector.shape_cast %7 : vector<1x768x256xbf16> to vector<768x256xbf16>
    %cst_9 = arith.constant dense<0.000000e+00> : vector<256x256xf32>
    %9 = tpu.matmul %6, %8, %cst_9 {dimension_numbers = #tpu.dot_dimension_numbers<[1], [0], [0], [1], [0, 0, 1, 1], [], []>} : vector<256x768xbf16>, vector<768x256xbf16>, vector<256x256xf32> -> vector<256x256xf32>
    %10 = arith.addf %4, %9 : vector<256x256xf32>
    %c0_10 = arith.constant 0 : index
    %c32 = arith.constant 32 : index
    %c0_11 = arith.constant 0 : index
    %11 = vector.load %arg1[%c0_10, %c32, %c0_11] : memref<1x288x768xbf16, #tpu.memory_space<vmem>>, vector<1x256x768xbf16>
    %12 = vector.shape_cast %11 : vector<1x256x768xbf16> to vector<256x768xbf16>
    %c2 = arith.constant 2 : index
    %c0_12 = arith.constant 0 : index
    %c0_13 = arith.constant 0 : index
    %13 = vector.load %arg2[%c2, %c0_12, %c0_13] : memref<3x768x256xbf16, #tpu.memory_space<vmem>>, vector<1x768x256xbf16>
    %14 = vector.shape_cast %13 : vector<1x768x256xbf16> to vector<768x256xbf16>
    %cst_14 = arith.constant dense<0.000000e+00> : vector<256x256xf32>
    %15 = tpu.matmul %12, %14, %cst_14 {dimension_numbers = #tpu.dot_dimension_numbers<[1], [0], [0], [1], [0, 0, 1, 1], [], []>} : vector<256x768xbf16>, vector<768x256xbf16>, vector<256x256xf32> -> vector<256x256xf32>
    %16 = arith.addf %10, %15 : vector<256x256xf32>
    %c0_15 = arith.constant 0 : index
    %c0_16 = arith.constant 0 : index
    %17 = vector.load %arg3[%c0_15, %c0_16] : memref<1x256xf32, #tpu.memory_space<vmem>>, vector<1x256xf32>
    %18 = vector.broadcast %17 : vector<1x256xf32> to vector<256x256xf32>
    %19 = arith.mulf %16, %18 : vector<256x256xf32>
    %c0_17 = arith.constant 0 : index
    %c0_18 = arith.constant 0 : index
    %20 = vector.load %arg4[%c0_17, %c0_18] : memref<1x256xf32, #tpu.memory_space<vmem>>, vector<1x256xf32>
    %21 = vector.broadcast %20 : vector<1x256xf32> to vector<256x256xf32>
    %22 = arith.addf %19, %21 : vector<256x256xf32>
    %cst_19 = arith.constant 0.000000e+00 : f32
    %23 = vector.broadcast %cst_19 : f32 to vector<256x256xf32>
    %24 = arith.maximumf %22, %23 : vector<256x256xf32>
    %25 = arith.truncf %24 : vector<256x256xf32> to vector<256x256xbf16>
    %c0_20 = arith.constant 0 : index
    %c0_21 = arith.constant 0 : index
    %26 = vector.load %arg5[%c0_20, %c0_21] : memref<256x128xbf16, #tpu.memory_space<vmem>>, vector<256x128xbf16>
    %cst_22 = arith.constant dense<0.000000e+00> : vector<256x128xf32>
    %27 = tpu.matmul %25, %26, %cst_22 {dimension_numbers = #tpu.dot_dimension_numbers<[1], [0], [0], [1], [0, 0, 1, 1], [], []>} : vector<256x256xbf16>, vector<256x128xbf16>, vector<256x128xf32> -> vector<256x128xf32>
    %c0_23 = arith.constant 0 : index
    %c0_24 = arith.constant 0 : index
    %28 = vector.load %arg6[%c0_23, %c0_24] : memref<1x128xf32, #tpu.memory_space<vmem>>, vector<1x128xf32>
    %29 = vector.broadcast %28 : vector<1x128xf32> to vector<256x128xf32>
    %30 = arith.addf %27, %29 : vector<256x128xf32>
    %c0_25 = arith.constant 0 : index
    %c0_26 = arith.constant 0 : index
    %c0_27 = arith.constant 0 : index
    %31 = vector.load %arg7[%c0_25, %c0_26, %c0_27] : memref<1x256x128xf32, #tpu.memory_space<vmem>>, vector<1x256x128xf32>
    %32 = vector.shape_cast %31 : vector<1x256x128xf32> to vector<256x128xf32>
    %33 = vector.shape_cast %30 : vector<256x128xf32> to vector<1x256x128xf32>
    tpu.vector_store %arg7[%c0_25, %c0_26, %c0_27], %33 {strides = array<i32>} : memref<1x256x128xf32, #tpu.memory_space<vmem>>, vector<1x256x128xf32>,
    return
  }
  func.func @transform_0(%arg0: i32) -> (i32, i32, i32) {
    %c0_i32 = arith.constant 0 : i32
    %c0_i32_0 = arith.constant 0 : i32
    %c0_i32_1 = arith.constant 0 : i32
    return %arg0, %c0_i32, %c0_i32_0 : i32, i32, i32
  }
  func.func @transform_1(%arg0: i32) -> (i32, i32, i32) {
    %c0_i32 = arith.constant 0 : i32
    %c0_i32_0 = arith.constant 0 : i32
    %c0_i32_1 = arith.constant 0 : i32
    %c0_i32_2 = arith.constant 0 : i32
    return %c0_i32, %c0_i32_0, %c0_i32_1 : i32, i32, i32
  }
  func.func @transform_2(%arg0: i32) -> (i32, i32) {
    %c0_i32 = arith.constant 0 : i32
    %c0_i32_0 = arith.constant 0 : i32
    %c0_i32_1 = arith.constant 0 : i32
    return %c0_i32, %c0_i32_0 : i32, i32
  }
  func.func @transform_3(%arg0: i32) -> (i32, i32) {
    %c0_i32 = arith.constant 0 : i32
    %c0_i32_0 = arith.constant 0 : i32
    %c0_i32_1 = arith.constant 0 : i32
    return %c0_i32, %c0_i32_0 : i32, i32
  }
  func.func @transform_4(%arg0: i32) -> (i32, i32) {
    %c0_i32 = arith.constant 0 : i32
    %c0_i32_0 = arith.constant 0 : i32
    %c0_i32_1 = arith.constant 0 : i32
    return %c0_i32, %c0_i32_0 : i32, i32
  }
  func.func @transform_5(%arg0: i32) -> (i32, i32) {
    %c0_i32 = arith.constant 0 : i32
    %c0_i32_0 = arith.constant 0 : i32
    %c0_i32_1 = arith.constant 0 : i32
    return %c0_i32, %c0_i32_0 : i32, i32
  }
  func.func @transform_6(%arg0: i32) -> (i32, i32, i32) {
    %c0_i32 = arith.constant 0 : i32
    %c0_i32_0 = arith.constant 0 : i32
    %c0_i32_1 = arith.constant 0 : i32
    return %arg0, %c0_i32, %c0_i32_0 : i32, i32, i32
  }
}

</mosaic_0001>

<bundles_post_ra>
// kernel: decoder_forward.3
= control target key start
LH: loop header
LB: loop body
LE: loop exit
PB: predicated region body
PF: predicated region fallthrough
CT: control target
= control target key end

     0   :  { %s1467_s15 = smov 0   ;;  %s1662_s0 = inlined_call_operand.vmem [shape: bf16[512,256], index: 0, kind: input, shape index: {}]   ;;  %s1663_s1 = inlined_call_operand.vmem [shape: bf16[256,128], index: 1, kind: input, shape index: {}]   ;;  %s1664_s2 = inlined_call_operand.vmem [shape: f32[1,128], index: 2, kind: input, shape index: {}]   ;;  %s1665_s3 = inlined_call_operand.vmem [shape: f32[1,128], index: 3, kind: input, shape index: {}]   ;;  %s1666_s4 = inlined_call_operand.vmem [shape: bf16[512,128], index: 4, kind: output, shape index: {}]  }
   0x1 LB: > { %s1012_s16 = sadd.s32 4294967295, %s1440_s15   ;;  %p1016_p0 = scmp.ge.s32.totalorder %s1440_s15, 1  ;;  %s1440_s15 = sphi %s1467_s15, %s14_s15  }
   0x2   : > { %p164_p1 = scmp.lt.s32.totalorder %s1440_s15, 3 }
   0x4   : > { %p165_p2 = pnand %p1016_p0, %p164_p1 }
   0x5   : > { %v1370_v0 = vld [vmem:[%s1663_s1 + $0x40] sm:$0xff] (!%p165_p2)   ;;  %s1017_s19 = sshll.u32 (!%p165_p2), %s1012_s16, 5  ;;  %v1372_v2 = vld [vmem:[%s1663_s1 + $0x48] sm:$0xff] (!%p165_p2)   ;;  %v1374_v4 = vld [vmem:[%s1663_s1 + $0x50] sm:$0xff] (!%p165_p2)  }
   0x6   : > { %168 = sbr.rel (%p165_p2) target bundleno = 321 (0x141), region = 36  ;;  %v1371_v1 = vld [vmem:[%s1663_s1] sm:$0xff] (!%p165_p2)   ;;  %1234 = vmatprep.subr.bf16.mxu0 (!%p165_p2), %v1370_v0  ;;  %1346 = vmatprep.subr.bf16.mxu1 (!%p165_p2), %v1370_v0  ;;  %v1373_v3 = vld [vmem:[%s1663_s1 + $0x8] sm:$0xff] (!%p165_p2)   ;;  %p192_p3 = scmp.lt.s32.totalorder (!%p165_p2), %s1017_s19, 63  ;;  %v1375_v5 = vld [vmem:[%s1663_s1 + $0x10] sm:$0xff] (!%p165_p2)  }
   0x7   : > { %1235 = vmatpush3.bf16.msra.mxu0 (!%p165_p2), %v1371_v1  ;;  %1354 = vmatpush3.bf16.msra.mxu1 (!%p165_p2), %v1371_v1  ;;  %v1376_v6 = vld [vmem:[%s1663_s1 + $0x58] sm:$0xff] (!%p165_p2)   ;;  %v1378_v8 = vld [vmem:[%s1663_s1 + $0x60] sm:$0xff] (!%p165_p2)   ;;  %v1380_v10 = vld [vmem:[%s1663_s1 + $0x68] sm:$0xff] (!%p165_p2)  }
   0x8   : > { %1236 = vmatprep.subr.bf16.mxu0 (!%p165_p2), %v1372_v2  ;;  %1347 = vmatprep.subr.bf16.mxu1 (!%p165_p2), %v1372_v2  ;;  %v1377_v7 = vld [vmem:[%s1663_s1 + $0x18] sm:$0xff] (!%p165_p2)   ;;  %v1379_v9 = vld [vmem:[%s1663_s1 + $0x20] sm:$0xff] (!%p165_p2)   ;;  %v1381_v13 = vld [vmem:[%s1663_s1 + $0x28] sm:$0xff] (!%p165_p2)  }
   0x9   : > { %v1382_v14 = vld [vmem:[%s1663_s1 + $0x70] sm:$0xff] (!%p165_p2)   ;;  %v1384_v16 = vld [vmem:[%s1663_s1 + $0x78] sm:$0xff] (!%p165_p2)   ;;  %v1566_v51 = vld [vmem:[%s1664_s2] ss:$0 sm:$0xff] (!%p165_p2) }
   0xa   : > { %v1383_v15 = vld [vmem:[%s1663_s1 + $0x30] sm:$0xff] (!%p165_p2)   ;;  %v1385_v17 = vld [vmem:[%s1663_s1 + $0x38] sm:$0xff] (!%p165_p2)   ;;  %v1571_v57 = vld [vmem:[%s1665_s3] ss:$0 sm:$0xff] (!%p165_p2) }
   0xb   : > { %1237 = vmatpush3.bf16.msra.mxu0 (!%p165_p2), %v1373_v3  ;;  %1355 = vmatpush3.bf16.msra.mxu1 (!%p165_p2), %v1373_v3 }
   0xc   : > { %1238 = vmatprep.subr.bf16.mxu0 (!%p165_p2), %v1374_v4  ;;  %1348 = vmatprep.subr.bf16.mxu1 (!%p165_p2), %v1374_v4 }
   0xd   : > { %s1668_s19 = smov (!%p192_p3, %s1017_s19), 63 }
   0xe   : > { %s1106_s8 = sshll.u32 %s1668_s19, 3 }
   0xf   : > { %1239 = vmatpush3.bf16.msra.mxu0 %v1375_v5  ;;  %1356 = vmatpush3.bf16.msra.mxu1 %v1375_v5  ;;  %s1508_s13 = scalar_lea.vmem %s1662_s0, %s1106_s8  ;;  %s1021_s8 = sshll.u32 %s1668_s19, 2 }
  0x10   : > { %1240 = vmatprep.subr.bf16.mxu0 %v1376_v6  ;;  %1349 = vmatprep.subr.bf16.mxu1 %v1376_v6  ;;  %v1388_v11 = vld [vmem:[%s1508_s13 + $0x4] ss:$8 sps:$4 sm:$0xff]   ;;  %v1386_v18 = vld [vmem:[%s1508_s13] ss:$8 sps:$4 sm:$0xff]   ;;  %v1392_v20 = vld [vmem:[%s1508_s13 + $0x14] ss:$8 sps:$4 sm:$0xff]   ;;  %s1585_s19 = scalar_lea.vmem %s1666_s4, %s1021_s8 }
  0x11   : > { %v1391_v12 = vld [vmem:[%s1508_s13 + $0x84] ss:$8 sps:$4 sm:$0xff]   ;;  %557 = vmatprep.mubr.bf16.mxu0 %v1388_v11  ;;  %v1389_v19 = vld [vmem:[%s1508_s13 + $0x80] ss:$8 sps:$4 sm:$0xff]   ;;  %v1394_v21 = vld [vmem:[%s1508_s13 + $0x94] ss:$8 sps:$4 sm:$0xff]  }
  0x12   : > { %621 = vmatprep.mubr.bf16.mxu1 %v1391_v12  ;;  %v1396_v22 = vld [vmem:[%s1508_s13 + $0x10] ss:$8 sps:$4 sm:$0xff]   ;;  %v1398_v24 = vld [vmem:[%s1508_s13 + $0x24] ss:$8 sps:$4 sm:$0xff]   ;;  %v1402_v26 = vld [vmem:[%s1508_s13 + $0x20] ss:$8 sps:$4 sm:$0xff]  }
  0x13   : > { %1241 = vmatpush3.bf16.msra.mxu0 %v1377_v7  ;;  %1357 = vmatpush3.bf16.msra.mxu1 %v1377_v7  ;;  %v1397_v23 = vld [vmem:[%s1508_s13 + $0x90] ss:$8 sps:$4 sm:$0xff]   ;;  %v1400_v25 = vld [vmem:[%s1508_s13 + $0xa4] ss:$8 sps:$4 sm:$0xff]   ;;  %v1403_v27 = vld [vmem:[%s1508_s13 + $0xa0] ss:$8 sps:$4 sm:$0xff]  }
  0x14   : > { %1242 = vmatprep.subr.bf16.mxu0 %v1378_v8  ;;  %1350 = vmatprep.subr.bf16.mxu1 %v1378_v8  ;;  %v1404_v28 = vld [vmem:[%s1508_s13 + $0x34] ss:$8 sps:$4 sm:$0xff]   ;;  %v1408_v30 = vld [vmem:[%s1508_s13 + $0x30] ss:$8 sps:$4 sm:$0xff]   ;;  %v1410_v32 = vld [vmem:[%s1508_s13 + $0x44] ss:$8 sps:$4 sm:$0xff]  }
  0x15   : > { %v1406_v29 = vld [vmem:[%s1508_s13 + $0xb4] ss:$8 sps:$4 sm:$0xff]   ;;  %v1409_v31 = vld [vmem:[%s1508_s13 + $0xb0] ss:$8 sps:$4 sm:$0xff]   ;;  %v1412_v33 = vld [vmem:[%s1508_s13 + $0xc4] ss:$8 sps:$4 sm:$0xff]  }
  0x16   : > { %v1414_v34 = vld [vmem:[%s1508_s13 + $0x40] ss:$8 sps:$4 sm:$0xff]   ;;  %v1416_v36 = vld [vmem:[%s1508_s13 + $0x54] ss:$8 sps:$4 sm:$0xff]   ;;  %v1420_v38 = vld [vmem:[%s1508_s13 + $0x50] ss:$8 sps:$4 sm:$0xff]  }
  0x17   : > { %1243 = vmatpush3.bf16.msra.mxu0 %v1379_v9  ;;  %1358 = vmatpush3.bf16.msra.mxu1 %v1379_v9  ;;  %v1415_v35 = vld [vmem:[%s1508_s13 + $0xc0] ss:$8 sps:$4 sm:$0xff]   ;;  %v1418_v37 = vld [vmem:[%s1508_s13 + $0xd4] ss:$8 sps:$4 sm:$0xff]   ;;  %v1421_v39 = vld [vmem:[%s1508_s13 + $0xd0] ss:$8 sps:$4 sm:$0xff]  }
  0x18   : > { %1244 = vmatprep.subr.bf16.mxu0 %v1380_v10  ;;  %1351 = vmatprep.subr.bf16.mxu1 %v1380_v10  ;;  %v1422_v40 = vld [vmem:[%s1508_s13 + $0x64] ss:$8 sps:$4 sm:$0xff]   ;;  %v1426_v42 = vld [vmem:[%s1508_s13 + $0x60] ss:$8 sps:$4 sm:$0xff]   ;;  %v1428_v44 = vld [vmem:[%s1508_s13 + $0x74] ss:$8 sps:$4 sm:$0xff]  }
  0x19   : > { %v1424_v41 = vld [vmem:[%s1508_s13 + $0xe4] ss:$8 sps:$4 sm:$0xff]   ;;  %v1427_v43 = vld [vmem:[%s1508_s13 + $0xe0] ss:$8 sps:$4 sm:$0xff]   ;;  %v1430_v45 = vld [vmem:[%s1508_s13 + $0xf4] ss:$8 sps:$4 sm:$0xff]  }
  0x1a   : > { %v1432_v46 = vld [vmem:[%s1508_s13 + $0x70] ss:$8 sps:$4 sm:$0xff]  }
  0x1b   : > { %1245 = vmatpush3.bf16.msra.mxu0 %v1381_v13  ;;  %1359 = vmatpush3.bf16.msra.mxu1 %v1381_v13  ;;  %v1433_v47 = vld [vmem:[%s1508_s13 + $0xf0] ss:$8 sps:$4 sm:$0xff]  }
  0x1c   : > { %1246 = vmatprep.subr.bf16.mxu0 %v1382_v14  ;;  %1352 = vmatprep.subr.bf16.mxu1 %v1382_v14 }
  0x1f   : > { %1247 = vmatpush3.bf16.msra.mxu0 %v1383_v15  ;;  %1360 = vmatpush3.bf16.msra.mxu1 %v1383_v15 }
  0x20   : > { %1248 = vmatprep.subr.bf16.mxu0 %v1384_v16  ;;  %1353 = vmatprep.subr.bf16.mxu1 %v1384_v16 }
  0x23   : > { %1249 = vmatpush3.bf16.msra.mxu0 %v1385_v17  ;;  %1361 = vmatpush3.bf16.msra.mxu1 %v1385_v17 }
  0x26   : > { %558 = vmatmul.mubr.bf16.vlgmr.msra.gmra.mrb[0].mxu0 %v1386_v18  ;;  %622 = vmatmul.mubr.bf16.vlgmr.msra.gmra.mrb[0].mxu1 %v1389_v19 }
  0x27   : > { %565 = vmatprep.mubr.bf16.mxu0 %v1392_v20  ;;  %629 = vmatprep.mubr.bf16.mxu1 %v1394_v21 }
  0x2e   : > { %566 = vmatmul.mubr.bf16.gmra.mrb[4].mxu0 %v1396_v22  ;;  %630 = vmatmul.mubr.bf16.gmra.mrb[4].mxu1 %v1397_v23 }
  0x2f   : > { %573 = vmatprep.mubr.bf16.mxu0 %v1398_v24  ;;  %637 = vmatprep.mubr.bf16.mxu1 %v1400_v25 }
  0x36   : > { %574 = vmatmul.mubr.bf16.gmra.mrb[8].mxu0 %v1402_v26  ;;  %638 = vmatmul.mubr.bf16.gmra.mrb[8].mxu1 %v1403_v27 }
  0x37   : > { %581 = vmatprep.mubr.bf16.mxu0 %v1404_v28  ;;  %645 = vmatprep.mubr.bf16.mxu1 %v1406_v29 }
  0x3e   : > { %582 = vmatmul.mubr.bf16.gmra.mrb[12].mxu0 %v1408_v30  ;;  %646 = vmatmul.mubr.bf16.gmra.mrb[12].mxu1 %v1409_v31 }
  0x3f   : > { %589 = vmatprep.mubr.bf16.mxu0 %v1410_v32  ;;  %653 = vmatprep.mubr.bf16.mxu1 %v1412_v33 }
  0x46   : > { %590 = vmatmul.mubr.bf16.gmra.mrb[16].mxu0 %v1414_v34  ;;  %654 = vmatmul.mubr.bf16.gmra.mrb[16].mxu1 %v1415_v35 }
  0x47   : > { %597 = vmatprep.mubr.bf16.mxu0 %v1416_v36  ;;  %661 = vmatprep.mubr.bf16.mxu1 %v1418_v37 }
  0x4e   : > { %598 = vmatmul.mubr.bf16.gmra.mrb[20].mxu0 %v1420_v38  ;;  %662 = vmatmul.mubr.bf16.gmra.mrb[20].mxu1 %v1421_v39 }
  0x4f   : > { %605 = vmatprep.mubr.bf16.mxu0 %v1422_v40  ;;  %669 = vmatprep.mubr.bf16.mxu1 %v1424_v41 }
  0x56   : > { %606 = vmatmul.mubr.bf16.gmra.mrb[24].mxu0 %v1426_v42  ;;  %670 = vmatmul.mubr.bf16.gmra.mrb[24].mxu1 %v1427_v43 }
  0x57   : > { %613 = vmatprep.mubr.bf16.mxu0 %v1428_v44  ;;  %677 = vmatprep.mubr.bf16.mxu1 %v1430_v45 }
  0x5e   : > { %614 = vmatmul.mubr.bf16.gmra.mrb[28].mxu0 %v1432_v46  ;;  %678 = vmatmul.mubr.bf16.gmra.mrb[28].mxu1 %v1433_v47 }
  0xf9   : > { %v1250_v48 = vpop.f32.mrb[0].mxu0  ;;  %v1298_v49 = vpop.f32.mrb[0].mxu1 }
  0xfa   : > { %v1251_v50 = vpop.f32.mrb[1].mxu0  ;;  %v1299_v52 = vpop.f32.mrb[1].mxu1 }
  0xfb   : > { %v1252_v53 = vadd.f32 %v1251_v50, %v1250_v48  ;;  %v1300_v54 = vadd.f32 %v1299_v52, %v1298_v49  ;;  %v1253_v55 = vpop.f32.mrb[2].mxu0  ;;  %v1301_v56 = vpop.f32.mrb[2].mxu1 }
  0xfc   : > { %v1254_v58 = vpop.f32.mrb[3].mxu0  ;;  %v1302_v59 = vpop.f32.mrb[3].mxu1 }
  0xfd   : > { %v693_v60 = vmul.f32 %v1252_v53, %v1566_v51  ;;  %v709_v61 = vmul.f32 %v1300_v54, %v1566_v51  ;;  %v1255_v62 = vadd.f32 %v1254_v58, %v1253_v55  ;;  %v1303_v63 = vadd.f32 %v1302_v59, %v1301_v56 }
  0xff   : > { %v732_v0 = vadd.f32 %v1571_v57, %v693_v60  ;;  %v748_v1 = vadd.f32 %v1571_v57, %v709_v61  ;;  %v694_v2 = vmul.f32 %v1255_v62, %v1566_v51  ;;  %v710_v3 = vmul.f32 %v1303_v63, %v1566_v51 }
 0x101   : > { %v733_v4 = vadd.f32 %v1571_v57, %v694_v2  ;;  %v749_v5 = vadd.f32 %v1571_v57, %v710_v3  ;;  %v1256_v6 = vpop.f32.mrb[4].mxu0  ;;  %v1304_v7 = vpop.f32.mrb[4].mxu1  ;;  %v764_v8 = vmax.f32 %v732_v0, 0.0  ;;  %v780_v9 = vmax.f32 %v748_v1, 0.0 }
 0x102   : > { %v1257_v10 = vpop.f32.mrb[5].mxu0  ;;  %v1305_v11 = vpop.f32.mrb[5].mxu1 }
 0x103   : > { %v765_v12 = vmax.f32 %v733_v4, 0.0  ;;  %v781_v13 = vmax.f32 %v749_v5, 0.0  ;;  %v1258_v14 = vadd.f32 %v1257_v10, %v1256_v6  ;;  %v1306_v15 = vadd.f32 %v1305_v11, %v1304_v7  ;;  %v1259_v16 = vpop.f32.mrb[6].mxu0  ;;  %v1307_v17 = vpop.f32.mrb[6].mxu1 }
 0x104   : > { %v1260_v18 = vpop.f32.mrb[7].mxu0  ;;  %v1308_v19 = vpop.f32.mrb[7].mxu1 }
 0x105   : > { %v1142_v20 = vpack.c.bf16 %v765_v12, %v764_v8  ;;  %v1182_v21 = vpack.c.bf16 %v781_v13, %v780_v9  ;;  %v695_v22 = vmul.f32 %v1258_v14, %v1566_v51  ;;  %v711_v23 = vmul.f32 %v1306_v15, %v1566_v51 }
 0x106   : > { %v1261_v24 = vadd.f32 %v1260_v18, %v1259_v16  ;;  %v1309_v25 = vadd.f32 %v1308_v19, %v1307_v17 }
 0x107   : > { %1143 = vst [vmem:[%s1585_s19] sm:$0xff] %v1142_v20   ;;  %1226 = vst [vmem:[%s1585_s19 + $0x40] sm:$0xff] %v1182_v21   ;;  %v734_v26 = vadd.f32 %v1571_v57, %v695_v22  ;;  %v750_v27 = vadd.f32 %v1571_v57, %v711_v23 }
 0x108   : > { %v696_v28 = vmul.f32 %v1261_v24, %v1566_v51  ;;  %v712_v29 = vmul.f32 %v1309_v25, %v1566_v51 }
 0x109   : > { %v1262_v30 = vpop.f32.mrb[8].mxu0  ;;  %v1310_v31 = vpop.f32.mrb[8].mxu1  ;;  %v766_v40 = vmax.f32 %v734_v26, 0.0  ;;  %v782_v41 = vmax.f32 %v750_v27, 0.0 }
 0x10a   : > { %v735_v32 = vadd.f32 %v1571_v57, %v696_v28  ;;  %v751_v33 = vadd.f32 %v1571_v57, %v712_v29  ;;  %v1263_v34 = vpop.f32.mrb[9].mxu0  ;;  %v1311_v35 = vpop.f32.mrb[9].mxu1 }
 0x10b   : > { %v1264_v36 = vadd.f32 %v1263_v34, %v1262_v30  ;;  %v1312_v37 = vadd.f32 %v1311_v35, %v1310_v31  ;;  %v1265_v38 = vpop.f32.mrb[10].mxu0  ;;  %v1313_v39 = vpop.f32.mrb[10].mxu1 }
 0x10c   : > { %v767_v42 = vmax.f32 %v735_v32, 0.0  ;;  %v783_v43 = vmax.f32 %v751_v33, 0.0  ;;  %v1266_v44 = vpop.f32.mrb[11].mxu0  ;;  %v1314_v45 = vpop.f32.mrb[11].mxu1 }
 0x10d   : > { %v697_v46 = vmul.f32 %v1264_v36, %v1566_v51  ;;  %v713_v47 = vmul.f32 %v1312_v37, %v1566_v51  ;;  %v1267_v48 = vadd.f32 %v1266_v44, %v1265_v38  ;;  %v1315_v49 = vadd.f32 %v1314_v45, %v1313_v39 }
 0x10e   : > { %v1147_v50 = vpack.c.bf16 %v767_v42, %v766_v40  ;;  %v1187_v52 = vpack.c.bf16 %v783_v43, %v782_v41 }
 0x10f   : > { %v736_v53 = vadd.f32 %v1571_v57, %v697_v46  ;;  %v752_v54 = vadd.f32 %v1571_v57, %v713_v47  ;;  %v698_v55 = vmul.f32 %v1267_v48, %v1566_v51  ;;  %v714_v56 = vmul.f32 %v1315_v49, %v1566_v51 }
 0x110   : > { %1219 = vst [vmem:[%s1585_s19 + $0x8] sm:$0xff] %v1147_v50   ;;  %1227 = vst [vmem:[%s1585_s19 + $0x48] sm:$0xff] %v1187_v52  }
 0x111   : > { %v737_v58 = vadd.f32 %v1571_v57, %v698_v55  ;;  %v753_v59 = vadd.f32 %v1571_v57, %v714_v56  ;;  %v1268_v60 = vpop.f32.mrb[12].mxu0  ;;  %v1316_v61 = vpop.f32.mrb[12].mxu1  ;;  %v768_v62 = vmax.f32 %v736_v53, 0.0  ;;  %v784_v63 = vmax.f32 %v752_v54, 0.0 }
 0x112   : > { %v1269_v0 = vpop.f32.mrb[13].mxu0  ;;  %v1317_v1 = vpop.f32.mrb[13].mxu1 }
 0x113   : > { %v769_v2 = vmax.f32 %v737_v58, 0.0  ;;  %v785_v3 = vmax.f32 %v753_v59, 0.0  ;;  %v1270_v4 = vadd.f32 %v1269_v0, %v1268_v60  ;;  %v1318_v5 = vadd.f32 %v1317_v1, %v1316_v61  ;;  %v1271_v6 = vpop.f32.mrb[14].mxu0  ;;  %v1319_v7 = vpop.f32.mrb[14].mxu1 }
 0x114   : > { %v1272_v8 = vpop.f32.mrb[15].mxu0  ;;  %v1320_v9 = vpop.f32.mrb[15].mxu1 }
 0x115   : > { %v1152_v10 = vpack.c.bf16 %v769_v2, %v768_v62  ;;  %v1192_v11 = vpack.c.bf16 %v785_v3, %v784_v63  ;;  %v699_v12 = vmul.f32 %v1270_v4, %v1566_v51  ;;  %v715_v13 = vmul.f32 %v1318_v5, %v1566_v51 }
 0x116   : > { %v1273_v14 = vadd.f32 %v1272_v8, %v1271_v6  ;;  %v1321_v15 = vadd.f32 %v1320_v9, %v1319_v7 }
 0x117   : > { %1220 = vst [vmem:[%s1585_s19 + $0x10] sm:$0xff] %v1152_v10   ;;  %1228 = vst [vmem:[%s1585_s19 + $0x50] sm:$0xff] %v1192_v11   ;;  %v738_v16 = vadd.f32 %v1571_v57, %v699_v12  ;;  %v754_v17 = vadd.f32 %v1571_v57, %v715_v13 }
 0x118   : > { %v700_v18 = vmul.f32 %v1273_v14, %v1566_v51  ;;  %v716_v19 = vmul.f32 %v1321_v15, %v1566_v51 }
 0x119   : > { %v1274_v20 = vpop.f32.mrb[16].mxu0  ;;  %v1322_v21 = vpop.f32.mrb[16].mxu1  ;;  %v770_v30 = vmax.f32 %v738_v16, 0.0  ;;  %v786_v31 = vmax.f32 %v754_v17, 0.0 }
 0x11a   : > { %v739_v22 = vadd.f32 %v1571_v57, %v700_v18  ;;  %v755_v23 = vadd.f32 %v1571_v57, %v716_v19  ;;  %v1275_v24 = vpop.f32.mrb[17].mxu0  ;;  %v1323_v25 = vpop.f32.mrb[17].mxu1 }
 0x11b   : > { %v1276_v26 = vadd.f32 %v1275_v24, %v1274_v20  ;;  %v1324_v27 = vadd.f32 %v1323_v25, %v1322_v21  ;;  %v1277_v28 = vpop.f32.mrb[18].mxu0  ;;  %v1325_v29 = vpop.f32.mrb[18].mxu1 }
 0x11c   : > { %v771_v32 = vmax.f32 %v739_v22, 0.0  ;;  %v787_v33 = vmax.f32 %v755_v23, 0.0  ;;  %v1278_v34 = vpop.f32.mrb[19].mxu0  ;;  %v1326_v35 = vpop.f32.mrb[19].mxu1 }
 0x11d   : > { %v701_v36 = vmul.f32 %v1276_v26, %v1566_v51  ;;  %v717_v37 = vmul.f32 %v1324_v27, %v1566_v51  ;;  %v1279_v38 = vadd.f32 %v1278_v34, %v1277_v28  ;;  %v1327_v39 = vadd.f32 %v1326_v35, %v1325_v29 }
 0x11e   : > { %v1157_v40 = vpack.c.bf16 %v771_v32, %v770_v30  ;;  %v1197_v41 = vpack.c.bf16 %v787_v33, %v786_v31 }
 0x11f   : > { %v740_v42 = vadd.f32 %v1571_v57, %v701_v36  ;;  %v756_v43 = vadd.f32 %v1571_v57, %v717_v37  ;;  %v702_v44 = vmul.f32 %v1279_v38, %v1566_v51  ;;  %v718_v45 = vmul.f32 %v1327_v39, %v1566_v51 }
 0x120   : > { %1221 = vst [vmem:[%s1585_s19 + $0x18] sm:$0xff] %v1157_v40   ;;  %1229 = vst [vmem:[%s1585_s19 + $0x58] sm:$0xff] %v1197_v41  }
 0x121   : > { %v741_v46 = vadd.f32 %v1571_v57, %v702_v44  ;;  %v757_v47 = vadd.f32 %v1571_v57, %v718_v45  ;;  %v1280_v48 = vpop.f32.mrb[20].mxu0  ;;  %v1328_v49 = vpop.f32.mrb[20].mxu1  ;;  %v772_v50 = vmax.f32 %v740_v42, 0.0  ;;  %v788_v52 = vmax.f32 %v756_v43, 0.0 }
 0x122   : > { %v1281_v53 = vpop.f32.mrb[21].mxu0  ;;  %v1329_v54 = vpop.f32.mrb[21].mxu1 }
 0x123   : > { %v773_v55 = vmax.f32 %v741_v46, 0.0  ;;  %v789_v56 = vmax.f32 %v757_v47, 0.0  ;;  %v1282_v58 = vadd.f32 %v1281_v53, %v1280_v48  ;;  %v1330_v59 = vadd.f32 %v1329_v54, %v1328_v49  ;;  %v1283_v60 = vpop.f32.mrb[22].mxu0  ;;  %v1331_v61 = vpop.f32.mrb[22].mxu1 }
 0x124   : > { %v1284_v62 = vpop.f32.mrb[23].mxu0  ;;  %v1332_v63 = vpop.f32.mrb[23].mxu1 }
 0x125   : > { %v1162_v0 = vpack.c.bf16 %v773_v55, %v772_v50  ;;  %v1202_v1 = vpack.c.bf16 %v789_v56, %v788_v52  ;;  %v703_v2 = vmul.f32 %v1282_v58, %v1566_v51  ;;  %v719_v3 = vmul.f32 %v1330_v59, %v1566_v51 }
 0x126   : > { %v1285_v4 = vadd.f32 %v1284_v62, %v1283_v60  ;;  %v1333_v5 = vadd.f32 %v1332_v63, %v1331_v61 }
 0x127   : > { %1222 = vst [vmem:[%s1585_s19 + $0x20] sm:$0xff] %v1162_v0   ;;  %1230 = vst [vmem:[%s1585_s19 + $0x60] sm:$0xff] %v1202_v1   ;;  %v742_v6 = vadd.f32 %v1571_v57, %v703_v2  ;;  %v758_v7 = vadd.f32 %v1571_v57, %v719_v3 }
 0x128   : > { %v704_v8 = vmul.f32 %v1285_v4, %v1566_v51  ;;  %v720_v9 = vmul.f32 %v1333_v5, %v1566_v51 }
 0x129   : > { %v1286_v10 = vpop.f32.mrb[24].mxu0  ;;  %v1334_v11 = vpop.f32.mrb[24].mxu1  ;;  %v774_v20 = vmax.f32 %v742_v6, 0.0  ;;  %v790_v21 = vmax.f32 %v758_v7, 0.0 }
 0x12a   : > { %v743_v12 = vadd.f32 %v1571_v57, %v704_v8  ;;  %v759_v13 = vadd.f32 %v1571_v57, %v720_v9  ;;  %v1287_v14 = vpop.f32.mrb[25].mxu0  ;;  %v1335_v15 = vpop.f32.mrb[25].mxu1 }
 0x12b   : > { %v1288_v16 = vadd.f32 %v1287_v14, %v1286_v10  ;;  %v1336_v17 = vadd.f32 %v1335_v15, %v1334_v11  ;;  %v1289_v18 = vpop.f32.mrb[26].mxu0  ;;  %v1337_v19 = vpop.f32.mrb[26].mxu1 }
 0x12c   : > { %v775_v22 = vmax.f32 %v743_v12, 0.0  ;;  %v791_v23 = vmax.f32 %v759_v13, 0.0  ;;  %v1290_v24 = vpop.f32.mrb[27].mxu0  ;;  %v1338_v25 = vpop.f32.mrb[27].mxu1 }
 0x12d   : > { %v705_v26 = vmul.f32 %v1288_v16, %v1566_v51  ;;  %v721_v27 = vmul.f32 %v1336_v17, %v1566_v51  ;;  %v1291_v28 = vadd.f32 %v1290_v24, %v1289_v18  ;;  %v1339_v29 = vadd.f32 %v1338_v25, %v1337_v19 }
 0x12e   : > { %v1167_v30 = vpack.c.bf16 %v775_v22, %v774_v20  ;;  %v1207_v31 = vpack.c.bf16 %v791_v23, %v790_v21 }
 0x12f   : > { %v744_v32 = vadd.f32 %v1571_v57, %v705_v26  ;;  %v760_v33 = vadd.f32 %v1571_v57, %v721_v27  ;;  %v706_v34 = vmul.f32 %v1291_v28, %v1566_v51  ;;  %v722_v35 = vmul.f32 %v1339_v29, %v1566_v51 }
 0x130   : > { %1223 = vst [vmem:[%s1585_s19 + $0x28] sm:$0xff] %v1167_v30   ;;  %1231 = vst [vmem:[%s1585_s19 + $0x68] sm:$0xff] %v1207_v31  }
 0x131   : > { %v745_v36 = vadd.f32 %v1571_v57, %v706_v34  ;;  %v761_v37 = vadd.f32 %v1571_v57, %v722_v35  ;;  %v1292_v38 = vpop.f32.mrb[28].mxu0  ;;  %v1340_v39 = vpop.f32.mrb[28].mxu1  ;;  %v776_v40 = vmax.f32 %v744_v32, 0.0  ;;  %v792_v41 = vmax.f32 %v760_v33, 0.0 }
 0x132   : > { %v1293_v42 = vpop.f32.mrb[29].mxu0  ;;  %v1341_v43 = vpop.f32.mrb[29].mxu1 }
 0x133   : > { %v777_v44 = vmax.f32 %v745_v36, 0.0  ;;  %v793_v45 = vmax.f32 %v761_v37, 0.0  ;;  %v1294_v46 = vadd.f32 %v1293_v42, %v1292_v38  ;;  %v1342_v47 = vadd.f32 %v1341_v43, %v1340_v39  ;;  %v1295_v48 = vpop.f32.mrb[30].mxu0  ;;  %v1343_v49 = vpop.f32.mrb[30].mxu1 }
 0x134   : > { %v1296_v50 = vpop.f32.mrb[31].mxu0  ;;  %v1344_v52 = vpop.f32.mrb[31].mxu1 }
 0x135   : > { %v1172_v53 = vpack.c.bf16 %v777_v44, %v776_v40  ;;  %v1212_v54 = vpack.c.bf16 %v793_v45, %v792_v41  ;;  %v707_v55 = vmul.f32 %v1294_v46, %v1566_v51  ;;  %v723_v56 = vmul.f32 %v1342_v47, %v1566_v51 }
 0x136   : > { %v1297_v58 = vadd.f32 %v1296_v50, %v1295_v48  ;;  %v1345_v59 = vadd.f32 %v1344_v52, %v1343_v49 }
 0x137   : > { %1224 = vst [vmem:[%s1585_s19 + $0x30] sm:$0xff] %v1172_v53   ;;  %1232 = vst [vmem:[%s1585_s19 + $0x70] sm:$0xff] %v1212_v54   ;;  %v746_v60 = vadd.f32 %v1571_v57, %v707_v55  ;;  %v762_v61 = vadd.f32 %v1571_v57, %v723_v56 }
 0x138   : > { %v708_v62 = vmul.f32 %v1297_v58, %v1566_v51  ;;  %v724_v63 = vmul.f32 %v1345_v59, %v1566_v51 }
 0x139   : > { %v778_v2 = vmax.f32 %v746_v60, 0.0  ;;  %v794_v3 = vmax.f32 %v762_v61, 0.0 }
 0x13a   : > { %v747_v0 = vadd.f32 %v1571_v57, %v708_v62  ;;  %v763_v1 = vadd.f32 %v1571_v57, %v724_v63 }
 0x13c   : > { %v779_v4 = vmax.f32 %v747_v0, 0.0  ;;  %v795_v5 = vmax.f32 %v763_v1, 0.0 }
 0x13e   : > { %v1177_v6 = vpack.c.bf16 %v779_v4, %v778_v2  ;;  %v1217_v7 = vpack.c.bf16 %v795_v5, %v794_v3 }
 0x140   : > { %1225 = vst [vmem:[%s1585_s19 + $0x38] sm:$0xff] %v1177_v6   ;;  %1233 = vst [vmem:[%s1585_s19 + $0x78] sm:$0xff] %v1217_v7  }
 0x141 PF: > { %s14_s15 = sadd.s32 1, %s1440_s15  }
 0x142   : > { %p11_p4 = scmp.ge.s32.totalorder %s14_s15, 4  }
 0x144   :  { %13 = sbr.rel (!%p11_p4) target bundleno = 1 (0x1), region = 66 }

// kernel: decoder_forward.4
= control target key start
LH: loop header
LB: loop body
LE: loop exit
PB: predicated region body
PF: predicated region fallthrough
CT: control target
= control target key end

     0   :  { %s11403_s15 = smov 0   ;;  %s13976_s0 = inlined_call_operand.vmem [shape: bf16[2,288,1152], index: 0, kind: input, shape index: {}]   ;;  %s13977_s1 = inlined_call_operand.vmem [shape: bf16[3,1152,256], index: 1, kind: input, shape index: {}]   ;;  %s13978_s2 = inlined_call_operand.vmem [shape: f32[1,256], index: 2, kind: input, shape index: {}]   ;;  %s13979_s3 = inlined_call_operand.vmem [shape: f32[1,256], index: 3, kind: input, shape index: {}]   ;;  %s13980_s4 = inlined_call_operand.vmem [shape: bf16[2,256,256], index: 4, kind: output, shape index: {}]  }
   0x1 LB: > { %s8095_s16 = sadd.s32 4294967295, %s11375_s15   ;;  %p8099_p0 = scmp.ge.s32.totalorder %s11375_s15, 1  ;;  %s11375_s15 = sphi %s11403_s15, %s14_s15  }
   0x2   : > { %p162_p1 = scmp.lt.s32.totalorder %s11375_s15, 3 }
   0x4   : > { %p163_p2 = pnand %p8099_p0, %p162_p1 }
   0x6   : > { %166 = sbr.rel (%p163_p2) target bundleno = 1242 (0x4da), region = 36 }
   0xd   : > { %v10125_v0 = vld [vmem:[%s13977_s1 + $0x484] ss:$8 sps:$4 sm:$0xff]   ;;  %v13981_v2 = vmov 0   ;;  %v10129_v3 = vld [vmem:[%s13977_s1 + $0x480] ss:$8 sps:$4 sm:$0xff]   ;;  %p188_p3 = scmp.lt.s32.totalorder %s8095_s16, 1 }
   0xe   : > { %v10127_v1 = vld [vmem:[%s13977_s1 + $0x884] ss:$8 sps:$4 sm:$0xff]   ;;  %2918 = vmatprep.mubr.bf16.mxu0 %v13981_v2  ;;  %2114 = vmatprep.subr.bf16.mxu1 %v10125_v0  ;;  %v10130_v4 = vld [vmem:[%s13977_s1 + $0x880] ss:$8 sps:$4 sm:$0xff]   ;;  %v10131_v5 = vld [vmem:[%s13977_s1 + $0x494] ss:$8 sps:$4 sm:$0xff]  }
   0xf   : > { %2886 = vmatprep.subr.bf16.mxu0 %v10127_v1  ;;  %2115 = vmatpush1.bf16.msra.mxu1 %v10129_v3  ;;  %v10133_v6 = vld [vmem:[%s13977_s1 + $0x894] ss:$8 sps:$4 sm:$0xff]   ;;  %v10135_v7 = vld [vmem:[%s13977_s1 + $0x490] ss:$8 sps:$4 sm:$0xff]   ;;  %v10137_v9 = vld [vmem:[%s13977_s1 + $0x4a4] ss:$8 sps:$4 sm:$0xff]  }
  0x10   : > { %2887 = vmatpush1.bf16.msra.mxu0 %v10130_v4  ;;  %2116 = vmatprep.subr.bf16.mxu1 %v10131_v5  ;;  %v10136_v8 = vld [vmem:[%s13977_s1 + $0x890] ss:$8 sps:$4 sm:$0xff]   ;;  %v10139_v10 = vld [vmem:[%s13977_s1 + $0x8a4] ss:$8 sps:$4 sm:$0xff]   ;;  %v10141_v11 = vld [vmem:[%s13977_s1 + $0x4a0] ss:$8 sps:$4 sm:$0xff]  }
  0x11   : > { %2888 = vmatprep.subr.bf16.mxu0 %v10133_v6  ;;  %v10142_v12 = vld [vmem:[%s13977_s1 + $0x8a0] ss:$8 sps:$4 sm:$0xff]   ;;  %v10143_v13 = vld [vmem:[%s13977_s1 + $0x4b4] ss:$8 sps:$4 sm:$0xff]   ;;  %v10147_v15 = vld [vmem:[%s13977_s1 + $0x4b0] ss:$8 sps:$4 sm:$0xff]  }
  0x12   : > { %v10145_v14 = vld [vmem:[%s13977_s1 + $0x8b4] ss:$8 sps:$4 sm:$0xff]   ;;  %v10148_v16 = vld [vmem:[%s13977_s1 + $0x8b0] ss:$8 sps:$4 sm:$0xff]   ;;  %v10149_v17 = vld [vmem:[%s13977_s1 + $0x4c4] ss:$8 sps:$4 sm:$0xff]  }
  0x13   : > { %2117 = vmatpush1.bf16.msra.mxu1 %v10135_v7  ;;  %v10151_v18 = vld [vmem:[%s13977_s1 + $0x8c4] ss:$8 sps:$4 sm:$0xff]   ;;  %s14051_s16 = smov (!%p188_p3, %s8095_s16), 1  ;;  %v10153_v19 = vld [vmem:[%s13977_s1 + $0x4c0] ss:$8 sps:$4 sm:$0xff]  }
  0x14   : > { %2889 = vmatpush1.bf16.msra.mxu0 %v10136_v8  ;;  %2118 = vmatprep.subr.bf16.mxu1 %v10137_v9  ;;  %v10154_v20 = vld [vmem:[%s13977_s1 + $0x8c0] ss:$8 sps:$4 sm:$0xff]   ;;  %v10155_v21 = vld [vmem:[%s13977_s1 + $0x4d4] ss:$8 sps:$4 sm:$0xff]   ;;  %s10115_s11 = smul.u32 1296, %s14051_s16  ;;  %s9154_s30 = sshll.u32 %s14051_s16, 8 }
  0x15   : > { %2890 = vmatprep.subr.bf16.mxu0 %v10139_v10  ;;  %v10157_v22 = vld [vmem:[%s13977_s1 + $0x8d4] ss:$8 sps:$4 sm:$0xff]   ;;  %v10159_v23 = vld [vmem:[%s13977_s1 + $0x4d0] ss:$8 sps:$4 sm:$0xff]   ;;  %v10161_v25 = vld [vmem:[%s13977_s1 + $0x4e4] ss:$8 sps:$4 sm:$0xff]   ;;  %s13723_s7 = scalar_lea.vmem %s13980_s4, %s9154_s30 }
  0x16   : > { %v10160_v24 = vld [vmem:[%s13977_s1 + $0x8d0] ss:$8 sps:$4 sm:$0xff]   ;;  %v10163_v26 = vld [vmem:[%s13977_s1 + $0x8e4] ss:$8 sps:$4 sm:$0xff]   ;;  %s11500_s24 = scalar_lea.vmem %s13976_s0, %s10115_s11  ;;  %v10165_v27 = vld [vmem:[%s13977_s1 + $0x4e0] ss:$8 sps:$4 sm:$0xff]  }
  0x17   : > { %2119 = vmatpush1.bf16.msra.mxu1 %v10141_v11  ;;  %v10166_v28 = vld [vmem:[%s13977_s1 + $0x8e0] ss:$8 sps:$4 sm:$0xff]   ;;  %v10167_v29 = vld [vmem:[%s13977_s1 + $0x4f4] ss:$8 sps:$4 sm:$0xff]   ;;  %v10171_v31 = vld [vmem:[%s13977_s1 + $0x4f0] ss:$8 sps:$4 sm:$0xff]  }
  0x18   : > { %2891 = vmatpush1.bf16.msra.mxu0 %v10142_v12  ;;  %2120 = vmatprep.subr.bf16.mxu1 %v10143_v13  ;;  %v10169_v30 = vld [vmem:[%s13977_s1 + $0x8f4] ss:$8 sps:$4 sm:$0xff]   ;;  %v10172_v32 = vld [vmem:[%s13977_s1 + $0x8f0] ss:$8 sps:$4 sm:$0xff]   ;;  %v10173_v33 = vld [vmem:[%s13977_s1 + $0x504] ss:$8 sps:$4 sm:$0xff]  }
  0x19   : > { %2892 = vmatprep.subr.bf16.mxu0 %v10145_v14  ;;  %v10179_v34 = vld [vmem:[%s13977_s1 + $0x304] ss:$8 sps:$4 sm:$0xff]   ;;  %v10176_v36 = vld [vmem:[%s13977_s1 + $0x500] ss:$8 sps:$4 sm:$0xff]   ;;  %v10180_v38 = vld [vmem:[%s13977_s1 + $0x514] ss:$8 sps:$4 sm:$0xff]  }
  0x1a   : > { %v10175_v35 = vld [vmem:[%s11500_s24 + $0x68] ss:$36 sps:$4 sm:$0xff]   ;;  %v10182_v39 = vld [vmem:[%s13977_s1 + $0x510] ss:$8 sps:$4 sm:$0xff]   ;;  %v10189_v40 = vld [vmem:[%s13977_s1 + $0x314] ss:$8 sps:$4 sm:$0xff]  }
  0x1b   : > { %2121 = vmatpush1.bf16.msra.mxu1 %v10147_v15  ;;  %v10177_v37 = vld [vmem:[%s13977_s1 + $0x300] ss:$8 sps:$4 sm:$0xff]   ;;  %v10183_v41 = vld [vmem:[%s13977_s1 + $0x524] ss:$8 sps:$4 sm:$0xff]   ;;  %v10187_v42 = vld [vmem:[%s13977_s1 + $0x310] ss:$8 sps:$4 sm:$0xff]  }
  0x1c   : > { %2893 = vmatpush1.bf16.msra.mxu0 %v10148_v16  ;;  %2122 = vmatprep.subr.bf16.mxu1 %v10149_v17  ;;  %v10199_v43 = vld [vmem:[%s13977_s1 + $0x324] ss:$8 sps:$4 sm:$0xff]   ;;  %v10185_v44 = vld [vmem:[%s11500_s24 + $0xb0] ss:$36 sps:$4 sm:$0xff]   ;;  %v10186_v45 = vld [vmem:[%s13977_s1 + $0x520] ss:$8 sps:$4 sm:$0xff]  }
  0x1d   : > { %2894 = vmatprep.subr.bf16.mxu0 %v10151_v18  ;;  %v10190_v46 = vld [vmem:[%s13977_s1 + $0x534] ss:$8 sps:$4 sm:$0xff]   ;;  %v10197_v47 = vld [vmem:[%s13977_s1 + $0x320] ss:$8 sps:$4 sm:$0xff]   ;;  %v10215_v49 = vld [vmem:[%s11500_s24 + $0x4c] ss:$36 sps:$4 sm:$0xff]  }
  0x1e   : > { %v10209_v48 = vld [vmem:[%s13977_s1 + $0x334] ss:$8 sps:$4 sm:$0xff]   ;;  %v10192_v50 = vld [vmem:[%s13977_s1 + $0x530] ss:$8 sps:$4 sm:$0xff]   ;;  %v10193_v51 = vld [vmem:[%s13977_s1 + $0x544] ss:$8 sps:$4 sm:$0xff]   ;;  %2146 = vmatprep.mubr.bf16.mxu1 %v10215_v49 }
  0x1f   : > { %2123 = vmatpush1.bf16.msra.mxu1 %v10153_v19  ;;  %v10207_v52 = vld [vmem:[%s13977_s1 + $0x330] ss:$8 sps:$4 sm:$0xff]   ;;  %v10222_v53 = vld [vmem:[%s13977_s1 + $0x344] ss:$8 sps:$4 sm:$0xff]   ;;  %v10196_v55 = vld [vmem:[%s13977_s1 + $0x540] ss:$8 sps:$4 sm:$0xff]  }
  0x20   : > { %2895 = vmatpush1.bf16.msra.mxu0 %v10154_v20  ;;  %2124 = vmatprep.subr.bf16.mxu1 %v10155_v21  ;;  %v10195_v54 = vld [vmem:[%s11500_s24 + $0xf8] ss:$36 sps:$4 sm:$0xff]   ;;  %v10220_v57 = vld [vmem:[%s13977_s1 + $0x340] ss:$8 sps:$4 sm:$0xff]   ;;  %v10203_v60 = vld [vmem:[%s13977_s1 + $0x564] ss:$8 sps:$4 sm:$0xff]  }
  0x21   : > { %2896 = vmatprep.subr.bf16.mxu0 %v10157_v22  ;;  %v10200_v56 = vld [vmem:[%s13977_s1 + $0x554] ss:$8 sps:$4 sm:$0xff]   ;;  %v10202_v59 = vld [vmem:[%s13977_s1 + $0x550] ss:$8 sps:$4 sm:$0xff]   ;;  %v10205_v62 = vld [vmem:[%s11500_s24 + $0x140] ss:$36 sps:$4 sm:$0xff]  }
  0x22   : > { %v10232_v58 = vld [vmem:[%s13977_s1 + $0x354] ss:$8 sps:$4 sm:$0xff]   ;;  %v10230_v61 = vld [vmem:[%s13977_s1 + $0x350] ss:$8 sps:$4 sm:$0xff]   ;;  %v10206_v63 = vld [vmem:[%s13977_s1 + $0x560] ss:$8 sps:$4 sm:$0xff]  }
  0x23   : > { %2125 = vmatpush1.bf16.msra.mxu1 %v10159_v23  ;;  %v10242_v0 = vld [vmem:[%s13977_s1 + $0x364] ss:$8 sps:$4 sm:$0xff]   ;;  %v10210_v1 = vld [vmem:[%s13977_s1 + $0x574] ss:$8 sps:$4 sm:$0xff]   ;;  %v10240_v3 = vld [vmem:[%s13977_s1 + $0x360] ss:$8 sps:$4 sm:$0xff]  }
  0x24   : > { %2897 = vmatpush1.bf16.msra.mxu0 %v10160_v24  ;;  %2126 = vmatprep.subr.bf16.mxu1 %v10161_v25  ;;  %v10212_v4 = vld [vmem:[%s13977_s1 + $0x570] ss:$8 sps:$4 sm:$0xff]   ;;  %v10218_v5 = vld [vmem:[%s13977_s1 + $0x584] ss:$8 sps:$4 sm:$0xff]   ;;  %v10252_v7 = vld [vmem:[%s13977_s1 + $0x374] ss:$8 sps:$4 sm:$0xff]  }
  0x25   : > { %2898 = vmatprep.subr.bf16.mxu0 %v10163_v26  ;;  %v10250_v6 = vld [vmem:[%s13977_s1 + $0x370] ss:$8 sps:$4 sm:$0xff]   ;;  %v10213_v8 = vld [vmem:[%s11500_s24 + $0x48] ss:$36 sps:$4 sm:$0xff]   ;;  %v10228_v12 = vld [vmem:[%s13977_s1 + $0x594] ss:$8 sps:$4 sm:$0xff]  }
  0x26   : > { %v10216_v9 = vld [vmem:[%s13977_s1 + $0x580] ss:$8 sps:$4 sm:$0xff]   ;;  %v10223_v11 = vld [vmem:[%s11500_s24 + $0x94] ss:$36 sps:$4 sm:$0xff]   ;;  %v10262_v13 = vld [vmem:[%s13977_s1 + $0x384] ss:$8 sps:$4 sm:$0xff]  }
  0x27   : > { %2127 = vmatpush1.bf16.msra.mxu1 %v10165_v27  ;;  %v10219_v10 = vld [vmem:[%s11500_s24 + $0x188] ss:$36 sps:$4 sm:$0xff]   ;;  %v10226_v15 = vld [vmem:[%s13977_s1 + $0x590] ss:$8 sps:$4 sm:$0xff]   ;;  %v10272_v19 = vld [vmem:[%s13977_s1 + $0x394] ss:$8 sps:$4 sm:$0xff]  }
  0x28   : > { %2899 = vmatpush1.bf16.msra.mxu0 %v10166_v28  ;;  %2128 = vmatprep.subr.bf16.mxu1 %v10167_v29  ;;  %v10260_v14 = vld [vmem:[%s13977_s1 + $0x380] ss:$8 sps:$4 sm:$0xff]   ;;  %v10225_v16 = vld [vmem:[%s11500_s24 + $0x90] ss:$36 sps:$4 sm:$0xff]   ;;  %v10238_v17 = vld [vmem:[%s13977_s1 + $0x5a4] ss:$8 sps:$4 sm:$0xff]  }
  0x29   : > { %2900 = vmatprep.subr.bf16.mxu0 %v10169_v30  ;;  %v10229_v18 = vld [vmem:[%s11500_s24 + $0x1d0] ss:$36 sps:$4 sm:$0xff]   ;;  %v10233_v20 = vld [vmem:[%s11500_s24 + $0xdc] ss:$36 sps:$4 sm:$0xff]   ;;  %v10282_v24 = vld [vmem:[%s13977_s1 + $0x3a4] ss:$8 sps:$4 sm:$0xff]  }
  0x2a   : > { %v10236_v21 = vld [vmem:[%s13977_s1 + $0x5a0] ss:$8 sps:$4 sm:$0xff]   ;;  %v10270_v22 = vld [vmem:[%s13977_s1 + $0x390] ss:$8 sps:$4 sm:$0xff]   ;;  %v10248_v23 = vld [vmem:[%s13977_s1 + $0x5b4] ss:$8 sps:$4 sm:$0xff]  }
  0x2b   : > { %2129 = vmatpush1.bf16.msra.mxu1 %v10171_v31  ;;  %v10235_v25 = vld [vmem:[%s11500_s24 + $0xd8] ss:$36 sps:$4 sm:$0xff]   ;;  %v10280_v27 = vld [vmem:[%s13977_s1 + $0x3a0] ss:$8 sps:$4 sm:$0xff]   ;;  %v10258_v29 = vld [vmem:[%s13977_s1 + $0x5c4] ss:$8 sps:$4 sm:$0xff]  }
  0x2c   : > { %2901 = vmatpush1.bf16.msra.mxu0 %v10172_v32  ;;  %2130 = vmatprep.subr.bf16.mxu1 %v10173_v33  ;;  %v10246_v26 = vld [vmem:[%s13977_s1 + $0x5b0] ss:$8 sps:$4 sm:$0xff]   ;;  %v10243_v30 = vld [vmem:[%s11500_s24 + $0x124] ss:$36 sps:$4 sm:$0xff]   ;;  %v10292_v32 = vld [vmem:[%s13977_s1 + $0x3b4] ss:$8 sps:$4 sm:$0xff]  }
  0x2d   : > { %4424 = vmatprep.subr.bf16.mxu0 %v10179_v34  ;;  %v10239_v28 = vld [vmem:[%s11500_s24 + $0x218] ss:$36 sps:$4 sm:$0xff]   ;;  %v10256_v31 = vld [vmem:[%s13977_s1 + $0x5c0] ss:$8 sps:$4 sm:$0xff]   ;;  %v10298_v49 = vld [vmem:[%s13977_s1 + $0x604] ss:$8 sps:$4 sm:$0xff]  }
  0x2e   : > { %v10268_v33 = vld [vmem:[%s13977_s1 + $0x5d4] ss:$8 sps:$4 sm:$0xff]   ;;  %v10290_v34 = vld [vmem:[%s13977_s1 + $0x3b0] ss:$8 sps:$4 sm:$0xff]  }
  0x2f   : > { %2919 = vmatmul.mubr.bf16.vlgmr.msra.gmra.mrb[0].mxu0 %v10175_v35  ;;  %2131 = vmatpush1.bf16.msra.mxu1 %v10176_v36  ;;  %v10266_v35 = vld [vmem:[%s13977_s1 + $0x5d0] ss:$8 sps:$4 sm:$0xff]   ;;  %v10278_v36 = vld [vmem:[%s13977_s1 + $0x5e4] ss:$8 sps:$4 sm:$0xff]  }
  0x30   : > { %4425 = vmatpush1.bf16.msra.mxu0 %v10177_v37  ;;  %2132 = vmatprep.subr.bf16.mxu1 %v10180_v38  ;;  %v10300_v37 = vld [vmem:[%s13977_s1 + $0x3c0] ss:$8 sps:$4 sm:$0xff]   ;;  %v10302_v38 = vld [vmem:[%s13977_s1 + $0x3c4] ss:$8 sps:$4 sm:$0xff]  }
  0x31   : > { %2928 = vmatprep.mubr.bf16.mxu0 %v13981_v2  ;;  %4426 = vmatprep.subr.bf16.mxu0 %v10189_v40  ;;  %v10249_v40 = vld [vmem:[%s11500_s24 + $0x260] ss:$36 sps:$4 sm:$0xff]  }
  0x33   : > { %2133 = vmatpush1.bf16.msra.mxu1 %v10182_v39  ;;  %v10245_v39 = vld [vmem:[%s11500_s24 + $0x120] ss:$36 sps:$4 sm:$0xff]  }
  0x34   : > { %4427 = vmatpush1.bf16.msra.mxu0 %v10187_v42  ;;  %2134 = vmatprep.subr.bf16.mxu1 %v10183_v41  ;;  %v10253_v41 = vld [vmem:[%s11500_s24 + $0x16c] ss:$36 sps:$4 sm:$0xff]   ;;  %v10276_v42 = vld [vmem:[%s13977_s1 + $0x5e0] ss:$8 sps:$4 sm:$0xff]  }
  0x35   : > { %4428 = vmatprep.subr.bf16.mxu0 %v10199_v43  ;;  %v10288_v43 = vld [vmem:[%s13977_s1 + $0x5f4] ss:$8 sps:$4 sm:$0xff]  }
  0x37   : > { %2929 = vmatmul.mubr.bf16.gmra.mrb[4].mxu0 %v10185_v44  ;;  %2135 = vmatpush1.bf16.msra.mxu1 %v10186_v45  ;;  %v10310_v44 = vld [vmem:[%s13977_s1 + $0x3d0] ss:$8 sps:$4 sm:$0xff]   ;;  %v10312_v45 = vld [vmem:[%s13977_s1 + $0x3d4] ss:$8 sps:$4 sm:$0xff]  }
  0x38   : > { %2938 = vmatprep.mubr.bf16.mxu0 %v13981_v2  ;;  %2136 = vmatprep.subr.bf16.mxu1 %v10190_v46  ;;  %v10255_v46 = vld [vmem:[%s11500_s24 + $0x168] ss:$36 sps:$4 sm:$0xff]  }
  0x39   : > { %4429 = vmatpush1.bf16.msra.mxu0 %v10197_v47  ;;  %v10259_v47 = vld [vmem:[%s11500_s24 + $0x2a8] ss:$36 sps:$4 sm:$0xff]  }
  0x3a   : > { %4430 = vmatprep.subr.bf16.mxu0 %v10209_v48  ;;  %v10286_v48 = vld [vmem:[%s13977_s1 + $0x5f0] ss:$8 sps:$4 sm:$0xff]  }
  0x3b   : > { %2137 = vmatpush1.bf16.msra.mxu1 %v10192_v50  ;;  %v10263_v50 = vld [vmem:[%s11500_s24 + $0x1b4] ss:$36 sps:$4 sm:$0xff]  }
  0x3c   : > { %2138 = vmatprep.subr.bf16.mxu1 %v10193_v51  ;;  %v10322_v51 = vld [vmem:[%s13977_s1 + $0x3e4] ss:$8 sps:$4 sm:$0xff]  }
  0x3d   : > { %4431 = vmatpush1.bf16.msra.mxu0 %v10207_v52  ;;  %v10296_v52 = vld [vmem:[%s13977_s1 + $0x600] ss:$8 sps:$4 sm:$0xff]  }
  0x3e   : > { %4432 = vmatprep.subr.bf16.mxu0 %v10222_v53  ;;  %v10320_v53 = vld [vmem:[%s13977_s1 + $0x3e0] ss:$8 sps:$4 sm:$0xff]  }
  0x3f   : > { %2939 = vmatmul.mubr.bf16.gmra.mrb[8].mxu0 %v10195_v54  ;;  %2139 = vmatpush1.bf16.msra.mxu1 %v10196_v55  ;;  %v10308_v54 = vld [vmem:[%s13977_s1 + $0x614] ss:$8 sps:$4 sm:$0xff]   ;;  %v10306_v55 = vld [vmem:[%s13977_s1 + $0x610] ss:$8 sps:$4 sm:$0xff]  }
  0x40   : > { %2948 = vmatprep.mubr.bf16.mxu0 %v13981_v2  ;;  %2140 = vmatprep.subr.bf16.mxu1 %v10200_v56  ;;  %v10330_v56 = vld [vmem:[%s13977_s1 + $0x3f0] ss:$8 sps:$4 sm:$0xff]  }
  0x41   : > { %4433 = vmatpush1.bf16.msra.mxu0 %v10220_v57  ;;  %v10332_v57 = vld [vmem:[%s13977_s1 + $0x3f4] ss:$8 sps:$4 sm:$0xff]  }
  0x42   : > { %4434 = vmatprep.subr.bf16.mxu0 %v10232_v58  ;;  %v10318_v58 = vld [vmem:[%s13977_s1 + $0x624] ss:$8 sps:$4 sm:$0xff]  }
  0x43   : > { %2141 = vmatpush1.bf16.msra.mxu1 %v10202_v59  ;;  %v10265_v59 = vld [vmem:[%s11500_s24 + $0x1b0] ss:$36 sps:$4 sm:$0xff]  }
  0x44   : > { %2142 = vmatprep.subr.bf16.mxu1 %v10203_v60  ;;  %v10269_v60 = vld [vmem:[%s11500_s24 + $0x2f0] ss:$36 sps:$4 sm:$0xff]  }
  0x45   : > { %4435 = vmatpush1.bf16.msra.mxu0 %v10230_v61  ;;  %v10273_v61 = vld [vmem:[%s11500_s24 + $0x1fc] ss:$36 sps:$4 sm:$0xff]  }
  0x46   : > { %4436 = vmatprep.subr.bf16.mxu0 %v10242_v0  ;;  %v10344_v0 = vld [vmem:[%s13977_s1 + $0x404] ss:$8 sps:$4 sm:$0xff]  }
  0x47   : > { %2949 = vmatmul.mubr.bf16.gmra.mrb[12].mxu0 %v10205_v62  ;;  %2143 = vmatpush1.bf16.msra.mxu1 %v10206_v63  ;;  %v10316_v62 = vld [vmem:[%s13977_s1 + $0x620] ss:$8 sps:$4 sm:$0xff]   ;;  %v10328_v63 = vld [vmem:[%s13977_s1 + $0x634] ss:$8 sps:$4 sm:$0xff]  }
  0x48   : > { %2958 = vmatprep.mubr.bf16.mxu0 %v13981_v2  ;;  %2144 = vmatprep.subr.bf16.mxu1 %v10210_v1  ;;  %v10326_v1 = vld [vmem:[%s13977_s1 + $0x630] ss:$8 sps:$4 sm:$0xff]  }
  0x49   : > { %4437 = vmatpush1.bf16.msra.mxu0 %v10240_v3  ;;  %v10341_v3 = vld [vmem:[%s13977_s1 + $0x644] ss:$8 sps:$4 sm:$0xff]  }
  0x4a   : > { %4438 = vmatprep.subr.bf16.mxu0 %v10252_v7  ;;  %v10339_v7 = vld [vmem:[%s13977_s1 + $0x640] ss:$8 sps:$4 sm:$0xff]  }
  0x4b   : > { %2145 = vmatpush1.bf16.msra.mxu1 %v10212_v4  ;;  %v10275_v4 = vld [vmem:[%s11500_s24 + $0x1f8] ss:$36 sps:$4 sm:$0xff]  }
  0x4c   : > { %2307 = vmatprep.subr.bf16.mxu1 %v10218_v5  ;;  %v10279_v5 = vld [vmem:[%s11500_s24 + $0x338] ss:$36 sps:$4 sm:$0xff]  }
  0x4d   : > { %4439 = vmatpush1.bf16.msra.mxu0 %v10250_v6  ;;  %v10283_v6 = vld [vmem:[%s11500_s24 + $0x244] ss:$36 sps:$4 sm:$0xff]  }
  0x4e   : > { %2147 = vmatmul.mubr.bf16.vlgmr.msra.gmra.mrb[0].mxu1 %v10213_v8  ;;  %4440 = vmatprep.subr.bf16.mxu0 %v10262_v13  ;;  %v10352_v8 = vld [vmem:[%s13977_s1 + $0x654] ss:$8 sps:$4 sm:$0xff]   ;;  %v10293_v13 = vld [vmem:[%s11500_s24 + $0x28c] ss:$36 sps:$4 sm:$0xff]  }
  0x4f   : > { %2959 = vmatmul.mubr.bf16.gmra.mrb[16].mxu0 %v10219_v10  ;;  %2308 = vmatpush1.bf16.msra.mxu1 %v10216_v9  ;;  %v10350_v9 = vld [vmem:[%s13977_s1 + $0x650] ss:$8 sps:$4 sm:$0xff]   ;;  %v10364_v10 = vld [vmem:[%s13977_s1 + $0x664] ss:$8 sps:$4 sm:$0xff]  }
  0x50   : > { %2156 = vmatprep.mubr.bf16.mxu1 %v10223_v11  ;;  %2968 = vmatprep.mubr.bf16.mxu0 %v13981_v2  ;;  %v10285_v11 = vld [vmem:[%s11500_s24 + $0x240] ss:$36 sps:$4 sm:$0xff]  }
  0x51   : > { %2309 = vmatprep.subr.bf16.mxu1 %v10228_v12  ;;  %4441 = vmatpush1.bf16.msra.mxu0 %v10260_v14  ;;  %v10289_v12 = vld [vmem:[%s11500_s24 + $0x380] ss:$36 sps:$4 sm:$0xff]  }
  0x52   : > { %4442 = vmatprep.subr.bf16.mxu0 %v10272_v19  ;;  %v10362_v14 = vld [vmem:[%s13977_s1 + $0x660] ss:$8 sps:$4 sm:$0xff]  }
  0x53   : > { %2310 = vmatpush1.bf16.msra.mxu1 %v10226_v15  ;;  %v10376_v15 = vld [vmem:[%s13977_s1 + $0x674] ss:$8 sps:$4 sm:$0xff]   ;;  %v10299_v19 = vld [vmem:[%s11500_s24 + $0x3c8] ss:$36 sps:$4 sm:$0xff]  }
  0x54   : > { %2311 = vmatprep.subr.bf16.mxu1 %v10238_v17  ;;  %v10295_v17 = vld [vmem:[%s11500_s24 + $0x288] ss:$36 sps:$4 sm:$0xff]  }
  0x55   : > { %4443 = vmatpush1.bf16.msra.mxu0 %v10270_v22  ;;  %v10309_v22 = vld [vmem:[%s11500_s24 + $0x410] ss:$36 sps:$4 sm:$0xff]  }
  0x56   : > { %2157 = vmatmul.mubr.bf16.gmra.mrb[4].mxu1 %v10225_v16  ;;  %4444 = vmatprep.subr.bf16.mxu0 %v10282_v24  ;;  %v10374_v16 = vld [vmem:[%s13977_s1 + $0x670] ss:$8 sps:$4 sm:$0xff]  }
  0x57   : > { %2969 = vmatmul.mubr.bf16.gmra.mrb[20].mxu0 %v10229_v18  ;;  %2166 = vmatprep.mubr.bf16.mxu1 %v10233_v20  ;;  %v10385_v18 = vld [vmem:[%s13977_s1 + $0x684] ss:$8 sps:$4 sm:$0xff]   ;;  %v10303_v20 = vld [vmem:[%s11500_s24 + $0x2d4] ss:$36 sps:$4 sm:$0xff]  }
  0x58   : > { %2978 = vmatprep.mubr.bf16.mxu0 %v13981_v2  ;;  %2312 = vmatpush1.bf16.msra.mxu1 %v10236_v21  ;;  %v10305_v21 = vld [vmem:[%s11500_s24 + $0x2d0] ss:$36 sps:$4 sm:$0xff]   ;;  %v10315_v24 = vld [vmem:[%s11500_s24 + $0x318] ss:$36 sps:$4 sm:$0xff]  }
  0x59   : > { %2313 = vmatprep.subr.bf16.mxu1 %v10248_v23  ;;  %4445 = vmatpush1.bf16.msra.mxu0 %v10280_v27  ;;  %v10313_v23 = vld [vmem:[%s11500_s24 + $0x31c] ss:$36 sps:$4 sm:$0xff]  }
  0x5a   : > { %4446 = vmatprep.subr.bf16.mxu0 %v10292_v32  ;;  %v10325_v27 = vld [vmem:[%s11500_s24 + $0x360] ss:$36 sps:$4 sm:$0xff]   ;;  %v10338_v32 = vld [vmem:[%s11500_s24 + $0x3a8] ss:$36 sps:$4 sm:$0xff]  }
  0x5c   : > { %2314 = vmatpush1.bf16.msra.mxu1 %v10246_v26  ;;  %v10323_v26 = vld [vmem:[%s11500_s24 + $0x364] ss:$36 sps:$4 sm:$0xff]  }
  0x5d   : > { %2315 = vmatprep.subr.bf16.mxu1 %v10258_v29  ;;  %4447 = vmatpush1.bf16.msra.mxu0 %v10290_v34  ;;  %v10333_v29 = vld [vmem:[%s11500_s24 + $0x3ac] ss:$36 sps:$4 sm:$0xff]   ;;  %v10345_v34 = vld [vmem:[%s11500_s24 + $0x3f4] ss:$36 sps:$4 sm:$0xff]  }
  0x5e   : > { %2167 = vmatmul.mubr.bf16.gmra.mrb[8].mxu1 %v10235_v25  ;;  %4448 = vmatprep.subr.bf16.mxu0 %v10302_v38  ;;  %v10319_v25 = vld [vmem:[%s11500_s24 + $0x458] ss:$36 sps:$4 sm:$0xff]   ;;  %v10368_v38 = vld [vmem:[%s13977_s1 + $0x424] ss:$8 sps:$4 sm:$0xff]  }
  0x5f   : > { %2979 = vmatmul.mubr.bf16.gmra.mrb[24].mxu0 %v10239_v28  ;;  %2176 = vmatprep.mubr.bf16.mxu1 %v10243_v30  ;;  %v10329_v28 = vld [vmem:[%s11500_s24 + $0x4a0] ss:$36 sps:$4 sm:$0xff]  }
  0x60   : > { %2988 = vmatprep.mubr.bf16.mxu0 %v13981_v2  ;;  %2316 = vmatpush1.bf16.msra.mxu1 %v10256_v31  ;;  %v10337_v30 = vld [vmem:[%s11500_s24 + $0x1c] ss:$36 sps:$4 sm:$0xff]  }
  0x61   : > { %2317 = vmatprep.subr.bf16.mxu1 %v10268_v33  ;;  %4449 = vmatpush1.bf16.msra.mxu0 %v10300_v37  ;;  %v10335_v31 = vld [vmem:[%s11500_s24 + $0x18] ss:$36 sps:$4 sm:$0xff]   ;;  %v10342_v33 = vld [vmem:[%s13977_s1 + $0x400] ss:$8 sps:$4 sm:$0xff]  }
  0x62   : > { %4450 = vmatprep.subr.bf16.mxu0 %v10312_v45  ;;  %v10354_v37 = vld [vmem:[%s13977_s1 + $0x410] ss:$8 sps:$4 sm:$0xff]  }
  0x63   : > { %v10387_v45 = vld [vmem:[%s13977_s1 + $0x430] ss:$8 sps:$4 sm:$0xff]  }
  0x64   : > { %2318 = vmatpush1.bf16.msra.mxu1 %v10266_v35  ;;  %v10347_v35 = vld [vmem:[%s11500_s24 + $0x64] ss:$36 sps:$4 sm:$0xff]  }
  0x65   : > { %2319 = vmatprep.subr.bf16.mxu1 %v10278_v36  ;;  %4451 = vmatpush1.bf16.msra.mxu0 %v10310_v44  ;;  %v10356_v36 = vld [vmem:[%s13977_s1 + $0x414] ss:$8 sps:$4 sm:$0xff]  }
  0x66   : > { %2177 = vmatmul.mubr.bf16.gmra.mrb[12].mxu1 %v10245_v39  ;;  %4452 = vmatprep.subr.bf16.mxu0 %v10322_v51  ;;  %v10349_v39 = vld [vmem:[%s11500_s24 + $0x3f0] ss:$36 sps:$4 sm:$0xff]   ;;  %v10399_v51 = vld [vmem:[%s13977_s1 + $0x440] ss:$8 sps:$4 sm:$0xff]  }
  0x67   : > { %2989 = vmatmul.mubr.bf16.gmra.mrb[28].mxu0 %v10249_v40  ;;  %2186 = vmatprep.mubr.bf16.mxu1 %v10253_v41  ;;  %v10353_v40 = vld [vmem:[%s11500_s24 + $0x60] ss:$36 sps:$4 sm:$0xff]   ;;  %v10389_v44 = vld [vmem:[%s13977_s1 + $0x434] ss:$8 sps:$4 sm:$0xff]  }
  0x68   : > { %2998 = vmatprep.mubr.bf16.mxu0 %v13981_v2  ;;  %2320 = vmatpush1.bf16.msra.mxu1 %v10276_v42  ;;  %v10357_v41 = vld [vmem:[%s11500_s24 + $0x43c] ss:$36 sps:$4 sm:$0xff]   ;;  %v10359_v42 = vld [vmem:[%s11500_s24 + $0xac] ss:$36 sps:$4 sm:$0xff]  }
  0x69   : > { %2321 = vmatprep.subr.bf16.mxu1 %v10288_v43  ;;  %4453 = vmatpush1.bf16.msra.mxu0 %v10320_v53  ;;  %v10366_v43 = vld [vmem:[%s13977_s1 + $0x420] ss:$8 sps:$4 sm:$0xff]   ;;  %v10411_v53 = vld [vmem:[%s13977_s1 + $0x450] ss:$8 sps:$4 sm:$0xff]  }
  0x6a   : > { %4454 = vmatprep.subr.bf16.mxu0 %v10332_v57  ;;  %v10380_v57 = vld [vmem:[%s11500_s24 + $0x54] ss:$36 sps:$4 sm:$0xff]  }
  0x6c   : > { %2322 = vmatpush1.bf16.msra.mxu1 %v10286_v48  ;;  %v10365_v48 = vld [vmem:[%s11500_s24 + $0xa8] ss:$36 sps:$4 sm:$0xff]  }
  0x6d   : > { %2323 = vmatprep.subr.bf16.mxu1 %v10298_v49  ;;  %4455 = vmatpush1.bf16.msra.mxu0 %v10330_v56  ;;  %v10369_v49 = vld [vmem:[%s11500_s24 + $0x484] ss:$36 sps:$4 sm:$0xff]   ;;  %v10377_v56 = vld [vmem:[%s11500_s24 + $0xf0] ss:$36 sps:$4 sm:$0xff]  }
  0x6e   : > { %2187 = vmatmul.mubr.bf16.gmra.mrb[16].mxu1 %v10255_v46  ;;  %4617 = vmatprep.subr.bf16.mxu0 %v10344_v0  ;;  %v10401_v46 = vld [vmem:[%s13977_s1 + $0x444] ss:$8 sps:$4 sm:$0xff]   ;;  %v10383_v0 = vld [vmem:[%s13977_s1 + $0x680] ss:$8 sps:$4 sm:$0xff]  }
  0x6f   : > { %2999 = vmatmul.mubr.bf16.gmra.mrb[32].mxu0 %v10259_v47  ;;  %2196 = vmatprep.mubr.bf16.mxu1 %v10263_v50  ;;  %v10361_v47 = vld [vmem:[%s11500_s24 + $0x438] ss:$36 sps:$4 sm:$0xff]  }
  0x70   : > { %3008 = vmatprep.mubr.bf16.mxu0 %v13981_v2  ;;  %2324 = vmatpush1.bf16.msra.mxu1 %v10296_v52  ;;  %v10371_v50 = vld [vmem:[%s11500_s24 + $0xf4] ss:$36 sps:$4 sm:$0xff]  }
  0x71   : > { %2325 = vmatprep.subr.bf16.mxu1 %v10308_v54  ;;  %v10413_v52 = vld [vmem:[%s13977_s1 + $0x454] ss:$8 sps:$4 sm:$0xff]   ;;  %v10425_v54 = vld [vmem:[%s13977_s1 + $0x464] ss:$8 sps:$4 sm:$0xff]  }
  0x74   : > { %2326 = vmatpush1.bf16.msra.mxu1 %v10306_v55  ;;  %v10373_v55 = vld [vmem:[%s11500_s24 + $0x480] ss:$36 sps:$4 sm:$0xff]  }
  0x75   : > { %2327 = vmatprep.subr.bf16.mxu1 %v10318_v58  ;;  %v10381_v58 = vld [vmem:[%s11500_s24 + $0x13c] ss:$36 sps:$4 sm:$0xff]  }
  0x76   : > { %2197 = vmatmul.mubr.bf16.gmra.mrb[20].mxu1 %v10265_v59  ;;  %v10423_v59 = vld [vmem:[%s13977_s1 + $0x460] ss:$8 sps:$4 sm:$0xff]  }
  0x77   : > { %3009 = vmatmul.mubr.bf16.gmra.mrb[36].mxu0 %v10269_v60  ;;  %2206 = vmatprep.mubr.bf16.mxu1 %v10273_v61  ;;  %v10446_v60 = vld [vmem:[%s13977_s1 + $0x474] ss:$8 sps:$4 sm:$0xff]  }
  0x78   : > { %3018 = vmatprep.mubr.bf16.mxu0 %v13981_v2  ;;  %2328 = vmatpush1.bf16.msra.mxu1 %v10316_v62  ;;  %v10378_v61 = vld [vmem:[%s11500_s24 + $0x50] ss:$36 sps:$4 sm:$0xff]  }
  0x79   : > { %2329 = vmatprep.subr.bf16.mxu1 %v10328_v63  ;;  %v10444_v62 = vld [vmem:[%s13977_s1 + $0x470] ss:$8 sps:$4 sm:$0xff]   ;;  %v10456_v63 = vld [vmem:[%s13977_s1 + $0x904] ss:$8 sps:$4 sm:$0xff]  }
  0x7c   : > { %2330 = vmatpush1.bf16.msra.mxu1 %v10326_v1  ;;  %v10386_v1 = vld [vmem:[%s11500_s24 + $0x138] ss:$36 sps:$4 sm:$0xff]  }
  0x7d   : > { %2331 = vmatprep.subr.bf16.mxu1 %v10341_v3  ;;  %v10390_v3 = vld [vmem:[%s11500_s24 + $0x9c] ss:$36 sps:$4 sm:$0xff]  }
  0x7e   : > { %2207 = vmatmul.mubr.bf16.gmra.mrb[24].mxu1 %v10275_v4  ;;  %v10392_v4 = vld [vmem:[%s11500_s24 + $0x184] ss:$36 sps:$4 sm:$0xff]  }
  0x7f   : > { %3019 = vmatmul.mubr.bf16.gmra.mrb[40].mxu0 %v10279_v5  ;;  %2216 = vmatprep.mubr.bf16.mxu1 %v10283_v6  ;;  %v10397_v5 = vld [vmem:[%s13977_s1 + $0x694] ss:$8 sps:$4 sm:$0xff]   ;;  %v10395_v6 = vld [vmem:[%s13977_s1 + $0x690] ss:$8 sps:$4 sm:$0xff]  }
  0x80   : > { %3028 = vmatprep.mubr.bf16.mxu0 %v13981_v2  ;;  %2332 = vmatpush1.bf16.msra.mxu1 %v10339_v7  ;;  %v10409_v7 = vld [vmem:[%s13977_s1 + $0x6a4] ss:$8 sps:$4 sm:$0xff]  }
  0x81   : > { %2333 = vmatprep.subr.bf16.mxu1 %v10352_v8  ;;  %v10394_v8 = vld [vmem:[%s11500_s24 + $0x98] ss:$36 sps:$4 sm:$0xff]  }
  0x84   : > { %2334 = vmatpush1.bf16.msra.mxu1 %v10350_v9  ;;  %v10398_v9 = vld [vmem:[%s11500_s24 + $0x180] ss:$36 sps:$4 sm:$0xff]  }
  0x85   : > { %2335 = vmatprep.subr.bf16.mxu1 %v10364_v10  ;;  %v10402_v10 = vld [vmem:[%s11500_s24 + $0xe4] ss:$36 sps:$4 sm:$0xff]  }
  0x86   : > { %2217 = vmatmul.mubr.bf16.gmra.mrb[28].mxu1 %v10285_v11  ;;  %v10404_v11 = vld [vmem:[%s11500_s24 + $0x1cc] ss:$36 sps:$4 sm:$0xff]  }
  0x87   : > { %3029 = vmatmul.mubr.bf16.gmra.mrb[44].mxu0 %v10289_v12  ;;  %2226 = vmatprep.mubr.bf16.mxu1 %v10293_v13  ;;  %v10407_v12 = vld [vmem:[%s13977_s1 + $0x6a0] ss:$8 sps:$4 sm:$0xff]   ;;  %v10421_v13 = vld [vmem:[%s13977_s1 + $0x6b4] ss:$8 sps:$4 sm:$0xff]  }
  0x88   : > { %3038 = vmatprep.mubr.bf16.mxu0 %v13981_v2  ;;  %2336 = vmatpush1.bf16.msra.mxu1 %v10362_v14  ;;  %v10419_v14 = vld [vmem:[%s13977_s1 + $0x6b0] ss:$8 sps:$4 sm:$0xff]  }
  0x89   : > { %2337 = vmatprep.subr.bf16.mxu1 %v10376_v15  ;;  %v10433_v15 = vld [vmem:[%s13977_s1 + $0x6c4] ss:$8 sps:$4 sm:$0xff]  }
  0x8c   : > { %2338 = vmatpush1.bf16.msra.mxu1 %v10374_v16  ;;  %v10406_v16 = vld [vmem:[%s11500_s24 + $0xe0] ss:$36 sps:$4 sm:$0xff]  }
  0x8d   : > { %2500 = vmatprep.subr.bf16.mxu1 %v10385_v18  ;;  %v10414_v18 = vld [vmem:[%s11500_s24 + $0x12c] ss:$36 sps:$4 sm:$0xff]  }
  0x8e   : > { %2227 = vmatmul.mubr.bf16.gmra.mrb[32].mxu1 %v10295_v17  ;;  %v10410_v17 = vld [vmem:[%s11500_s24 + $0x1c8] ss:$36 sps:$4 sm:$0xff]  }
  0x8f   : > { %3039 = vmatmul.mubr.bf16.gmra.mrb[48].mxu0 %v10299_v19  ;;  %2236 = vmatprep.mubr.bf16.mxu1 %v10303_v20  ;;  %v10416_v19 = vld [vmem:[%s11500_s24 + $0x214] ss:$36 sps:$4 sm:$0xff]   ;;  %v10431_v20 = vld [vmem:[%s13977_s1 + $0x6c0] ss:$8 sps:$4 sm:$0xff]  }
  0x90   : > { %3048 = vmatprep.mubr.bf16.mxu0 %v13981_v2 }
  0x96   : > { %2237 = vmatmul.mubr.bf16.gmra.mrb[36].mxu1 %v10305_v21  ;;  %v10442_v21 = vld [vmem:[%s13977_s1 + $0x6d4] ss:$8 sps:$4 sm:$0xff]  }
  0x97   : > { %3049 = vmatmul.mubr.bf16.gmra.mrb[52].mxu0 %v10309_v22  ;;  %2246 = vmatprep.mubr.bf16.mxu1 %v10313_v23  ;;  %v10440_v22 = vld [vmem:[%s13977_s1 + $0x6d0] ss:$8 sps:$4 sm:$0xff]   ;;  %v10452_v23 = vld [vmem:[%s13977_s1 + $0x6e4] ss:$8 sps:$4 sm:$0xff]  }
  0x98   : > { %3058 = vmatprep.mubr.bf16.mxu0 %v13981_v2 }
  0x9e   : > { %2247 = vmatmul.mubr.bf16.gmra.mrb[40].mxu1 %v10315_v24  ;;  %v10418_v24 = vld [vmem:[%s11500_s24 + $0x128] ss:$36 sps:$4 sm:$0xff]  }
  0x9f   : > { %3059 = vmatmul.mubr.bf16.gmra.mrb[56].mxu0 %v10319_v25  ;;  %2256 = vmatprep.mubr.bf16.mxu1 %v10323_v26  ;;  %v10422_v25 = vld [vmem:[%s11500_s24 + $0x210] ss:$36 sps:$4 sm:$0xff]  }
  0xa0   : > { %3068 = vmatprep.mubr.bf16.mxu0 %v13981_v2  ;;  %v10426_v26 = vld [vmem:[%s11500_s24 + $0x174] ss:$36 sps:$4 sm:$0xff]  }
  0xa6   : > { %2257 = vmatmul.mubr.bf16.gmra.mrb[44].mxu1 %v10325_v27  ;;  %v10428_v27 = vld [vmem:[%s11500_s24 + $0x25c] ss:$36 sps:$4 sm:$0xff]  }
  0xa7   : > { %3069 = vmatmul.mubr.bf16.gmra.mrb[60].mxu0 %v10329_v28  ;;  %2266 = vmatprep.mubr.bf16.mxu1 %v10333_v29  ;;  %v10450_v28 = vld [vmem:[%s13977_s1 + $0x6e0] ss:$8 sps:$4 sm:$0xff]   ;;  %v10462_v29 = vld [vmem:[%s13977_s1 + $0x6f4] ss:$8 sps:$4 sm:$0xff]  }
  0xa8   : > { %4456 = vmatprep.mubr.bf16.mxu0 %v10337_v30  ;;  %v10460_v30 = vld [vmem:[%s13977_s1 + $0x6f0] ss:$8 sps:$4 sm:$0xff]  }
  0xae   : > { %2267 = vmatmul.mubr.bf16.gmra.mrb[48].mxu1 %v10338_v32  ;;  %v10430_v32 = vld [vmem:[%s11500_s24 + $0x170] ss:$36 sps:$4 sm:$0xff]  }
  0xaf   : > { %4457 = vmatmul.mubr.bf16.vlgmr.msra.gmra.mrb[64].mxu0 %v10335_v31  ;;  %2276 = vmatprep.mubr.bf16.mxu1 %v10345_v34  ;;  %v10471_v31 = vld [vmem:[%s13977_s1 + $0x704] ss:$8 sps:$4 sm:$0xff]   ;;  %v10435_v34 = vld [vmem:[%s11500_s24 + $0x1bc] ss:$36 sps:$4 sm:$0xff]  }
  0xb0   : > { %4618 = vmatpush1.bf16.msra.mxu0 %v10342_v33  ;;  %4466 = vmatprep.mubr.bf16.mxu0 %v10347_v35  ;;  %v10434_v33 = vld [vmem:[%s11500_s24 + $0x258] ss:$36 sps:$4 sm:$0xff]   ;;  %v10437_v35 = vld [vmem:[%s11500_s24 + $0x2a4] ss:$36 sps:$4 sm:$0xff]  }
  0xb1   : > { %4619 = vmatprep.subr.bf16.mxu0 %v10356_v36  ;;  %v10469_v36 = vld [vmem:[%s13977_s1 + $0x700] ss:$8 sps:$4 sm:$0xff]  }
  0xb4   : > { %4620 = vmatpush1.bf16.msra.mxu0 %v10354_v37  ;;  %v10480_v37 = vld [vmem:[%s13977_s1 + $0x714] ss:$8 sps:$4 sm:$0xff]  }
  0xb5   : > { %4621 = vmatprep.subr.bf16.mxu0 %v10368_v38  ;;  %v10478_v38 = vld [vmem:[%s13977_s1 + $0x710] ss:$8 sps:$4 sm:$0xff]  }
  0xb6   : > { %2277 = vmatmul.mubr.bf16.gmra.mrb[52].mxu1 %v10349_v39  ;;  %v10489_v39 = vld [vmem:[%s13977_s1 + $0x724] ss:$8 sps:$4 sm:$0xff]  }
  0xb7   : > { %4467 = vmatmul.mubr.bf16.gmra.mrb[68].mxu0 %v10353_v40  ;;  %2286 = vmatprep.mubr.bf16.mxu1 %v10357_v41  ;;  %v10439_v40 = vld [vmem:[%s11500_s24 + $0x1b8] ss:$36 sps:$4 sm:$0xff]   ;;  %v10443_v41 = vld [vmem:[%s11500_s24 + $0x2a0] ss:$36 sps:$4 sm:$0xff]  }
  0xb8   : > { %4476 = vmatprep.mubr.bf16.mxu0 %v10359_v42  ;;  %4622 = vmatpush1.bf16.msra.mxu0 %v10366_v43  ;;  %v10447_v42 = vld [vmem:[%s11500_s24 + $0x204] ss:$36 sps:$4 sm:$0xff]  }
  0xb9   : > { %4623 = vmatprep.subr.bf16.mxu0 %v10389_v44  ;;  %v10487_v43 = vld [vmem:[%s13977_s1 + $0x720] ss:$8 sps:$4 sm:$0xff]   ;;  %v10498_v44 = vld [vmem:[%s13977_s1 + $0x734] ss:$8 sps:$4 sm:$0xff]  }
  0xbc   : > { %4624 = vmatpush1.bf16.msra.mxu0 %v10387_v45  ;;  %v10496_v45 = vld [vmem:[%s13977_s1 + $0x730] ss:$8 sps:$4 sm:$0xff]  }
  0xbd   : > { %4625 = vmatprep.subr.bf16.mxu0 %v10401_v46  ;;  %v10507_v46 = vld [vmem:[%s13977_s1 + $0x744] ss:$8 sps:$4 sm:$0xff]  }
  0xbe   : > { %2287 = vmatmul.mubr.bf16.gmra.mrb[56].mxu1 %v10361_v47  ;;  %v10449_v47 = vld [vmem:[%s11500_s24 + $0x200] ss:$36 sps:$4 sm:$0xff]  }
  0xbf   : > { %4477 = vmatmul.mubr.bf16.gmra.mrb[72].mxu0 %v10365_v48  ;;  %2296 = vmatprep.mubr.bf16.mxu1 %v10369_v49  ;;  %v10453_v48 = vld [vmem:[%s11500_s24 + $0x20] ss:$36 sps:$4 sm:$0xff]  }
  0xc0   : > { %4486 = vmatprep.mubr.bf16.mxu0 %v10371_v50  ;;  %4626 = vmatpush1.bf16.msra.mxu0 %v10399_v51  ;;  %v10454_v49 = vld [vmem:[%s13977_s1 + $0x900] ss:$8 sps:$4 sm:$0xff]   ;;  %v10457_v50 = vld [vmem:[%s11500_s24 + $0x24c] ss:$36 sps:$4 sm:$0xff]   ;;  %v10465_v51 = vld [vmem:[%s13977_s1 + $0x914] ss:$8 sps:$4 sm:$0xff]  }
  0xc1   : > { %4627 = vmatprep.subr.bf16.mxu0 %v10413_v52  ;;  %v10505_v52 = vld [vmem:[%s13977_s1 + $0x740] ss:$8 sps:$4 sm:$0xff]  }
  0xc4   : > { %4628 = vmatpush1.bf16.msra.mxu0 %v10411_v53  ;;  %v10516_v53 = vld [vmem:[%s13977_s1 + $0x754] ss:$8 sps:$4 sm:$0xff]  }
  0xc5   : > { %4629 = vmatprep.subr.bf16.mxu0 %v10425_v54  ;;  %v10463_v54 = vld [vmem:[%s13977_s1 + $0x910] ss:$8 sps:$4 sm:$0xff]  }
  0xc6   : > { %2297 = vmatmul.mubr.bf16.gmra.mrb[60].mxu1 %v10373_v55  ;;  %v10474_v55 = vld [vmem:[%s13977_s1 + $0x924] ss:$8 sps:$4 sm:$0xff]  }
  0xc7   : > { %4487 = vmatmul.mubr.bf16.gmra.mrb[76].mxu0 %v10377_v56  ;;  %2339 = vmatprep.mubr.bf16.mxu1 %v10380_v57  ;;  %v10459_v56 = vld [vmem:[%s11500_s24 + $0x248] ss:$36 sps:$4 sm:$0xff]   ;;  %v10514_v57 = vld [vmem:[%s13977_s1 + $0x750] ss:$8 sps:$4 sm:$0xff]  }
  0xc8   : > { %4496 = vmatprep.mubr.bf16.mxu0 %v10381_v58  ;;  %4630 = vmatpush1.bf16.msra.mxu0 %v10423_v59  ;;  %v10466_v59 = vld [vmem:[%s11500_s24 + $0x294] ss:$36 sps:$4 sm:$0xff]  }
  0xc9   : > { %4631 = vmatprep.subr.bf16.mxu0 %v10446_v60 }
  0xcc   : > { %4632 = vmatpush1.bf16.msra.mxu0 %v10444_v62 }
  0xcd   : > { %6571 = vmatprep.subr.bf16.mxu0 %v10456_v63  ;;  %v10483_v63 = vld [vmem:[%s13977_s1 + $0x934] ss:$8 sps:$4 sm:$0xff]  }
  0xce   : > { %2340 = vmatmul.mubr.bf16.vlgmr.msra.gmra.mrb[0].mxu1 %v10378_v61  ;;  %v10472_v61 = vld [vmem:[%s13977_s1 + $0x920] ss:$8 sps:$4 sm:$0xff]  }
  0xcf   : > { %4497 = vmatmul.mubr.bf16.gmra.mrb[80].mxu0 %v10386_v1  ;;  %2501 = vmatpush1.bf16.msra.mxu1 %v10383_v0  ;;  %v10523_v0 = vld [vmem:[%s13977_s1 + $0x760] ss:$8 sps:$4 sm:$0xff]  }
  0xd0   : > { %2349 = vmatprep.mubr.bf16.mxu1 %v10390_v3  ;;  %4506 = vmatprep.mubr.bf16.mxu0 %v10392_v4  ;;  %v10525_v3 = vld [vmem:[%s13977_s1 + $0x764] ss:$8 sps:$4 sm:$0xff]  }
  0xd1   : > { %2502 = vmatprep.subr.bf16.mxu1 %v10397_v5  ;;  %v11202_v4 = vld [vmem:[%s11500_s24 + $0x68] ss:$36 sps:$4 sm:$0xff]   ;;  %v10534_v5 = vld [vmem:[%s13977_s1 + $0x774] ss:$8 sps:$4 sm:$0xff]  }
  0xd3   : > { %2503 = vmatpush1.bf16.msra.mxu1 %v10395_v6  ;;  %v10481_v6 = vld [vmem:[%s13977_s1 + $0x930] ss:$8 sps:$4 sm:$0xff]  }
  0xd4   : > { %2504 = vmatprep.subr.bf16.mxu1 %v10409_v7  ;;  %v10492_v7 = vld [vmem:[%s13977_s1 + $0x944] ss:$8 sps:$4 sm:$0xff]  }
  0xd6   : > { %2350 = vmatmul.mubr.bf16.gmra.mrb[4].mxu1 %v10394_v8  ;;  %v10468_v8 = vld [vmem:[%s11500_s24 + $0x290] ss:$36 sps:$4 sm:$0xff]  }
  0xd7   : > { %4507 = vmatmul.mubr.bf16.gmra.mrb[84].mxu0 %v10398_v9  ;;  %2359 = vmatprep.mubr.bf16.mxu1 %v10402_v10  ;;  %v10532_v9 = vld [vmem:[%s13977_s1 + $0x770] ss:$8 sps:$4 sm:$0xff]  }
  0xd8   : > { %4516 = vmatprep.mubr.bf16.mxu0 %v10404_v11  ;;  %2505 = vmatpush1.bf16.msra.mxu1 %v10407_v12  ;;  %v10475_v11 = vld [vmem:[%s11500_s24 + $0x2dc] ss:$36 sps:$4 sm:$0xff]  }
  0xd9   : > { %2506 = vmatprep.subr.bf16.mxu1 %v10421_v13  ;;  %v10490_v13 = vld [vmem:[%s13977_s1 + $0x940] ss:$8 sps:$4 sm:$0xff]  }
  0xdc   : > { %2507 = vmatpush1.bf16.msra.mxu1 %v10419_v14 }
  0xdd   : > { %2508 = vmatprep.subr.bf16.mxu1 %v10433_v15  ;;  %v10501_v15 = vld [vmem:[%s13977_s1 + $0x954] ss:$8 sps:$4 sm:$0xff]  }
  0xde   : > { %2360 = vmatmul.mubr.bf16.gmra.mrb[8].mxu1 %v10406_v16 }
  0xdf   : > { %4517 = vmatmul.mubr.bf16.gmra.mrb[88].mxu0 %v10410_v17  ;;  %2369 = vmatprep.mubr.bf16.mxu1 %v10414_v18  ;;  %v10543_v17 = vld [vmem:[%s13977_s1 + $0x784] ss:$8 sps:$4 sm:$0xff]   ;;  %v11203_v18 = vld [vmem:[%s11500_s24 + $0xb0] ss:$36 sps:$4 sm:$0xff]  }
  0xe0   : > { %4526 = vmatprep.mubr.bf16.mxu0 %v10416_v19  ;;  %2509 = vmatpush1.bf16.msra.mxu1 %v10431_v20  ;;  %v10499_v19 = vld [vmem:[%s13977_s1 + $0x950] ss:$8 sps:$4 sm:$0xff]  }
  0xe1   : > { %2510 = vmatprep.subr.bf16.mxu1 %v10442_v21  ;;  %v10477_v20 = vld [vmem:[%s11500_s24 + $0x2d8] ss:$36 sps:$4 sm:$0xff]   ;;  %v10510_v21 = vld [vmem:[%s13977_s1 + $0x964] ss:$8 sps:$4 sm:$0xff]  }
  0xe4   : > { %2511 = vmatpush1.bf16.msra.mxu1 %v10440_v22 }
  0xe5   : > { %2512 = vmatprep.subr.bf16.mxu1 %v10452_v23  ;;  %v10484_v23 = vld [vmem:[%s11500_s24 + $0x324] ss:$36 sps:$4 sm:$0xff]  }
  0xe6   : > { %2370 = vmatmul.mubr.bf16.gmra.mrb[12].mxu1 %v10418_v24 }
  0xe7   : > { %4527 = vmatmul.mubr.bf16.gmra.mrb[92].mxu0 %v10422_v25  ;;  %2379 = vmatprep.mubr.bf16.mxu1 %v10426_v26  ;;  %v10508_v25 = vld [vmem:[%s13977_s1 + $0x960] ss:$8 sps:$4 sm:$0xff]  }
  0xe8   : > { %4536 = vmatprep.mubr.bf16.mxu0 %v10428_v27  ;;  %2513 = vmatpush1.bf16.msra.mxu1 %v10450_v28  ;;  %v10519_v28 = vld [vmem:[%s13977_s1 + $0x974] ss:$8 sps:$4 sm:$0xff]  }
  0xe9   : > { %2514 = vmatprep.subr.bf16.mxu1 %v10462_v29  ;;  %v11204_v29 = vld [vmem:[%s11500_s24 + $0xf8] ss:$36 sps:$4 sm:$0xff]  }
  0xec   : > { %2515 = vmatpush1.bf16.msra.mxu1 %v10460_v30  ;;  %v10517_v30 = vld [vmem:[%s13977_s1 + $0x970] ss:$8 sps:$4 sm:$0xff]  }
  0xed   : > { %2516 = vmatprep.subr.bf16.mxu1 %v10471_v31  ;;  %v10486_v31 = vld [vmem:[%s11500_s24 + $0x320] ss:$36 sps:$4 sm:$0xff]  }
  0xee   : > { %2380 = vmatmul.mubr.bf16.gmra.mrb[16].mxu1 %v10430_v32  ;;  %v10528_v32 = vld [vmem:[%s13977_s1 + $0x984] ss:$8 sps:$4 sm:$0xff]  }
  0xef   : > { %4537 = vmatmul.mubr.bf16.gmra.mrb[96].mxu0 %v10434_v33  ;;  %2389 = vmatprep.mubr.bf16.mxu1 %v10435_v34  ;;  %v10493_v34 = vld [vmem:[%s11500_s24 + $0x36c] ss:$36 sps:$4 sm:$0xff]  }
  0xf0   : > { %4546 = vmatprep.mubr.bf16.mxu0 %v10437_v35  ;;  %2517 = vmatpush1.bf16.msra.mxu1 %v10469_v36  ;;  %v10526_v36 = vld [vmem:[%s13977_s1 + $0x980] ss:$8 sps:$4 sm:$0xff]  }
  0xf1   : > { %2518 = vmatprep.subr.bf16.mxu1 %v10480_v37 }
  0xf4   : > { %2519 = vmatpush1.bf16.msra.mxu1 %v10478_v38 }
  0xf5   : > { %2520 = vmatprep.subr.bf16.mxu1 %v10489_v39  ;;  %v10537_v39 = vld [vmem:[%s13977_s1 + $0x994] ss:$8 sps:$4 sm:$0xff]  }
  0xf6   : > { %2390 = vmatmul.mubr.bf16.gmra.mrb[20].mxu1 %v10439_v40  ;;  %v11205_v40 = vld [vmem:[%s11500_s24 + $0x140] ss:$36 sps:$4 sm:$0xff]  }
  0xf7   : > { %4547 = vmatmul.mubr.bf16.gmra.mrb[100].mxu0 %v10443_v41  ;;  %2399 = vmatprep.mubr.bf16.mxu1 %v10447_v42  ;;  %v10535_v41 = vld [vmem:[%s13977_s1 + $0x990] ss:$8 sps:$4 sm:$0xff]   ;;  %v10495_v42 = vld [vmem:[%s11500_s24 + $0x368] ss:$36 sps:$4 sm:$0xff]  }
  0xf8   : > { %4649 = vmatprep.mubr.bf16.mxu0 %v13981_v2  ;;  %2521 = vmatpush1.bf16.msra.mxu1 %v10487_v43  ;;  %v10546_v43 = vld [vmem:[%s13977_s1 + $0x9a4] ss:$8 sps:$4 sm:$0xff]  }
  0xf9   : > { %2522 = vmatprep.subr.bf16.mxu1 %v10498_v44 }
  0xfc   : > { %2523 = vmatpush1.bf16.msra.mxu1 %v10496_v45  ;;  %v10502_v45 = vld [vmem:[%s11500_s24 + $0x3b4] ss:$36 sps:$4 sm:$0xff]  }
  0xfd   : > { %2524 = vmatprep.subr.bf16.mxu1 %v10507_v46 }
  0xfe   : > { %2400 = vmatmul.mubr.bf16.gmra.mrb[24].mxu1 %v10449_v47  ;;  %v10544_v47 = vld [vmem:[%s13977_s1 + $0x9a0] ss:$8 sps:$4 sm:$0xff]  }
  0xff   : > { %4650 = vmatmul.mubr.bf16.vlgmr.msra.gmra.mrb[64].mxu0 %v10453_v48  ;;  %2409 = vmatprep.mubr.bf16.mxu1 %v10457_v50  ;;  %v10555_v50 = vld [vmem:[%s13977_s1 + $0x9b4] ss:$8 sps:$4 sm:$0xff]  }
 0x100   : > { %6572 = vmatpush1.bf16.msra.mxu0 %v10454_v49  ;;  %4659 = vmatprep.mubr.bf16.mxu0 %v13981_v2 }
 0x101   : > { %6573 = vmatprep.subr.bf16.mxu0 %v10465_v51  ;;  %2525 = vmatpush1.bf16.msra.mxu1 %v10505_v52  ;;  %v11206_v51 = vld [vmem:[%s11500_s24 + $0x188] ss:$36 sps:$4 sm:$0xff]   ;;  %v10553_v52 = vld [vmem:[%s13977_s1 + $0x9b0] ss:$8 sps:$4 sm:$0xff]  }
 0x102   : > { %v12009_v58 = vpop.f32.mrb[0].mxu0  ;;  %2526 = vmatprep.subr.bf16.mxu1 %v10516_v53  ;;  %v10504_v53 = vld [vmem:[%s11500_s24 + $0x3b0] ss:$36 sps:$4 sm:$0xff]  }
 0x103   : > { %v12012_v60 = vpop.f32.mrb[1].mxu0 }
 0x104   : > { %v12017_v62 = vpop.f32.mrb[2].mxu0  ;;  %6574 = vmatpush1.bf16.msra.mxu0 %v10463_v54  ;;  %v10564_v54 = vld [vmem:[%s13977_s1 + $0x9c4] ss:$8 sps:$4 sm:$0xff]  }
 0x105   : > { %v12025_v1 = vpop.f32.mrb[3].mxu0  ;;  %6575 = vmatprep.subr.bf16.mxu0 %v10474_v55  ;;  %2527 = vmatpush1.bf16.msra.mxu1 %v10514_v57 }
 0x106   : > { %2410 = vmatmul.mubr.bf16.gmra.mrb[28].mxu1 %v10459_v56  ;;  %2528 = vmatprep.subr.bf16.mxu1 %v10525_v3  ;;  %v10511_v56 = vld [vmem:[%s11500_s24 + $0x3fc] ss:$36 sps:$4 sm:$0xff]   ;;  %v11207_v3 = vld [vmem:[%s11500_s24 + $0x1d0] ss:$36 sps:$4 sm:$0xff]  }
 0x107   : > { %4660 = vmatmul.mubr.bf16.gmra.mrb[68].mxu0 %v11202_v4  ;;  %2419 = vmatprep.mubr.bf16.mxu1 %v10466_v59  ;;  %v10562_v59 = vld [vmem:[%s13977_s1 + $0x9c0] ss:$8 sps:$4 sm:$0xff]   ;;  %v10571_v4 = vld [vmem:[%s13977_s1 + $0x9d0] ss:$8 sps:$4 sm:$0xff]  }
 0x108   : > { %4669 = vmatprep.mubr.bf16.mxu0 %v13981_v2  ;;  %6576 = vmatpush1.bf16.msra.mxu0 %v10472_v61 }
 0x109   : > { %6577 = vmatprep.subr.bf16.mxu0 %v10483_v63  ;;  %2529 = vmatpush1.bf16.msra.mxu1 %v10523_v0  ;;  %v10573_v0 = vld [vmem:[%s13977_s1 + $0x9d4] ss:$8 sps:$4 sm:$0xff]  }
 0x10a   : > { %v12045_v10 = vpop.f32.mrb[4].mxu0  ;;  %2530 = vmatprep.subr.bf16.mxu1 %v10534_v5  ;;  %v10513_v5 = vld [vmem:[%s11500_s24 + $0x3f8] ss:$36 sps:$4 sm:$0xff]  }
 0x10b   : > { %v12048_v12 = vpop.f32.mrb[5].mxu0 }
 0x10c   : > { %v12053_v14 = vpop.f32.mrb[6].mxu0  ;;  %6578 = vmatpush1.bf16.msra.mxu0 %v10481_v6  ;;  %v10582_v6 = vld [vmem:[%s13977_s1 + $0x9e4] ss:$8 sps:$4 sm:$0xff]  }
 0x10d   : > { %v12058_v16 = vpop.f32.mrb[7].mxu0  ;;  %6579 = vmatprep.subr.bf16.mxu0 %v10492_v7  ;;  %2531 = vmatpush1.bf16.msra.mxu1 %v10532_v9 }
 0x10e   : > { %2420 = vmatmul.mubr.bf16.gmra.mrb[32].mxu1 %v10468_v8  ;;  %2693 = vmatprep.subr.bf16.mxu1 %v10543_v17  ;;  %v10520_v8 = vld [vmem:[%s11500_s24 + $0x444] ss:$36 sps:$4 sm:$0xff]   ;;  %v10591_v17 = vld [vmem:[%s13977_s1 + $0x9f4] ss:$8 sps:$4 sm:$0xff]  }
 0x10f   : > { %4670 = vmatmul.mubr.bf16.gmra.mrb[72].mxu0 %v11203_v18  ;;  %2429 = vmatprep.mubr.bf16.mxu1 %v10475_v11  ;;  %v10580_v11 = vld [vmem:[%s13977_s1 + $0x9e0] ss:$8 sps:$4 sm:$0xff]   ;;  %v11208_v18 = vld [vmem:[%s11500_s24 + $0x218] ss:$36 sps:$4 sm:$0xff]  }
 0x110   : > { %4679 = vmatprep.mubr.bf16.mxu0 %v13981_v2  ;;  %6580 = vmatpush1.bf16.msra.mxu0 %v10490_v13 }
 0x111   : > { %6581 = vmatprep.subr.bf16.mxu0 %v10501_v15 }
 0x112   : > { %v12072_v22 = vpop.f32.mrb[8].mxu0 }
 0x113   : > { %v12075_v24 = vpop.f32.mrb[9].mxu0 }
 0x114   : > { %v12080_v26 = vpop.f32.mrb[10].mxu0  ;;  %6582 = vmatpush1.bf16.msra.mxu0 %v10499_v19  ;;  %v10589_v19 = vld [vmem:[%s13977_s1 + $0x9f0] ss:$8 sps:$4 sm:$0xff]  }
 0x115   : > { %v12082_v27 = vpop.f32.mrb[11].mxu0  ;;  %6583 = vmatprep.subr.bf16.mxu0 %v10510_v21  ;;  %v10603_v21 = vld [vmem:[%s13977_s1 + $0xa04] ss:$8 sps:$4 sm:$0xff]  }
 0x116   : > { %2430 = vmatmul.mubr.bf16.gmra.mrb[36].mxu1 %v10477_v20  ;;  %v10522_v20 = vld [vmem:[%s11500_s24 + $0x440] ss:$36 sps:$4 sm:$0xff]  }
 0x117   : > { %4680 = vmatmul.mubr.bf16.gmra.mrb[76].mxu0 %v11204_v29  ;;  %2439 = vmatprep.mubr.bf16.mxu1 %v10484_v23 }
 0x118   : > { %4689 = vmatprep.mubr.bf16.mxu0 %v13981_v2  ;;  %6584 = vmatpush1.bf16.msra.mxu0 %v10508_v25  ;;  %v10529_v25 = vld [vmem:[%s11500_s24 + $0x48c] ss:$36 sps:$4 sm:$0xff]  }
 0x119   : > { %6585 = vmatprep.subr.bf16.mxu0 %v10519_v28 }
 0x11a   : > { %v12096_v33 = vpop.f32.mrb[12].mxu0 }
 0x11b   : > { %v12099_v35 = vpop.f32.mrb[13].mxu0 }
 0x11c   : > { %v12104_v37 = vpop.f32.mrb[14].mxu0  ;;  %6586 = vmatpush1.bf16.msra.mxu0 %v10517_v30 }
 0x11d   : > { %v12106_v38 = vpop.f32.mrb[15].mxu0  ;;  %6587 = vmatprep.subr.bf16.mxu0 %v10528_v32  ;;  %v10531_v32 = vld [vmem:[%s11500_s24 + $0x488] ss:$36 sps:$4 sm:$0xff]  }
 0x11e   : > { %2440 = vmatmul.mubr.bf16.gmra.mrb[40].mxu1 %v10486_v31  ;;  %v11209_v31 = vld [vmem:[%s11500_s24 + $0x260] ss:$36 sps:$4 sm:$0xff]  }
 0x11f   : > { %4690 = vmatmul.mubr.bf16.gmra.mrb[80].mxu0 %v11205_v40  ;;  %2449 = vmatprep.mubr.bf16.mxu1 %v10493_v34 }
 0x120   : > { %4699 = vmatprep.mubr.bf16.mxu0 %v13981_v2  ;;  %6588 = vmatpush1.bf16.msra.mxu0 %v10526_v36  ;;  %v10540_v36 = vld [vmem:[%s11500_s24 + $0x5c] ss:$36 sps:$4 sm:$0xff]  }
 0x121   : > { %6589 = vmatprep.subr.bf16.mxu0 %v10537_v39 }
 0x122   : > { %v12120_v44 = vpop.f32.mrb[16].mxu0 }
 0x123   : > { %v12123_v46 = vpop.f32.mrb[17].mxu0 }
 0x124   : > { %v12128_v48 = vpop.f32.mrb[18].mxu0  ;;  %6590 = vmatpush1.bf16.msra.mxu0 %v10535_v41 }
 0x125   : > { %v12130_v49 = vpop.f32.mrb[19].mxu0  ;;  %6591 = vmatprep.subr.bf16.mxu0 %v10546_v43  ;;  %v10538_v43 = vld [vmem:[%s11500_s24 + $0x58] ss:$36 sps:$4 sm:$0xff]  }
 0x126   : > { %2450 = vmatmul.mubr.bf16.gmra.mrb[44].mxu1 %v10495_v42  ;;  %v11210_v42 = vld [vmem:[%s11500_s24 + $0x2a8] ss:$36 sps:$4 sm:$0xff]  }
 0x127   : > { %4700 = vmatmul.mubr.bf16.gmra.mrb[84].mxu0 %v11206_v51  ;;  %2459 = vmatprep.mubr.bf16.mxu1 %v10502_v45 }
 0x128   : > { %4709 = vmatprep.mubr.bf16.mxu0 %v13981_v2  ;;  %6592 = vmatpush1.bf16.msra.mxu0 %v10544_v47  ;;  %v10541_v47 = vld [vmem:[%s13977_s1 + $0x780] ss:$8 sps:$4 sm:$0xff]  }
 0x129   : > { %6593 = vmatprep.subr.bf16.mxu0 %v10555_v50  ;;  %v10547_v50 = vld [vmem:[%s11500_s24 + $0xa4] ss:$36 sps:$4 sm:$0xff]  }
 0x12a   : > { %v12144_v55 = vpop.f32.mrb[20].mxu0 }
 0x12b   : > { %v12147_v57 = vpop.f32.mrb[21].mxu0 }
 0x12c   : > { %v12152_v61 = vpop.f32.mrb[22].mxu0  ;;  %6594 = vmatpush1.bf16.msra.mxu0 %v10553_v52 }
 0x12d   : > { %v12154_v63 = vpop.f32.mrb[23].mxu0  ;;  %6595 = vmatprep.subr.bf16.mxu0 %v10564_v54  ;;  %v10552_v54 = vld [vmem:[%s13977_s1 + $0x794] ss:$8 sps:$4 sm:$0xff]  }
 0x12e   : > { %2460 = vmatmul.mubr.bf16.gmra.mrb[48].mxu1 %v10504_v53 }
 0x12f   : > { %4710 = vmatmul.mubr.bf16.gmra.mrb[88].mxu0 %v11207_v3  ;;  %2469 = vmatprep.mubr.bf16.mxu1 %v10511_v56  ;;  %v11211_v56 = vld [vmem:[%s11500_s24 + $0x2f0] ss:$36 sps:$4 sm:$0xff]   ;;  %v10549_v3 = vld [vmem:[%s11500_s24 + $0xa0] ss:$36 sps:$4 sm:$0xff]  }
 0x130   : > { %4719 = vmatprep.mubr.bf16.mxu0 %v13981_v2  ;;  %6596 = vmatpush1.bf16.msra.mxu0 %v10562_v59  ;;  %v10550_v59 = vld [vmem:[%s13977_s1 + $0x790] ss:$8 sps:$4 sm:$0xff]  }
 0x131   : > { %6597 = vmatprep.subr.bf16.mxu0 %v10573_v0  ;;  %v10561_v0 = vld [vmem:[%s13977_s1 + $0x7a4] ss:$8 sps:$4 sm:$0xff]  }
 0x132   : > { %v12168_v7 = vpop.f32.mrb[24].mxu0 }
 0x133   : > { %v12171_v9 = vpop.f32.mrb[25].mxu0 }
 0x134   : > { %v12176_v13 = vpop.f32.mrb[26].mxu0  ;;  %6598 = vmatpush1.bf16.msra.mxu0 %v10571_v4 }
 0x135   : > { %v12178_v15 = vpop.f32.mrb[27].mxu0  ;;  %6599 = vmatprep.subr.bf16.mxu0 %v10582_v6 }
 0x136   : > { %2470 = vmatmul.mubr.bf16.gmra.mrb[52].mxu1 %v10513_v5  ;;  %v10556_v5 = vld [vmem:[%s11500_s24 + $0xec] ss:$36 sps:$4 sm:$0xff]  }
 0x137   : > { %4720 = vmatmul.mubr.bf16.gmra.mrb[92].mxu0 %v11208_v18  ;;  %2479 = vmatprep.mubr.bf16.mxu1 %v10520_v8  ;;  %v10559_v8 = vld [vmem:[%s13977_s1 + $0x7a0] ss:$8 sps:$4 sm:$0xff]   ;;  %v10570_v18 = vld [vmem:[%s13977_s1 + $0x7b4] ss:$8 sps:$4 sm:$0xff]  }
 0x138   : > { %4729 = vmatprep.mubr.bf16.mxu0 %v13981_v2  ;;  %6600 = vmatpush1.bf16.msra.mxu0 %v10580_v11 }
 0x139   : > { %6601 = vmatprep.subr.bf16.mxu0 %v10591_v17 }
 0x13a   : > { %v12192_v23 = vpop.f32.mrb[28].mxu0 }
 0x13b   : > { %v12195_v28 = vpop.f32.mrb[29].mxu0 }
 0x13c   : > { %v12197_v29 = vpop.f32.mrb[30].mxu0  ;;  %6602 = vmatpush1.bf16.msra.mxu0 %v10589_v19  ;;  %v11212_v19 = vld [vmem:[%s11500_s24 + $0x338] ss:$36 sps:$4 sm:$0xff]  }
 0x13d   : > { %v12199_v30 = vpop.f32.mrb[31].mxu0  ;;  %6764 = vmatprep.subr.bf16.mxu0 %v10603_v21  ;;  %v10579_v21 = vld [vmem:[%s13977_s1 + $0x7c4] ss:$8 sps:$4 sm:$0xff]  }
 0x13e   : > { %2480 = vmatmul.mubr.bf16.gmra.mrb[56].mxu1 %v10522_v20  ;;  %v10568_v20 = vld [vmem:[%s13977_s1 + $0x7b0] ss:$8 sps:$4 sm:$0xff]  }
 0x13f   : > { %4730 = vmatmul.mubr.bf16.gmra.mrb[96].mxu0 %v11209_v31  ;;  %2489 = vmatprep.mubr.bf16.mxu1 %v10529_v25  ;;  %v10558_v25 = vld [vmem:[%s11500_s24 + $0xe8] ss:$36 sps:$4 sm:$0xff]  }
 0x140   : > { %4739 = vmatprep.mubr.bf16.mxu0 %v13981_v2 }
 0x142   : > { %v12204_v34 = vpop.f32.mrb[32].mxu0 }
 0x143   : > { %v12207_v39 = vpop.f32.mrb[33].mxu0 }
 0x144   : > { %v12209_v40 = vpop.f32.mrb[34].mxu0 }
 0x145   : > { %v12211_v41 = vpop.f32.mrb[35].mxu0 }
 0x146   : > { %2490 = vmatmul.mubr.bf16.gmra.mrb[60].mxu1 %v10531_v32  ;;  %v10565_v32 = vld [vmem:[%s11500_s24 + $0x134] ss:$36 sps:$4 sm:$0xff]  }
 0x147   : > { %4740 = vmatmul.mubr.bf16.gmra.mrb[100].mxu0 %v11210_v42  ;;  %2532 = vmatprep.mubr.bf16.mxu1 %v10540_v36  ;;  %v10577_v42 = vld [vmem:[%s13977_s1 + $0x7c0] ss:$8 sps:$4 sm:$0xff]  }
 0x148   : > { %4749 = vmatprep.mubr.bf16.mxu0 %v13981_v2 }
 0x14a   : > { %v12216_v45 = vpop.f32.mrb[36].mxu0 }
 0x14b   : > { %v12222_v51 = vpop.f32.mrb[37].mxu0 }
 0x14c   : > { %v12224_v52 = vpop.f32.mrb[38].mxu0 }
 0x14d   : > { %v12226_v53 = vpop.f32.mrb[39].mxu0 }
 0x14e   : > { %2533 = vmatmul.mubr.bf16.vlgmr.msra.gmra.mrb[0].mxu1 %v10538_v43 }
 0x14f   : > { %4750 = vmatmul.mubr.bf16.gmra.mrb[104].mxu0 %v11211_v56  ;;  %2694 = vmatpush1.bf16.msra.mxu1 %v10541_v47  ;;  %v10586_v56 = vld [vmem:[%s13977_s1 + $0x7d0] ss:$8 sps:$4 sm:$0xff]  }
 0x150   : > { %2542 = vmatprep.mubr.bf16.mxu1 %v10547_v50  ;;  %4759 = vmatprep.mubr.bf16.mxu0 %v13981_v2  ;;  %v10588_v50 = vld [vmem:[%s13977_s1 + $0x7d4] ss:$8 sps:$4 sm:$0xff]  }
 0x151   : > { %2695 = vmatprep.subr.bf16.mxu1 %v10552_v54  ;;  %v11213_v54 = vld [vmem:[%s11500_s24 + $0x380] ss:$36 sps:$4 sm:$0xff]  }
 0x152   : > { %v12240_v4 = vpop.f32.mrb[40].mxu0 }
 0x153   : > { %v12243_v6 = vpop.f32.mrb[41].mxu0  ;;  %2696 = vmatpush1.bf16.msra.mxu1 %v10550_v59  ;;  %v10600_v59 = vld [vmem:[%s13977_s1 + $0x7e4] ss:$8 sps:$4 sm:$0xff]  }
 0x154   : > { %v12248_v11 = vpop.f32.mrb[42].mxu0  ;;  %2697 = vmatprep.subr.bf16.mxu1 %v10561_v0  ;;  %v10567_v0 = vld [vmem:[%s11500_s24 + $0x130] ss:$36 sps:$4 sm:$0xff]  }
 0x155   : > { %v12250_v17 = vpop.f32.mrb[43].mxu0 }
 0x156   : > { %2543 = vmatmul.mubr.bf16.gmra.mrb[4].mxu1 %v10549_v3 }
 0x157   : > { %4760 = vmatmul.mubr.bf16.gmra.mrb[108].mxu0 %v11212_v19  ;;  %2552 = vmatprep.mubr.bf16.mxu1 %v10556_v5  ;;  %v10574_v5 = vld [vmem:[%s11500_s24 + $0x17c] ss:$36 sps:$4 sm:$0xff]  }
 0x158   : > { %4769 = vmatprep.mubr.bf16.mxu0 %v13981_v2  ;;  %2698 = vmatpush1.bf16.msra.mxu1 %v10559_v8 }
 0x159   : > { %2699 = vmatprep.subr.bf16.mxu1 %v10570_v18  ;;  %v10598_v18 = vld [vmem:[%s13977_s1 + $0x7e0] ss:$8 sps:$4 sm:$0xff]  }
 0x15a   : > { %v12264_v31 = vpop.f32.mrb[44].mxu0 }
 0x15b   : > { %v12267_v36 = vpop.f32.mrb[45].mxu0 }
 0x15c   : > { %v12272_v43 = vpop.f32.mrb[46].mxu0  ;;  %2700 = vmatpush1.bf16.msra.mxu1 %v10568_v20 }
 0x15d   : > { %v12274_v47 = vpop.f32.mrb[47].mxu0  ;;  %2701 = vmatprep.subr.bf16.mxu1 %v10579_v21  ;;  %v10611_v21 = vld [vmem:[%s13977_s1 + $0x7f4] ss:$8 sps:$4 sm:$0xff]  }
 0x15e   : > { %2553 = vmatmul.mubr.bf16.gmra.mrb[8].mxu1 %v10558_v25  ;;  %v11214_v25 = vld [vmem:[%s11500_s24 + $0x3c8] ss:$36 sps:$4 sm:$0xff]  }
 0x15f   : > { %4770 = vmatmul.mubr.bf16.gmra.mrb[112].mxu0 %v11213_v54  ;;  %2562 = vmatprep.mubr.bf16.mxu1 %v10565_v32  ;;  %v10609_v32 = vld [vmem:[%s13977_s1 + $0x7f0] ss:$8 sps:$4 sm:$0xff]  }
 0x160   : > { %4779 = vmatprep.mubr.bf16.mxu0 %v13981_v2  ;;  %2702 = vmatpush1.bf16.msra.mxu1 %v10577_v42  ;;  %v10623_v42 = vld [vmem:[%s13977_s1 + $0x804] ss:$8 sps:$4 sm:$0xff]  }
 0x161   : > { %2703 = vmatprep.subr.bf16.mxu1 %v10588_v50  ;;  %v10576_v50 = vld [vmem:[%s11500_s24 + $0x178] ss:$36 sps:$4 sm:$0xff]  }
 0x162   : > { %v12288_v3 = vpop.f32.mrb[48].mxu0 }
 0x163   : > { %v12291_v8 = vpop.f32.mrb[49].mxu0 }
 0x164   : > { %v12296_v19 = vpop.f32.mrb[50].mxu0  ;;  %2704 = vmatpush1.bf16.msra.mxu1 %v10586_v56  ;;  %v10583_v56 = vld [vmem:[%s11500_s24 + $0x1c4] ss:$36 sps:$4 sm:$0xff]  }
 0x165   : > { %13983 = vst [vmem:[#allocation2_spill] sm:$0xff] %v12296_v19  ;;  %v12298_v20 = vpop.f32.mrb[51].mxu0  ;;  %2705 = vmatprep.subr.bf16.mxu1 %v10600_v59  ;;  %v10630_v19 = vld [vmem:[%s11500_s24 + $0x16c] ss:$36 sps:$4 sm:$0xff]  }
 0x166   : > { %13984 = vst [vmem:[#allocation3_spill] sm:$0xff] %v12298_v20  ;;  %2563 = vmatmul.mubr.bf16.gmra.mrb[12].mxu1 %v10567_v0  ;;  %v10621_v0 = vld [vmem:[%s13977_s1 + $0x800] ss:$8 sps:$4 sm:$0xff]  }
 0x167   : > { %4780 = vmatmul.mubr.bf16.gmra.mrb[116].mxu0 %v11214_v25  ;;  %2572 = vmatprep.mubr.bf16.mxu1 %v10574_v5 }
 0x168   : > { %4789 = vmatprep.mubr.bf16.mxu0 %v13981_v2  ;;  %2706 = vmatpush1.bf16.msra.mxu1 %v10598_v18  ;;  %v10635_v18 = vld [vmem:[%s13977_s1 + $0x814] ss:$8 sps:$4 sm:$0xff]  }
 0x169   : > { %2707 = vmatprep.subr.bf16.mxu1 %v10611_v21  ;;  %v11215_v21 = vld [vmem:[%s11500_s24 + $0x410] ss:$36 sps:$4 sm:$0xff]  }
 0x16a   : > { %v12312_v54 = vpop.f32.mrb[52].mxu0 }
 0x16b   : > { %13985 = vst [vmem:[#allocation4_spill] sm:$0xff] %v12312_v54  ;;  %v12315_v59 = vpop.f32.mrb[53].mxu0 }
 0x16c   : > { %13986 = vst [vmem:[#allocation5_spill] sm:$0xff] %v12315_v59  ;;  %v12320_v5 = vpop.f32.mrb[54].mxu0  ;;  %2708 = vmatpush1.bf16.msra.mxu1 %v10609_v32  ;;  %v10633_v59 = vld [vmem:[%s13977_s1 + $0x810] ss:$8 sps:$4 sm:$0xff]   ;;  %v10647_v32 = vld [vmem:[%s13977_s1 + $0x824] ss:$8 sps:$4 sm:$0xff]  }
 0x16d   : > { %13987 = vst [vmem:[#allocation6_spill] sm:$0xff] %v12320_v5  ;;  %v12322_v25 = vpop.f32.mrb[55].mxu0  ;;  %2709 = vmatprep.subr.bf16.mxu1 %v10623_v42  ;;  %v10592_v42 = vld [vmem:[%s11500_s24 + $0x20c] ss:$36 sps:$4 sm:$0xff]  }
 0x16e   : > { %13988 = vst [vmem:[#allocation7_spill] sm:$0xff] %v12322_v25  ;;  %2573 = vmatmul.mubr.bf16.gmra.mrb[16].mxu1 %v10576_v50  ;;  %v10585_v25 = vld [vmem:[%s11500_s24 + $0x1c0] ss:$36 sps:$4 sm:$0xff]   ;;  %v10596_v50 = vld [vmem:[%s11500_s24 + $0x94] ss:$36 sps:$4 sm:$0xff]  }
 0x16f   : > { %4790 = vmatmul.mubr.bf16.gmra.mrb[120].mxu0 %v11215_v21  ;;  %2582 = vmatprep.mubr.bf16.mxu1 %v10583_v56  ;;  %v10645_v21 = vld [vmem:[%s13977_s1 + $0x820] ss:$8 sps:$4 sm:$0xff]  }
 0x170   : > { %4799 = vmatprep.mubr.bf16.mxu0 %v13981_v2  ;;  %2710 = vmatpush1.bf16.msra.mxu1 %v10621_v0  ;;  %v10659_v0 = vld [vmem:[%s13977_s1 + $0x834] ss:$8 sps:$4 sm:$0xff]  }
 0x171   : > { %2711 = vmatprep.subr.bf16.mxu1 %v10635_v18  ;;  %v11216_v18 = vld [vmem:[%s11500_s24 + $0x458] ss:$36 sps:$4 sm:$0xff]  }
 0x172   : > { %v12336_v5 = vpop.f32.mrb[56].mxu0 }
 0x173   : > { %13989 = vst [vmem:[#allocation8_spill] sm:$0xff] %v12336_v5  ;;  %v12340_v56 = vpop.f32.mrb[57].mxu0 }
 0x174   : > { %13990 = vst [vmem:[#allocation9_spill] sm:$0xff] %v12340_v56  ;;  %v12345_v2 = vpop.f32.mrb[58].mxu0  ;;  %2712 = vmatpush1.bf16.msra.mxu1 %v10633_v59  ;;  %v10657_v56 = vld [vmem:[%s13977_s1 + $0x830] ss:$8 sps:$4 sm:$0xff]  }
 0x175   : > { %13991 = vst [vmem:[#allocation10_spill] sm:$0xff] %v12345_v2  ;;  %v12347_v54 = vpop.f32.mrb[59].mxu0  ;;  %2713 = vmatprep.subr.bf16.mxu1 %v10647_v32  ;;  %v10594_v59 = vld [vmem:[%s11500_s24 + $0x90] ss:$36 sps:$4 sm:$0xff]   ;;  %v10597_v2 = vld [vmem:[%s11500_s24 + $0x208] ss:$36 sps:$4 sm:$0xff]  }
 0x176   : > { %13992 = vst [vmem:[#allocation11_spill] sm:$0xff] %v12347_v54  ;;  %2583 = vmatmul.mubr.bf16.gmra.mrb[20].mxu1 %v10585_v25  ;;  %v10671_v54 = vld [vmem:[%s13977_s1 + $0x844] ss:$8 sps:$4 sm:$0xff]   ;;  %v10601_v25 = vld [vmem:[%s13977_s1 + $0xa00] ss:$8 sps:$4 sm:$0xff]  }
 0x177   : > { %4800 = vmatmul.mubr.bf16.gmra.mrb[124].mxu0 %v11216_v18  ;;  %2592 = vmatprep.mubr.bf16.mxu1 %v10592_v42  ;;  %v10604_v32 = vld [vmem:[%s11500_s24 + $0x254] ss:$36 sps:$4 sm:$0xff]  }
 0x178   : > { %6603 = vmatprep.mubr.bf16.mxu0 %v10596_v50  ;;  %2714 = vmatpush1.bf16.msra.mxu1 %v10645_v21  ;;  %v10606_v50 = vld [vmem:[%s11500_s24 + $0xdc] ss:$36 sps:$4 sm:$0xff]  }
 0x179   : > { %2715 = vmatprep.subr.bf16.mxu1 %v10659_v0  ;;  %v10615_v18 = vld [vmem:[%s13977_s1 + $0xa14] ss:$8 sps:$4 sm:$0xff]   ;;  %v10669_v21 = vld [vmem:[%s13977_s1 + $0x840] ss:$8 sps:$4 sm:$0xff]   ;;  %v10613_v0 = vld [vmem:[%s13977_s1 + $0xa10] ss:$8 sps:$4 sm:$0xff]  }
 0x17a   : > { %v12361_v5 = vpop.f32.mrb[60].mxu0 }
 0x17b   : > { %13993 = vst [vmem:[#allocation12_spill] sm:$0xff] %v12361_v5  ;;  %v12367_v42 = vpop.f32.mrb[61].mxu0 }
 0x17c   : > { %13994 = vst [vmem:[#allocation13_spill] sm:$0xff] %v12367_v42  ;;  %v12373_v20 = vpop.f32.mrb[62].mxu0  ;;  %2716 = vmatpush1.bf16.msra.mxu1 %v10657_v56  ;;  %v10627_v42 = vld [vmem:[%s13977_s1 + $0xa24] ss:$8 sps:$4 sm:$0xff]   ;;  %v10612_v56 = vld [vmem:[%s11500_s24 + $0xd8] ss:$36 sps:$4 sm:$0xff]  }
 0x17d   : > { %13995 = vst [vmem:[#allocation14_spill] sm:$0xff] %v12373_v20  ;;  %v12378_v5 = vpop.f32.mrb[63].mxu0  ;;  %2717 = vmatprep.subr.bf16.mxu1 %v10671_v54  ;;  %v10683_v20 = vld [vmem:[%s13977_s1 + $0x854] ss:$8 sps:$4 sm:$0xff]   ;;  %v10681_v54 = vld [vmem:[%s13977_s1 + $0x850] ss:$8 sps:$4 sm:$0xff]  }
 0x17e   : > { %13996 = vst [vmem:[#allocation15_spill] sm:$0xff] %v12378_v5  ;;  %2593 = vmatmul.mubr.bf16.gmra.mrb[24].mxu1 %v10597_v2  ;;  %v10608_v2 = vld [vmem:[%s11500_s24 + $0x250] ss:$36 sps:$4 sm:$0xff]   ;;  %v10618_v5 = vld [vmem:[%s11500_s24 + $0x124] ss:$36 sps:$4 sm:$0xff]  }
 0x17f   : > { %6604 = vmatmul.mubr.bf16.vlgmr.msra.gmra.mrb[64].mxu0 %v10594_v59  ;;  %2602 = vmatprep.mubr.bf16.mxu1 %v10604_v32  ;;  %v10616_v59 = vld [vmem:[%s11500_s24 + $0x29c] ss:$36 sps:$4 sm:$0xff]  }
 0x180   : > { %6765 = vmatpush1.bf16.msra.mxu0 %v10601_v25  ;;  %6613 = vmatprep.mubr.bf16.mxu0 %v10606_v50  ;;  %v10625_v25 = vld [vmem:[%s13977_s1 + $0xa20] ss:$8 sps:$4 sm:$0xff]   ;;  %v10639_v32 = vld [vmem:[%s13977_s1 + $0xa34] ss:$8 sps:$4 sm:$0xff]  }
 0x181   : > { %6766 = vmatprep.subr.bf16.mxu0 %v10615_v18  ;;  %2718 = vmatpush1.bf16.msra.mxu1 %v10669_v21  ;;  %v10693_v50 = vld [vmem:[%s13977_s1 + $0x860] ss:$8 sps:$4 sm:$0xff]   ;;  %v10695_v18 = vld [vmem:[%s13977_s1 + $0x864] ss:$8 sps:$4 sm:$0xff]   ;;  %v10707_v21 = vld [vmem:[%s13977_s1 + $0x874] ss:$8 sps:$4 sm:$0xff]  }
 0x182   : > { %2719 = vmatprep.subr.bf16.mxu1 %v10683_v20  ;;  %v10637_v20 = vld [vmem:[%s13977_s1 + $0xa30] ss:$8 sps:$4 sm:$0xff]  }
 0x184   : > { %6767 = vmatpush1.bf16.msra.mxu0 %v10613_v0  ;;  %v10705_v0 = vld [vmem:[%s13977_s1 + $0x870] ss:$8 sps:$4 sm:$0xff]  }
 0x185   : > { %6768 = vmatprep.subr.bf16.mxu0 %v10627_v42  ;;  %2720 = vmatpush1.bf16.msra.mxu1 %v10681_v54  ;;  %v10651_v42 = vld [vmem:[%s13977_s1 + $0xa44] ss:$8 sps:$4 sm:$0xff]   ;;  %v10620_v54 = vld [vmem:[%s11500_s24 + $0x298] ss:$36 sps:$4 sm:$0xff]  }
 0x186   : > { %2603 = vmatmul.mubr.bf16.gmra.mrb[28].mxu1 %v10608_v2  ;;  %v10624_v2 = vld [vmem:[%s11500_s24 + $0x120] ss:$36 sps:$4 sm:$0xff]   ;;  %2721 = vmatprep.subr.bf16.mxu1 %v10695_v18  ;;  %v10636_v18 = vld [vmem:[%s11500_s24 + $0x168] ss:$36 sps:$4 sm:$0xff]  }
 0x187   : > { %6614 = vmatmul.mubr.bf16.gmra.mrb[68].mxu0 %v10612_v56  ;;  %2612 = vmatprep.mubr.bf16.mxu1 %v10616_v59  ;;  %v10628_v56 = vld [vmem:[%s11500_s24 + $0x2e4] ss:$36 sps:$4 sm:$0xff]   ;;  %v10663_v59 = vld [vmem:[%s13977_s1 + $0xa54] ss:$8 sps:$4 sm:$0xff]  }
 0x188   : > { %6623 = vmatprep.mubr.bf16.mxu0 %v10618_v5  ;;  %6769 = vmatpush1.bf16.msra.mxu0 %v10625_v25  ;;  %v10649_v5 = vld [vmem:[%s13977_s1 + $0xa40] ss:$8 sps:$4 sm:$0xff]   ;;  %v10716_v25 = vld [vmem:[%s13977_s1 + $0x4] ss:$8 sps:$4 sm:$0xff]  }
 0x189   : > { %6770 = vmatprep.subr.bf16.mxu0 %v10639_v32  ;;  %2722 = vmatpush1.bf16.msra.mxu1 %v10693_v50  ;;  %v10661_v32 = vld [vmem:[%s13977_s1 + $0xa50] ss:$8 sps:$4 sm:$0xff]   ;;  %v10632_v50 = vld [vmem:[%s11500_s24 + $0x2e0] ss:$36 sps:$4 sm:$0xff]  }
 0x18a   : > { %2723 = vmatprep.subr.bf16.mxu1 %v10707_v21  ;;  %v10640_v21 = vld [vmem:[%s11500_s24 + $0x32c] ss:$36 sps:$4 sm:$0xff]  }
 0x18c   : > { %6771 = vmatpush1.bf16.msra.mxu0 %v10637_v20  ;;  %v10675_v20 = vld [vmem:[%s13977_s1 + $0xa64] ss:$8 sps:$4 sm:$0xff]  }
 0x18d   : > { %6772 = vmatprep.subr.bf16.mxu0 %v10651_v42  ;;  %2724 = vmatpush1.bf16.msra.mxu1 %v10705_v0  ;;  %v10642_v42 = vld [vmem:[%s11500_s24 + $0x1b4] ss:$36 sps:$4 sm:$0xff]  }
 0x18e   : > { %2613 = vmatmul.mubr.bf16.gmra.mrb[32].mxu1 %v10620_v54  ;;  %3845 = vmatprep.subr.bf16.mxu1 %v10716_v25  ;;  %v10687_v0 = vld [vmem:[%s13977_s1 + $0xa74] ss:$8 sps:$4 sm:$0xff]   ;;  %v10685_v54 = vld [vmem:[%s13977_s1 + $0xa70] ss:$8 sps:$4 sm:$0xff]  }
 0x18f   : > { %6624 = vmatmul.mubr.bf16.gmra.mrb[72].mxu0 %v10624_v2  ;;  %2622 = vmatprep.mubr.bf16.mxu1 %v10628_v56  ;;  %v10644_v2 = vld [vmem:[%s11500_s24 + $0x328] ss:$36 sps:$4 sm:$0xff]   ;;  %v10648_v56 = vld [vmem:[%s11500_s24 + $0x1b0] ss:$36 sps:$4 sm:$0xff]   ;;  %v10654_v25 = vld [vmem:[%s11500_s24 + $0x1fc] ss:$36 sps:$4 sm:$0xff]  }
 0x190   : > { %6633 = vmatprep.mubr.bf16.mxu0 %v10630_v19  ;;  %6773 = vmatpush1.bf16.msra.mxu0 %v10649_v5  ;;  %v10673_v19 = vld [vmem:[%s13977_s1 + $0xa60] ss:$8 sps:$4 sm:$0xff]   ;;  %v10699_v5 = vld [vmem:[%s13977_s1 + $0xa84] ss:$8 sps:$4 sm:$0xff]  }
 0x191   : > { %6774 = vmatprep.subr.bf16.mxu0 %v10663_v59  ;;  %v10652_v59 = vld [vmem:[%s11500_s24 + $0x374] ss:$36 sps:$4 sm:$0xff]  }
 0x194   : > { %6775 = vmatpush1.bf16.msra.mxu0 %v10661_v32  ;;  %v10697_v32 = vld [vmem:[%s13977_s1 + $0xa80] ss:$8 sps:$4 sm:$0xff]  }
 0x195   : > { %6776 = vmatprep.subr.bf16.mxu0 %v10675_v20  ;;  %v10656_v20 = vld [vmem:[%s11500_s24 + $0x370] ss:$36 sps:$4 sm:$0xff]  }
 0x196   : > { %2623 = vmatmul.mubr.bf16.gmra.mrb[36].mxu1 %v10632_v50  ;;  %v10711_v50 = vld [vmem:[%s13977_s1 + $0xa94] ss:$8 sps:$4 sm:$0xff]  }
 0x197   : > { %6634 = vmatmul.mubr.bf16.gmra.mrb[76].mxu0 %v10636_v18  ;;  %2632 = vmatprep.mubr.bf16.mxu1 %v10640_v21  ;;  %v10709_v18 = vld [vmem:[%s13977_s1 + $0xa90] ss:$8 sps:$4 sm:$0xff]  }
 0x198   : > { %6643 = vmatprep.mubr.bf16.mxu0 %v10642_v42  ;;  %6777 = vmatpush1.bf16.msra.mxu0 %v10673_v19  ;;  %v10660_v21 = vld [vmem:[%s11500_s24 + $0x1f8] ss:$36 sps:$4 sm:$0xff]   ;;  %v10720_v42 = vld [vmem:[%s13977_s1 + $0xaa4] ss:$8 sps:$4 sm:$0xff]  }
 0x199   : > { %6778 = vmatprep.subr.bf16.mxu0 %v10687_v0  ;;  %v10664_v19 = vld [vmem:[%s11500_s24 + $0x3bc] ss:$36 sps:$4 sm:$0xff]   ;;  %v10666_v0 = vld [vmem:[%s11500_s24 + $0x244] ss:$36 sps:$4 sm:$0xff]  }
 0x19c   : > { %6779 = vmatpush1.bf16.msra.mxu0 %v10685_v54  ;;  %v10718_v54 = vld [vmem:[%s13977_s1 + $0xaa0] ss:$8 sps:$4 sm:$0xff]  }
 0x19d   : > { %6780 = vmatprep.subr.bf16.mxu0 %v10699_v5  ;;  %v10738_v5 = vld [vmem:[%s13977_s1 + $0xac4] ss:$8 sps:$4 sm:$0xff]  }
 0x19e   : > { %2633 = vmatmul.mubr.bf16.gmra.mrb[40].mxu1 %v10644_v2  ;;  %v10729_v2 = vld [vmem:[%s13977_s1 + $0xab4] ss:$8 sps:$4 sm:$0xff]  }
 0x19f   : > { %6644 = vmatmul.mubr.bf16.gmra.mrb[80].mxu0 %v10648_v56  ;;  %2642 = vmatprep.mubr.bf16.mxu1 %v10652_v59  ;;  %v10727_v56 = vld [vmem:[%s13977_s1 + $0xab0] ss:$8 sps:$4 sm:$0xff]  }
 0x1a0   : > { %6653 = vmatprep.mubr.bf16.mxu0 %v10654_v25  ;;  %6781 = vmatpush1.bf16.msra.mxu0 %v10697_v32  ;;  %v10668_v59 = vld [vmem:[%s11500_s24 + $0x3b8] ss:$36 sps:$4 sm:$0xff]   ;;  %v10672_v25 = vld [vmem:[%s11500_s24 + $0x240] ss:$36 sps:$4 sm:$0xff]  }
 0x1a1   : > { %6782 = vmatprep.subr.bf16.mxu0 %v10711_v50  ;;  %v10676_v32 = vld [vmem:[%s11500_s24 + $0x404] ss:$36 sps:$4 sm:$0xff]   ;;  %v10678_v50 = vld [vmem:[%s11500_s24 + $0x28c] ss:$36 sps:$4 sm:$0xff]  }
 0x1a4   : > { %6783 = vmatpush1.bf16.msra.mxu0 %v10709_v18  ;;  %v10736_v18 = vld [vmem:[%s13977_s1 + $0xac0] ss:$8 sps:$4 sm:$0xff]  }
 0x1a5   : > { %6784 = vmatprep.subr.bf16.mxu0 %v10720_v42  ;;  %v10756_v42 = vld [vmem:[%s13977_s1 + $0xae4] ss:$8 sps:$4 sm:$0xff]  }
 0x1a6   : > { %2643 = vmatmul.mubr.bf16.gmra.mrb[44].mxu1 %v10656_v20  ;;  %v10747_v20 = vld [vmem:[%s13977_s1 + $0xad4] ss:$8 sps:$4 sm:$0xff]  }
 0x1a7   : > { %6654 = vmatmul.mubr.bf16.gmra.mrb[84].mxu0 %v10660_v21  ;;  %2652 = vmatprep.mubr.bf16.mxu1 %v10664_v19  ;;  %v10745_v21 = vld [vmem:[%s13977_s1 + $0xad0] ss:$8 sps:$4 sm:$0xff]   ;;  %v10680_v19 = vld [vmem:[%s11500_s24 + $0x400] ss:$36 sps:$4 sm:$0xff]  }
 0x1a8   : > { %6663 = vmatprep.mubr.bf16.mxu0 %v10666_v0  ;;  %6785 = vmatpush1.bf16.msra.mxu0 %v10718_v54  ;;  %v10684_v0 = vld [vmem:[%s11500_s24 + $0x288] ss:$36 sps:$4 sm:$0xff]  }
 0x1a9   : > { %6786 = vmatprep.subr.bf16.mxu0 %v10729_v2  ;;  %v10688_v54 = vld [vmem:[%s11500_s24 + $0x44c] ss:$36 sps:$4 sm:$0xff]   ;;  %v10690_v2 = vld [vmem:[%s11500_s24 + $0x2d4] ss:$36 sps:$4 sm:$0xff]  }
 0x1ac   : > { %6787 = vmatpush1.bf16.msra.mxu0 %v10727_v56  ;;  %v10754_v56 = vld [vmem:[%s13977_s1 + $0xae0] ss:$8 sps:$4 sm:$0xff]  }
 0x1ad   : > { %6788 = vmatprep.subr.bf16.mxu0 %v10738_v5  ;;  %v10765_v5 = vld [vmem:[%s13977_s1 + $0xaf4] ss:$8 sps:$4 sm:$0xff]  }
 0x1ae   : > { %2653 = vmatmul.mubr.bf16.gmra.mrb[48].mxu1 %v10668_v59  ;;  %v10763_v59 = vld [vmem:[%s13977_s1 + $0xaf0] ss:$8 sps:$4 sm:$0xff]  }
 0x1af   : > { %6664 = vmatmul.mubr.bf16.gmra.mrb[88].mxu0 %v10672_v25  ;;  %2662 = vmatprep.mubr.bf16.mxu1 %v10676_v32  ;;  %v10774_v25 = vld [vmem:[%s13977_s1 + $0xb04] ss:$8 sps:$4 sm:$0xff]  }
 0x1b0   : > { %6673 = vmatprep.mubr.bf16.mxu0 %v10678_v50  ;;  %6789 = vmatpush1.bf16.msra.mxu0 %v10736_v18  ;;  %v10692_v32 = vld [vmem:[%s11500_s24 + $0x448] ss:$36 sps:$4 sm:$0xff]   ;;  %v10696_v50 = vld [vmem:[%s11500_s24 + $0x2d0] ss:$36 sps:$4 sm:$0xff]  }
 0x1b1   : > { %6790 = vmatprep.subr.bf16.mxu0 %v10747_v20  ;;  %v10700_v18 = vld [vmem:[%s11500_s24 + $0x494] ss:$36 sps:$4 sm:$0xff]   ;;  %v10702_v20 = vld [vmem:[%s11500_s24 + $0x31c] ss:$36 sps:$4 sm:$0xff]  }
 0x1b4   : > { %6791 = vmatpush1.bf16.msra.mxu0 %v10745_v21  ;;  %v10704_v21 = vld [vmem:[%s11500_s24 + $0x490] ss:$36 sps:$4 sm:$0xff]  }
 0x1b5   : > { %6792 = vmatprep.subr.bf16.mxu0 %v10756_v42  ;;  %v10708_v42 = vld [vmem:[%s11500_s24 + $0x318] ss:$36 sps:$4 sm:$0xff]  }
 0x1b6   : > { %2663 = vmatmul.mubr.bf16.gmra.mrb[52].mxu1 %v10680_v19  ;;  %v10712_v19 = vld [vmem:[%s11500_s24 + $0x364] ss:$36 sps:$4 sm:$0xff]  }
 0x1b7   : > { %6674 = vmatmul.mubr.bf16.gmra.mrb[92].mxu0 %v10684_v0  ;;  %2672 = vmatprep.mubr.bf16.mxu1 %v10688_v54  ;;  %v11217_v0 = vld [vmem:[%s11500_s24 + $0x64] ss:$36 sps:$4 sm:$0xff]  }
 0x1b8   : > { %6683 = vmatprep.mubr.bf16.mxu0 %v10690_v2  ;;  %6793 = vmatpush1.bf16.msra.mxu0 %v10754_v56  ;;  %v10717_v54 = vld [vmem:[%s11500_s24 + $0x360] ss:$36 sps:$4 sm:$0xff]   ;;  %v10721_v56 = vld [vmem:[%s11500_s24 + $0x3ac] ss:$36 sps:$4 sm:$0xff]  }
 0x1b9   : > { %6794 = vmatprep.subr.bf16.mxu0 %v10765_v5  ;;  %v10714_v2 = vld [vmem:[%s13977_s1] ss:$8 sps:$4 sm:$0xff]   ;;  %v10725_v5 = vld [vmem:[%s13977_s1 + $0x14] ss:$8 sps:$4 sm:$0xff]  }
 0x1bc   : > { %6795 = vmatpush1.bf16.msra.mxu0 %v10763_v59  ;;  %v11218_v59 = vld [vmem:[%s11500_s24 + $0x60] ss:$36 sps:$4 sm:$0xff]  }
 0x1bd   : > { %6957 = vmatprep.subr.bf16.mxu0 %v10774_v25  ;;  %v11219_v25 = vld [vmem:[%s11500_s24 + $0xac] ss:$36 sps:$4 sm:$0xff]  }
 0x1be   : > { %2673 = vmatmul.mubr.bf16.gmra.mrb[56].mxu1 %v10692_v32  ;;  %v10723_v32 = vld [vmem:[%s13977_s1 + $0x10] ss:$8 sps:$4 sm:$0xff]  }
 0x1bf   : > { %6684 = vmatmul.mubr.bf16.gmra.mrb[96].mxu0 %v10696_v50  ;;  %2682 = vmatprep.mubr.bf16.mxu1 %v10700_v18  ;;  %v10734_v50 = vld [vmem:[%s13977_s1 + $0x24] ss:$8 sps:$4 sm:$0xff]  }
 0x1c0   : > { %6693 = vmatprep.mubr.bf16.mxu0 %v10702_v20  ;;  %v10726_v18 = vld [vmem:[%s11500_s24 + $0x3a8] ss:$36 sps:$4 sm:$0xff]   ;;  %v10730_v20 = vld [vmem:[%s11500_s24 + $0x3f4] ss:$36 sps:$4 sm:$0xff]  }
 0x1c6   : > { %2683 = vmatmul.mubr.bf16.gmra.mrb[60].mxu1 %v10704_v21  ;;  %v10732_v21 = vld [vmem:[%s13977_s1 + $0x20] ss:$8 sps:$4 sm:$0xff]  }
 0x1c7   : > { %6694 = vmatmul.mubr.bf16.gmra.mrb[100].mxu0 %v10708_v42  ;;  %2725 = vmatprep.mubr.bf16.mxu1 %v11217_v0  ;;  %v10743_v42 = vld [vmem:[%s13977_s1 + $0x34] ss:$8 sps:$4 sm:$0xff]  }
 0x1c8   : > { %6703 = vmatprep.mubr.bf16.mxu0 %v10712_v19  ;;  %v11220_v19 = vld [vmem:[%s11500_s24 + $0xa8] ss:$36 sps:$4 sm:$0xff]   ;;  %v11221_v0 = vld [vmem:[%s11500_s24 + $0xf4] ss:$36 sps:$4 sm:$0xff]  }
 0x1ce   : > { %2726 = vmatmul.mubr.bf16.vlgmr.msra.gmra.mrb[0].mxu1 %v11218_v59  ;;  %v10750_v59 = vld [vmem:[%s13977_s1 + $0x40] ss:$8 sps:$4 sm:$0xff]  }
 0x1cf   : > { %6704 = vmatmul.mubr.bf16.gmra.mrb[104].mxu0 %v10717_v54  ;;  %3846 = vmatpush1.bf16.msra.mxu1 %v10714_v2  ;;  %v10741_v54 = vld [vmem:[%s13977_s1 + $0x30] ss:$8 sps:$4 sm:$0xff]   ;;  %v10752_v2 = vld [vmem:[%s13977_s1 + $0x44] ss:$8 sps:$4 sm:$0xff]  }
 0x1d0   : > { %2735 = vmatprep.mubr.bf16.mxu1 %v11219_v25  ;;  %6713 = vmatprep.mubr.bf16.mxu0 %v10721_v56  ;;  %v10735_v56 = vld [vmem:[%s11500_s24 + $0x3f0] ss:$36 sps:$4 sm:$0xff]  }
 0x1d1   : > { %3847 = vmatprep.subr.bf16.mxu1 %v10725_v5  ;;  %v10739_v5 = vld [vmem:[%s11500_s24 + $0x43c] ss:$36 sps:$4 sm:$0xff]  }
 0x1d2   : > { %v10761_v25 = vld [vmem:[%s13977_s1 + $0x54] ss:$8 sps:$4 sm:$0xff]  }
 0x1d3   : > { %3848 = vmatpush1.bf16.msra.mxu1 %v10723_v32  ;;  %v11222_v32 = vld [vmem:[%s11500_s24 + $0xf0] ss:$36 sps:$4 sm:$0xff]  }
 0x1d4   : > { %3849 = vmatprep.subr.bf16.mxu1 %v10734_v50  ;;  %v11223_v50 = vld [vmem:[%s11500_s24 + $0x13c] ss:$36 sps:$4 sm:$0xff]  }
 0x1d6   : > { %2736 = vmatmul.mubr.bf16.gmra.mrb[4].mxu1 %v11220_v19  ;;  %v10769_v19 = vld [vmem:[%s13977_s1 + $0x60] ss:$8 sps:$4 sm:$0xff]  }
 0x1d7   : > { %6714 = vmatmul.mubr.bf16.gmra.mrb[108].mxu0 %v10726_v18  ;;  %2745 = vmatprep.mubr.bf16.mxu1 %v11221_v0  ;;  %v10759_v18 = vld [vmem:[%s13977_s1 + $0x50] ss:$8 sps:$4 sm:$0xff]   ;;  %v10779_v0 = vld [vmem:[%s13977_s1 + $0x74] ss:$8 sps:$4 sm:$0xff]  }
 0x1d8   : > { %6723 = vmatprep.mubr.bf16.mxu0 %v10730_v20  ;;  %3850 = vmatpush1.bf16.msra.mxu1 %v10732_v21  ;;  %v10771_v20 = vld [vmem:[%s13977_s1 + $0x64] ss:$8 sps:$4 sm:$0xff]   ;;  %v10744_v21 = vld [vmem:[%s11500_s24 + $0x438] ss:$36 sps:$4 sm:$0xff]  }
 0x1d9   : > { %3851 = vmatprep.subr.bf16.mxu1 %v10743_v42  ;;  %v10748_v42 = vld [vmem:[%s11500_s24 + $0x484] ss:$36 sps:$4 sm:$0xff]  }
 0x1dc   : > { %3852 = vmatpush1.bf16.msra.mxu1 %v10741_v54  ;;  %v11224_v54 = vld [vmem:[%s11500_s24 + $0x138] ss:$36 sps:$4 sm:$0xff]  }
 0x1dd   : > { %3853 = vmatprep.subr.bf16.mxu1 %v10752_v2  ;;  %v11225_v2 = vld [vmem:[%s11500_s24 + $0x184] ss:$36 sps:$4 sm:$0xff]  }
 0x1de   : > { %2746 = vmatmul.mubr.bf16.gmra.mrb[8].mxu1 %v11222_v32  ;;  %v10786_v32 = vld [vmem:[%s13977_s1 + $0x80] ss:$8 sps:$4 sm:$0xff]  }
 0x1df   : > { %6724 = vmatmul.mubr.bf16.gmra.mrb[112].mxu0 %v10735_v56  ;;  %2755 = vmatprep.mubr.bf16.mxu1 %v11223_v50  ;;  %v10777_v56 = vld [vmem:[%s13977_s1 + $0x70] ss:$8 sps:$4 sm:$0xff]   ;;  %v10800_v50 = vld [vmem:[%s13977_s1 + $0x94] ss:$8 sps:$4 sm:$0xff]  }
 0x1e0   : > { %6733 = vmatprep.mubr.bf16.mxu0 %v10739_v5  ;;  %3854 = vmatpush1.bf16.msra.mxu1 %v10750_v59  ;;  %v10788_v5 = vld [vmem:[%s13977_s1 + $0x84] ss:$8 sps:$4 sm:$0xff]  }
 0x1e1   : > { %3855 = vmatprep.subr.bf16.mxu1 %v10761_v25  ;;  %v10753_v59 = vld [vmem:[%s11500_s24 + $0x480] ss:$36 sps:$4 sm:$0xff]   ;;  %v10757_v25 = vld [vmem:[%s11500_s24 + $0x4cc] ss:$36 sps:$4 sm:$0xff]  }
 0x1e4   : > { %3856 = vmatpush1.bf16.msra.mxu1 %v10759_v18  ;;  %v11226_v18 = vld [vmem:[%s11500_s24 + $0x180] ss:$36 sps:$4 sm:$0xff]  }
 0x1e5   : > { %3857 = vmatprep.subr.bf16.mxu1 %v10771_v20  ;;  %v11227_v20 = vld [vmem:[%s11500_s24 + $0x1cc] ss:$36 sps:$4 sm:$0xff]  }
 0x1e6   : > { %2756 = vmatmul.mubr.bf16.gmra.mrb[12].mxu1 %v11224_v54  ;;  %v10810_v54 = vld [vmem:[%s13977_s1 + $0xa0] ss:$8 sps:$4 sm:$0xff]  }
 0x1e7   : > { %6734 = vmatmul.mubr.bf16.gmra.mrb[116].mxu0 %v10744_v21  ;;  %2765 = vmatprep.mubr.bf16.mxu1 %v11225_v2  ;;  %v10798_v21 = vld [vmem:[%s13977_s1 + $0x90] ss:$8 sps:$4 sm:$0xff]   ;;  %v10824_v2 = vld [vmem:[%s13977_s1 + $0xb4] ss:$8 sps:$4 sm:$0xff]  }
 0x1e8   : > { %6743 = vmatprep.mubr.bf16.mxu0 %v10748_v42  ;;  %3858 = vmatpush1.bf16.msra.mxu1 %v10769_v19  ;;  %v10812_v42 = vld [vmem:[%s13977_s1 + $0xa4] ss:$8 sps:$4 sm:$0xff]  }
 0x1e9   : > { %3859 = vmatprep.subr.bf16.mxu1 %v10779_v0  ;;  %v10762_v19 = vld [vmem:[%s11500_s24 + $0x4c8] ss:$36 sps:$4 sm:$0xff]   ;;  %v10768_v0 = vld [vmem:[%s11500_s24 + $0x9c] ss:$36 sps:$4 sm:$0xff]  }
 0x1ec   : > { %3860 = vmatpush1.bf16.msra.mxu1 %v10777_v56  ;;  %v11228_v56 = vld [vmem:[%s11500_s24 + $0x1c8] ss:$36 sps:$4 sm:$0xff]  }
 0x1ed   : > { %3861 = vmatprep.subr.bf16.mxu1 %v10788_v5  ;;  %v11229_v5 = vld [vmem:[%s11500_s24 + $0x214] ss:$36 sps:$4 sm:$0xff]  }
 0x1ee   : > { %2766 = vmatmul.mubr.bf16.gmra.mrb[16].mxu1 %v11226_v18  ;;  %v10775_v18 = vld [vmem:[%s11500_s24 + $0xe4] ss:$36 sps:$4 sm:$0xff]  }
 0x1ef   : > { %6744 = vmatmul.mubr.bf16.gmra.mrb[120].mxu0 %v10753_v59  ;;  %2775 = vmatprep.mubr.bf16.mxu1 %v11227_v20  ;;  %v10822_v59 = vld [vmem:[%s13977_s1 + $0xb0] ss:$8 sps:$4 sm:$0xff]   ;;  %v10783_v20 = vld [vmem:[%s13977_s1 + $0xb14] ss:$8 sps:$4 sm:$0xff]  }
 0x1f0   : > { %6753 = vmatprep.mubr.bf16.mxu0 %v10757_v25  ;;  %3862 = vmatpush1.bf16.msra.mxu1 %v10786_v32  ;;  %v10836_v25 = vld [vmem:[%s13977_s1 + $0xc4] ss:$8 sps:$4 sm:$0xff]   ;;  %v10766_v32 = vld [vmem:[%s11500_s24 + $0x98] ss:$36 sps:$4 sm:$0xff]  }
 0x1f1   : > { %3863 = vmatprep.subr.bf16.mxu1 %v10800_v50  ;;  %v10772_v50 = vld [vmem:[%s13977_s1 + $0xb00] ss:$8 sps:$4 sm:$0xff]  }
 0x1f4   : > { %3864 = vmatpush1.bf16.msra.mxu1 %v10798_v21  ;;  %v10834_v21 = vld [vmem:[%s13977_s1 + $0xc0] ss:$8 sps:$4 sm:$0xff]  }
 0x1f5   : > { %3865 = vmatprep.subr.bf16.mxu1 %v10812_v42  ;;  %v11230_v42 = vld [vmem:[%s11500_s24 + $0x210] ss:$36 sps:$4 sm:$0xff]  }
 0x1f6   : > { %2776 = vmatmul.mubr.bf16.gmra.mrb[20].mxu1 %v11228_v56  ;;  %v10846_v56 = vld [vmem:[%s13977_s1 + $0xd0] ss:$8 sps:$4 sm:$0xff]  }
 0x1f7   : > { %6754 = vmatmul.mubr.bf16.gmra.mrb[124].mxu0 %v10762_v19  ;;  %2785 = vmatprep.mubr.bf16.mxu1 %v11229_v5  ;;  %v10848_v19 = vld [vmem:[%s13977_s1 + $0xd4] ss:$8 sps:$4 sm:$0xff]   ;;  %v10780_v5 = vld [vmem:[%s11500_s24 + $0xe0] ss:$36 sps:$4 sm:$0xff]  }
 0x1f8   : > { %6796 = vmatprep.mubr.bf16.mxu0 %v10768_v0  ;;  %3866 = vmatpush1.bf16.msra.mxu1 %v10810_v54  ;;  %v11231_v0 = vld [vmem:[%s11500_s24 + $0x25c] ss:$36 sps:$4 sm:$0xff]   ;;  %v10781_v54 = vld [vmem:[%s13977_s1 + $0xb10] ss:$8 sps:$4 sm:$0xff]  }
 0x1f9   : > { %3867 = vmatprep.subr.bf16.mxu1 %v10824_v2  ;;  %v10792_v2 = vld [vmem:[%s13977_s1 + $0xb24] ss:$8 sps:$4 sm:$0xff]  }
 0x1fc   : > { %3868 = vmatpush1.bf16.msra.mxu1 %v10822_v59  ;;  %v10784_v59 = vld [vmem:[%s11500_s24 + $0x12c] ss:$36 sps:$4 sm:$0xff]  }
 0x1fd   : > { %3869 = vmatprep.subr.bf16.mxu1 %v10836_v25  ;;  %v10790_v25 = vld [vmem:[%s13977_s1 + $0xb20] ss:$8 sps:$4 sm:$0xff]  }
 0x1fe   : > { %2786 = vmatmul.mubr.bf16.gmra.mrb[24].mxu1 %v11230_v42  ;;  %v11233_v42 = vld [vmem:[%s11500_s24 + $0x2a4] ss:$36 sps:$4 sm:$0xff]  }
 0x1ff   : > { %6797 = vmatmul.mubr.bf16.vlgmr.msra.gmra.mrb[64].mxu0 %v10766_v32  ;;  %2795 = vmatprep.mubr.bf16.mxu1 %v11231_v0  ;;  %v10860_v32 = vld [vmem:[%s13977_s1 + $0xe4] ss:$8 sps:$4 sm:$0xff]  }
 0x200   : > { %6958 = vmatpush1.bf16.msra.mxu0 %v10772_v50  ;;  %6806 = vmatprep.mubr.bf16.mxu0 %v10775_v18  ;;  %v10804_v50 = vld [vmem:[%s13977_s1 + $0xb34] ss:$8 sps:$4 sm:$0xff]   ;;  %v10858_v18 = vld [vmem:[%s13977_s1 + $0xe0] ss:$8 sps:$4 sm:$0xff]   ;;  %v10816_v0 = vld [vmem:[%s13977_s1 + $0xb44] ss:$8 sps:$4 sm:$0xff]  }
 0x201   : > { %6959 = vmatprep.subr.bf16.mxu0 %v10783_v20  ;;  %3870 = vmatpush1.bf16.msra.mxu1 %v10834_v21  ;;  %v11232_v20 = vld [vmem:[%s11500_s24 + $0x258] ss:$36 sps:$4 sm:$0xff]  }
 0x202   : > { %3871 = vmatprep.subr.bf16.mxu1 %v10848_v19  ;;  %v10872_v21 = vld [vmem:[%s13977_s1 + $0xf4] ss:$8 sps:$4 sm:$0xff]   ;;  %v10802_v19 = vld [vmem:[%s13977_s1 + $0xb30] ss:$8 sps:$4 sm:$0xff]  }
 0x204   : > { %6960 = vmatpush1.bf16.msra.mxu0 %v10781_v54  ;;  %v10870_v54 = vld [vmem:[%s13977_s1 + $0xf0] ss:$8 sps:$4 sm:$0xff]  }
 0x205   : > { %6961 = vmatprep.subr.bf16.mxu0 %v10792_v2  ;;  %3872 = vmatpush1.bf16.msra.mxu1 %v10846_v56  ;;  %v10789_v2 = vld [vmem:[%s11500_s24 + $0x128] ss:$36 sps:$4 sm:$0xff]  }
 0x206   : > { %2796 = vmatmul.mubr.bf16.gmra.mrb[28].mxu1 %v11232_v20  ;;  %3873 = vmatprep.subr.bf16.mxu1 %v10860_v32  ;;  %v10793_v56 = vld [vmem:[%s11500_s24 + $0x2ec] ss:$36 sps:$4 sm:$0xff]   ;;  %v10828_v32 = vld [vmem:[%s13977_s1 + $0xb54] ss:$8 sps:$4 sm:$0xff]  }
 0x207   : > { %6807 = vmatmul.mubr.bf16.gmra.mrb[68].mxu0 %v10780_v5  ;;  %2805 = vmatprep.mubr.bf16.mxu1 %v11233_v42  ;;  %v10795_v5 = vld [vmem:[%s11500_s24 + $0x174] ss:$36 sps:$4 sm:$0xff]   ;;  %v10840_v20 = vld [vmem:[%s13977_s1 + $0xb64] ss:$8 sps:$4 sm:$0xff]  }
 0x208   : > { %6816 = vmatprep.mubr.bf16.mxu0 %v10784_v59  ;;  %6962 = vmatpush1.bf16.msra.mxu0 %v10790_v25  ;;  %v10814_v59 = vld [vmem:[%s13977_s1 + $0xb40] ss:$8 sps:$4 sm:$0xff]   ;;  %v10884_v25 = vld [vmem:[%s13977_s1 + $0x104] ss:$8 sps:$4 sm:$0xff]   ;;  %v10801_v42 = vld [vmem:[%s11500_s24 + $0x170] ss:$36 sps:$4 sm:$0xff]  }
 0x209   : > { %6963 = vmatprep.subr.bf16.mxu0 %v10804_v50  ;;  %3874 = vmatpush1.bf16.msra.mxu1 %v10858_v18  ;;  %v11234_v50 = vld [vmem:[%s11500_s24 + $0x2a0] ss:$36 sps:$4 sm:$0xff]   ;;  %v10826_v18 = vld [vmem:[%s13977_s1 + $0xb50] ss:$8 sps:$4 sm:$0xff]  }
 0x20a   : > { %3875 = vmatprep.subr.bf16.mxu1 %v10872_v21  ;;  %v10797_v21 = vld [vmem:[%s11500_s24 + $0x2e8] ss:$36 sps:$4 sm:$0xff]  }
 0x20c   : > { %6964 = vmatpush1.bf16.msra.mxu0 %v10802_v19  ;;  %v10805_v19 = vld [vmem:[%s11500_s24 + $0x334] ss:$36 sps:$4 sm:$0xff]  }
 0x20d   : > { %6965 = vmatprep.subr.bf16.mxu0 %v10816_v0  ;;  %3876 = vmatpush1.bf16.msra.mxu1 %v10870_v54  ;;  %v10807_v0 = vld [vmem:[%s11500_s24 + $0x1bc] ss:$36 sps:$4 sm:$0xff]  }
 0x20e   : > { %2806 = vmatmul.mubr.bf16.gmra.mrb[32].mxu1 %v11234_v50  ;;  %4038 = vmatprep.subr.bf16.mxu1 %v10884_v25  ;;  %v10838_v54 = vld [vmem:[%s13977_s1 + $0xb60] ss:$8 sps:$4 sm:$0xff]   ;;  %v10813_v25 = vld [vmem:[%s11500_s24 + $0x1b8] ss:$36 sps:$4 sm:$0xff]  }
 0x20f   : > { %6817 = vmatmul.mubr.bf16.gmra.mrb[72].mxu0 %v10789_v2  ;;  %2815 = vmatprep.mubr.bf16.mxu1 %v10793_v56  ;;  %v10852_v2 = vld [vmem:[%s13977_s1 + $0xb74] ss:$8 sps:$4 sm:$0xff]   ;;  %v10850_v56 = vld [vmem:[%s13977_s1 + $0xb70] ss:$8 sps:$4 sm:$0xff]   ;;  %v10819_v50 = vld [vmem:[%s11500_s24 + $0x204] ss:$36 sps:$4 sm:$0xff]  }
 0x210   : > { %6826 = vmatprep.mubr.bf16.mxu0 %v10795_v5  ;;  %6966 = vmatpush1.bf16.msra.mxu0 %v10814_v59  ;;  %v10864_v5 = vld [vmem:[%s13977_s1 + $0xb84] ss:$8 sps:$4 sm:$0xff]   ;;  %v10809_v59 = vld [vmem:[%s11500_s24 + $0x330] ss:$36 sps:$4 sm:$0xff]  }
 0x211   : > { %6967 = vmatprep.subr.bf16.mxu0 %v10828_v32  ;;  %v10817_v32 = vld [vmem:[%s11500_s24 + $0x37c] ss:$36 sps:$4 sm:$0xff]  }
 0x214   : > { %6968 = vmatpush1.bf16.msra.mxu0 %v10826_v18  ;;  %v10862_v18 = vld [vmem:[%s13977_s1 + $0xb80] ss:$8 sps:$4 sm:$0xff]  }
 0x215   : > { %6969 = vmatprep.subr.bf16.mxu0 %v10840_v20  ;;  %v10876_v20 = vld [vmem:[%s13977_s1 + $0xb94] ss:$8 sps:$4 sm:$0xff]  }
 0x216   : > { %2816 = vmatmul.mubr.bf16.gmra.mrb[36].mxu1 %v10797_v21  ;;  %v10874_v21 = vld [vmem:[%s13977_s1 + $0xb90] ss:$8 sps:$4 sm:$0xff]  }
 0x217   : > { %6827 = vmatmul.mubr.bf16.gmra.mrb[76].mxu0 %v10801_v42  ;;  %2825 = vmatprep.mubr.bf16.mxu1 %v10805_v19  ;;  %v10888_v42 = vld [vmem:[%s13977_s1 + $0xba4] ss:$8 sps:$4 sm:$0xff]   ;;  %v10821_v19 = vld [vmem:[%s11500_s24 + $0x378] ss:$36 sps:$4 sm:$0xff]  }
 0x218   : > { %6836 = vmatprep.mubr.bf16.mxu0 %v10807_v0  ;;  %6970 = vmatpush1.bf16.msra.mxu0 %v10838_v54  ;;  %v10825_v0 = vld [vmem:[%s11500_s24 + $0x200] ss:$36 sps:$4 sm:$0xff]  }
 0x219   : > { %6971 = vmatprep.subr.bf16.mxu0 %v10852_v2  ;;  %v10829_v54 = vld [vmem:[%s11500_s24 + $0x3c4] ss:$36 sps:$4 sm:$0xff]   ;;  %v10831_v2 = vld [vmem:[%s11500_s24 + $0x24c] ss:$36 sps:$4 sm:$0xff]  }
 0x21c   : > { %6972 = vmatpush1.bf16.msra.mxu0 %v10850_v56  ;;  %v10886_v56 = vld [vmem:[%s13977_s1 + $0xba0] ss:$8 sps:$4 sm:$0xff]  }
 0x21d   : > { %6973 = vmatprep.subr.bf16.mxu0 %v10864_v5  ;;  %v10897_v5 = vld [vmem:[%s13977_s1 + $0xbb4] ss:$8 sps:$4 sm:$0xff]  }
 0x21e   : > { %2826 = vmatmul.mubr.bf16.gmra.mrb[40].mxu1 %v10809_v59  ;;  %v10895_v59 = vld [vmem:[%s13977_s1 + $0xbb0] ss:$8 sps:$4 sm:$0xff]  }
 0x21f   : > { %6837 = vmatmul.mubr.bf16.gmra.mrb[80].mxu0 %v10813_v25  ;;  %2835 = vmatprep.mubr.bf16.mxu1 %v10817_v32  ;;  %v10906_v25 = vld [vmem:[%s13977_s1 + $0xbc4] ss:$8 sps:$4 sm:$0xff]  }
 0x220   : > { %6846 = vmatprep.mubr.bf16.mxu0 %v10819_v50  ;;  %6974 = vmatpush1.bf16.msra.mxu0 %v10862_v18  ;;  %v10833_v32 = vld [vmem:[%s11500_s24 + $0x3c0] ss:$36 sps:$4 sm:$0xff]   ;;  %v10837_v50 = vld [vmem:[%s11500_s24 + $0x248] ss:$36 sps:$4 sm:$0xff]  }
 0x221   : > { %6975 = vmatprep.subr.bf16.mxu0 %v10876_v20  ;;  %v10841_v18 = vld [vmem:[%s11500_s24 + $0x40c] ss:$36 sps:$4 sm:$0xff]   ;;  %v10843_v20 = vld [vmem:[%s11500_s24 + $0x294] ss:$36 sps:$4 sm:$0xff]  }
 0x224   : > { %6976 = vmatpush1.bf16.msra.mxu0 %v10874_v21  ;;  %v10904_v21 = vld [vmem:[%s13977_s1 + $0xbc0] ss:$8 sps:$4 sm:$0xff]  }
 0x225   : > { %6977 = vmatprep.subr.bf16.mxu0 %v10888_v42  ;;  %v10915_v42 = vld [vmem:[%s13977_s1 + $0xbd4] ss:$8 sps:$4 sm:$0xff]  }
 0x226   : > { %2836 = vmatmul.mubr.bf16.gmra.mrb[44].mxu1 %v10821_v19  ;;  %v10913_v19 = vld [vmem:[%s13977_s1 + $0xbd0] ss:$8 sps:$4 sm:$0xff]  }
 0x227   : > { %6847 = vmatmul.mubr.bf16.gmra.mrb[84].mxu0 %v10825_v0  ;;  %2845 = vmatprep.mubr.bf16.mxu1 %v10829_v54  ;;  %v10924_v0 = vld [vmem:[%s13977_s1 + $0xbe4] ss:$8 sps:$4 sm:$0xff]  }
 0x228   : > { %6856 = vmatprep.mubr.bf16.mxu0 %v10831_v2  ;;  %6978 = vmatpush1.bf16.msra.mxu0 %v10886_v56  ;;  %v10845_v54 = vld [vmem:[%s11500_s24 + $0x408] ss:$36 sps:$4 sm:$0xff]   ;;  %v10849_v2 = vld [vmem:[%s11500_s24 + $0x290] ss:$36 sps:$4 sm:$0xff]  }
 0x229   : > { %6979 = vmatprep.subr.bf16.mxu0 %v10897_v5  ;;  %v10853_v56 = vld [vmem:[%s11500_s24 + $0x454] ss:$36 sps:$4 sm:$0xff]   ;;  %v10855_v5 = vld [vmem:[%s11500_s24 + $0x2dc] ss:$36 sps:$4 sm:$0xff]  }
 0x22c   : > { %6980 = vmatpush1.bf16.msra.mxu0 %v10895_v59  ;;  %v10922_v59 = vld [vmem:[%s13977_s1 + $0xbe0] ss:$8 sps:$4 sm:$0xff]  }
 0x22d   : > { %6981 = vmatprep.subr.bf16.mxu0 %v10906_v25  ;;  %v10933_v25 = vld [vmem:[%s13977_s1 + $0xbf4] ss:$8 sps:$4 sm:$0xff]  }
 0x22e   : > { %2846 = vmatmul.mubr.bf16.gmra.mrb[48].mxu1 %v10833_v32  ;;  %v10931_v32 = vld [vmem:[%s13977_s1 + $0xbf0] ss:$8 sps:$4 sm:$0xff]  }
 0x22f   : > { %6857 = vmatmul.mubr.bf16.gmra.mrb[88].mxu0 %v10837_v50  ;;  %2855 = vmatprep.mubr.bf16.mxu1 %v10841_v18  ;;  %v10942_v50 = vld [vmem:[%s13977_s1 + $0xc04] ss:$8 sps:$4 sm:$0xff]   ;;  %v10857_v18 = vld [vmem:[%s11500_s24 + $0x450] ss:$36 sps:$4 sm:$0xff]  }
 0x230   : > { %6866 = vmatprep.mubr.bf16.mxu0 %v10843_v20  ;;  %6982 = vmatpush1.bf16.msra.mxu0 %v10904_v21  ;;  %v10861_v20 = vld [vmem:[%s11500_s24 + $0x2d8] ss:$36 sps:$4 sm:$0xff]  }
 0x231   : > { %6983 = vmatprep.subr.bf16.mxu0 %v10915_v42  ;;  %v10865_v21 = vld [vmem:[%s11500_s24 + $0x49c] ss:$36 sps:$4 sm:$0xff]   ;;  %v10867_v42 = vld [vmem:[%s11500_s24 + $0x324] ss:$36 sps:$4 sm:$0xff]  }
 0x234   : > { %6984 = vmatpush1.bf16.msra.mxu0 %v10913_v19  ;;  %v10869_v19 = vld [vmem:[%s11500_s24 + $0x498] ss:$36 sps:$4 sm:$0xff]  }
 0x235   : > { %6985 = vmatprep.subr.bf16.mxu0 %v10924_v0  ;;  %v10873_v0 = vld [vmem:[%s11500_s24 + $0x320] ss:$36 sps:$4 sm:$0xff]  }
 0x236   : > { %2856 = vmatmul.mubr.bf16.gmra.mrb[52].mxu1 %v10845_v54  ;;  %v10879_v54 = vld [vmem:[%s11500_s24 + $0x4] ss:$36 sps:$4 sm:$0xff]  }
 0x237   : > { %6867 = vmatmul.mubr.bf16.gmra.mrb[92].mxu0 %v10849_v2  ;;  %2865 = vmatprep.mubr.bf16.mxu1 %v10853_v56  ;;  %v10880_v2 = vld [vmem:[%s11500_s24 + $0x36c] ss:$36 sps:$4 sm:$0xff]   ;;  %v10877_v56 = vld [vmem:[%s11500_s24] ss:$36 sps:$4 sm:$0xff]  }
 0x238   : > { %6876 = vmatprep.mubr.bf16.mxu0 %v10855_v5  ;;  %6986 = vmatpush1.bf16.msra.mxu0 %v10922_v59  ;;  %v10885_v5 = vld [vmem:[%s11500_s24 + $0x368] ss:$36 sps:$4 sm:$0xff]  }
 0x239   : > { %6987 = vmatprep.subr.bf16.mxu0 %v10933_v25  ;;  %v10882_v59 = vld [vmem:[%s13977_s1 + $0x100] ss:$8 sps:$4 sm:$0xff]   ;;  %v10889_v25 = vld [vmem:[%s11500_s24 + $0x3b4] ss:$36 sps:$4 sm:$0xff]  }
 0x23c   : > { %6988 = vmatpush1.bf16.msra.mxu0 %v10931_v32  ;;  %v10893_v32 = vld [vmem:[%s13977_s1 + $0x114] ss:$8 sps:$4 sm:$0xff]  }
 0x23d   : > { %7150 = vmatprep.subr.bf16.mxu0 %v10942_v50  ;;  %v11235_v50 = vld [vmem:[%s11500_s24 + $0x4c] ss:$36 sps:$4 sm:$0xff]  }
 0x23e   : > { %2866 = vmatmul.mubr.bf16.gmra.mrb[56].mxu1 %v10857_v18  ;;  %v10891_v18 = vld [vmem:[%s13977_s1 + $0x110] ss:$8 sps:$4 sm:$0xff]  }
 0x23f   : > { %6877 = vmatmul.mubr.bf16.gmra.mrb[96].mxu0 %v10861_v20  ;;  %2875 = vmatprep.mubr.bf16.mxu1 %v10865_v21  ;;  %v10902_v20 = vld [vmem:[%s13977_s1 + $0x124] ss:$8 sps:$4 sm:$0xff]   ;;  %v10894_v21 = vld [vmem:[%s11500_s24 + $0x3b0] ss:$36 sps:$4 sm:$0xff]  }
 0x240   : > { %6886 = vmatprep.mubr.bf16.mxu0 %v10867_v42  ;;  %v10898_v42 = vld [vmem:[%s11500_s24 + $0x3fc] ss:$36 sps:$4 sm:$0xff]  }
 0x246   : > { %2876 = vmatmul.mubr.bf16.gmra.mrb[60].mxu1 %v10869_v19  ;;  %v10900_v19 = vld [vmem:[%s13977_s1 + $0x120] ss:$8 sps:$4 sm:$0xff]  }
 0x247   : > { %6887 = vmatmul.mubr.bf16.gmra.mrb[100].mxu0 %v10873_v0  ;;  %3877 = vmatprep.mubr.bf16.mxu1 %v10879_v54  ;;  %v10911_v0 = vld [vmem:[%s13977_s1 + $0x134] ss:$8 sps:$4 sm:$0xff]   ;;  %v11236_v54 = vld [vmem:[%s11500_s24 + $0x48] ss:$36 sps:$4 sm:$0xff]  }
 0x248   : > { %6896 = vmatprep.mubr.bf16.mxu0 %v10880_v2  ;;  %v11237_v2 = vld [vmem:[%s11500_s24 + $0x94] ss:$36 sps:$4 sm:$0xff]  }
 0x24e   : > { %3878 = vmatmul.mubr.bf16.vlgmr.msra.gmra.mrb[64].mxu1 %v10877_v56  ;;  %v10909_v56 = vld [vmem:[%s13977_s1 + $0x130] ss:$8 sps:$4 sm:$0xff]  }
 0x24f   : > { %6897 = vmatmul.mubr.bf16.gmra.mrb[104].mxu0 %v10885_v5  ;;  %4039 = vmatpush1.bf16.msra.mxu1 %v10882_v59  ;;  %v10920_v5 = vld [vmem:[%s13977_s1 + $0x144] ss:$8 sps:$4 sm:$0xff]   ;;  %v10903_v59 = vld [vmem:[%s11500_s24 + $0x3f8] ss:$36 sps:$4 sm:$0xff]  }
 0x250   : > { %3887 = vmatprep.mubr.bf16.mxu1 %v11235_v50  ;;  %6906 = vmatprep.mubr.bf16.mxu0 %v10889_v25  ;;  %v10907_v25 = vld [vmem:[%s11500_s24 + $0x444] ss:$36 sps:$4 sm:$0xff]   ;;  %v10929_v50 = vld [vmem:[%s13977_s1 + $0x154] ss:$8 sps:$4 sm:$0xff]  }
 0x251   : > { %4040 = vmatprep.subr.bf16.mxu1 %v10893_v32  ;;  %v10918_v32 = vld [vmem:[%s13977_s1 + $0x140] ss:$8 sps:$4 sm:$0xff]  }
 0x253   : > { %4041 = vmatpush1.bf16.msra.mxu1 %v10891_v18  ;;  %v11238_v18 = vld [vmem:[%s11500_s24 + $0x90] ss:$36 sps:$4 sm:$0xff]  }
 0x254   : > { %4042 = vmatprep.subr.bf16.mxu1 %v10902_v20  ;;  %v11239_v20 = vld [vmem:[%s11500_s24 + $0xdc] ss:$36 sps:$4 sm:$0xff]  }
 0x256   : > { %3888 = vmatmul.mubr.bf16.gmra.mrb[68].mxu1 %v11236_v54  ;;  %v10937_v54 = vld [vmem:[%s13977_s1 + $0x160] ss:$8 sps:$4 sm:$0xff]  }
 0x257   : > { %6907 = vmatmul.mubr.bf16.gmra.mrb[108].mxu0 %v10894_v21  ;;  %3897 = vmatprep.mubr.bf16.mxu1 %v11237_v2  ;;  %v10927_v21 = vld [vmem:[%s13977_s1 + $0x150] ss:$8 sps:$4 sm:$0xff]   ;;  %v10947_v2 = vld [vmem:[%s13977_s1 + $0x174] ss:$8 sps:$4 sm:$0xff]  }
 0x258   : > { %6916 = vmatprep.mubr.bf16.mxu0 %v10898_v42  ;;  %4043 = vmatpush1.bf16.msra.mxu1 %v10900_v19  ;;  %v10939_v42 = vld [vmem:[%s13977_s1 + $0x164] ss:$8 sps:$4 sm:$0xff]  }
 0x259   : > { %4044 = vmatprep.subr.bf16.mxu1 %v10911_v0  ;;  %v10912_v19 = vld [vmem:[%s11500_s24 + $0x440] ss:$36 sps:$4 sm:$0xff]   ;;  %v10916_v0 = vld [vmem:[%s11500_s24 + $0x48c] ss:$36 sps:$4 sm:$0xff]  }
 0x25c   : > { %4045 = vmatpush1.bf16.msra.mxu1 %v10909_v56  ;;  %v11240_v56 = vld [vmem:[%s11500_s24 + $0xd8] ss:$36 sps:$4 sm:$0xff]  }
 0x25d   : > { %4046 = vmatprep.subr.bf16.mxu1 %v10920_v5  ;;  %v11241_v5 = vld [vmem:[%s11500_s24 + $0x124] ss:$36 sps:$4 sm:$0xff]  }
 0x25e   : > { %3898 = vmatmul.mubr.bf16.gmra.mrb[72].mxu1 %v11238_v18  ;;  %v10954_v18 = vld [vmem:[%s13977_s1 + $0x180] ss:$8 sps:$4 sm:$0xff]  }
 0x25f   : > { %6917 = vmatmul.mubr.bf16.gmra.mrb[112].mxu0 %v10903_v59  ;;  %3907 = vmatprep.mubr.bf16.mxu1 %v11239_v20  ;;  %v10945_v59 = vld [vmem:[%s13977_s1 + $0x170] ss:$8 sps:$4 sm:$0xff]   ;;  %v10965_v20 = vld [vmem:[%s13977_s1 + $0x194] ss:$8 sps:$4 sm:$0xff]  }
 0x260   : > { %6926 = vmatprep.mubr.bf16.mxu0 %v10907_v25  ;;  %4047 = vmatpush1.bf16.msra.mxu1 %v10918_v32  ;;  %v10956_v25 = vld [vmem:[%s13977_s1 + $0x184] ss:$8 sps:$4 sm:$0xff]  }
 0x261   : > { %4048 = vmatprep.subr.bf16.mxu1 %v10929_v50  ;;  %v10921_v32 = vld [vmem:[%s11500_s24 + $0x488] ss:$36 sps:$4 sm:$0xff]   ;;  %v10925_v50 = vld [vmem:[%s11500_s24 + $0x4d4] ss:$36 sps:$4 sm:$0xff]  }
 0x264   : > { %4049 = vmatpush1.bf16.msra.mxu1 %v10927_v21  ;;  %v11242_v21 = vld [vmem:[%s11500_s24 + $0x120] ss:$36 sps:$4 sm:$0xff]  }
 0x265   : > { %4050 = vmatprep.subr.bf16.mxu1 %v10939_v42  ;;  %v11243_v42 = vld [vmem:[%s11500_s24 + $0x16c] ss:$36 sps:$4 sm:$0xff]  }
 0x266   : > { %3908 = vmatmul.mubr.bf16.gmra.mrb[76].mxu1 %v11240_v56  ;;  %v10972_v56 = vld [vmem:[%s13977_s1 + $0x1a0] ss:$8 sps:$4 sm:$0xff]  }
 0x267   : > { %6927 = vmatmul.mubr.bf16.gmra.mrb[116].mxu0 %v10912_v19  ;;  %3917 = vmatprep.mubr.bf16.mxu1 %v11241_v5  ;;  %v10963_v19 = vld [vmem:[%s13977_s1 + $0x190] ss:$8 sps:$4 sm:$0xff]   ;;  %v10983_v5 = vld [vmem:[%s13977_s1 + $0x1b4] ss:$8 sps:$4 sm:$0xff]  }
 0x268   : > { %6936 = vmatprep.mubr.bf16.mxu0 %v10916_v0  ;;  %4051 = vmatpush1.bf16.msra.mxu1 %v10937_v54  ;;  %v10974_v0 = vld [vmem:[%s13977_s1 + $0x1a4] ss:$8 sps:$4 sm:$0xff]   ;;  %v10930_v54 = vld [vmem:[%s11500_s24 + $0x4d0] ss:$36 sps:$4 sm:$0xff]  }
 0x269   : > { %4052 = vmatprep.subr.bf16.mxu1 %v10947_v2  ;;  %v10936_v2 = vld [vmem:[%s11500_s24 + $0xa4] ss:$36 sps:$4 sm:$0xff]  }
 0x26c   : > { %4053 = vmatpush1.bf16.msra.mxu1 %v10945_v59  ;;  %v11244_v59 = vld [vmem:[%s11500_s24 + $0x168] ss:$36 sps:$4 sm:$0xff]  }
 0x26d   : > { %4054 = vmatprep.subr.bf16.mxu1 %v10956_v25  ;;  %v11245_v25 = vld [vmem:[%s11500_s24 + $0x1b4] ss:$36 sps:$4 sm:$0xff]  }
 0x26e   : > { %3918 = vmatmul.mubr.bf16.gmra.mrb[80].mxu1 %v11242_v21  ;;  %v10943_v21 = vld [vmem:[%s11500_s24 + $0xec] ss:$36 sps:$4 sm:$0xff]  }
 0x26f   : > { %6937 = vmatmul.mubr.bf16.gmra.mrb[120].mxu0 %v10921_v32  ;;  %3927 = vmatprep.mubr.bf16.mxu1 %v11243_v42  ;;  %v10981_v32 = vld [vmem:[%s13977_s1 + $0x1b0] ss:$8 sps:$4 sm:$0xff]   ;;  %v10951_v42 = vld [vmem:[%s13977_s1 + $0xc14] ss:$8 sps:$4 sm:$0xff]  }
 0x270   : > { %6946 = vmatprep.mubr.bf16.mxu0 %v10925_v50  ;;  %4055 = vmatpush1.bf16.msra.mxu1 %v10954_v18  ;;  %v10992_v50 = vld [vmem:[%s13977_s1 + $0x1c4] ss:$8 sps:$4 sm:$0xff]  }
 0x271   : > { %4056 = vmatprep.subr.bf16.mxu1 %v10965_v20  ;;  %v10934_v18 = vld [vmem:[%s11500_s24 + $0xa0] ss:$36 sps:$4 sm:$0xff]  }
 0x272   : > { %v10940_v20 = vld [vmem:[%s13977_s1 + $0xc00] ss:$8 sps:$4 sm:$0xff]  }
 0x274   : > { %4057 = vmatpush1.bf16.msra.mxu1 %v10963_v19  ;;  %v10990_v19 = vld [vmem:[%s13977_s1 + $0x1c0] ss:$8 sps:$4 sm:$0xff]  }
 0x275   : > { %4058 = vmatprep.subr.bf16.mxu1 %v10974_v0  ;;  %v11246_v0 = vld [vmem:[%s11500_s24 + $0x1b0] ss:$36 sps:$4 sm:$0xff]  }
 0x276   : > { %3928 = vmatmul.mubr.bf16.gmra.mrb[84].mxu1 %v11244_v59  ;;  %v10999_v59 = vld [vmem:[%s13977_s1 + $0x1d0] ss:$8 sps:$4 sm:$0xff]  }
 0x277   : > { %6947 = vmatmul.mubr.bf16.gmra.mrb[124].mxu0 %v10930_v54  ;;  %3937 = vmatprep.mubr.bf16.mxu1 %v11245_v25  ;;  %v11001_v54 = vld [vmem:[%s13977_s1 + $0x1d4] ss:$8 sps:$4 sm:$0xff]   ;;  %v10948_v25 = vld [vmem:[%s11500_s24 + $0xe8] ss:$36 sps:$4 sm:$0xff]  }
 0x278   : > { %6989 = vmatprep.mubr.bf16.mxu0 %v10936_v2  ;;  %4059 = vmatpush1.bf16.msra.mxu1 %v10972_v56  ;;  %v11247_v2 = vld [vmem:[%s11500_s24 + $0x1fc] ss:$36 sps:$4 sm:$0xff]   ;;  %v10949_v56 = vld [vmem:[%s13977_s1 + $0xc10] ss:$8 sps:$4 sm:$0xff]  }
 0x279   : > { %4060 = vmatprep.subr.bf16.mxu1 %v10983_v5  ;;  %v10960_v5 = vld [vmem:[%s13977_s1 + $0xc24] ss:$8 sps:$4 sm:$0xff]  }
 0x27c   : > { %4061 = vmatpush1.bf16.msra.mxu1 %v10981_v32  ;;  %v10952_v32 = vld [vmem:[%s11500_s24 + $0x134] ss:$36 sps:$4 sm:$0xff]  }
 0x27d   : > { %4062 = vmatprep.subr.bf16.mxu1 %v10992_v50  ;;  %v10958_v50 = vld [vmem:[%s13977_s1 + $0xc20] ss:$8 sps:$4 sm:$0xff]  }
 0x27e   : > { %3938 = vmatmul.mubr.bf16.gmra.mrb[88].mxu1 %v11246_v0  ;;  %v11249_v0 = vld [vmem:[%s11500_s24 + $0x244] ss:$36 sps:$4 sm:$0xff]  }
 0x27f   : > { %6990 = vmatmul.mubr.bf16.vlgmr.msra.gmra.mrb[64].mxu0 %v10934_v18  ;;  %3947 = vmatprep.mubr.bf16.mxu1 %v11247_v2  ;;  %v11010_v18 = vld [vmem:[%s13977_s1 + $0x1e4] ss:$8 sps:$4 sm:$0xff]  }
 0x280   : > { %7151 = vmatpush1.bf16.msra.mxu0 %v10940_v20  ;;  %6999 = vmatprep.mubr.bf16.mxu0 %v10943_v21  ;;  %v10969_v20 = vld [vmem:[%s13977_s1 + $0xc34] ss:$8 sps:$4 sm:$0xff]   ;;  %v11008_v21 = vld [vmem:[%s13977_s1 + $0x1e0] ss:$8 sps:$4 sm:$0xff]   ;;  %v10978_v2 = vld [vmem:[%s13977_s1 + $0xc44] ss:$8 sps:$4 sm:$0xff]  }
 0x281   : > { %7152 = vmatprep.subr.bf16.mxu0 %v10951_v42  ;;  %4063 = vmatpush1.bf16.msra.mxu1 %v10990_v19  ;;  %v11248_v42 = vld [vmem:[%s11500_s24 + $0x1f8] ss:$36 sps:$4 sm:$0xff]  }
 0x282   : > { %4064 = vmatprep.subr.bf16.mxu1 %v11001_v54  ;;  %v11019_v19 = vld [vmem:[%s13977_s1 + $0x1f4] ss:$8 sps:$4 sm:$0xff]   ;;  %v10967_v54 = vld [vmem:[%s13977_s1 + $0xc30] ss:$8 sps:$4 sm:$0xff]  }
 0x284   : > { %7153 = vmatpush1.bf16.msra.mxu0 %v10949_v56  ;;  %v11017_v56 = vld [vmem:[%s13977_s1 + $0x1f0] ss:$8 sps:$4 sm:$0xff]  }
 0x285   : > { %7154 = vmatprep.subr.bf16.mxu0 %v10960_v5  ;;  %4065 = vmatpush1.bf16.msra.mxu1 %v10999_v59  ;;  %v10957_v5 = vld [vmem:[%s11500_s24 + $0x130] ss:$36 sps:$4 sm:$0xff]   ;;  %v10961_v59 = vld [vmem:[%s11500_s24 + $0x17c] ss:$36 sps:$4 sm:$0xff]  }
 0x286   : > { %3948 = vmatmul.mubr.bf16.gmra.mrb[92].mxu1 %v11248_v42  ;;  %4066 = vmatprep.subr.bf16.mxu1 %v11010_v18  ;;  %v11250_v18 = vld [vmem:[%s11500_s24 + $0x240] ss:$36 sps:$4 sm:$0xff]  }
 0x287   : > { %7000 = vmatmul.mubr.bf16.gmra.mrb[68].mxu0 %v10948_v25  ;;  %3957 = vmatprep.mubr.bf16.mxu1 %v11249_v0  ;;  %v10976_v25 = vld [vmem:[%s13977_s1 + $0xc40] ss:$8 sps:$4 sm:$0xff]   ;;  %v10996_v42 = vld [vmem:[%s13977_s1 + $0xc64] ss:$8 sps:$4 sm:$0xff]  }
 0x288   : > { %7009 = vmatprep.mubr.bf16.mxu0 %v10952_v32  ;;  %7155 = vmatpush1.bf16.msra.mxu0 %v10958_v50  ;;  %v11031_v32 = vld [vmem:[%s13977_s1 + $0x204] ss:$8 sps:$4 sm:$0xff]   ;;  %v10987_v50 = vld [vmem:[%s13977_s1 + $0xc54] ss:$8 sps:$4 sm:$0xff]  }
 0x289   : > { %7156 = vmatprep.subr.bf16.mxu0 %v10969_v20  ;;  %4067 = vmatpush1.bf16.msra.mxu1 %v11008_v21  ;;  %v11251_v20 = vld [vmem:[%s11500_s24 + $0x28c] ss:$36 sps:$4 sm:$0xff]   ;;  %v10970_v0 = vld [vmem:[%s11500_s24 + $0x1c4] ss:$36 sps:$4 sm:$0xff]  }
 0x28a   : > { %4068 = vmatprep.subr.bf16.mxu1 %v11019_v19  ;;  %v10985_v21 = vld [vmem:[%s13977_s1 + $0xc50] ss:$8 sps:$4 sm:$0xff]  }
 0x28b   : > { %v10966_v19 = vld [vmem:[%s11500_s24 + $0x178] ss:$36 sps:$4 sm:$0xff]  }
 0x28c   : > { %7157 = vmatpush1.bf16.msra.mxu0 %v10967_v54  ;;  %v10994_v54 = vld [vmem:[%s13977_s1 + $0xc60] ss:$8 sps:$4 sm:$0xff]  }
 0x28d   : > { %7158 = vmatprep.subr.bf16.mxu0 %v10978_v2  ;;  %4069 = vmatpush1.bf16.msra.mxu1 %v11017_v56  ;;  %v11005_v2 = vld [vmem:[%s13977_s1 + $0xc74] ss:$8 sps:$4 sm:$0xff]   ;;  %v11252_v56 = vld [vmem:[%s11500_s24 + $0x288] ss:$36 sps:$4 sm:$0xff]  }
 0x28e   : > { %3958 = vmatmul.mubr.bf16.gmra.mrb[96].mxu1 %v11250_v18  ;;  %4231 = vmatprep.subr.bf16.mxu1 %v11031_v32  ;;  %v10975_v32 = vld [vmem:[%s11500_s24 + $0x1c0] ss:$36 sps:$4 sm:$0xff]  }
 0x28f   : > { %7010 = vmatmul.mubr.bf16.gmra.mrb[72].mxu0 %v10957_v5  ;;  %3967 = vmatprep.mubr.bf16.mxu1 %v11251_v20  ;;  %v11253_v5 = vld [vmem:[%s11500_s24 + $0x2d4] ss:$36 sps:$4 sm:$0xff]   ;;  %v11012_v18 = vld [vmem:[%s13977_s1 + $0xc80] ss:$8 sps:$4 sm:$0xff]  }
 0x290   : > { %7019 = vmatprep.mubr.bf16.mxu0 %v10961_v59  ;;  %7159 = vmatpush1.bf16.msra.mxu0 %v10976_v25  ;;  %v11003_v59 = vld [vmem:[%s13977_s1 + $0xc70] ss:$8 sps:$4 sm:$0xff]   ;;  %v11014_v25 = vld [vmem:[%s13977_s1 + $0xc84] ss:$8 sps:$4 sm:$0xff]   ;;  %v11023_v20 = vld [vmem:[%s13977_s1 + $0xc94] ss:$8 sps:$4 sm:$0xff]  }
 0x291   : > { %7160 = vmatprep.subr.bf16.mxu0 %v10987_v50  ;;  %v10979_v50 = vld [vmem:[%s11500_s24 + $0x20c] ss:$36 sps:$4 sm:$0xff]  }
 0x294   : > { %7161 = vmatpush1.bf16.msra.mxu0 %v10985_v21  ;;  %v11254_v21 = vld [vmem:[%s11500_s24 + $0x2d0] ss:$36 sps:$4 sm:$0xff]  }
 0x295   : > { %7162 = vmatprep.subr.bf16.mxu0 %v10996_v42  ;;  %v11255_v42 = vld [vmem:[%s11500_s24 + $0x31c] ss:$36 sps:$4 sm:$0xff]  }
 0x296   : > { %3968 = vmatmul.mubr.bf16.gmra.mrb[100].mxu1 %v11252_v56 }
 0x297   : > { %7020 = vmatmul.mubr.bf16.gmra.mrb[76].mxu0 %v10966_v19  ;;  %3977 = vmatprep.mubr.bf16.mxu1 %v11253_v5  ;;  %v11021_v19 = vld [vmem:[%s13977_s1 + $0xc90] ss:$8 sps:$4 sm:$0xff]   ;;  %v10984_v5 = vld [vmem:[%s11500_s24 + $0x208] ss:$36 sps:$4 sm:$0xff]  }
 0x298   : > { %7029 = vmatprep.mubr.bf16.mxu0 %v10970_v0  ;;  %7163 = vmatpush1.bf16.msra.mxu0 %v10994_v54  ;;  %v11035_v54 = vld [vmem:[%s13977_s1 + $0xca4] ss:$8 sps:$4 sm:$0xff]  }
 0x299   : > { %7164 = vmatprep.subr.bf16.mxu0 %v11005_v2 }
 0x29c   : > { %7165 = vmatpush1.bf16.msra.mxu0 %v11003_v59 }
 0x29d   : > { %7166 = vmatprep.subr.bf16.mxu0 %v11014_v25 }
 0x29e   : > { %3978 = vmatmul.mubr.bf16.gmra.mrb[104].mxu1 %v11254_v21  ;;  %v11256_v21 = vld [vmem:[%s11500_s24 + $0x318] ss:$36 sps:$4 sm:$0xff]  }
 0x29f   : > { %7030 = vmatmul.mubr.bf16.gmra.mrb[80].mxu0 %v10975_v32  ;;  %3987 = vmatprep.mubr.bf16.mxu1 %v11255_v42  ;;  %v10988_v32 = vld [vmem:[%s11500_s24 + $0x254] ss:$36 sps:$4 sm:$0xff]  }
 0x2a0   : > { %7039 = vmatprep.mubr.bf16.mxu0 %v10979_v50  ;;  %7167 = vmatpush1.bf16.msra.mxu0 %v11012_v18  ;;  %v11042_v42 = vld [vmem:[%s13977_s1 + $0xcb0] ss:$8 sps:$4 sm:$0xff]  }
 0x2a1   : > { %v2727_v0 = vpop.f32.mrb[0].mxu1  ;;  %7168 = vmatprep.subr.bf16.mxu0 %v11023_v20  ;;  %v11033_v20 = vld [vmem:[%s13977_s1 + $0xca0] ss:$8 sps:$4 sm:$0xff]  }
 0x2a2   : > { %v12984_v2 = vadd.f32 %v12009_v58, %v2727_v0  ;;  %v2729_v56 = vpop.f32.mrb[1].mxu1 }
 0x2a3   : > { %v12988_v59 = vadd.f32 %v12012_v60, %v2729_v56  ;;  %v2731_v25 = vpop.f32.mrb[2].mxu1  ;;  %v11044_v60 = vld [vmem:[%s13977_s1 + $0xcb4] ss:$8 sps:$4 sm:$0xff]  }
 0x2a4   : > { %v12992_v50 = vadd.f32 %v12017_v62, %v2731_v25  ;;  %v2733_v18 = vpop.f32.mrb[3].mxu1  ;;  %7169 = vmatpush1.bf16.msra.mxu0 %v11021_v19  ;;  %v11257_v62 = vld [vmem:[%s11500_s24 + $0x364] ss:$36 sps:$4 sm:$0xff]   ;;  %v10993_v56 = vld [vmem:[%s11500_s24 + $0x250] ss:$36 sps:$4 sm:$0xff]  }
 0x2a5   : > { %v12998_v58 = vadd.f32 %v12025_v1, %v2733_v18  ;;  %7170 = vmatprep.subr.bf16.mxu0 %v11035_v54  ;;  %v11053_v19 = vld [vmem:[%s13977_s1 + $0xcc4] ss:$8 sps:$4 sm:$0xff]  }
 0x2a6   : > { %3988 = vmatmul.mubr.bf16.gmra.mrb[108].mxu1 %v11256_v21  ;;  %v11258_v21 = vld [vmem:[%s11500_s24 + $0x360] ss:$36 sps:$4 sm:$0xff]  }
 0x2a7   : > { %7040 = vmatmul.mubr.bf16.gmra.mrb[84].mxu0 %v10984_v5  ;;  %3997 = vmatprep.mubr.bf16.mxu1 %v11257_v62  ;;  %v11060_v62 = vld [vmem:[%s13977_s1 + $0xcd0] ss:$8 sps:$4 sm:$0xff]  }
 0x2a8   : > { %7049 = vmatprep.mubr.bf16.mxu0 %v10988_v32  ;;  %7171 = vmatpush1.bf16.msra.mxu0 %v11033_v20  ;;  %v10997_v32 = vld [vmem:[%s11500_s24 + $0x29c] ss:$36 sps:$4 sm:$0xff]  }
 0x2a9   : > { %v2737_v1 = vpop.f32.mrb[4].mxu1  ;;  %7172 = vmatprep.subr.bf16.mxu0 %v11044_v60  ;;  %v11051_v60 = vld [vmem:[%s13977_s1 + $0xcc0] ss:$8 sps:$4 sm:$0xff]  }
 0x2aa   : > { %v13012_v0 = vadd.f32 %v12045_v10, %v2737_v1  ;;  %v2739_v54 = vpop.f32.mrb[5].mxu1 }
 0x2ab   : > { %v13016_v5 = vadd.f32 %v12048_v12, %v2739_v54  ;;  %v2741_v25 = vpop.f32.mrb[6].mxu1  ;;  %v11062_v12 = vld [vmem:[%s13977_s1 + $0xcd4] ss:$8 sps:$4 sm:$0xff]  }
 0x2ac   : > { %v13020_v18 = vadd.f32 %v12053_v14, %v2741_v25  ;;  %v2743_v20 = vpop.f32.mrb[7].mxu1  ;;  %7173 = vmatpush1.bf16.msra.mxu0 %v11042_v42  ;;  %v11259_v14 = vld [vmem:[%s11500_s24 + $0x3ac] ss:$36 sps:$4 sm:$0xff]   ;;  %v11002_v54 = vld [vmem:[%s11500_s24 + $0x298] ss:$36 sps:$4 sm:$0xff]  }
 0x2ad   : > { %v13026_v10 = vadd.f32 %v12058_v16, %v2743_v20  ;;  %7174 = vmatprep.subr.bf16.mxu0 %v11053_v19  ;;  %v11071_v42 = vld [vmem:[%s13977_s1 + $0xce4] ss:$8 sps:$4 sm:$0xff]  }
 0x2ae   : > { %3998 = vmatmul.mubr.bf16.gmra.mrb[112].mxu1 %v11258_v21  ;;  %v11260_v21 = vld [vmem:[%s11500_s24 + $0x3a8] ss:$36 sps:$4 sm:$0xff]  }
 0x2af   : > { %7050 = vmatmul.mubr.bf16.gmra.mrb[88].mxu0 %v10993_v56  ;;  %4007 = vmatprep.mubr.bf16.mxu1 %v11259_v14 }
 0x2b0   : > { %7059 = vmatprep.mubr.bf16.mxu0 %v10997_v32  ;;  %7175 = vmatpush1.bf16.msra.mxu0 %v11051_v60  ;;  %v11006_v32 = vld [vmem:[%s11500_s24 + $0x2e4] ss:$36 sps:$4 sm:$0xff]  }
 0x2b1   : > { %v2747_v16 = vpop.f32.mrb[8].mxu1  ;;  %7176 = vmatprep.subr.bf16.mxu0 %v11062_v12  ;;  %v11069_v12 = vld [vmem:[%s13977_s1 + $0xce0] ss:$8 sps:$4 sm:$0xff]  }
 0x2b2   : > { %v13040_v1 = vadd.f32 %v12072_v22, %v2747_v16  ;;  %v2749_v19 = vpop.f32.mrb[9].mxu1 }
 0x2b3   : > { %v13044_v56 = vadd.f32 %v12075_v24, %v2749_v19  ;;  %v2751_v25 = vpop.f32.mrb[10].mxu1  ;;  %v11080_v24 = vld [vmem:[%s13977_s1 + $0xcf4] ss:$8 sps:$4 sm:$0xff]   ;;  %v11011_v19 = vld [vmem:[%s11500_s24 + $0x2e0] ss:$36 sps:$4 sm:$0xff]  }
 0x2b4   : > { %v13048_v20 = vadd.f32 %v12080_v26, %v2751_v25  ;;  %v2753_v60 = vpop.f32.mrb[11].mxu1  ;;  %7177 = vmatpush1.bf16.msra.mxu0 %v11060_v62  ;;  %v11261_v26 = vld [vmem:[%s11500_s24 + $0x3f4] ss:$36 sps:$4 sm:$0xff]   ;;  %v11089_v62 = vld [vmem:[%s13977_s1 + $0xd04] ss:$8 sps:$4 sm:$0xff]  }
 0x2b5   : > { %v13054_v22 = vadd.f32 %v12082_v27, %v2753_v60  ;;  %7178 = vmatprep.subr.bf16.mxu0 %v11071_v42  ;;  %v11078_v27 = vld [vmem:[%s13977_s1 + $0xcf0] ss:$8 sps:$4 sm:$0xff]  }
 0x2b6   : > { %4008 = vmatmul.mubr.bf16.gmra.mrb[116].mxu1 %v11260_v21 }
 0x2b7   : > { %7060 = vmatmul.mubr.bf16.gmra.mrb[92].mxu0 %v11002_v54  ;;  %4017 = vmatprep.mubr.bf16.mxu1 %v11261_v26 }
 0x2b8   : > { %7069 = vmatprep.mubr.bf16.mxu0 %v11006_v32  ;;  %7179 = vmatpush1.bf16.msra.mxu0 %v11069_v12  ;;  %v11015_v32 = vld [vmem:[%s11500_s24 + $0x32c] ss:$36 sps:$4 sm:$0xff]  }
 0x2b9   : > { %v2757_v14 = vpop.f32.mrb[12].mxu1  ;;  %7180 = vmatprep.subr.bf16.mxu0 %v11080_v24 }
 0x2ba   : > { %v13068_v16 = vadd.f32 %v12096_v33, %v2757_v14  ;;  %v2759_v42 = vpop.f32.mrb[13].mxu1  ;;  %v11262_v33 = vld [vmem:[%s11500_s24 + $0x3f0] ss:$36 sps:$4 sm:$0xff]   ;;  %v11020_v14 = vld [vmem:[%s11500_s24 + $0x328] ss:$36 sps:$4 sm:$0xff]  }
 0x2bb   : > { %v13072_v54 = vadd.f32 %v12099_v35, %v2759_v42  ;;  %v2761_v25 = vpop.f32.mrb[14].mxu1  ;;  %v11263_v35 = vld [vmem:[%s11500_s24 + $0x43c] ss:$36 sps:$4 sm:$0xff]   ;;  %v11027_v42 = vld [vmem:[%s11500_s24 + $0x374] ss:$36 sps:$4 sm:$0xff]  }
 0x2bc   : > { %v13076_v60 = vadd.f32 %v12104_v37, %v2761_v25  ;;  %v2763_v12 = vpop.f32.mrb[15].mxu1  ;;  %7181 = vmatpush1.bf16.msra.mxu0 %v11078_v27 }
 0x2bd   : > { %v13079_v24 = vadd.f32 %v12106_v38, %v2763_v12  ;;  %7343 = vmatprep.subr.bf16.mxu0 %v11089_v62  ;;  %v11026_v62 = vld [vmem:[%s11500_s24 + $0xc] ss:$36 sps:$4 sm:$0xff]  }
 0x2be   : > { %4018 = vmatmul.mubr.bf16.gmra.mrb[120].mxu1 %v11262_v33 }
 0x2bf   : > { %7070 = vmatmul.mubr.bf16.gmra.mrb[96].mxu0 %v11011_v19  ;;  %4027 = vmatprep.mubr.bf16.mxu1 %v11263_v35  ;;  %v11024_v35 = vld [vmem:[%s11500_s24 + $0x8] ss:$36 sps:$4 sm:$0xff]  }
 0x2c0   : > { %7079 = vmatprep.mubr.bf16.mxu0 %v11015_v32 }
 0x2c1   : > { %v2767_v21 = vpop.f32.mrb[16].mxu1 }
 0x2c2   : > { %v13084_v26 = vadd.f32 %v12120_v44, %v2767_v21  ;;  %v2769_v37 = vpop.f32.mrb[17].mxu1  ;;  %v11264_v44 = vld [vmem:[%s11500_s24 + $0x438] ss:$36 sps:$4 sm:$0xff]   ;;  %v11032_v21 = vld [vmem:[%s11500_s24 + $0x370] ss:$36 sps:$4 sm:$0xff]  }
 0x2c3   : > { %v13088_v27 = vadd.f32 %v12123_v46, %v2769_v37  ;;  %v2771_v38 = vpop.f32.mrb[18].mxu1 }
 0x2c4   : > { %v13093_v25 = vadd.f32 %v12128_v48, %v2771_v38  ;;  %v2773_v19 = vpop.f32.mrb[19].mxu1 }
 0x2c5   : > { %v13096_v32 = vadd.f32 %v12130_v49, %v2773_v19  ;;  %v11029_v49 = vld [vmem:[%s13977_s1 + $0x200] ss:$8 sps:$4 sm:$0xff]   ;;  %v11049_v19 = vld [vmem:[%s13977_s1 + $0x224] ss:$8 sps:$4 sm:$0xff]  }
 0x2c6   : > { %4028 = vmatmul.mubr.bf16.gmra.mrb[124].mxu1 %v11264_v44 }
 0x2c7   : > { %7080 = vmatmul.mubr.bf16.gmra.mrb[100].mxu0 %v11020_v14  ;;  %4070 = vmatprep.mubr.bf16.mxu1 %v11026_v62  ;;  %v11036_v62 = vld [vmem:[%s11500_s24 + $0x3bc] ss:$36 sps:$4 sm:$0xff]  }
 0x2c8   : > { %7089 = vmatprep.mubr.bf16.mxu0 %v11027_v42 }
 0x2c9   : > { %v2777_v12 = vpop.f32.mrb[20].mxu1 }
 0x2ca   : > { %v13100_v46 = vadd.f32 %v12144_v55, %v2777_v12  ;;  %v2779_v33 = vpop.f32.mrb[21].mxu1  ;;  %v11040_v55 = vld [vmem:[%s13977_s1 + $0x214] ss:$8 sps:$4 sm:$0xff]  }
 0x2cb   : > { %v13105_v48 = vadd.f32 %v12147_v57, %v2779_v33  ;;  %v2781_v37 = vpop.f32.mrb[22].mxu1  ;;  %v11265_v57 = vld [vmem:[%s11500_s24 + $0x54] ss:$36 sps:$4 sm:$0xff]  }
 0x2cc   : > { %v13111_v14 = vadd.f32 %v12152_v61, %v2781_v37  ;;  %v2783_v38 = vpop.f32.mrb[23].mxu1  ;;  %v11038_v61 = vld [vmem:[%s13977_s1 + $0x210] ss:$8 sps:$4 sm:$0xff]   ;;  %v11045_v37 = vld [vmem:[%s11500_s24 + $0x404] ss:$36 sps:$4 sm:$0xff]  }
 0x2cd   : > { %v13118_v42 = vadd.f32 %v12154_v63, %v2783_v38  ;;  %v11041_v33 = vld [vmem:[%s11500_s24 + $0x3b8] ss:$36 sps:$4 sm:$0xff]  }
 0x2ce   : > { %4071 = vmatmul.mubr.bf16.vlgmr.msra.gmra.mrb[64].mxu1 %v11024_v35 }
 0x2cf   : > { %7090 = vmatmul.mubr.bf16.gmra.mrb[104].mxu0 %v11032_v21  ;;  %4232 = vmatpush1.bf16.msra.mxu1 %v11029_v49 }
 0x2d0   : > { %4080 = vmatprep.mubr.bf16.mxu1 %v11265_v57  ;;  %7099 = vmatprep.mubr.bf16.mxu0 %v11036_v62  ;;  %v11047_v62 = vld [vmem:[%s13977_s1 + $0x220] ss:$8 sps:$4 sm:$0xff]   ;;  %v11056_v57 = vld [vmem:[%s13977_s1 + $0x230] ss:$8 sps:$4 sm:$0xff]  }
 0x2d1   : > { %4233 = vmatprep.subr.bf16.mxu1 %v11040_v55  ;;  %v2787_v44 = vpop.f32.mrb[24].mxu1  ;;  %v11266_v55 = vld [vmem:[%s11500_s24 + $0x50] ss:$36 sps:$4 sm:$0xff]  }
 0x2d2   : > { %v13128_v63 = vadd.f32 %v12168_v7, %v2787_v44  ;;  %v2789_v12 = vpop.f32.mrb[25].mxu1 }
 0x2d3   : > { %v13132_v35 = vadd.f32 %v12171_v9, %v2789_v12  ;;  %v2791_v21 = vpop.f32.mrb[26].mxu1  ;;  %4234 = vmatpush1.bf16.msra.mxu1 %v11038_v61  ;;  %v11058_v9 = vld [vmem:[%s13977_s1 + $0x234] ss:$8 sps:$4 sm:$0xff]   ;;  %v11050_v12 = vld [vmem:[%s11500_s24 + $0x400] ss:$36 sps:$4 sm:$0xff]  }
 0x2d4   : > { %v13136_v49 = vadd.f32 %v12176_v13, %v2791_v21  ;;  %v2793_v38 = vpop.f32.mrb[27].mxu1  ;;  %4235 = vmatprep.subr.bf16.mxu1 %v11049_v19  ;;  %v11267_v13 = vld [vmem:[%s11500_s24 + $0x9c] ss:$36 sps:$4 sm:$0xff]  }
 0x2d5   : > { %v13142_v7 = vadd.f32 %v12178_v15, %v2793_v38  ;;  %v11067_v15 = vld [vmem:[%s13977_s1 + $0x244] ss:$8 sps:$4 sm:$0xff]  }
 0x2d6   : > { %4081 = vmatmul.mubr.bf16.gmra.mrb[68].mxu1 %v11266_v55  ;;  %v11268_v55 = vld [vmem:[%s11500_s24 + $0x98] ss:$36 sps:$4 sm:$0xff]  }
 0x2d7   : > { %7100 = vmatmul.mubr.bf16.gmra.mrb[108].mxu0 %v11041_v33  ;;  %4090 = vmatprep.mubr.bf16.mxu1 %v11267_v13  ;;  %v11074_v13 = vld [vmem:[%s13977_s1 + $0x250] ss:$8 sps:$4 sm:$0xff]  }
 0x2d8   : > { %7109 = vmatprep.mubr.bf16.mxu0 %v11045_v37  ;;  %4236 = vmatpush1.bf16.msra.mxu1 %v11047_v62  ;;  %v11054_v37 = vld [vmem:[%s11500_s24 + $0x44c] ss:$36 sps:$4 sm:$0xff]  }
 0x2d9   : > { %v2797_v61 = vpop.f32.mrb[28].mxu1  ;;  %4237 = vmatprep.subr.bf16.mxu1 %v11058_v9  ;;  %v11065_v9 = vld [vmem:[%s13977_s1 + $0x240] ss:$8 sps:$4 sm:$0xff]  }
 0x2da   : > { %v13156_v19 = vadd.f32 %v12192_v23, %v2797_v61  ;;  %v2799_v44 = vpop.f32.mrb[29].mxu1 }
 0x2db   : > { %v13160_v33 = vadd.f32 %v12195_v28, %v2799_v44  ;;  %v2801_v21 = vpop.f32.mrb[30].mxu1  ;;  %v11076_v28 = vld [vmem:[%s13977_s1 + $0x254] ss:$8 sps:$4 sm:$0xff]   ;;  %v11059_v44 = vld [vmem:[%s11500_s24 + $0x448] ss:$36 sps:$4 sm:$0xff]  }
 0x2dc   : > { %v13164_v38 = vadd.f32 %v12197_v29, %v2801_v21  ;;  %v2803_v62 = vpop.f32.mrb[31].mxu1  ;;  %4238 = vmatpush1.bf16.msra.mxu1 %v11056_v57  ;;  %v11269_v29 = vld [vmem:[%s11500_s24 + $0xe4] ss:$36 sps:$4 sm:$0xff]  }
 0x2dd   : > { %v13170_v23 = vadd.f32 %v12199_v30, %v2803_v62  ;;  %4239 = vmatprep.subr.bf16.mxu1 %v11067_v15  ;;  %v11086_v57 = vld [vmem:[%s13977_s1 + $0x264] ss:$8 sps:$4 sm:$0xff]  }
 0x2de   : > { %4091 = vmatmul.mubr.bf16.gmra.mrb[72].mxu1 %v11268_v55  ;;  %v11270_v55 = vld [vmem:[%s11500_s24 + $0xe0] ss:$36 sps:$4 sm:$0xff]  }
 0x2df   : > { %7110 = vmatmul.mubr.bf16.gmra.mrb[112].mxu0 %v11050_v12  ;;  %4100 = vmatprep.mubr.bf16.mxu1 %v11269_v29  ;;  %v11092_v29 = vld [vmem:[%s13977_s1 + $0x270] ss:$8 sps:$4 sm:$0xff]  }
 0x2e0   : > { %7119 = vmatprep.mubr.bf16.mxu0 %v11054_v37  ;;  %4240 = vmatpush1.bf16.msra.mxu1 %v11065_v9  ;;  %v11063_v37 = vld [vmem:[%s11500_s24 + $0x494] ss:$36 sps:$4 sm:$0xff]  }
 0x2e1   : > { %v2807_v30 = vpop.f32.mrb[32].mxu1  ;;  %4241 = vmatprep.subr.bf16.mxu1 %v11076_v28  ;;  %v11084_v28 = vld [vmem:[%s13977_s1 + $0x260] ss:$8 sps:$4 sm:$0xff]  }
 0x2e2   : > { %v13184_v61 = vadd.f32 %v12204_v34, %v2807_v30  ;;  %v2809_v15 = vpop.f32.mrb[33].mxu1 }
 0x2e3   : > { %v13188_v12 = vadd.f32 %v12207_v39, %v2809_v15  ;;  %v2811_v21 = vpop.f32.mrb[34].mxu1  ;;  %v11094_v39 = vld [vmem:[%s13977_s1 + $0x274] ss:$8 sps:$4 sm:$0xff]  }
 0x2e4   : > { %v13192_v62 = vadd.f32 %v12209_v40, %v2811_v21  ;;  %v2813_v9 = vpop.f32.mrb[35].mxu1  ;;  %4242 = vmatpush1.bf16.msra.mxu1 %v11074_v13  ;;  %v11271_v40 = vld [vmem:[%s11500_s24 + $0x12c] ss:$36 sps:$4 sm:$0xff]  }
 0x2e5   : > { %v13198_v34 = vadd.f32 %v12211_v41, %v2813_v9  ;;  %4243 = vmatprep.subr.bf16.mxu1 %v11086_v57  ;;  %v11100_v13 = vld [vmem:[%s13977_s1 + $0x284] ss:$8 sps:$4 sm:$0xff]   ;;  %v11068_v15 = vld [vmem:[%s11500_s24 + $0x490] ss:$36 sps:$4 sm:$0xff]  }
 0x2e6   : > { %4101 = vmatmul.mubr.bf16.gmra.mrb[76].mxu1 %v11270_v55  ;;  %v11272_v55 = vld [vmem:[%s11500_s24 + $0x128] ss:$36 sps:$4 sm:$0xff]  }
 0x2e7   : > { %7120 = vmatmul.mubr.bf16.gmra.mrb[116].mxu0 %v11059_v44  ;;  %4110 = vmatprep.mubr.bf16.mxu1 %v11271_v40  ;;  %v11107_v40 = vld [vmem:[%s13977_s1 + $0x290] ss:$8 sps:$4 sm:$0xff]  }
 0x2e8   : > { %7129 = vmatprep.mubr.bf16.mxu0 %v11063_v37  ;;  %4244 = vmatpush1.bf16.msra.mxu1 %v11084_v28  ;;  %v11072_v37 = vld [vmem:[%s11500_s24 + $0x4dc] ss:$36 sps:$4 sm:$0xff]  }
 0x2e9   : > { %v2817_v41 = vpop.f32.mrb[36].mxu1  ;;  %4245 = vmatprep.subr.bf16.mxu1 %v11094_v39  ;;  %v11098_v39 = vld [vmem:[%s13977_s1 + $0x280] ss:$8 sps:$4 sm:$0xff]  }
 0x2ea   : > { %v13212_v30 = vadd.f32 %v12216_v45, %v2817_v41  ;;  %v2819_v57 = vpop.f32.mrb[37].mxu1 }
 0x2eb   : > { %v13216_v44 = vadd.f32 %v12222_v51, %v2819_v57  ;;  %v2821_v21 = vpop.f32.mrb[38].mxu1  ;;  %v11109_v51 = vld [vmem:[%s13977_s1 + $0x294] ss:$8 sps:$4 sm:$0xff]  }
 0x2ec   : > { %v13220_v9 = vadd.f32 %v12224_v52, %v2821_v21  ;;  %v2823_v28 = vpop.f32.mrb[39].mxu1  ;;  %4246 = vmatpush1.bf16.msra.mxu1 %v11092_v29  ;;  %v11273_v52 = vld [vmem:[%s11500_s24 + $0x174] ss:$36 sps:$4 sm:$0xff]   ;;  %v11115_v29 = vld [vmem:[%s13977_s1 + $0x2a4] ss:$8 sps:$4 sm:$0xff]  }
 0x2ed   : > { %v13226_v45 = vadd.f32 %v12226_v53, %v2823_v28  ;;  %4247 = vmatprep.subr.bf16.mxu1 %v11100_v13  ;;  %v11077_v57 = vld [vmem:[%s11500_s24 + $0x4d8] ss:$36 sps:$4 sm:$0xff]  }
 0x2ee   : > { %4111 = vmatmul.mubr.bf16.gmra.mrb[80].mxu1 %v11272_v55  ;;  %v11274_v55 = vld [vmem:[%s11500_s24 + $0x170] ss:$36 sps:$4 sm:$0xff]  }
 0x2ef   : > { %7130 = vmatmul.mubr.bf16.gmra.mrb[120].mxu0 %v11068_v15  ;;  %4120 = vmatprep.mubr.bf16.mxu1 %v11273_v52  ;;  %v11122_v52 = vld [vmem:[%s13977_s1 + $0x2b0] ss:$8 sps:$4 sm:$0xff]  }
 0x2f0   : > { %7139 = vmatprep.mubr.bf16.mxu0 %v11072_v37  ;;  %4248 = vmatpush1.bf16.msra.mxu1 %v11098_v39  ;;  %v11083_v37 = vld [vmem:[%s11500_s24 + $0xac] ss:$36 sps:$4 sm:$0xff]  }
 0x2f1   : > { %v2827_v53 = vpop.f32.mrb[40].mxu1  ;;  %4249 = vmatprep.subr.bf16.mxu1 %v11109_v51  ;;  %v11113_v51 = vld [vmem:[%s13977_s1 + $0x2a0] ss:$8 sps:$4 sm:$0xff]  }
 0x2f2   : > { %v13240_v41 = vadd.f32 %v12240_v4, %v2827_v53  ;;  %v2829_v13 = vpop.f32.mrb[41].mxu1 }
 0x2f3   : > { %v13244_v15 = vadd.f32 %v12243_v6, %v2829_v13  ;;  %v2831_v21 = vpop.f32.mrb[42].mxu1  ;;  %v11124_v6 = vld [vmem:[%s13977_s1 + $0x2b4] ss:$8 sps:$4 sm:$0xff]   ;;  %v11081_v13 = vld [vmem:[%s11500_s24 + $0xa8] ss:$36 sps:$4 sm:$0xff]  }
 0x2f4   : > { %v13248_v28 = vadd.f32 %v12248_v11, %v2831_v21  ;;  %v2833_v39 = vpop.f32.mrb[43].mxu1  ;;  %4250 = vmatpush1.bf16.msra.mxu1 %v11107_v40  ;;  %v11275_v11 = vld [vmem:[%s11500_s24 + $0x1bc] ss:$36 sps:$4 sm:$0xff]   ;;  %v11130_v40 = vld [vmem:[%s13977_s1 + $0x2c4] ss:$8 sps:$4 sm:$0xff]  }
 0x2f5   : > { %v13254_v4 = vadd.f32 %v12250_v17, %v2833_v39  ;;  %4251 = vmatprep.subr.bf16.mxu1 %v11115_v29 }
 0x2f6   : > { %4121 = vmatmul.mubr.bf16.gmra.mrb[84].mxu1 %v11274_v55 }
 0x2f7   : > { %7140 = vmatmul.mubr.bf16.gmra.mrb[124].mxu0 %v11077_v57  ;;  %4130 = vmatprep.mubr.bf16.mxu1 %v11275_v11  ;;  %v11276_v11 = vld [vmem:[%s11500_s24 + $0x1b8] ss:$36 sps:$4 sm:$0xff]  }
 0x2f8   : > { %7182 = vmatprep.mubr.bf16.mxu0 %v11083_v37  ;;  %4252 = vmatpush1.bf16.msra.mxu1 %v11113_v51  ;;  %v11087_v37 = vld [vmem:[%s13977_s1 + $0xd00] ss:$8 sps:$4 sm:$0xff]  }
 0x2f9   : > { %v2837_v17 = vpop.f32.mrb[44].mxu1  ;;  %4253 = vmatprep.subr.bf16.mxu1 %v11124_v6  ;;  %v11090_v6 = vld [vmem:[%s11500_s24 + $0xf4] ss:$36 sps:$4 sm:$0xff]  }
 0x2fa   : > { %v13268_v53 = vadd.f32 %v12264_v31, %v2837_v17  ;;  %v2839_v29 = vpop.f32.mrb[45].mxu1  ;;  %v11104_v31 = vld [vmem:[%s13977_s1 + $0xd14] ss:$8 sps:$4 sm:$0xff]   ;;  %v11277_v17 = vld [vmem:[%s11500_s24 + $0x204] ss:$36 sps:$4 sm:$0xff]  }
 0x2fb   : > { %v13272_v57 = vadd.f32 %v12267_v36, %v2839_v29  ;;  %v2841_v21 = vpop.f32.mrb[46].mxu1  ;;  %v11128_v36 = vld [vmem:[%s13977_s1 + $0x2c0] ss:$8 sps:$4 sm:$0xff]   ;;  %v11137_v29 = vld [vmem:[%s13977_s1 + $0x2d0] ss:$8 sps:$4 sm:$0xff]  }
 0x2fc   : > { %v13278_v39 = vadd.f32 %v12272_v43, %v2841_v21  ;;  %v2843_v51 = vpop.f32.mrb[47].mxu1  ;;  %4254 = vmatpush1.bf16.msra.mxu1 %v11122_v52  ;;  %v11139_v43 = vld [vmem:[%s13977_s1 + $0x2d4] ss:$8 sps:$4 sm:$0xff]   ;;  %v11119_v52 = vld [vmem:[%s13977_s1 + $0xd24] ss:$8 sps:$4 sm:$0xff]  }
 0x2fd   : > { %13997 = vst [vmem:[#allocation16_spill] sm:$0xff] %v13272_v57  ;;  %v13285_v55 = vadd.f32 %v12274_v47, %v2843_v51  ;;  %4255 = vmatprep.subr.bf16.mxu1 %v11130_v40  ;;  %v11102_v47 = vld [vmem:[%s13977_s1 + $0xd10] ss:$8 sps:$4 sm:$0xff]  }
 0x2fe   : > { %13998 = vst [vmem:[#allocation17_spill] sm:$0xff] %v13278_v39  ;;  %4131 = vmatmul.mubr.bf16.gmra.mrb[88].mxu1 %v11276_v11  ;;  %v14002_v11 = vld [vmem:[#allocation2_spill] sm:$0xff] }
 0x2ff   : > { %13999 = vst [vmem:[#allocation18_spill] sm:$0xff] %v13285_v55  ;;  %7183 = vmatmul.mubr.bf16.vlgmr.msra.gmra.mrb[64].mxu0 %v11081_v13  ;;  %4140 = vmatprep.mubr.bf16.mxu1 %v11277_v17  ;;  %v11147_v55 = vld [vmem:[%s13977_s1 + $0xd40] ss:$8 sps:$4 sm:$0xff]  }
 0x300   : > { %7344 = vmatpush1.bf16.msra.mxu0 %v11087_v37  ;;  %7192 = vmatprep.mubr.bf16.mxu0 %v11090_v6  ;;  %v11095_v37 = vld [vmem:[%s11500_s24 + $0xf0] ss:$36 sps:$4 sm:$0xff]  }
 0x301   : > { %7345 = vmatprep.subr.bf16.mxu0 %v11104_v31  ;;  %v2847_v40 = vpop.f32.mrb[48].mxu1  ;;  %4256 = vmatpush1.bf16.msra.mxu1 %v11128_v36  ;;  %v11096_v31 = vld [vmem:[%s11500_s24 + $0x13c] ss:$36 sps:$4 sm:$0xff]  }
 0x302   : > { %v13305_v13 = vadd.f32 %v12288_v3, %v2847_v40  ;;  %v2849_v21 = vpop.f32.mrb[49].mxu1  ;;  %4257 = vmatprep.subr.bf16.mxu1 %v11139_v43  ;;  %v11117_v3 = vld [vmem:[%s13977_s1 + $0xd20] ss:$8 sps:$4 sm:$0xff]   ;;  %v11145_v43 = vld [vmem:[%s13977_s1 + $0x2e4] ss:$8 sps:$4 sm:$0xff]  }
 0x303   : > { %v13309_v51 = vadd.f32 %v12291_v8, %v2849_v21  ;;  %v2851_v6 = vpop.f32.mrb[50].mxu1  ;;  %v14004_v40 = vld [vmem:[#allocation3_spill] sm:$0xff] }
 0x304   : > { %14000 = vst [vmem:[#allocation19_spill] sm:$0xff] %v13305_v13  ;;  %7346 = vmatpush1.bf16.msra.mxu0 %v11102_v47  ;;  %v13313_v36 = vadd.f32 %v14002_v11, %v2851_v6  ;;  %v2853_v17 = vpop.f32.mrb[51].mxu1  ;;  %v11134_v47 = vld [vmem:[%s13977_s1 + $0xd34] ss:$8 sps:$4 sm:$0xff]   ;;  %v11143_v21 = vld [vmem:[%s13977_s1 + $0x2e0] ss:$8 sps:$4 sm:$0xff]  }
 0x305   : > { %14001 = vst [vmem:[#allocation20_spill] sm:$0xff] %v13309_v51  ;;  %7347 = vmatprep.subr.bf16.mxu0 %v11119_v52  ;;  %v13322_v8 = vadd.f32 %v14004_v40, %v2853_v17  ;;  %4258 = vmatpush1.bf16.msra.mxu1 %v11137_v29  ;;  %v11278_v6 = vld [vmem:[%s11500_s24 + $0x200] ss:$36 sps:$4 sm:$0xff]   ;;  %v11154_v52 = vld [vmem:[%s13977_s1 + $0x2f4] ss:$8 sps:$4 sm:$0xff]  }
 0x306   : > { %14003 = vst [vmem:[#allocation2_spill] sm:$0xff] %v13313_v36  ;;  %4141 = vmatmul.mubr.bf16.gmra.mrb[92].mxu1 %v11278_v6  ;;  %v11279_v11 = vld [vmem:[%s11500_s24 + $0x24c] ss:$36 sps:$4 sm:$0xff]   ;;  %4259 = vmatprep.subr.bf16.mxu1 %v11145_v43  ;;  %v14008_v43 = vld [vmem:[#allocation5_spill] sm:$0xff]  ;;  %v14010_v36 = vld [vmem:[#allocation6_spill] sm:$0xff] }
 0x307   : > { %14005 = vst [vmem:[#allocation3_spill] sm:$0xff] %v13322_v8  ;;  %7193 = vmatmul.mubr.bf16.gmra.mrb[68].mxu0 %v11095_v37  ;;  %4150 = vmatprep.mubr.bf16.mxu1 %v11279_v11  ;;  %v11132_v29 = vld [vmem:[%s13977_s1 + $0xd30] ss:$8 sps:$4 sm:$0xff]   ;;  %v11149_v37 = vld [vmem:[%s13977_s1 + $0xd44] ss:$8 sps:$4 sm:$0xff]  }
 0x308   : > { %7202 = vmatprep.mubr.bf16.mxu0 %v11096_v31  ;;  %7348 = vmatpush1.bf16.msra.mxu0 %v11117_v3  ;;  %v11152_v40 = vld [vmem:[%s13977_s1 + $0x2f0] ss:$8 sps:$4 sm:$0xff]  }
 0x309   : > { %v2857_v17 = vpop.f32.mrb[52].mxu1  ;;  %7349 = vmatprep.subr.bf16.mxu0 %v11134_v47  ;;  %4260 = vmatpush1.bf16.msra.mxu1 %v11143_v21  ;;  %v14006_v6 = vld [vmem:[#allocation4_spill] sm:$0xff]  ;;  %v11101_v11 = vld [vmem:[%s11500_s24 + $0x138] ss:$36 sps:$4 sm:$0xff]   ;;  %v11105_v21 = vld [vmem:[%s11500_s24 + $0x184] ss:$36 sps:$4 sm:$0xff]  }
 0x30a   : > { %v13345_v31 = vadd.f32 %v14006_v6, %v2857_v17  ;;  %v2859_v3 = vpop.f32.mrb[53].mxu1  ;;  %4261 = vmatprep.subr.bf16.mxu1 %v11154_v52  ;;  %v14012_v17 = vld [vmem:[#allocation7_spill] sm:$0xff]  ;;  %v11164_v52 = vld [vmem:[%s13977_s1 + $0xd54] ss:$8 sps:$4 sm:$0xff]  }
 0x30b   : > { %v13349_v8 = vadd.f32 %v14008_v43, %v2859_v3  ;;  %v2861_v47 = vpop.f32.mrb[54].mxu1  ;;  %v11280_v3 = vld [vmem:[%s11500_s24 + $0x248] ss:$36 sps:$4 sm:$0xff]  }
 0x30c   : > { %14007 = vst [vmem:[#allocation4_spill] sm:$0xff] %v13345_v31  ;;  %v13353_v51 = vadd.f32 %v14010_v36, %v2861_v47  ;;  %v2863_v13 = vpop.f32.mrb[55].mxu1  ;;  %7350 = vmatpush1.bf16.msra.mxu0 %v11132_v29  ;;  %v11281_v36 = vld [vmem:[%s11500_s24 + $0x294] ss:$36 sps:$4 sm:$0xff]   ;;  %v11110_v47 = vld [vmem:[%s11500_s24 + $0x180] ss:$36 sps:$4 sm:$0xff]  }
 0x30d   : > { %14009 = vst [vmem:[#allocation5_spill] sm:$0xff] %v13349_v8  ;;  %v13359_v6 = vadd.f32 %v14012_v17, %v2863_v13  ;;  %7351 = vmatprep.subr.bf16.mxu0 %v11149_v37  ;;  %4262 = vmatpush1.bf16.msra.mxu1 %v11152_v40  ;;  %v11282_v13 = vld [vmem:[%s13977_s1 + $0x304] ss:$8 sps:$4 sm:$0xff]   ;;  %v11162_v29 = vld [vmem:[%s13977_s1 + $0xd50] ss:$8 sps:$4 sm:$0xff]  }
 0x30e   : > { %14011 = vst [vmem:[#allocation6_spill] sm:$0xff] %v13353_v51  ;;  %4151 = vmatmul.mubr.bf16.gmra.mrb[96].mxu1 %v11280_v3  ;;  %9187 = vmatprep.subr.bf16.mxu1 %v11282_v13  ;;  %v11173_v40 = vld [vmem:[%s13977_s1 + $0xd64] ss:$8 sps:$4 sm:$0xff]  }
 0x30f   : > { %14013 = vst [vmem:[#allocation7_spill] sm:$0xff] %v13359_v6  ;;  %7203 = vmatmul.mubr.bf16.gmra.mrb[72].mxu0 %v11101_v11  ;;  %4160 = vmatprep.mubr.bf16.mxu1 %v11281_v36  ;;  %v14014_v11 = vld [vmem:[#allocation8_spill] sm:$0xff]  ;;  %v14018_v13 = vld [vmem:[#allocation10_spill] sm:$0xff]  ;;  %v14020_v8 = vld [vmem:[#allocation11_spill] sm:$0xff] }
 0x310   : > { %7212 = vmatprep.mubr.bf16.mxu0 %v11105_v21  ;;  %7352 = vmatpush1.bf16.msra.mxu0 %v11147_v55  ;;  %v14016_v21 = vld [vmem:[#allocation9_spill] sm:$0xff]  ;;  %v11111_v36 = vld [vmem:[%s11500_s24 + $0x1cc] ss:$36 sps:$4 sm:$0xff]  }
 0x311   : > { %v2867_v37 = vpop.f32.mrb[56].mxu1  ;;  %7353 = vmatprep.subr.bf16.mxu0 %v11164_v52  ;;  %v11171_v52 = vld [vmem:[%s13977_s1 + $0xd60] ss:$8 sps:$4 sm:$0xff]  }
 0x312   : > { %v13376_v43 = vadd.f32 %v14014_v11, %v2867_v37  ;;  %v2869_v55 = vpop.f32.mrb[57].mxu1  ;;  %v11182_v11 = vld [vmem:[%s13977_s1 + $0xd74] ss:$8 sps:$4 sm:$0xff]  }
 0x313   : > { %v13380_v17 = vadd.f32 %v14016_v21, %v2869_v55  ;;  %v2871_v3 = vpop.f32.mrb[58].mxu1  ;;  %v11283_v55 = vld [vmem:[%s11500_s24 + $0x290] ss:$36 sps:$4 sm:$0xff]   ;;  %v11284_v21 = vld [vmem:[%s11500_s24 + $0x2dc] ss:$36 sps:$4 sm:$0xff]  }
 0x314   : > { %14015 = vst [vmem:[#allocation8_spill] sm:$0xff] %v13376_v43  ;;  %v13384_v6 = vadd.f32 %v14018_v13, %v2871_v3  ;;  %v2873_v51 = vpop.f32.mrb[59].mxu1  ;;  %7354 = vmatpush1.bf16.msra.mxu0 %v11162_v29  ;;  %v11180_v29 = vld [vmem:[%s13977_s1 + $0xd70] ss:$8 sps:$4 sm:$0xff]   ;;  %v11116_v13 = vld [vmem:[%s11500_s24 + $0x1c8] ss:$36 sps:$4 sm:$0xff]  }
 0x315   : > { %14017 = vst [vmem:[#allocation9_spill] sm:$0xff] %v13380_v17  ;;  %v13390_v37 = vadd.f32 %v14020_v8, %v2873_v51  ;;  %7355 = vmatprep.subr.bf16.mxu0 %v11173_v40  ;;  %v14022_v8 = vld [vmem:[#allocation12_spill] sm:$0xff] }
 0x316   : > { %14019 = vst [vmem:[#allocation10_spill] sm:$0xff] %v13384_v6  ;;  %4161 = vmatmul.mubr.bf16.gmra.mrb[100].mxu1 %v11283_v55 }
 0x317   : > { %14021 = vst [vmem:[#allocation11_spill] sm:$0xff] %v13390_v37  ;;  %7213 = vmatmul.mubr.bf16.gmra.mrb[76].mxu0 %v11110_v47  ;;  %4170 = vmatprep.mubr.bf16.mxu1 %v11284_v21  ;;  %v14024_v47 = vld [vmem:[#allocation13_spill] sm:$0xff]  ;;  %v14026_v21 = vld [vmem:[#allocation14_spill] sm:$0xff] }
 0x318   : > { %7222 = vmatprep.mubr.bf16.mxu0 %v11111_v36  ;;  %7356 = vmatpush1.bf16.msra.mxu0 %v11171_v52  ;;  %v11120_v52 = vld [vmem:[%s11500_s24 + $0x214] ss:$36 sps:$4 sm:$0xff]  }
 0x319   : > { %v2877_v51 = vpop.f32.mrb[60].mxu1  ;;  %7357 = vmatprep.subr.bf16.mxu0 %v11182_v11  ;;  %v14028_v11 = vld [vmem:[#allocation15_spill] sm:$0xff] }
 0x31a   : > { %v13401_v40 = vadd.f32 %v14022_v8, %v2877_v51  ;;  %v2879_v3 = vpop.f32.mrb[61].mxu1  ;;  %v11285_v8 = vld [vmem:[%s11500_s24 + $0x2d8] ss:$36 sps:$4 sm:$0xff]  }
 0x31b   : > { %v13405_v55 = vadd.f32 %v14024_v47, %v2879_v3  ;;  %v2881_v36 = vpop.f32.mrb[62].mxu1  ;;  %v11125_v3 = vld [vmem:[%s11500_s24 + $0x210] ss:$36 sps:$4 sm:$0xff]   ;;  %v11126_v47 = vld [vmem:[%s11500_s24 + $0x25c] ss:$36 sps:$4 sm:$0xff]  }
 0x31c   : > { %14023 = vst [vmem:[#allocation12_spill] sm:$0xff] %v13401_v40  ;;  %v13409_v37 = vadd.f32 %v14026_v21, %v2881_v36  ;;  %v2883_v6 = vpop.f32.mrb[63].mxu1  ;;  %7358 = vmatpush1.bf16.msra.mxu0 %v11180_v29  ;;  %v11286_v40 = vld [vmem:[%s11500_s24 + $0x324] ss:$36 sps:$4 sm:$0xff]   ;;  %v11288_v29 = vld [vmem:[%s11500_s24 + $0x36c] ss:$36 sps:$4 sm:$0xff]  }
 0x31d   : > { %14025 = vst [vmem:[#allocation13_spill] sm:$0xff] %v13405_v55  ;;  %v13412_v51 = vadd.f32 %v14028_v11, %v2883_v6  ;;  %v11287_v36 = vld [vmem:[%s11500_s24 + $0x320] ss:$36 sps:$4 sm:$0xff]   ;;  %v11131_v6 = vld [vmem:[%s11500_s24 + $0x258] ss:$36 sps:$4 sm:$0xff]  }
 0x31e   : > { %14027 = vst [vmem:[#allocation14_spill] sm:$0xff] %v13409_v37  ;;  %4171 = vmatmul.mubr.bf16.gmra.mrb[104].mxu1 %v11285_v8  ;;  %v11135_v21 = vld [vmem:[%s11500_s24 + $0x2a4] ss:$36 sps:$4 sm:$0xff]   ;;  %v11141_v11 = vld [vmem:[%s11500_s24 + $0x2ec] ss:$36 sps:$4 sm:$0xff]  }
 0x31f   : > { %14029 = vst [vmem:[#allocation15_spill] sm:$0xff] %v13412_v51  ;;  %7223 = vmatmul.mubr.bf16.gmra.mrb[80].mxu0 %v11116_v13  ;;  %4180 = vmatprep.mubr.bf16.mxu1 %v11286_v40  ;;  %v11289_v13 = vld [vmem:[%s11500_s24 + $0x368] ss:$36 sps:$4 sm:$0xff]   ;;  %v11290_v40 = vld [vmem:[%s11500_s24 + $0x3b4] ss:$36 sps:$4 sm:$0xff]  }
 0x320   : > { %7232 = vmatprep.mubr.bf16.mxu0 %v11120_v52  ;;  %v11140_v52 = vld [vmem:[%s11500_s24 + $0x2a0] ss:$36 sps:$4 sm:$0xff]   ;;  %v11291_v8 = vld [vmem:[%s11500_s24 + $0x3b0] ss:$36 sps:$4 sm:$0xff]  }
 0x326   : > { %4181 = vmatmul.mubr.bf16.gmra.mrb[108].mxu1 %v11287_v36  ;;  %v11150_v36 = vld [vmem:[%s11500_s24 + $0x334] ss:$36 sps:$4 sm:$0xff]  }
 0x327   : > { %7233 = vmatmul.mubr.bf16.gmra.mrb[84].mxu0 %v11125_v3  ;;  %4190 = vmatprep.mubr.bf16.mxu1 %v11288_v29  ;;  %v11292_v3 = vld [vmem:[%s11500_s24 + $0x3fc] ss:$36 sps:$4 sm:$0xff]  }
 0x328   : > { %7242 = vmatprep.mubr.bf16.mxu0 %v11126_v47  ;;  %v11146_v47 = vld [vmem:[%s11500_s24 + $0x2e8] ss:$36 sps:$4 sm:$0xff]   ;;  %v11293_v29 = vld [vmem:[%s11500_s24 + $0x3f8] ss:$36 sps:$4 sm:$0xff]  }
 0x32e   : > { %4191 = vmatmul.mubr.bf16.gmra.mrb[112].mxu1 %v11289_v13  ;;  %v11158_v13 = vld [vmem:[%s11500_s24 + $0x14] ss:$36 sps:$4 sm:$0xff]  }
 0x32f   : > { %7243 = vmatmul.mubr.bf16.gmra.mrb[88].mxu0 %v11131_v6  ;;  %4200 = vmatprep.mubr.bf16.mxu1 %v11290_v40  ;;  %v11294_v6 = vld [vmem:[%s11500_s24 + $0x444] ss:$36 sps:$4 sm:$0xff]   ;;  %v11159_v40 = vld [vmem:[%s11500_s24 + $0x37c] ss:$36 sps:$4 sm:$0xff]  }
 0x330   : > { %7252 = vmatprep.mubr.bf16.mxu0 %v11135_v21  ;;  %v11155_v21 = vld [vmem:[%s11500_s24 + $0x330] ss:$36 sps:$4 sm:$0xff]  }
 0x336   : > { %4201 = vmatmul.mubr.bf16.gmra.mrb[116].mxu1 %v11291_v8  ;;  %v11295_v8 = vld [vmem:[%s11500_s24 + $0x440] ss:$36 sps:$4 sm:$0xff]  }
 0x337   : > { %7253 = vmatmul.mubr.bf16.gmra.mrb[92].mxu0 %v11140_v52  ;;  %4210 = vmatprep.mubr.bf16.mxu1 %v11292_v3  ;;  %v11156_v52 = vld [vmem:[%s11500_s24 + $0x10] ss:$36 sps:$4 sm:$0xff]   ;;  %v11165_v3 = vld [vmem:[%s11500_s24 + $0x3c4] ss:$36 sps:$4 sm:$0xff]  }
 0x338   : > { %7262 = vmatprep.mubr.bf16.mxu0 %v11141_v11  ;;  %v11161_v11 = vld [vmem:[%s11500_s24 + $0x378] ss:$36 sps:$4 sm:$0xff]  }
 0x33e   : > { %4211 = vmatmul.mubr.bf16.gmra.mrb[120].mxu1 %v11293_v29  ;;  %v11298_v29 = vld [vmem:[%s13977_s1 + $0x314] ss:$8 sps:$4 sm:$0xff]  }
 0x33f   : > { %7263 = vmatmul.mubr.bf16.gmra.mrb[96].mxu0 %v11146_v47  ;;  %4220 = vmatprep.mubr.bf16.mxu1 %v11294_v6  ;;  %v11296_v47 = vld [vmem:[%s13977_s1 + $0x300] ss:$8 sps:$4 sm:$0xff]  }
 0x340   : > { %7272 = vmatprep.mubr.bf16.mxu0 %v11150_v36  ;;  %v11297_v36 = vld [vmem:[%s11500_s24 + $0x5c] ss:$36 sps:$4 sm:$0xff]  }
 0x341   : > { %v11167_v6 = vld [vmem:[%s11500_s24 + $0x3c0] ss:$36 sps:$4 sm:$0xff]  }
 0x346   : > { %4221 = vmatmul.mubr.bf16.gmra.mrb[124].mxu1 %v11295_v8  ;;  %v11301_v8 = vld [vmem:[%s11500_s24 + $0x58] ss:$36 sps:$4 sm:$0xff]  }
 0x347   : > { %7273 = vmatmul.mubr.bf16.gmra.mrb[100].mxu0 %v11155_v21  ;;  %4263 = vmatprep.mubr.bf16.mxu1 %v11158_v13  ;;  %v11299_v21 = vld [vmem:[%s13977_s1 + $0x310] ss:$8 sps:$4 sm:$0xff]  }
 0x348   : > { %7282 = vmatprep.mubr.bf16.mxu0 %v11159_v40  ;;  %v11168_v13 = vld [vmem:[%s11500_s24 + $0x40c] ss:$36 sps:$4 sm:$0xff]  }
 0x349   : > { %v11300_v40 = vld [vmem:[%s13977_s1 + $0x324] ss:$8 sps:$4 sm:$0xff]  }
 0x34e   : > { %4264 = vmatmul.mubr.bf16.vlgmr.msra.gmra.mrb[64].mxu1 %v11156_v52  ;;  %v11302_v52 = vld [vmem:[%s11500_s24 + $0xa4] ss:$36 sps:$4 sm:$0xff]  }
 0x34f   : > { %7283 = vmatmul.mubr.bf16.gmra.mrb[104].mxu0 %v11161_v11  ;;  %9203 = vmatpush1.bf16.msra.mxu1 %v11296_v47  ;;  %v11303_v11 = vld [vmem:[%s13977_s1 + $0x320] ss:$8 sps:$4 sm:$0xff]  }
 0x350   : > { %4273 = vmatprep.mubr.bf16.mxu1 %v11297_v36  ;;  %7292 = vmatprep.mubr.bf16.mxu0 %v11165_v3  ;;  %v11304_v3 = vld [vmem:[%s13977_s1 + $0x334] ss:$8 sps:$4 sm:$0xff]   ;;  %v11170_v47 = vld [vmem:[%s11500_s24 + $0x408] ss:$36 sps:$4 sm:$0xff]  }
 0x351   : > { %9188 = vmatprep.subr.bf16.mxu1 %v11298_v29  ;;  %v11174_v36 = vld [vmem:[%s11500_s24 + $0x454] ss:$36 sps:$4 sm:$0xff]  }
 0x352   : > { %v11305_v29 = vld [vmem:[%s13977_s1 + $0x330] ss:$8 sps:$4 sm:$0xff]  }
 0x353   : > { %9204 = vmatpush1.bf16.msra.mxu1 %v11299_v21  ;;  %v11307_v21 = vld [vmem:[%s11500_s24 + $0xa0] ss:$36 sps:$4 sm:$0xff]  }
 0x354   : > { %9189 = vmatprep.subr.bf16.mxu1 %v11300_v40  ;;  %v11309_v40 = vld [vmem:[%s13977_s1 + $0x340] ss:$8 sps:$4 sm:$0xff]  }
 0x356   : > { %4274 = vmatmul.mubr.bf16.gmra.mrb[68].mxu1 %v11301_v8  ;;  %v11310_v8 = vld [vmem:[%s13977_s1 + $0x354] ss:$8 sps:$4 sm:$0xff]  }
 0x357   : > { %7293 = vmatmul.mubr.bf16.gmra.mrb[108].mxu0 %v11167_v6  ;;  %4283 = vmatprep.mubr.bf16.mxu1 %v11302_v52  ;;  %v11306_v6 = vld [vmem:[%s13977_s1 + $0x344] ss:$8 sps:$4 sm:$0xff]   ;;  %v11176_v52 = vld [vmem:[%s11500_s24 + $0x450] ss:$36 sps:$4 sm:$0xff]  }
 0x358   : > { %7302 = vmatprep.mubr.bf16.mxu0 %v11168_v13  ;;  %9205 = vmatpush1.bf16.msra.mxu1 %v11303_v11  ;;  %v11308_v13 = vld [vmem:[%s11500_s24 + $0xec] ss:$36 sps:$4 sm:$0xff]   ;;  %v11177_v11 = vld [vmem:[%s11500_s24 + $0x49c] ss:$36 sps:$4 sm:$0xff]  }
 0x359   : > { %9190 = vmatprep.subr.bf16.mxu1 %v11304_v3  ;;  %v11311_v3 = vld [vmem:[%s13977_s1 + $0x350] ss:$8 sps:$4 sm:$0xff]  }
 0x35c   : > { %9206 = vmatpush1.bf16.msra.mxu1 %v11305_v29  ;;  %v11314_v29 = vld [vmem:[%s11500_s24 + $0x134] ss:$36 sps:$4 sm:$0xff]  }
 0x35d   : > { %9191 = vmatprep.subr.bf16.mxu1 %v11306_v6  ;;  %v11315_v6 = vld [vmem:[%s13977_s1 + $0x360] ss:$8 sps:$4 sm:$0xff]  }
 0x35e   : > { %4284 = vmatmul.mubr.bf16.gmra.mrb[72].mxu1 %v11307_v21  ;;  %v11316_v21 = vld [vmem:[%s13977_s1 + $0x374] ss:$8 sps:$4 sm:$0xff]  }
 0x35f   : > { %7303 = vmatmul.mubr.bf16.gmra.mrb[112].mxu0 %v11170_v47  ;;  %4293 = vmatprep.mubr.bf16.mxu1 %v11308_v13  ;;  %v11312_v47 = vld [vmem:[%s13977_s1 + $0x364] ss:$8 sps:$4 sm:$0xff]   ;;  %v11179_v13 = vld [vmem:[%s11500_s24 + $0x498] ss:$36 sps:$4 sm:$0xff]  }
 0x360   : > { %7312 = vmatprep.mubr.bf16.mxu0 %v11174_v36  ;;  %9207 = vmatpush1.bf16.msra.mxu1 %v11309_v40  ;;  %v11313_v36 = vld [vmem:[%s11500_s24 + $0xe8] ss:$36 sps:$4 sm:$0xff]  }
 0x361   : > { %9192 = vmatprep.subr.bf16.mxu1 %v11310_v8  ;;  %v11183_v40 = vld [vmem:[%s11500_s24 + $0x4e4] ss:$36 sps:$4 sm:$0xff]   ;;  %v11317_v8 = vld [vmem:[%s13977_s1 + $0x370] ss:$8 sps:$4 sm:$0xff]  }
 0x364   : > { %9208 = vmatpush1.bf16.msra.mxu1 %v11311_v3  ;;  %v11320_v3 = vld [vmem:[%s11500_s24 + $0x17c] ss:$36 sps:$4 sm:$0xff]  }
 0x365   : > { %9193 = vmatprep.subr.bf16.mxu1 %v11312_v47  ;;  %v11321_v47 = vld [vmem:[%s13977_s1 + $0x380] ss:$8 sps:$4 sm:$0xff]  }
 0x366   : > { %4294 = vmatmul.mubr.bf16.gmra.mrb[76].mxu1 %v11313_v36  ;;  %v11322_v36 = vld [vmem:[%s13977_s1 + $0x394] ss:$8 sps:$4 sm:$0xff]  }
 0x367   : > { %7313 = vmatmul.mubr.bf16.gmra.mrb[116].mxu0 %v11176_v52  ;;  %4303 = vmatprep.mubr.bf16.mxu1 %v11314_v29  ;;  %v11318_v52 = vld [vmem:[%s13977_s1 + $0x384] ss:$8 sps:$4 sm:$0xff]  }
 0x368   : > { %7322 = vmatprep.mubr.bf16.mxu0 %v11177_v11  ;;  %9209 = vmatpush1.bf16.msra.mxu1 %v11315_v6  ;;  %v11319_v11 = vld [vmem:[%s11500_s24 + $0x130] ss:$36 sps:$4 sm:$0xff]   ;;  %v11185_v29 = vld [vmem:[%s11500_s24 + $0x4e0] ss:$36 sps:$4 sm:$0xff]  }
 0x369   : > { %9194 = vmatprep.subr.bf16.mxu1 %v11316_v21  ;;  %v11323_v6 = vld [vmem:[%s13977_s1 + $0x390] ss:$8 sps:$4 sm:$0xff]   ;;  %v11324_v21 = vld [vmem:[%s13977_s1 + $0x3a4] ss:$8 sps:$4 sm:$0xff]  }
 0x36c   : > { %9210 = vmatpush1.bf16.msra.mxu1 %v11317_v8  ;;  %v14030_v8 = vmov 0  }
 0x36d   : > { %9195 = vmatprep.subr.bf16.mxu1 %v11318_v52  ;;  %v11327_v52 = vld [vmem:[%s13977_s1 + $0x3a0] ss:$8 sps:$4 sm:$0xff]  }
 0x36e   : > { %4304 = vmatmul.mubr.bf16.gmra.mrb[80].mxu1 %v11319_v11  ;;  %v11328_v11 = vld [vmem:[%s13977_s1 + $0x3b4] ss:$8 sps:$4 sm:$0xff]  }
 0x36f   : > { %7323 = vmatmul.mubr.bf16.gmra.mrb[120].mxu0 %v11179_v13  ;;  %4313 = vmatprep.mubr.bf16.mxu1 %v11320_v3  ;;  %v11325_v13 = vld [vmem:[%s11500_s24 + $0x178] ss:$36 sps:$4 sm:$0xff]   ;;  %v11186_v3 = vld [vmem:[%s11500_s24 + $0xb0] ss:$36 sps:$4 sm:$0xff]  }
 0x370   : > { %7332 = vmatprep.mubr.bf16.mxu0 %v11183_v40  ;;  %9211 = vmatpush1.bf16.msra.mxu1 %v11321_v47  ;;  %v11326_v40 = vld [vmem:[%s11500_s24 + $0x1c4] ss:$36 sps:$4 sm:$0xff]   ;;  %v11329_v47 = vld [vmem:[%s13977_s1 + $0x3b0] ss:$8 sps:$4 sm:$0xff]  }
 0x371   : > { %9196 = vmatprep.subr.bf16.mxu1 %v11322_v36  ;;  %v11330_v36 = vld [vmem:[%s13977_s1 + $0x3c4] ss:$8 sps:$4 sm:$0xff]  }
 0x374   : > { %9212 = vmatpush1.bf16.msra.mxu1 %v11323_v6  ;;  %v11332_v6 = vld [vmem:[%s11500_s24 + $0x20c] ss:$36 sps:$4 sm:$0xff]  }
 0x375   : > { %9197 = vmatprep.subr.bf16.mxu1 %v11324_v21  ;;  %v11333_v21 = vld [vmem:[%s13977_s1 + $0x3c0] ss:$8 sps:$4 sm:$0xff]  }
 0x376   : > { %4314 = vmatmul.mubr.bf16.gmra.mrb[84].mxu1 %v11325_v13  ;;  %v11334_v13 = vld [vmem:[%s13977_s1 + $0x3d4] ss:$8 sps:$4 sm:$0xff]  }
 0x377   : > { %7333 = vmatmul.mubr.bf16.gmra.mrb[124].mxu0 %v11185_v29  ;;  %4323 = vmatprep.mubr.bf16.mxu1 %v11326_v40  ;;  %v11331_v29 = vld [vmem:[%s11500_s24 + $0x1c0] ss:$36 sps:$4 sm:$0xff]   ;;  %v11187_v40 = vld [vmem:[%s11500_s24 + $0xf8] ss:$36 sps:$4 sm:$0xff]  }
 0x378   : > { %7375 = vmatprep.mubr.bf16.mxu0 %v14030_v8  ;;  %9213 = vmatpush1.bf16.msra.mxu1 %v11327_v52  ;;  %v11335_v52 = vld [vmem:[%s13977_s1 + $0x3d0] ss:$8 sps:$4 sm:$0xff]  }
 0x379   : > { %9198 = vmatprep.subr.bf16.mxu1 %v11328_v11  ;;  %v11336_v11 = vld [vmem:[%s13977_s1 + $0x3e4] ss:$8 sps:$4 sm:$0xff]  }
 0x37c   : > { %9214 = vmatpush1.bf16.msra.mxu1 %v11329_v47  ;;  %v11338_v47 = vld [vmem:[%s11500_s24 + $0x254] ss:$36 sps:$4 sm:$0xff]  }
 0x37d   : > { %9199 = vmatprep.subr.bf16.mxu1 %v11330_v36  ;;  %v11339_v36 = vld [vmem:[%s13977_s1 + $0x3e0] ss:$8 sps:$4 sm:$0xff]  }
 0x37e   : > { %4324 = vmatmul.mubr.bf16.gmra.mrb[88].mxu1 %v11331_v29  ;;  %v11340_v29 = vld [vmem:[%s13977_s1 + $0x3f4] ss:$8 sps:$4 sm:$0xff]  }
 0x37f   : > { %7376 = vmatmul.mubr.bf16.vlgmr.msra.gmra.mrb[64].mxu0 %v11186_v3  ;;  %4333 = vmatprep.mubr.bf16.mxu1 %v11332_v6  ;;  %v11337_v3 = vld [vmem:[%s11500_s24 + $0x208] ss:$36 sps:$4 sm:$0xff]   ;;  %v11188_v6 = vld [vmem:[%s11500_s24 + $0x140] ss:$36 sps:$4 sm:$0xff]  }
 0x380   : > { %7385 = vmatprep.mubr.bf16.mxu0 %v14030_v8  ;;  %9215 = vmatpush1.bf16.msra.mxu1 %v11333_v21  ;;  %v11341_v21 = vld [vmem:[%s13977_s1 + $0x3f0] ss:$8 sps:$4 sm:$0xff]  }
 0x381   : > { %9200 = vmatprep.subr.bf16.mxu1 %v11334_v13  ;;  %v11342_v13 = vld [vmem:[%s11500_s24 + $0x250] ss:$36 sps:$4 sm:$0xff]  }
 0x384   : > { %9216 = vmatpush1.bf16.msra.mxu1 %v11335_v52  ;;  %v11189_v52 = vld [vmem:[%s11500_s24 + $0x188] ss:$36 sps:$4 sm:$0xff]  }
 0x385   : > { %9201 = vmatprep.subr.bf16.mxu1 %v11336_v11  ;;  %v11344_v11 = vld [vmem:[%s11500_s24 + $0x298] ss:$36 sps:$4 sm:$0xff]  }
 0x386   : > { %4334 = vmatmul.mubr.bf16.gmra.mrb[92].mxu1 %v11337_v3  ;;  %v11345_v3 = vld [vmem:[%s11500_s24 + $0x2e4] ss:$36 sps:$4 sm:$0xff]  }
 0x387   : > { %7386 = vmatmul.mubr.bf16.gmra.mrb[68].mxu0 %v11187_v40  ;;  %4343 = vmatprep.mubr.bf16.mxu1 %v11338_v47  ;;  %v11343_v40 = vld [vmem:[%s11500_s24 + $0x29c] ss:$36 sps:$4 sm:$0xff]   ;;  %v11190_v47 = vld [vmem:[%s11500_s24 + $0x1d0] ss:$36 sps:$4 sm:$0xff]  }
 0x388   : > { %7395 = vmatprep.mubr.bf16.mxu0 %v14030_v8  ;;  %9217 = vmatpush1.bf16.msra.mxu1 %v11339_v36  ;;  %v11346_v36 = vld [vmem:[%s11500_s24 + $0x2e0] ss:$36 sps:$4 sm:$0xff]  }
 0x389   : > { %9202 = vmatprep.subr.bf16.mxu1 %v11340_v29  ;;  %v11347_v29 = vld [vmem:[%s11500_s24 + $0x32c] ss:$36 sps:$4 sm:$0xff]  }
 0x38c   : > { %9218 = vmatpush1.bf16.msra.mxu1 %v11341_v21  ;;  %v11348_v21 = vld [vmem:[%s11500_s24 + $0x328] ss:$36 sps:$4 sm:$0xff]  }
 0x38e   : > { %4344 = vmatmul.mubr.bf16.gmra.mrb[96].mxu1 %v11342_v13  ;;  %v11349_v13 = vld [vmem:[%s11500_s24 + $0x374] ss:$36 sps:$4 sm:$0xff]  }
 0x38f   : > { %7396 = vmatmul.mubr.bf16.gmra.mrb[72].mxu0 %v11188_v6  ;;  %4353 = vmatprep.mubr.bf16.mxu1 %v11343_v40  ;;  %v11191_v6 = vld [vmem:[%s11500_s24 + $0x218] ss:$36 sps:$4 sm:$0xff]   ;;  %v11192_v40 = vld [vmem:[%s11500_s24 + $0x260] ss:$36 sps:$4 sm:$0xff]  }
 0x390   : > { %7405 = vmatprep.mubr.bf16.mxu0 %v14030_v8 }
 0x396   : > { %4354 = vmatmul.mubr.bf16.gmra.mrb[100].mxu1 %v11344_v11  ;;  %v11351_v11 = vld [vmem:[%s11500_s24 + $0x3bc] ss:$36 sps:$4 sm:$0xff]  }
 0x397   : > { %7406 = vmatmul.mubr.bf16.gmra.mrb[76].mxu0 %v11189_v52  ;;  %4363 = vmatprep.mubr.bf16.mxu1 %v11345_v3  ;;  %v11350_v52 = vld [vmem:[%s11500_s24 + $0x370] ss:$36 sps:$4 sm:$0xff]   ;;  %v11193_v3 = vld [vmem:[%s11500_s24 + $0x2a8] ss:$36 sps:$4 sm:$0xff]  }
 0x398   : > { %7415 = vmatprep.mubr.bf16.mxu0 %v14030_v8 }
 0x39e   : > { %4364 = vmatmul.mubr.bf16.gmra.mrb[104].mxu1 %v11346_v36  ;;  %v11353_v36 = vld [vmem:[%s11500_s24 + $0x404] ss:$36 sps:$4 sm:$0xff]  }
 0x39f   : > { %7416 = vmatmul.mubr.bf16.gmra.mrb[80].mxu0 %v11190_v47  ;;  %4373 = vmatprep.mubr.bf16.mxu1 %v11347_v29  ;;  %v11352_v47 = vld [vmem:[%s11500_s24 + $0x3b8] ss:$36 sps:$4 sm:$0xff]   ;;  %v11194_v29 = vld [vmem:[%s11500_s24 + $0x2f0] ss:$36 sps:$4 sm:$0xff]  }
 0x3a0   : > { %7425 = vmatprep.mubr.bf16.mxu0 %v14030_v8 }
 0x3a6   : > { %4374 = vmatmul.mubr.bf16.gmra.mrb[108].mxu1 %v11348_v21  ;;  %v11355_v21 = vld [vmem:[%s11500_s24 + $0x44c] ss:$36 sps:$4 sm:$0xff]  }
 0x3a7   : > { %7426 = vmatmul.mubr.bf16.gmra.mrb[84].mxu0 %v11191_v6  ;;  %4383 = vmatprep.mubr.bf16.mxu1 %v11349_v13  ;;  %v11354_v6 = vld [vmem:[%s11500_s24 + $0x400] ss:$36 sps:$4 sm:$0xff]   ;;  %v11195_v13 = vld [vmem:[%s11500_s24 + $0x338] ss:$36 sps:$4 sm:$0xff]  }
 0x3a8   : > { %7435 = vmatprep.mubr.bf16.mxu0 %v14030_v8 }
 0x3ae   : > { %4384 = vmatmul.mubr.bf16.gmra.mrb[112].mxu1 %v11350_v52  ;;  %v11357_v52 = vld [vmem:[%s11500_s24 + $0x2ec] ss:$36 sps:$4 sm:$0xff]  }
 0x3af   : > { %7436 = vmatmul.mubr.bf16.gmra.mrb[88].mxu0 %v11192_v40  ;;  %4393 = vmatprep.mubr.bf16.mxu1 %v11351_v11  ;;  %v11356_v40 = vld [vmem:[%s11500_s24 + $0x448] ss:$36 sps:$4 sm:$0xff]   ;;  %v11196_v11 = vld [vmem:[%s11500_s24 + $0x380] ss:$36 sps:$4 sm:$0xff]  }
 0x3b0   : > { %7445 = vmatprep.mubr.bf16.mxu0 %v14030_v8 }
 0x3b6   : > { %4394 = vmatmul.mubr.bf16.gmra.mrb[116].mxu1 %v11352_v47  ;;  %v11359_v47 = vld [vmem:[%s11500_s24 + $0x334] ss:$36 sps:$4 sm:$0xff]  }
 0x3b7   : > { %7446 = vmatmul.mubr.bf16.gmra.mrb[92].mxu0 %v11193_v3  ;;  %4403 = vmatprep.mubr.bf16.mxu1 %v11353_v36  ;;  %v11358_v3 = vld [vmem:[%s11500_s24 + $0x2e8] ss:$36 sps:$4 sm:$0xff]  }
 0x3b8   : > { %7455 = vmatprep.mubr.bf16.mxu0 %v14030_v8  ;;  %v11197_v36 = vld [vmem:[%s11500_s24 + $0x3c8] ss:$36 sps:$4 sm:$0xff]  }
 0x3be   : > { %4404 = vmatmul.mubr.bf16.gmra.mrb[120].mxu1 %v11354_v6  ;;  %v11361_v6 = vld [vmem:[%s11500_s24 + $0x37c] ss:$36 sps:$4 sm:$0xff]  }
 0x3bf   : > { %7456 = vmatmul.mubr.bf16.gmra.mrb[96].mxu0 %v11194_v29  ;;  %4413 = vmatprep.mubr.bf16.mxu1 %v11355_v21  ;;  %v11360_v29 = vld [vmem:[%s11500_s24 + $0x330] ss:$36 sps:$4 sm:$0xff]  }
 0x3c0   : > { %7465 = vmatprep.mubr.bf16.mxu0 %v14030_v8  ;;  %v11198_v21 = vld [vmem:[%s11500_s24 + $0x410] ss:$36 sps:$4 sm:$0xff]  }
 0x3c6   : > { %4414 = vmatmul.mubr.bf16.gmra.mrb[124].mxu1 %v11356_v40  ;;  %v11363_v40 = vld [vmem:[%s11500_s24 + $0x3c4] ss:$36 sps:$4 sm:$0xff]  }
 0x3c7   : > { %7466 = vmatmul.mubr.bf16.gmra.mrb[100].mxu0 %v11195_v13  ;;  %4556 = vmatprep.mubr.bf16.mxu1 %v11357_v52  ;;  %v11362_v13 = vld [vmem:[%s11500_s24 + $0x378] ss:$36 sps:$4 sm:$0xff]  }
 0x3c8   : > { %7475 = vmatprep.mubr.bf16.mxu0 %v14030_v8  ;;  %v11199_v52 = vld [vmem:[%s11500_s24 + $0x458] ss:$36 sps:$4 sm:$0xff]  }
 0x3ce   : > { %4557 = vmatmul.mubr.bf16.vlgmr.msra.gmra.mrb[104].mxu1 %v11358_v3  ;;  %v11365_v3 = vld [vmem:[%s11500_s24 + $0x40c] ss:$36 sps:$4 sm:$0xff]  }
 0x3cf   : > { %7476 = vmatmul.mubr.bf16.gmra.mrb[104].mxu0 %v11196_v11  ;;  %4566 = vmatprep.mubr.bf16.mxu1 %v11359_v47  ;;  %v11364_v11 = vld [vmem:[%s11500_s24 + $0x3c0] ss:$36 sps:$4 sm:$0xff]  }
 0x3d0   : > { %7485 = vmatprep.mubr.bf16.mxu0 %v14030_v8  ;;  %v11200_v47 = vld [vmem:[%s11500_s24 + $0x4a0] ss:$36 sps:$4 sm:$0xff]  }
 0x3d6   : > { %4567 = vmatmul.mubr.bf16.gmra.mrb[108].mxu1 %v11360_v29  ;;  %v11367_v29 = vld [vmem:[%s11500_s24 + $0x454] ss:$36 sps:$4 sm:$0xff]  }
 0x3d7   : > { %7486 = vmatmul.mubr.bf16.gmra.mrb[108].mxu0 %v11197_v36  ;;  %4576 = vmatprep.mubr.bf16.mxu1 %v11361_v6  ;;  %v11366_v36 = vld [vmem:[%s11500_s24 + $0x408] ss:$36 sps:$4 sm:$0xff]  }
 0x3d8   : > { %7495 = vmatprep.mubr.bf16.mxu0 %v14030_v8  ;;  %v11201_v6 = vld [vmem:[%s11500_s24 + $0x4e8] ss:$36 sps:$4 sm:$0xff]  }
 0x3de   : > { %4577 = vmatmul.mubr.bf16.gmra.mrb[112].mxu1 %v11362_v13 }
 0x3df   : > { %7496 = vmatmul.mubr.bf16.gmra.mrb[112].mxu0 %v11198_v21  ;;  %4586 = vmatprep.mubr.bf16.mxu1 %v11363_v40  ;;  %v11368_v21 = vld [vmem:[%s11500_s24 + $0x450] ss:$36 sps:$4 sm:$0xff]  }
 0x3e0   : > { %7505 = vmatprep.mubr.bf16.mxu0 %v14030_v8 }
 0x3e6   : > { %4587 = vmatmul.mubr.bf16.gmra.mrb[116].mxu1 %v11364_v11 }
 0x3e7   : > { %7506 = vmatmul.mubr.bf16.gmra.mrb[116].mxu0 %v11199_v52  ;;  %4596 = vmatprep.mubr.bf16.mxu1 %v11365_v3 }
 0x3e8   : > { %7515 = vmatprep.mubr.bf16.mxu0 %v14030_v8 }
 0x3ee   : > { %4597 = vmatmul.mubr.bf16.gmra.mrb[120].mxu1 %v11366_v36 }
 0x3ef   : > { %7516 = vmatmul.mubr.bf16.gmra.mrb[120].mxu0 %v11200_v47  ;;  %4606 = vmatprep.mubr.bf16.mxu1 %v11367_v29 }
 0x3f0   : > { %7525 = vmatprep.mubr.bf16.mxu0 %v14030_v8 }
 0x3f6   : > { %4607 = vmatmul.mubr.bf16.gmra.mrb[124].mxu1 %v11368_v21 }
 0x3f7   : > { %7526 = vmatmul.mubr.bf16.gmra.mrb[124].mxu0 %v11201_v6 }
 0x421   : > { %v4265_v13 = vpop.f32.mrb[64].mxu1 }
 0x422   : > { %v9220_v40 = vadd.f32 %v12984_v2, %v4265_v13  ;;  %v4267_v52 = vpop.f32.mrb[65].mxu1 }
 0x423   : > { %v9223_v11 = vadd.f32 %v12988_v59, %v4267_v52  ;;  %v4269_v3 = vpop.f32.mrb[66].mxu1 }
 0x424   : > { %v13618_v51 = vadd.f32 %v12992_v50, %v4269_v3  ;;  %v4271_v36 = vpop.f32.mrb[67].mxu1 }
 0x425   : > { %v13621_v47 = vadd.f32 %v12998_v58, %v4271_v36 }
 0x429   : > { %v4275_v29 = vpop.f32.mrb[68].mxu1 }
 0x42a   : > { %v13624_v8 = vadd.f32 %v13012_v0, %v4275_v29  ;;  %v4277_v21 = vpop.f32.mrb[69].mxu1 }
 0x42b   : > { %v13627_v6 = vadd.f32 %v13016_v5, %v4277_v21  ;;  %v4279_v2 = vpop.f32.mrb[70].mxu1 }
 0x42c   : > { %v13630_v13 = vadd.f32 %v13020_v18, %v4279_v2  ;;  %v4281_v59 = vpop.f32.mrb[71].mxu1 }
 0x42d   : > { %v13633_v50 = vadd.f32 %v13026_v10, %v4281_v59 }
 0x431   : > { %v4285_v52 = vpop.f32.mrb[72].mxu1 }
 0x432   : > { %v13636_v58 = vadd.f32 %v13040_v1, %v4285_v52  ;;  %v4287_v3 = vpop.f32.mrb[73].mxu1 }
 0x433   : > { %v13639_v0 = vadd.f32 %v13044_v56, %v4287_v3  ;;  %v4289_v36 = vpop.f32.mrb[74].mxu1 }
 0x434   : > { %v13642_v5 = vadd.f32 %v13048_v20, %v4289_v36  ;;  %v4291_v29 = vpop.f32.mrb[75].mxu1 }
 0x435   : > { %v13645_v18 = vadd.f32 %v13054_v22, %v4291_v29 }
 0x439   : > { %v4295_v21 = vpop.f32.mrb[76].mxu1 }
 0x43a   : > { %v13648_v10 = vadd.f32 %v13068_v16, %v4295_v21  ;;  %v4297_v2 = vpop.f32.mrb[77].mxu1 }
 0x43b   : > { %v13651_v1 = vadd.f32 %v13072_v54, %v4297_v2  ;;  %v4299_v59 = vpop.f32.mrb[78].mxu1  ;;  %v7602_v2 = vlaneseq }
 0x43c   : > { %v13654_v56 = vadd.f32 %v13076_v60, %v4299_v59  ;;  %v4301_v52 = vpop.f32.mrb[79].mxu1 }
 0x43d   : > { %v13657_v20 = vadd.f32 %v13079_v24, %v4301_v52  ;;  %v7603_v59 = vshrl.u32 %v7602_v2, 7 }
 0x441   : > { %v4305_v3 = vpop.f32.mrb[80].mxu1 }
 0x442   : > { %v13660_v22 = vadd.f32 %v13084_v26, %v4305_v3  ;;  %v4307_v36 = vpop.f32.mrb[81].mxu1 }
 0x443   : > { %v13663_v16 = vadd.f32 %v13088_v27, %v4307_v36  ;;  %v4309_v29 = vpop.f32.mrb[82].mxu1 }
 0x444   : > { %v13666_v54 = vadd.f32 %v13093_v25, %v4309_v29  ;;  %v4311_v21 = vpop.f32.mrb[83].mxu1  ;;  %v7604_v29 = vsub.s32 0, %v7603_v59 }
 0x445   : > { %v13669_v60 = vadd.f32 %v13096_v32, %v4311_v21  ;;  %v7600_v32 = vld [vmem:[%s13978_s2] sm:$0x3]  ;;  %v7608_v21 = vsub.s32 1, %v7603_v59 }
 0x449   : > { %v4315_v24 = vpop.f32.mrb[84].mxu1 }
 0x44a   : > { %v13672_v52 = vadd.f32 %v13100_v46, %v4315_v24  ;;  %v4317_v26 = vpop.f32.mrb[85].mxu1  ;;  %v7676_v46 = vld [vmem:[%s13979_s3] sm:$0x3] }
 0x44b   : > { %v13675_v3 = vadd.f32 %v13105_v48, %v4317_v26  ;;  %v4319_v27 = vpop.f32.mrb[86].mxu1  ;;  %v13689_v48 = vrot.slane %v7600_v32, %v7604_v29  ;;  %v13701_v43 = vrot.slane %v7676_v46, %v7608_v21 }
 0x44c   : > { %v13678_v36 = vadd.f32 %v13111_v14, %v4319_v27  ;;  %v4321_v25 = vpop.f32.mrb[87].mxu1  ;;  %v13691_v14 = vrot.slane %v7600_v32, %v7608_v21  ;;  %v13696_v27 = vrot.slane %v7676_v46, %v7604_v29 }
 0x44d   : > { %v13681_v37 = vadd.f32 %v13118_v42, %v4321_v25 }
 0x451   : > { %v4325_v2 = vpop.f32.mrb[88].mxu1 }
 0x452   : > { %v7377_v24 = vpop.f32.mrb[64].mxu0  ;;  %v13694_v26 = vadd.f32 %v13128_v63, %v4325_v2  ;;  %v4327_v25 = vpop.f32.mrb[89].mxu1 }
 0x453   : > { %v9221_v42 = vadd.f32 %v9220_v40, %v7377_v24  ;;  %v7379_v55 = vpop.f32.mrb[65].mxu0  ;;  %v13699_v59 = vadd.f32 %v13132_v35, %v4327_v25  ;;  %v4329_v31 = vpop.f32.mrb[90].mxu1 }
 0x454   : > { %v9224_v17 = vadd.f32 %v9223_v11, %v7379_v55  ;;  %v7381_v39 = vpop.f32.mrb[66].mxu0  ;;  %v13705_v57 = vadd.f32 %v13136_v49, %v4329_v31  ;;  %v4331_v40 = vpop.f32.mrb[91].mxu1 }
 0x455   : > { %v7612_v32 = vmul.f32 %v9221_v42, %v13689_v48  ;;  %v9227_v63 = vadd.f32 %v13618_v51, %v7381_v39  ;;  %v7383_v29 = vpop.f32.mrb[67].mxu0  ;;  %v13710_v24 = vadd.f32 %v13142_v7, %v4331_v40 }
 0x456   : > { %v7613_v2 = vmul.f32 %v9224_v17, %v13691_v14  ;;  %v9230_v35 = vadd.f32 %v13621_v47, %v7383_v29 }
 0x457   : > { %v7688_v55 = vadd.f32 %v13696_v27, %v7612_v32  ;;  %v7614_v11 = vmul.f32 %v9227_v63, %v13689_v48 }
 0x458   : > { %v7689_v21 = vadd.f32 %v13701_v43, %v7613_v2  ;;  %v7615_v49 = vmul.f32 %v9230_v35, %v13691_v14 }
 0x459   : > { %v7752_v31 = vmax.f32 %v7688_v55, 0.0  ;;  %v7690_v39 = vadd.f32 %v13696_v27, %v7614_v11  ;;  %v4335_v46 = vpop.f32.mrb[92].mxu1 }
 0x45a   : > { %v7753_v51 = vmax.f32 %v7689_v21, 0.0  ;;  %v7691_v17 = vadd.f32 %v13701_v43, %v7615_v49  ;;  %v7387_v7 = vpop.f32.mrb[68].mxu0  ;;  %v13726_v42 = vadd.f32 %v13156_v19, %v4335_v46  ;;  %v4337_v32 = vpop.f32.mrb[93].mxu1 }
 0x45b   : > { %v7754_v47 = vmax.f32 %v7690_v39, 0.0  ;;  %v9233_v25 = vadd.f32 %v13624_v8, %v7387_v7  ;;  %v7389_v63 = vpop.f32.mrb[69].mxu0  ;;  %v13730_v2 = vadd.f32 %v13160_v33, %v4337_v32  ;;  %v4339_v55 = vpop.f32.mrb[94].mxu1 }
 0x45c   : > { %v9155_v40 = vpack.c.bf16 %v7753_v51, %v7752_v31  ;;  %v7755_v29 = vmax.f32 %v7691_v17, 0.0  ;;  %v9236_v35 = vadd.f32 %v13627_v6, %v7389_v63  ;;  %v7391_v11 = vpop.f32.mrb[70].mxu0  ;;  %v13735_v49 = vadd.f32 %v13164_v38, %v4339_v55  ;;  %v4341_v8 = vpop.f32.mrb[95].mxu1 }
 0x45d   : > { %v7616_v21 = vmul.f32 %v9233_v25, %v13689_v48  ;;  %v9239_v19 = vadd.f32 %v13630_v13, %v7391_v11  ;;  %v7393_v39 = vpop.f32.mrb[71].mxu0  ;;  %v13741_v33 = vadd.f32 %v13170_v23, %v4341_v8 }
 0x45e   : > { %8008 = vst [vmem:[%s13723_s7] sm:$0xff] %v9155_v40  ;;  %v9156_v31 = vpack.c.bf16 %v7755_v29, %v7754_v47  ;;  %v7617_v51 = vmul.f32 %v9236_v35, %v13691_v14  ;;  %v9242_v6 = vadd.f32 %v13633_v50, %v7393_v39 }
 0x45f   : > { %v7692_v17 = vadd.f32 %v13696_v27, %v7616_v21  ;;  %v7618_v46 = vmul.f32 %v9239_v19, %v13689_v48 }
 0x460   : > { %8009 = vst [vmem:[%s13723_s7 + $0x8] sm:$0xff] %v9156_v31  ;;  %v7693_v38 = vadd.f32 %v13701_v43, %v7617_v51  ;;  %v7619_v13 = vmul.f32 %v9242_v6, %v13691_v14 }
 0x461   : > { %v7756_v7 = vmax.f32 %v7692_v17, 0.0  ;;  %v7694_v25 = vadd.f32 %v13696_v27, %v7618_v46  ;;  %v4345_v63 = vpop.f32.mrb[96].mxu1 }
 0x462   : > { %v7757_v47 = vmax.f32 %v7693_v38, 0.0  ;;  %v7695_v32 = vadd.f32 %v13701_v43, %v7619_v13  ;;  %v7397_v23 = vpop.f32.mrb[72].mxu0  ;;  %v13752_v50 = vadd.f32 %v13184_v61, %v4345_v63  ;;  %v4347_v35 = vpop.f32.mrb[97].mxu1 }
 0x463   : > { %v7758_v40 = vmax.f32 %v7694_v25, 0.0  ;;  %v9245_v29 = vadd.f32 %v13636_v58, %v7397_v23  ;;  %v7399_v55 = vpop.f32.mrb[73].mxu0  ;;  %v13756_v19 = vadd.f32 %v13188_v12, %v4347_v35  ;;  %v4349_v39 = vpop.f32.mrb[98].mxu1 }
 0x464   : > { %v9157_v11 = vpack.c.bf16 %v7757_v47, %v7756_v7  ;;  %v7759_v21 = vmax.f32 %v7695_v32, 0.0  ;;  %v9248_v8 = vadd.f32 %v13639_v0, %v7399_v55  ;;  %v7401_v31 = vpop.f32.mrb[74].mxu0  ;;  %v13761_v6 = vadd.f32 %v13192_v62, %v4349_v39  ;;  %v4351_v58 = vpop.f32.mrb[99].mxu1 }
 0x465   : > { %v7620_v51 = vmul.f32 %v9245_v29, %v13689_v48  ;;  %v9251_v61 = vadd.f32 %v13642_v5, %v7401_v31  ;;  %v7403_v17 = vpop.f32.mrb[75].mxu0  ;;  %v13767_v12 = vadd.f32 %v13198_v34, %v4351_v58 }
 0x466   : > { %8010 = vst [vmem:[%s13723_s7 + $0x10] sm:$0xff] %v9157_v11  ;;  %v9158_v46 = vpack.c.bf16 %v7759_v21, %v7758_v40  ;;  %v7621_v38 = vmul.f32 %v9248_v8, %v13691_v14  ;;  %v9254_v0 = vadd.f32 %v13645_v18, %v7403_v17 }
 0x467   : > { %v7696_v13 = vadd.f32 %v13696_v27, %v7620_v51  ;;  %v7622_v7 = vmul.f32 %v9251_v61, %v13689_v48 }
 0x468   : > { %8011 = vst [vmem:[%s13723_s7 + $0x18] sm:$0xff] %v9158_v46  ;;  %v7697_v62 = vadd.f32 %v13701_v43, %v7621_v38  ;;  %v7623_v5 = vmul.f32 %v9254_v0, %v13691_v14 }
 0x469   : > { %v7760_v25 = vmax.f32 %v7696_v13, 0.0  ;;  %v7698_v47 = vadd.f32 %v13696_v27, %v7622_v7  ;;  %v4355_v23 = vpop.f32.mrb[100].mxu1 }
 0x46a   : > { %v7761_v32 = vmax.f32 %v7697_v62, 0.0  ;;  %v7699_v63 = vadd.f32 %v13701_v43, %v7623_v5  ;;  %v7407_v34 = vpop.f32.mrb[76].mxu0  ;;  %v13778_v18 = vadd.f32 %v13212_v30, %v4355_v23  ;;  %v4357_v35 = vpop.f32.mrb[101].mxu1 }
 0x46b   : > { %v7762_v40 = vmax.f32 %v7698_v47, 0.0  ;;  %v9257_v29 = vadd.f32 %v13648_v10, %v7407_v34  ;;  %v7409_v55 = vpop.f32.mrb[77].mxu0  ;;  %v13782_v8 = vadd.f32 %v13216_v44, %v4357_v35  ;;  %v4359_v31 = vpop.f32.mrb[102].mxu1 }
 0x46c   : > { %v9159_v11 = vpack.c.bf16 %v7761_v32, %v7760_v25  ;;  %v7763_v21 = vmax.f32 %v7699_v63, 0.0  ;;  %v9260_v39 = vadd.f32 %v13651_v1, %v7409_v55  ;;  %v7411_v51 = vpop.f32.mrb[78].mxu0  ;;  %v13787_v58 = vadd.f32 %v13220_v9, %v4359_v31  ;;  %v4361_v10 = vpop.f32.mrb[103].mxu1 }
 0x46d   : > { %v7624_v61 = vmul.f32 %v9257_v29, %v13689_v48  ;;  %v9263_v30 = vadd.f32 %v13654_v56, %v7411_v51  ;;  %v7413_v17 = vpop.f32.mrb[79].mxu0  ;;  %v13793_v44 = vadd.f32 %v13226_v45, %v4361_v10 }
 0x46e   : > { %8012 = vst [vmem:[%s13723_s7 + $0x20] sm:$0xff] %v9159_v11  ;;  %v9160_v46 = vpack.c.bf16 %v7763_v21, %v7762_v40  ;;  %v7625_v38 = vmul.f32 %v9260_v39, %v13691_v14  ;;  %v9266_v1 = vadd.f32 %v13657_v20, %v7413_v17 }
 0x46f   : > { %v7700_v0 = vadd.f32 %v13696_v27, %v7624_v61  ;;  %v7626_v13 = vmul.f32 %v9263_v30, %v13689_v48 }
 0x470   : > { %8013 = vst [vmem:[%s13723_s7 + $0x28] sm:$0xff] %v9160_v46  ;;  %v7701_v9 = vadd.f32 %v13701_v43, %v7625_v38  ;;  %v7627_v56 = vmul.f32 %v9266_v1, %v13691_v14 }
 0x471   : > { %v7764_v7 = vmax.f32 %v7700_v0, 0.0  ;;  %v7702_v62 = vadd.f32 %v13696_v27, %v7626_v13 }
 0x472   : > { %v7765_v5 = vmax.f32 %v7701_v9, 0.0  ;;  %v7703_v25 = vadd.f32 %v13701_v43, %v7627_v56  ;;  %v7417_v45 = vpop.f32.mrb[80].mxu0 }
 0x473   : > { %v7766_v47 = vmax.f32 %v7702_v62, 0.0  ;;  %v9269_v20 = vadd.f32 %v13660_v22, %v7417_v45  ;;  %v7419_v32 = vpop.f32.mrb[81].mxu0 }
 0x474   : > { %v9161_v63 = vpack.c.bf16 %v7765_v5, %v7764_v7  ;;  %v7767_v23 = vmax.f32 %v7703_v25, 0.0  ;;  %v9272_v34 = vadd.f32 %v13663_v16, %v7419_v32  ;;  %v7421_v40 = vpop.f32.mrb[82].mxu0 }
 0x475   : > { %v7628_v29 = vmul.f32 %v9269_v20, %v13689_v48  ;;  %v9275_v35 = vadd.f32 %v13666_v54, %v7421_v40  ;;  %v7423_v55 = vpop.f32.mrb[83].mxu0 }
 0x476   : > { %8014 = vst [vmem:[%s13723_s7 + $0x30] sm:$0xff] %v9161_v63  ;;  %v9162_v11 = vpack.c.bf16 %v7767_v23, %v7766_v47  ;;  %v7629_v21 = vmul.f32 %v9272_v34, %v13691_v14  ;;  %v9278_v39 = vadd.f32 %v13669_v60, %v7423_v55 }
 0x477   : > { %v7704_v31 = vadd.f32 %v13696_v27, %v7628_v29  ;;  %v7630_v22 = vmul.f32 %v9275_v35, %v13689_v48 }
 0x478   : > { %8015 = vst [vmem:[%s13723_s7 + $0x38] sm:$0xff] %v9162_v11  ;;  %v7705_v51 = vadd.f32 %v13701_v43, %v7629_v21  ;;  %v7631_v16 = vmul.f32 %v9278_v39, %v13691_v14 }
 0x479   : > { %v7768_v61 = vmax.f32 %v7704_v31, 0.0  ;;  %v7706_v54 = vadd.f32 %v13696_v27, %v7630_v22 }
 0x47a   : > { %v7769_v30 = vmax.f32 %v7705_v51, 0.0  ;;  %v7707_v10 = vadd.f32 %v13701_v43, %v7631_v16  ;;  %v7427_v17 = vpop.f32.mrb[84].mxu0 }
 0x47b   : > { %v7770_v46 = vmax.f32 %v7706_v54, 0.0  ;;  %v9281_v60 = vadd.f32 %v13672_v52, %v7427_v17  ;;  %v7429_v38 = vpop.f32.mrb[85].mxu0 }
 0x47c   : > { %v9163_v1 = vpack.c.bf16 %v7769_v30, %v7768_v61  ;;  %v7771_v0 = vmax.f32 %v7707_v10, 0.0  ;;  %v9284_v13 = vadd.f32 %v13675_v3, %v7429_v38  ;;  %v7431_v9 = vpop.f32.mrb[86].mxu0 }
 0x47d   : > { %v7632_v56 = vmul.f32 %v9281_v60, %v13689_v48  ;;  %v9287_v7 = vadd.f32 %v13678_v36, %v7431_v9  ;;  %v7433_v62 = vpop.f32.mrb[87].mxu0 }
 0x47e   : > { %8016 = vst [vmem:[%s13723_s7 + $0x40] sm:$0xff] %v9163_v1  ;;  %v9164_v5 = vpack.c.bf16 %v7771_v0, %v7770_v46  ;;  %v7633_v25 = vmul.f32 %v9284_v13, %v13691_v14  ;;  %v9290_v45 = vadd.f32 %v13681_v37, %v7433_v62 }
 0x47f   : > { %v7708_v47 = vadd.f32 %v13696_v27, %v7632_v56  ;;  %v7634_v52 = vmul.f32 %v9287_v7, %v13689_v48 }
 0x480   : > { %8017 = vst [vmem:[%s13723_s7 + $0x48] sm:$0xff] %v9164_v5  ;;  %v7709_v20 = vadd.f32 %v13701_v43, %v7633_v25  ;;  %v7635_v3 = vmul.f32 %v9290_v45, %v13691_v14 }
 0x481   : > { %v7772_v32 = vmax.f32 %v7708_v47, 0.0  ;;  %v7710_v36 = vadd.f32 %v13696_v27, %v7634_v52 }
 0x482   : > { %v7773_v63 = vmax.f32 %v7709_v20, 0.0  ;;  %v7711_v23 = vadd.f32 %v13701_v43, %v7635_v3  ;;  %v7437_v34 = vpop.f32.mrb[88].mxu0 }
 0x483   : > { %v7774_v40 = vmax.f32 %v7710_v36, 0.0  ;;  %v9293_v37 = vadd.f32 %v13694_v26, %v7437_v34  ;;  %v7439_v29 = vpop.f32.mrb[89].mxu0 }
 0x484   : > { %v9165_v35 = vpack.c.bf16 %v7773_v63, %v7772_v32  ;;  %v7775_v55 = vmax.f32 %v7711_v23, 0.0  ;;  %v9296_v11 = vadd.f32 %v13699_v59, %v7439_v29  ;;  %v7441_v21 = vpop.f32.mrb[90].mxu0 }
 0x485   : > { %v7636_v39 = vmul.f32 %v9293_v37, %v13689_v48  ;;  %v9299_v31 = vadd.f32 %v13705_v57, %v7441_v21  ;;  %v7443_v22 = vpop.f32.mrb[91].mxu0 }
 0x486   : > { %8018 = vst [vmem:[%s13723_s7 + $0x50] sm:$0xff] %v9165_v35  ;;  %v9166_v51 = vpack.c.bf16 %v7775_v55, %v7774_v40  ;;  %v7637_v16 = vmul.f32 %v9296_v11, %v13691_v14  ;;  %v9302_v61 = vadd.f32 %v13710_v24, %v7443_v22 }
 0x487   : > { %v7712_v54 = vadd.f32 %v13696_v27, %v7636_v39  ;;  %v7638_v26 = vmul.f32 %v9299_v31, %v13689_v48 }
 0x488   : > { %8019 = vst [vmem:[%s13723_s7 + $0x58] sm:$0xff] %v9166_v51  ;;  %v7713_v30 = vadd.f32 %v13701_v43, %v7637_v16  ;;  %v7639_v59 = vmul.f32 %v9302_v61, %v13691_v14 }
 0x489   : > { %v7776_v10 = vmax.f32 %v7712_v54, 0.0  ;;  %v7714_v57 = vadd.f32 %v13696_v27, %v7638_v26 }
 0x48a   : > { %v7777_v17 = vmax.f32 %v7713_v30, 0.0  ;;  %v7715_v46 = vadd.f32 %v13701_v43, %v7639_v59  ;;  %v7447_v60 = vpop.f32.mrb[92].mxu0 }
 0x48b   : > { %v7778_v38 = vmax.f32 %v7714_v57, 0.0  ;;  %v9305_v24 = vadd.f32 %v13726_v42, %v7447_v60  ;;  %v7449_v1 = vpop.f32.mrb[93].mxu0 }
 0x48c   : > { %v9167_v0 = vpack.c.bf16 %v7777_v17, %v7776_v10  ;;  %v7779_v13 = vmax.f32 %v7715_v46, 0.0  ;;  %v9308_v9 = vadd.f32 %v13730_v2, %v7449_v1  ;;  %v7451_v56 = vpop.f32.mrb[94].mxu0 }
 0x48d   : > { %v7640_v7 = vmul.f32 %v9305_v24, %v13689_v48  ;;  %v9311_v62 = vadd.f32 %v13735_v49, %v7451_v56  ;;  %v7453_v5 = vpop.f32.mrb[95].mxu0 }
 0x48e   : > { %8020 = vst [vmem:[%s13723_s7 + $0x60] sm:$0xff] %v9167_v0  ;;  %v9168_v25 = vpack.c.bf16 %v7779_v13, %v7778_v38  ;;  %v7641_v45 = vmul.f32 %v9308_v9, %v13691_v14  ;;  %v9314_v47 = vadd.f32 %v13741_v33, %v7453_v5 }
 0x48f   : > { %v7716_v52 = vadd.f32 %v13696_v27, %v7640_v7  ;;  %v7642_v42 = vmul.f32 %v9311_v62, %v13689_v48 }
 0x490   : > { %8021 = vst [vmem:[%s13723_s7 + $0x68] sm:$0xff] %v9168_v25  ;;  %v7717_v20 = vadd.f32 %v13701_v43, %v7641_v45  ;;  %v7643_v2 = vmul.f32 %v9314_v47, %v13691_v14 }
 0x491   : > { %v7780_v3 = vmax.f32 %v7716_v52, 0.0  ;;  %v7718_v49 = vadd.f32 %v13696_v27, %v7642_v42 }
 0x492   : > { %v7781_v32 = vmax.f32 %v7717_v20, 0.0  ;;  %v7719_v36 = vadd.f32 %v13701_v43, %v7643_v2  ;;  %v7457_v63 = vpop.f32.mrb[96].mxu0 }
 0x493   : > { %v7782_v23 = vmax.f32 %v7718_v49, 0.0  ;;  %v9317_v33 = vadd.f32 %v13752_v50, %v7457_v63  ;;  %v7459_v34 = vpop.f32.mrb[97].mxu0 }
 0x494   : > { %v9169_v40 = vpack.c.bf16 %v7781_v32, %v7780_v3  ;;  %v7783_v37 = vmax.f32 %v7719_v36, 0.0  ;;  %v9320_v29 = vadd.f32 %v13756_v19, %v7459_v34  ;;  %v7461_v35 = vpop.f32.mrb[98].mxu0 }
 0x495   : > { %v7644_v55 = vmul.f32 %v9317_v33, %v13689_v48  ;;  %v9323_v11 = vadd.f32 %v13761_v6, %v7461_v35  ;;  %v7463_v21 = vpop.f32.mrb[99].mxu0 }
 0x496   : > { %8022 = vst [vmem:[%s13723_s7 + $0x70] sm:$0xff] %v9169_v40  ;;  %v9170_v39 = vpack.c.bf16 %v7783_v37, %v7782_v23  ;;  %v7645_v31 = vmul.f32 %v9320_v29, %v13691_v14  ;;  %v9326_v22 = vadd.f32 %v13767_v12, %v7463_v21 }
 0x497   : > { %v7720_v51 = vadd.f32 %v13696_v27, %v7644_v55  ;;  %v7646_v50 = vmul.f32 %v9323_v11, %v13689_v48 }
 0x498   : > { %8023 = vst [vmem:[%s13723_s7 + $0x78] sm:$0xff] %v9170_v39  ;;  %v7721_v16 = vadd.f32 %v13701_v43, %v7645_v31  ;;  %v7647_v19 = vmul.f32 %v9326_v22, %v13691_v14 }
 0x499   : > { %v7784_v61 = vmax.f32 %v7720_v51, 0.0  ;;  %v7722_v6 = vadd.f32 %v13696_v27, %v7646_v50 }
 0x49a   : > { %v7785_v54 = vmax.f32 %v7721_v16, 0.0  ;;  %v7723_v26 = vadd.f32 %v13701_v43, %v7647_v19  ;;  %v7467_v30 = vpop.f32.mrb[100].mxu0 }
 0x49b   : > { %v7786_v59 = vmax.f32 %v7722_v6, 0.0  ;;  %v9329_v12 = vadd.f32 %v13778_v18, %v7467_v30  ;;  %v7469_v10 = vpop.f32.mrb[101].mxu0 }
 0x49c   : > { %v9171_v57 = vpack.c.bf16 %v7785_v54, %v7784_v61  ;;  %v7787_v17 = vmax.f32 %v7723_v26, 0.0  ;;  %v9332_v46 = vadd.f32 %v13782_v8, %v7469_v10  ;;  %v7471_v60 = vpop.f32.mrb[102].mxu0  ;;  %v14031_v54 = vld [vmem:[#allocation16_spill] sm:$0xff] }
 0x49d   : > { %v7648_v38 = vmul.f32 %v9329_v12, %v13689_v48  ;;  %v9335_v24 = vadd.f32 %v13787_v58, %v7471_v60  ;;  %v7473_v1 = vpop.f32.mrb[103].mxu0 }
 0x49e   : > { %8024 = vst [vmem:[%s13723_s7 + $0x80] sm:$0xff] %v9171_v57  ;;  %v9172_v0 = vpack.c.bf16 %v7787_v17, %v7786_v59  ;;  %v7649_v13 = vmul.f32 %v9332_v46, %v13691_v14  ;;  %v9338_v9 = vadd.f32 %v13793_v44, %v7473_v1  ;;  %v14032_v57 = vld [vmem:[#allocation17_spill] sm:$0xff]  ;;  %v14033_v1 = vld [vmem:[#allocation18_spill] sm:$0xff] }
 0x49f   : > { %v7724_v56 = vadd.f32 %v13696_v27, %v7648_v38  ;;  %v7650_v18 = vmul.f32 %v9335_v24, %v13689_v48 }
 0x4a0   : > { %8025 = vst [vmem:[%s13723_s7 + $0x88] sm:$0xff] %v9172_v0  ;;  %v7725_v7 = vadd.f32 %v13701_v43, %v7649_v13  ;;  %v7651_v8 = vmul.f32 %v9338_v9, %v13691_v14 }
 0x4a1   : > { %v7788_v62 = vmax.f32 %v7724_v56, 0.0  ;;  %v7726_v5 = vadd.f32 %v13696_v27, %v7650_v18  ;;  %v4558_v45 = vpop.f32.mrb[104].mxu1 }
 0x4a2   : > { %v7789_v58 = vmax.f32 %v7725_v7, 0.0  ;;  %v7727_v25 = vadd.f32 %v13701_v43, %v7651_v8  ;;  %v7477_v47 = vpop.f32.mrb[104].mxu0  ;;  %v9340_v44 = vadd.f32 %v13240_v41, %v4558_v45  ;;  %v4560_v42 = vpop.f32.mrb[105].mxu1 }
 0x4a3   : > { %v7790_v52 = vmax.f32 %v7726_v5, 0.0  ;;  %v7479_v20 = vpop.f32.mrb[105].mxu0  ;;  %v9343_v49 = vadd.f32 %v13244_v15, %v4560_v42  ;;  %v4562_v32 = vpop.f32.mrb[106].mxu1 }
 0x4a4   : > { %v9173_v2 = vpack.c.bf16 %v7789_v58, %v7788_v62  ;;  %v7791_v3 = vmax.f32 %v7727_v25, 0.0  ;;  %v7481_v36 = vpop.f32.mrb[106].mxu0  ;;  %v9341_v63 = vadd.f32 %v9340_v44, %v7477_v47  ;;  %v9346_v23 = vadd.f32 %v13248_v28, %v4562_v32  ;;  %v4564_v33 = vpop.f32.mrb[107].mxu1  ;;  %v14034_v44 = vld [vmem:[#allocation19_spill] sm:$0xff]  ;;  %v14035_v32 = vld [vmem:[#allocation20_spill] sm:$0xff] }
 0x4a5   : > { %v7483_v34 = vpop.f32.mrb[107].mxu0  ;;  %v9344_v37 = vadd.f32 %v9343_v49, %v7479_v20  ;;  %v9349_v29 = vadd.f32 %v13254_v4, %v4564_v33 }
 0x4a6   : > { %8026 = vst [vmem:[%s13723_s7 + $0x90] sm:$0xff] %v9173_v2  ;;  %v9174_v40 = vpack.c.bf16 %v7791_v3, %v7790_v52  ;;  %v7652_v41 = vmul.f32 %v9341_v63, %v13689_v48  ;;  %v9347_v35 = vadd.f32 %v9346_v23, %v7481_v36 }
 0x4a7   : > { %v7653_v55 = vmul.f32 %v9344_v37, %v13691_v14  ;;  %v9350_v11 = vadd.f32 %v9349_v29, %v7483_v34 }
 0x4a8   : > { %8027 = vst [vmem:[%s13723_s7 + $0x98] sm:$0xff] %v9174_v40  ;;  %v7728_v15 = vadd.f32 %v13696_v27, %v7652_v41  ;;  %v7654_v21 = vmul.f32 %v9347_v35, %v13689_v48  ;;  %v14036_v40 = vld [vmem:[#allocation2_spill] sm:$0xff] }
 0x4a9   : > { %v7729_v28 = vadd.f32 %v13701_v43, %v7653_v55  ;;  %v7655_v39 = vmul.f32 %v9350_v11, %v13691_v14  ;;  %v4568_v31 = vpop.f32.mrb[108].mxu1 }
 0x4aa   : > { %v7487_v22 = vpop.f32.mrb[108].mxu0  ;;  %v7792_v51 = vmax.f32 %v7728_v15, 0.0  ;;  %v7730_v4 = vadd.f32 %v13696_v27, %v7654_v21  ;;  %v9352_v50 = vadd.f32 %v13268_v53, %v4568_v31  ;;  %v4570_v16 = vpop.f32.mrb[109].mxu1  ;;  %v14037_v15 = vld [vmem:[#allocation3_spill] sm:$0xff] }
 0x4ab   : > { %v7489_v19 = vpop.f32.mrb[109].mxu0  ;;  %v7793_v61 = vmax.f32 %v7729_v28, 0.0  ;;  %v7731_v6 = vadd.f32 %v13701_v43, %v7655_v39  ;;  %v9355_v26 = vadd.f32 %v14031_v54, %v4570_v16  ;;  %v4572_v30 = vpop.f32.mrb[110].mxu1 }
 0x4ac   : > { %v7491_v59 = vpop.f32.mrb[110].mxu0  ;;  %v7794_v12 = vmax.f32 %v7730_v4, 0.0  ;;  %v9353_v10 = vadd.f32 %v9352_v50, %v7487_v22  ;;  %v9358_v17 = vadd.f32 %v14032_v57, %v4572_v30  ;;  %v4574_v46 = vpop.f32.mrb[111].mxu1  ;;  %v14038_v30 = vld [vmem:[#allocation4_spill] sm:$0xff] }
 0x4ad   : > { %v7493_v60 = vpop.f32.mrb[111].mxu0  ;;  %v9175_v38 = vpack.c.bf16 %v7793_v61, %v7792_v51  ;;  %v7795_v24 = vmax.f32 %v7731_v6, 0.0  ;;  %v9356_v53 = vadd.f32 %v9355_v26, %v7489_v19  ;;  %v9361_v0 = vadd.f32 %v14033_v1, %v4574_v46  ;;  %v14039_v46 = vld [vmem:[#allocation5_spill] sm:$0xff] }
 0x4ae   : > { %v7656_v13 = vmul.f32 %v9353_v10, %v13689_v48  ;;  %v9359_v9 = vadd.f32 %v9358_v17, %v7491_v59 }
 0x4af   : > { %8028 = vst [vmem:[%s13723_s7 + $0xa0] sm:$0xff] %v9175_v38  ;;  %v9176_v56 = vpack.c.bf16 %v7795_v24, %v7794_v12  ;;  %v7657_v18 = vmul.f32 %v9356_v53, %v13691_v14  ;;  %v9362_v7 = vadd.f32 %v9361_v0, %v7493_v60  ;;  %v14040_v0 = vld [vmem:[#allocation6_spill] sm:$0xff] }
 0x4b0   : > { %v7732_v8 = vadd.f32 %v13696_v27, %v7656_v13  ;;  %v7658_v62 = vmul.f32 %v9359_v9, %v13689_v48 }
 0x4b1   : > { %8029 = vst [vmem:[%s13723_s7 + $0xa8] sm:$0xff] %v9176_v56  ;;  %v7733_v5 = vadd.f32 %v13701_v43, %v7657_v18  ;;  %v7659_v58 = vmul.f32 %v9362_v7, %v13691_v14  ;;  %v4578_v25 = vpop.f32.mrb[112].mxu1 }
 0x4b2   : > { %v7497_v45 = vpop.f32.mrb[112].mxu0  ;;  %v7796_v47 = vmax.f32 %v7732_v8, 0.0  ;;  %v7734_v52 = vadd.f32 %v13696_v27, %v7658_v62  ;;  %v9364_v42 = vadd.f32 %v14034_v44, %v4578_v25  ;;  %v4580_v20 = vpop.f32.mrb[113].mxu1  ;;  %v14041_v62 = vld [vmem:[#allocation7_spill] sm:$0xff] }
 0x4b3   : > { %v7499_v2 = vpop.f32.mrb[113].mxu0  ;;  %v7797_v3 = vmax.f32 %v7733_v5, 0.0  ;;  %v7735_v49 = vadd.f32 %v13701_v43, %v7659_v58  ;;  %v9367_v36 = vadd.f32 %v14035_v32, %v4580_v20  ;;  %v4582_v63 = vpop.f32.mrb[114].mxu1 }
 0x4b4   : > { %v7501_v23 = vpop.f32.mrb[114].mxu0  ;;  %v7798_v33 = vmax.f32 %v7734_v52, 0.0  ;;  %v9365_v34 = vadd.f32 %v9364_v42, %v7497_v45  ;;  %v9370_v37 = vadd.f32 %v14036_v40, %v4582_v63  ;;  %v4584_v29 = vpop.f32.mrb[115].mxu1  ;;  %v14042_v63 = vld [vmem:[#allocation8_spill] sm:$0xff] }
 0x4b5   : > { %v7503_v41 = vpop.f32.mrb[115].mxu0  ;;  %v9177_v35 = vpack.c.bf16 %v7797_v3, %v7796_v47  ;;  %v7799_v55 = vmax.f32 %v7735_v49, 0.0  ;;  %v9368_v11 = vadd.f32 %v9367_v36, %v7499_v2  ;;  %v9373_v21 = vadd.f32 %v14037_v15, %v4584_v29  ;;  %v14043_v29 = vld [vmem:[#allocation9_spill] sm:$0xff] }
 0x4b6   : > { %v7660_v28 = vmul.f32 %v9365_v34, %v13689_v48  ;;  %v9371_v39 = vadd.f32 %v9370_v37, %v7501_v23 }
 0x4b7   : > { %8030 = vst [vmem:[%s13723_s7 + $0xb0] sm:$0xff] %v9177_v35  ;;  %v9178_v31 = vpack.c.bf16 %v7799_v55, %v7798_v33  ;;  %v7661_v22 = vmul.f32 %v9368_v11, %v13691_v14  ;;  %v9374_v51 = vadd.f32 %v9373_v21, %v7503_v41  ;;  %v14044_v21 = vld [vmem:[#allocation10_spill] sm:$0xff] }
 0x4b8   : > { %v7736_v4 = vadd.f32 %v13696_v27, %v7660_v28  ;;  %v7662_v50 = vmul.f32 %v9371_v39, %v13689_v48 }
 0x4b9   : > { %8031 = vst [vmem:[%s13723_s7 + $0xb8] sm:$0xff] %v9178_v31  ;;  %v7737_v16 = vadd.f32 %v13701_v43, %v7661_v22  ;;  %v7663_v19 = vmul.f32 %v9374_v51, %v13691_v14  ;;  %v4588_v61 = vpop.f32.mrb[116].mxu1 }
 0x4ba   : > { %v7507_v6 = vpop.f32.mrb[116].mxu0  ;;  %v7800_v54 = vmax.f32 %v7736_v4, 0.0  ;;  %v7738_v26 = vadd.f32 %v13696_v27, %v7662_v50  ;;  %v9376_v59 = vadd.f32 %v14038_v30, %v4588_v61  ;;  %v4590_v12 = vpop.f32.mrb[117].mxu1  ;;  %v14045_v50 = vld [vmem:[#allocation11_spill] sm:$0xff] }
 0x4bb   : > { %v7509_v10 = vpop.f32.mrb[117].mxu0  ;;  %v7801_v57 = vmax.f32 %v7737_v16, 0.0  ;;  %v7739_v17 = vadd.f32 %v13701_v43, %v7663_v19  ;;  %v9379_v60 = vadd.f32 %v14039_v46, %v4590_v12  ;;  %v4592_v38 = vpop.f32.mrb[118].mxu1 }
 0x4bc   : > { %v7511_v24 = vpop.f32.mrb[118].mxu0  ;;  %v7802_v53 = vmax.f32 %v7738_v26, 0.0  ;;  %v9377_v1 = vadd.f32 %v9376_v59, %v7507_v6  ;;  %v9382_v13 = vadd.f32 %v14040_v0, %v4592_v38  ;;  %v4594_v9 = vpop.f32.mrb[119].mxu1  ;;  %v14046_v38 = vld [vmem:[#allocation12_spill] sm:$0xff] }
 0x4bd   : > { %v7513_v56 = vpop.f32.mrb[119].mxu0  ;;  %v9179_v18 = vpack.c.bf16 %v7801_v57, %v7800_v54  ;;  %v7803_v7 = vmax.f32 %v7739_v17, 0.0  ;;  %v9380_v8 = vadd.f32 %v9379_v60, %v7509_v10  ;;  %v9385_v5 = vadd.f32 %v14041_v62, %v4594_v9  ;;  %v14047_v9 = vld [vmem:[#allocation13_spill] sm:$0xff] }
 0x4be   : > { %v7664_v58 = vmul.f32 %v9377_v1, %v13689_v48  ;;  %v9383_v25 = vadd.f32 %v9382_v13, %v7511_v24 }
 0x4bf   : > { %8032 = vst [vmem:[%s13723_s7 + $0xc0] sm:$0xff] %v9179_v18  ;;  %v9180_v45 = vpack.c.bf16 %v7803_v7, %v7802_v53  ;;  %v7665_v47 = vmul.f32 %v9380_v8, %v13691_v14  ;;  %v9386_v52 = vadd.f32 %v9385_v5, %v7513_v56  ;;  %v14048_v5 = vld [vmem:[#allocation14_spill] sm:$0xff] }
 0x4c0   : > { %v7740_v44 = vadd.f32 %v13696_v27, %v7664_v58  ;;  %v7666_v42 = vmul.f32 %v9383_v25, %v13689_v48 }
 0x4c1   : > { %8033 = vst [vmem:[%s13723_s7 + $0xc8] sm:$0xff] %v9180_v45  ;;  %v7741_v20 = vadd.f32 %v13701_v43, %v7665_v47  ;;  %v7667_v2 = vmul.f32 %v9386_v52, %v13691_v14  ;;  %v4598_v3 = vpop.f32.mrb[120].mxu1 }
 0x4c2   : > { %v7517_v49 = vpop.f32.mrb[120].mxu0  ;;  %v7804_v32 = vmax.f32 %v7740_v44, 0.0  ;;  %v7742_v36 = vadd.f32 %v13696_v27, %v7666_v42  ;;  %v9388_v23 = vadd.f32 %v14042_v63, %v4598_v3  ;;  %v4600_v33 = vpop.f32.mrb[121].mxu1  ;;  %v14049_v42 = vld [vmem:[#allocation15_spill] sm:$0xff] }
 0x4c3   : > { %v7519_v34 = vpop.f32.mrb[121].mxu0  ;;  %v7805_v40 = vmax.f32 %v7741_v20, 0.0  ;;  %v7743_v37 = vadd.f32 %v13701_v43, %v7667_v2  ;;  %v9391_v41 = vadd.f32 %v14043_v29, %v4600_v33  ;;  %v4602_v35 = vpop.f32.mrb[122].mxu1 }
 0x4c4   : > { %v7521_v55 = vpop.f32.mrb[122].mxu0  ;;  %v7806_v11 = vmax.f32 %v7742_v36, 0.0  ;;  %v9389_v15 = vadd.f32 %v9388_v23, %v7517_v49  ;;  %v9394_v28 = vadd.f32 %v14044_v21, %v4602_v35  ;;  %v4604_v39 = vpop.f32.mrb[123].mxu1 }
 0x4c5   : > { %v7523_v31 = vpop.f32.mrb[123].mxu0  ;;  %v9181_v22 = vpack.c.bf16 %v7805_v40, %v7804_v32  ;;  %v7807_v51 = vmax.f32 %v7743_v37, 0.0  ;;  %v9392_v4 = vadd.f32 %v9391_v41, %v7519_v34  ;;  %v9397_v16 = vadd.f32 %v14045_v50, %v4604_v39 }
 0x4c6   : > { %v7668_v19 = vmul.f32 %v9389_v15, %v13689_v48  ;;  %v9395_v61 = vadd.f32 %v9394_v28, %v7521_v55 }
 0x4c7   : > { %8034 = vst [vmem:[%s13723_s7 + $0xd0] sm:$0xff] %v9181_v22  ;;  %v9182_v6 = vpack.c.bf16 %v7807_v51, %v7806_v11  ;;  %v7669_v54 = vmul.f32 %v9392_v4, %v13691_v14  ;;  %v9398_v26 = vadd.f32 %v9397_v16, %v7523_v31 }
 0x4c8   : > { %v7744_v30 = vadd.f32 %v13696_v27, %v7668_v19  ;;  %v7670_v59 = vmul.f32 %v9395_v61, %v13689_v48 }
 0x4c9   : > { %8035 = vst [vmem:[%s13723_s7 + $0xd8] sm:$0xff] %v9182_v6  ;;  %v7745_v12 = vadd.f32 %v13701_v43, %v7669_v54  ;;  %v7671_v10 = vmul.f32 %v9398_v26, %v13691_v14  ;;  %v4608_v57 = vpop.f32.mrb[124].mxu1 }
 0x4ca   : > { %v7527_v17 = vpop.f32.mrb[124].mxu0  ;;  %v7808_v46 = vmax.f32 %v7744_v30, 0.0  ;;  %v7746_v60 = vadd.f32 %v13696_v27, %v7670_v59  ;;  %v9400_v24 = vadd.f32 %v14046_v38, %v4608_v57  ;;  %v4610_v53 = vpop.f32.mrb[125].mxu1 }
 0x4cb   : > { %v7529_v1 = vpop.f32.mrb[125].mxu0  ;;  %v7809_v0 = vmax.f32 %v7745_v12, 0.0  ;;  %v7747_v13 = vadd.f32 %v13701_v43, %v7671_v10  ;;  %v9403_v56 = vadd.f32 %v14047_v9, %v4610_v53  ;;  %v4612_v18 = vpop.f32.mrb[126].mxu1 }
 0x4cc   : > { %v7531_v7 = vpop.f32.mrb[126].mxu0  ;;  %v7810_v8 = vmax.f32 %v7746_v60, 0.0  ;;  %v9401_v62 = vadd.f32 %v9400_v24, %v7527_v17  ;;  %v9406_v58 = vadd.f32 %v14048_v5, %v4612_v18  ;;  %v4614_v25 = vpop.f32.mrb[127].mxu1 }
 0x4cd   : > { %v7533_v45 = vpop.f32.mrb[127].mxu0  ;;  %v9183_v47 = vpack.c.bf16 %v7809_v0, %v7808_v46  ;;  %v7811_v52 = vmax.f32 %v7747_v13, 0.0  ;;  %v9404_v44 = vadd.f32 %v9403_v56, %v7529_v1  ;;  %v9409_v20 = vadd.f32 %v14049_v42, %v4614_v25 }
 0x4ce   : > { %v7672_v2 = vmul.f32 %v9401_v62, %v13689_v48  ;;  %v9407_v3 = vadd.f32 %v9406_v58, %v7531_v7 }
 0x4cf   : > { %8036 = vst [vmem:[%s13723_s7 + $0xe0] sm:$0xff] %v9183_v47  ;;  %v9184_v49 = vpack.c.bf16 %v7811_v52, %v7810_v8  ;;  %v7673_v32 = vmul.f32 %v9404_v44, %v13691_v14  ;;  %v9410_v36 = vadd.f32 %v9409_v20, %v7533_v45 }
 0x4d0   : > { %v7748_v63 = vadd.f32 %v13696_v27, %v7672_v2  ;;  %v7674_v23 = vmul.f32 %v9407_v3, %v13689_v48 }
 0x4d1   : > { %8037 = vst [vmem:[%s13723_s7 + $0xe8] sm:$0xff] %v9184_v49  ;;  %v7749_v33 = vadd.f32 %v13701_v43, %v7673_v32  ;;  %v7675_v34 = vmul.f32 %v9410_v36, %v13691_v14 }
 0x4d2   : > { %v7812_v40 = vmax.f32 %v7748_v63, 0.0  ;;  %v7750_v37 = vadd.f32 %v13696_v27, %v7674_v23 }
 0x4d3   : > { %v7813_v29 = vmax.f32 %v7749_v33, 0.0  ;;  %v7751_v41 = vadd.f32 %v13701_v43, %v7675_v34 }
 0x4d4   : > { %v7814_v35 = vmax.f32 %v7750_v37, 0.0 }
 0x4d5   : > { %v9185_v55 = vpack.c.bf16 %v7813_v29, %v7812_v40  ;;  %v7815_v11 = vmax.f32 %v7751_v41, 0.0 }
 0x4d7   : > { %8038 = vst [vmem:[%s13723_s7 + $0xf0] sm:$0xff] %v9185_v55  ;;  %v9186_v15 = vpack.c.bf16 %v7815_v11, %v7814_v35 }
 0x4d9   : > { %8039 = vst [vmem:[%s13723_s7 + $0xf8] sm:$0xff] %v9186_v15 }
 0x4da PF: > { %s14_s15 = sadd.s32 1, %s11375_s15  }
 0x4db   : > { %p11_p4 = scmp.ge.s32.totalorder %s14_s15, 4  }
 0x4dd   :  { %13 = sbr.rel (!%p11_p4) target bundleno = 1 (0x1), region = 68 }

// kernel: decoder_forward.5
= control target key start
LH: loop header
LB: loop body
LE: loop exit
PB: predicated region body
PF: predicated region fallthrough
CT: control target
= control target key end

     0   :  { %s7757_s21 = smov 0   ;;  %s9575_s0 = inlined_call_operand.vmem [shape: bf16[2,288,768], index: 0, kind: input, shape index: {}]   ;;  %s9576_s1 = inlined_call_operand.vmem [shape: bf16[3,768,256], index: 1, kind: input, shape index: {}]   ;;  %s9577_s2 = inlined_call_operand.vmem [shape: f32[1,256], index: 2, kind: input, shape index: {}]   ;;  %s9578_s3 = inlined_call_operand.vmem [shape: f32[1,256], index: 3, kind: input, shape index: {}]   ;;  %s9579_s4 = inlined_call_operand.vmem [shape: bf16[256,128], index: 4, kind: input, shape index: {}]   ;;  %s9580_s5 = inlined_call_operand.vmem [shape: f32[1,128], index: 5, kind: input, shape index: {}]   ;;  %s9581_s6 = inlined_call_operand.vmem [shape: f32[2,256,128], index: 6, kind: output, shape index: {}]  }
   0x1 LB: > { %s5603_s22 = sadd.s32 4294967295, %s7720_s21   ;;  %p5607_p0 = scmp.ge.s32.totalorder %s7720_s21, 1  ;;  %s7720_s21 = sphi %s7757_s21, %s16_s21  }
   0x2   : > { %p212_p1 = scmp.lt.s32.totalorder %s7720_s21, 3 }
   0x4   : > { %p213_p2 = pnand %p5607_p0, %p212_p1 }
   0x6   : > { %216 = sbr.rel (%p213_p2) target bundleno = 1157 (0x485), region = 44 }
   0xd   : > { %v6942_v0 = vld [vmem:[%s9576_s1 + $0x304] ss:$8 sps:$4 sm:$0xff]   ;;  %v6946_v2 = vld [vmem:[%s9576_s1 + $0x300] ss:$8 sps:$4 sm:$0xff]   ;;  %v6948_v4 = vld [vmem:[%s9576_s1 + $0x314] ss:$8 sps:$4 sm:$0xff]  }
   0xe   : > { %v6944_v1 = vld [vmem:[%s9576_s1 + $0x104] ss:$8 sps:$4 sm:$0xff]   ;;  %1508 = vmatprep.subr.bf16.mxu1 %v6942_v0  ;;  %v6947_v3 = vld [vmem:[%s9576_s1 + $0x100] ss:$8 sps:$4 sm:$0xff]   ;;  %v6950_v5 = vld [vmem:[%s9576_s1 + $0x114] ss:$8 sps:$4 sm:$0xff]  }
   0xf   : > { %2790 = vmatprep.subr.bf16.mxu0 %v6944_v1  ;;  %1509 = vmatpush1.bf16.msra.mxu1 %v6946_v2  ;;  %v6952_v6 = vld [vmem:[%s9576_s1 + $0x310] ss:$8 sps:$4 sm:$0xff]   ;;  %v6954_v8 = vld [vmem:[%s9576_s1 + $0x324] ss:$8 sps:$4 sm:$0xff]   ;;  %v6958_v10 = vld [vmem:[%s9576_s1 + $0x320] ss:$8 sps:$4 sm:$0xff]  }
  0x10   : > { %2791 = vmatpush1.bf16.msra.mxu0 %v6947_v3  ;;  %1510 = vmatprep.subr.bf16.mxu1 %v6948_v4  ;;  %v6953_v7 = vld [vmem:[%s9576_s1 + $0x110] ss:$8 sps:$4 sm:$0xff]   ;;  %v6956_v9 = vld [vmem:[%s9576_s1 + $0x124] ss:$8 sps:$4 sm:$0xff]   ;;  %v6959_v11 = vld [vmem:[%s9576_s1 + $0x120] ss:$8 sps:$4 sm:$0xff]  }
  0x11   : > { %2792 = vmatprep.subr.bf16.mxu0 %v6950_v5  ;;  %v6960_v12 = vld [vmem:[%s9576_s1 + $0x334] ss:$8 sps:$4 sm:$0xff]   ;;  %v6964_v14 = vld [vmem:[%s9576_s1 + $0x330] ss:$8 sps:$4 sm:$0xff]   ;;  %v6966_v16 = vld [vmem:[%s9576_s1 + $0x344] ss:$8 sps:$4 sm:$0xff]  }
  0x12   : > { %v6962_v13 = vld [vmem:[%s9576_s1 + $0x134] ss:$8 sps:$4 sm:$0xff]   ;;  %v6965_v15 = vld [vmem:[%s9576_s1 + $0x130] ss:$8 sps:$4 sm:$0xff]   ;;  %v6968_v17 = vld [vmem:[%s9576_s1 + $0x144] ss:$8 sps:$4 sm:$0xff]  }
  0x13   : > { %1511 = vmatpush1.bf16.msra.mxu1 %v6952_v6  ;;  %v6970_v18 = vld [vmem:[%s9576_s1 + $0x340] ss:$8 sps:$4 sm:$0xff]   ;;  %v6972_v20 = vld [vmem:[%s9576_s1 + $0x354] ss:$8 sps:$4 sm:$0xff]   ;;  %v6976_v22 = vld [vmem:[%s9576_s1 + $0x350] ss:$8 sps:$4 sm:$0xff]  }
  0x14   : > { %2793 = vmatpush1.bf16.msra.mxu0 %v6953_v7  ;;  %1512 = vmatprep.subr.bf16.mxu1 %v6954_v8  ;;  %v6971_v19 = vld [vmem:[%s9576_s1 + $0x140] ss:$8 sps:$4 sm:$0xff]   ;;  %v6974_v21 = vld [vmem:[%s9576_s1 + $0x154] ss:$8 sps:$4 sm:$0xff]   ;;  %v6977_v23 = vld [vmem:[%s9576_s1 + $0x150] ss:$8 sps:$4 sm:$0xff]  }
  0x15   : > { %2794 = vmatprep.subr.bf16.mxu0 %v6956_v9  ;;  %v6978_v24 = vld [vmem:[%s9576_s1 + $0x364] ss:$8 sps:$4 sm:$0xff]   ;;  %v6982_v26 = vld [vmem:[%s9576_s1 + $0x360] ss:$8 sps:$4 sm:$0xff]   ;;  %v6984_v28 = vld [vmem:[%s9576_s1 + $0x374] ss:$8 sps:$4 sm:$0xff]  }
  0x16   : > { %v6980_v25 = vld [vmem:[%s9576_s1 + $0x164] ss:$8 sps:$4 sm:$0xff]   ;;  %v6983_v27 = vld [vmem:[%s9576_s1 + $0x160] ss:$8 sps:$4 sm:$0xff]   ;;  %v6986_v29 = vld [vmem:[%s9576_s1 + $0x174] ss:$8 sps:$4 sm:$0xff]  }
  0x17   : > { %1513 = vmatpush1.bf16.msra.mxu1 %v6958_v10  ;;  %v6988_v30 = vld [vmem:[%s9576_s1 + $0x370] ss:$8 sps:$4 sm:$0xff]   ;;  %v6990_v32 = vld [vmem:[%s9576_s1 + $0x384] ss:$8 sps:$4 sm:$0xff]   ;;  %p242_p3 = scmp.lt.s32.totalorder %s5603_s22, 1 }
  0x18   : > { %2795 = vmatpush1.bf16.msra.mxu0 %v6959_v11  ;;  %1514 = vmatprep.subr.bf16.mxu1 %v6960_v12  ;;  %v6989_v31 = vld [vmem:[%s9576_s1 + $0x170] ss:$8 sps:$4 sm:$0xff]   ;;  %v6992_v33 = vld [vmem:[%s9576_s1 + $0x184] ss:$8 sps:$4 sm:$0xff]   ;;  %v6994_v34 = vld [vmem:[%s9576_s1 + $0x380] ss:$8 sps:$4 sm:$0xff]  }
  0x19   : > { %2796 = vmatprep.subr.bf16.mxu0 %v6962_v13  ;;  %v6995_v35 = vld [vmem:[%s9576_s1 + $0x180] ss:$8 sps:$4 sm:$0xff]   ;;  %v6996_v36 = vld [vmem:[%s9576_s1 + $0x394] ss:$8 sps:$4 sm:$0xff]   ;;  %s9621_s22 = smov (!%p242_p3, %s5603_s22), 1 }
  0x1a   : > { %v6998_v37 = vld [vmem:[%s9576_s1 + $0x194] ss:$8 sps:$4 sm:$0xff]   ;;  %v7000_v38 = vld [vmem:[%s9576_s1 + $0x390] ss:$8 sps:$4 sm:$0xff]   ;;  %v7002_v40 = vld [vmem:[%s9576_s1 + $0x3a4] ss:$8 sps:$4 sm:$0xff]  }
  0x1b   : > { %1515 = vmatpush1.bf16.msra.mxu1 %v6964_v14  ;;  %v7001_v39 = vld [vmem:[%s9576_s1 + $0x190] ss:$8 sps:$4 sm:$0xff]   ;;  %s6933_s15 = smul.u32 864, %s9621_s22  ;;  %v7004_v41 = vld [vmem:[%s9576_s1 + $0x1a4] ss:$8 sps:$4 sm:$0xff]   ;;  %s6308_s24 = sshll.u32 %s9621_s22, 8 }
  0x1c   : > { %2797 = vmatpush1.bf16.msra.mxu0 %v6965_v15  ;;  %1516 = vmatprep.subr.bf16.mxu1 %v6966_v16  ;;  %v7006_v42 = vld [vmem:[%s9576_s1 + $0x3a0] ss:$8 sps:$4 sm:$0xff]   ;;  %v7008_v44 = vld [vmem:[%s9576_s1 + $0x3b4] ss:$8 sps:$4 sm:$0xff]   ;;  %v7012_v46 = vld [vmem:[%s9576_s1 + $0x3b0] ss:$8 sps:$4 sm:$0xff]   ;;  %s9506_s30 = scalar_lea.vmem %s9581_s6, %s6308_s24 }
  0x1d   : > { %2798 = vmatprep.subr.bf16.mxu0 %v6968_v17  ;;  %v7007_v43 = vld [vmem:[%s9576_s1 + $0x1a0] ss:$8 sps:$4 sm:$0xff]   ;;  %s7910_s28 = scalar_lea.vmem %s9575_s0, %s6933_s15  ;;  %v7010_v45 = vld [vmem:[%s9576_s1 + $0x1b4] ss:$8 sps:$4 sm:$0xff]   ;;  %v7013_v47 = vld [vmem:[%s9576_s1 + $0x1b0] ss:$8 sps:$4 sm:$0xff]  }
  0x1e   : > { %v7014_v48 = vld [vmem:[%s9576_s1 + $0x3c4] ss:$8 sps:$4 sm:$0xff]   ;;  %v7018_v52 = vld [vmem:[%s9576_s1 + $0x3c0] ss:$8 sps:$4 sm:$0xff]   ;;  %v7020_v54 = vld [vmem:[%s9576_s1 + $0x3d4] ss:$8 sps:$4 sm:$0xff]  }
  0x1f   : > { %1517 = vmatpush1.bf16.msra.mxu1 %v6970_v18  ;;  %v7040_v49 = vld [vmem:[%s7910_s28 + $0x34] ss:$24 sps:$4 sm:$0xff]   ;;  %v7019_v53 = vld [vmem:[%s9576_s1 + $0x1c0] ss:$8 sps:$4 sm:$0xff]   ;;  %v7024_v56 = vld [vmem:[%s9576_s1 + $0x3d0] ss:$8 sps:$4 sm:$0xff]  }
  0x20   : > { %2799 = vmatpush1.bf16.msra.mxu0 %v6971_v19  ;;  %1518 = vmatprep.subr.bf16.mxu1 %v6972_v20  ;;  %v7016_v50 = vld [vmem:[%s9576_s1 + $0x1c4] ss:$8 sps:$4 sm:$0xff]   ;;  %v7022_v55 = vld [vmem:[%s9576_s1 + $0x1d4] ss:$8 sps:$4 sm:$0xff]   ;;  %v7025_v57 = vld [vmem:[%s9576_s1 + $0x1d0] ss:$8 sps:$4 sm:$0xff]  }
  0x21   : > { %2800 = vmatprep.subr.bf16.mxu0 %v6974_v21  ;;  %v7043_v51 = vld [vmem:[%s7910_s28 + $0xc] ss:$24 sps:$4 sm:$0xff]   ;;  %1540 = vmatprep.mubr.bf16.mxu1 %v7040_v49  ;;  %v7030_v60 = vld [vmem:[%s9576_s1 + $0x3e0] ss:$8 sps:$4 sm:$0xff]   ;;  %v7032_v62 = vld [vmem:[%s9576_s1 + $0x3f4] ss:$8 sps:$4 sm:$0xff]  }
  0x22   : > { %2822 = vmatprep.mubr.bf16.mxu0 %v7043_v51  ;;  %v7026_v58 = vld [vmem:[%s9576_s1 + $0x3e4] ss:$8 sps:$4 sm:$0xff]   ;;  %v7031_v61 = vld [vmem:[%s9576_s1 + $0x1e0] ss:$8 sps:$4 sm:$0xff]   ;;  %v7034_v63 = vld [vmem:[%s9576_s1 + $0x1f4] ss:$8 sps:$4 sm:$0xff]  }
  0x23   : > { %1519 = vmatpush1.bf16.msra.mxu1 %v6976_v22  ;;  %v7028_v59 = vld [vmem:[%s9576_s1 + $0x1e4] ss:$8 sps:$4 sm:$0xff]   ;;  %v7036_v0 = vld [vmem:[%s9576_s1 + $0x3f0] ss:$8 sps:$4 sm:$0xff]   ;;  %v7041_v4 = vld [vmem:[%s7910_s28 + $0x8] ss:$24 sps:$4 sm:$0xff]  }
  0x24   : > { %2801 = vmatpush1.bf16.msra.mxu0 %v6977_v23  ;;  %1520 = vmatprep.subr.bf16.mxu1 %v6978_v24  ;;  %v7037_v1 = vld [vmem:[%s9576_s1 + $0x1f0] ss:$8 sps:$4 sm:$0xff]   ;;  %v7046_v2 = vld [vmem:[%s9576_s1 + $0x204] ss:$8 sps:$4 sm:$0xff]   ;;  %v7044_v5 = vld [vmem:[%s9576_s1 + $0x200] ss:$8 sps:$4 sm:$0xff]  }
  0x25   : > { %2802 = vmatprep.subr.bf16.mxu0 %v6980_v25  ;;  %v7038_v3 = vld [vmem:[%s7910_s28 + $0x30] ss:$24 sps:$4 sm:$0xff]   ;;  %v7047_v6 = vld [vmem:[%s7910_s28 + $0x64] ss:$24 sps:$4 sm:$0xff]   ;;  %v7051_v11 = vld [vmem:[%s7910_s28 + $0x60] ss:$24 sps:$4 sm:$0xff]  }
  0x26   : > { %v7981_v7 = vld [vmem:[%s7910_s28 + $0x3c] ss:$24 sps:$4 sm:$0xff]   ;;  %v7053_v9 = vld [vmem:[%s9576_s1 + $0x210] ss:$8 sps:$4 sm:$0xff]   ;;  %v7064_v10 = vld [vmem:[%s9576_s1 + $0x224] ss:$8 sps:$4 sm:$0xff]  }
  0x27   : > { %1521 = vmatpush1.bf16.msra.mxu1 %v6982_v26  ;;  %v7055_v8 = vld [vmem:[%s9576_s1 + $0x214] ss:$8 sps:$4 sm:$0xff]   ;;  %v7995_v12 = vld [vmem:[%s7910_s28 + $0x38] ss:$24 sps:$4 sm:$0xff]   ;;  %v7999_v14 = vld [vmem:[%s7910_s28 + $0x6c] ss:$24 sps:$4 sm:$0xff]  }
  0x28   : > { %2803 = vmatpush1.bf16.msra.mxu0 %v6983_v27  ;;  %1522 = vmatprep.subr.bf16.mxu1 %v6984_v28  ;;  %v7056_v13 = vld [vmem:[%s7910_s28 + $0x94] ss:$24 sps:$4 sm:$0xff]   ;;  %v7062_v15 = vld [vmem:[%s9576_s1 + $0x220] ss:$8 sps:$4 sm:$0xff]   ;;  %v7071_v17 = vld [vmem:[%s9576_s1 + $0x230] ss:$8 sps:$4 sm:$0xff]  }
  0x29   : > { %2804 = vmatprep.subr.bf16.mxu0 %v6986_v29  ;;  %v7073_v16 = vld [vmem:[%s9576_s1 + $0x234] ss:$8 sps:$4 sm:$0xff]   ;;  %v7060_v18 = vld [vmem:[%s7910_s28 + $0x90] ss:$24 sps:$4 sm:$0xff]   ;;  %v7082_v22 = vld [vmem:[%s9576_s1 + $0x244] ss:$8 sps:$4 sm:$0xff]  }
  0x2a   : > { %v8014_v19 = vld [vmem:[%s7910_s28 + $0x68] ss:$24 sps:$4 sm:$0xff]   ;;  %v7065_v21 = vld [vmem:[%s7910_s28 + $0xc4] ss:$24 sps:$4 sm:$0xff]   ;;  %v7122_v28 = vld [vmem:[%s9576_s1 + $0x410] ss:$8 sps:$4 sm:$0xff]  }
  0x2b   : > { %1523 = vmatpush1.bf16.msra.mxu1 %v6988_v30  ;;  %v7115_v20 = vld [vmem:[%s9576_s1 + $0x400] ss:$8 sps:$4 sm:$0xff]   ;;  %v7117_v23 = vld [vmem:[%s9576_s1 + $0x404] ss:$8 sps:$4 sm:$0xff]   ;;  %v8027_v24 = vld [vmem:[%s7910_s28 + $0x9c] ss:$24 sps:$4 sm:$0xff]  }
  0x2c   : > { %2805 = vmatpush1.bf16.msra.mxu0 %v6989_v31  ;;  %1524 = vmatprep.subr.bf16.mxu1 %v6990_v32  ;;  %v7080_v25 = vld [vmem:[%s9576_s1 + $0x240] ss:$8 sps:$4 sm:$0xff]   ;;  %v7091_v26 = vld [vmem:[%s9576_s1 + $0x254] ss:$8 sps:$4 sm:$0xff]   ;;  %v7132_v29 = vld [vmem:[%s9576_s1 + $0x424] ss:$8 sps:$4 sm:$0xff]  }
  0x2d   : > { %2806 = vmatprep.subr.bf16.mxu0 %v6992_v33  ;;  %v7124_v27 = vld [vmem:[%s9576_s1 + $0x414] ss:$8 sps:$4 sm:$0xff]   ;;  %v7069_v30 = vld [vmem:[%s7910_s28 + $0xc0] ss:$24 sps:$4 sm:$0xff]  }
  0x2e   : > { %v8048_v31 = vld [vmem:[%s7910_s28 + $0x98] ss:$24 sps:$4 sm:$0xff]   ;;  %v7074_v33 = vld [vmem:[%s7910_s28 + $0xf4] ss:$24 sps:$4 sm:$0xff]   ;;  %v7119_v49 = vld [vmem:[%s9576_s1 + $0x280] ss:$8 sps:$4 sm:$0xff]  }
  0x2f   : > { %1525 = vmatpush1.bf16.msra.mxu1 %v6994_v34  ;;  %v7089_v32 = vld [vmem:[%s9576_s1 + $0x250] ss:$8 sps:$4 sm:$0xff]   ;;  %v7100_v34 = vld [vmem:[%s9576_s1 + $0x264] ss:$8 sps:$4 sm:$0xff]   ;;  %v7136_v51 = vld [vmem:[%s9576_s1 + $0x294] ss:$8 sps:$4 sm:$0xff]  }
  0x30   : > { %2807 = vmatpush1.bf16.msra.mxu0 %v6995_v35  ;;  %1526 = vmatprep.subr.bf16.mxu1 %v6996_v36  ;;  %v7130_v35 = vld [vmem:[%s9576_s1 + $0x420] ss:$8 sps:$4 sm:$0xff]   ;;  %v8061_v36 = vld [vmem:[%s7910_s28 + $0xcc] ss:$24 sps:$4 sm:$0xff]  }
  0x31   : > { %2808 = vmatprep.subr.bf16.mxu0 %v6998_v37  ;;  %v7098_v37 = vld [vmem:[%s9576_s1 + $0x260] ss:$8 sps:$4 sm:$0xff]  }
  0x33   : > { %1527 = vmatpush1.bf16.msra.mxu1 %v7000_v38  ;;  %v7109_v38 = vld [vmem:[%s9576_s1 + $0x274] ss:$8 sps:$4 sm:$0xff]  }
  0x34   : > { %2809 = vmatpush1.bf16.msra.mxu0 %v7001_v39  ;;  %1528 = vmatprep.subr.bf16.mxu1 %v7002_v40  ;;  %v7139_v39 = vld [vmem:[%s9576_s1 + $0x434] ss:$8 sps:$4 sm:$0xff]   ;;  %v7137_v40 = vld [vmem:[%s9576_s1 + $0x430] ss:$8 sps:$4 sm:$0xff]  }
  0x35   : > { %2810 = vmatprep.subr.bf16.mxu0 %v7004_v41  ;;  %v7147_v41 = vld [vmem:[%s9576_s1 + $0x444] ss:$8 sps:$4 sm:$0xff]  }
  0x37   : > { %1529 = vmatpush1.bf16.msra.mxu1 %v7006_v42  ;;  %v7078_v42 = vld [vmem:[%s7910_s28 + $0xf0] ss:$24 sps:$4 sm:$0xff]  }
  0x38   : > { %2811 = vmatpush1.bf16.msra.mxu0 %v7007_v43  ;;  %1530 = vmatprep.subr.bf16.mxu1 %v7008_v44  ;;  %v8082_v43 = vld [vmem:[%s7910_s28 + $0xc8] ss:$24 sps:$4 sm:$0xff]   ;;  %v7107_v44 = vld [vmem:[%s9576_s1 + $0x270] ss:$8 sps:$4 sm:$0xff]  }
  0x39   : > { %2812 = vmatprep.subr.bf16.mxu0 %v7010_v45  ;;  %v7121_v45 = vld [vmem:[%s9576_s1 + $0x284] ss:$8 sps:$4 sm:$0xff]  }
  0x3b   : > { %1531 = vmatpush1.bf16.msra.mxu1 %v7012_v46  ;;  %v7145_v46 = vld [vmem:[%s9576_s1 + $0x440] ss:$8 sps:$4 sm:$0xff]  }
  0x3c   : > { %2813 = vmatpush1.bf16.msra.mxu0 %v7013_v47  ;;  %1532 = vmatprep.subr.bf16.mxu1 %v7014_v48  ;;  %v7083_v47 = vld [vmem:[%s7910_s28 + $0x124] ss:$24 sps:$4 sm:$0xff]  }
  0x3d   : > { %2814 = vmatprep.subr.bf16.mxu0 %v7016_v50  ;;  %v8095_v48 = vld [vmem:[%s7910_s28 + $0xfc] ss:$24 sps:$4 sm:$0xff]  }
  0x3e   : > { %v7154_v50 = vld [vmem:[%s9576_s1 + $0x454] ss:$8 sps:$4 sm:$0xff]  }
  0x3f   : > { %1533 = vmatpush1.bf16.msra.mxu1 %v7018_v52  ;;  %v7152_v52 = vld [vmem:[%s9576_s1 + $0x450] ss:$8 sps:$4 sm:$0xff]  }
  0x40   : > { %2815 = vmatpush1.bf16.msra.mxu0 %v7019_v53  ;;  %1534 = vmatprep.subr.bf16.mxu1 %v7020_v54  ;;  %v7162_v53 = vld [vmem:[%s9576_s1 + $0x464] ss:$8 sps:$4 sm:$0xff]   ;;  %v7134_v54 = vld [vmem:[%s9576_s1 + $0x290] ss:$8 sps:$4 sm:$0xff]  }
  0x41   : > { %2816 = vmatprep.subr.bf16.mxu0 %v7022_v55  ;;  %v7087_v55 = vld [vmem:[%s7910_s28 + $0x120] ss:$24 sps:$4 sm:$0xff]  }
  0x43   : > { %1535 = vmatpush1.bf16.msra.mxu1 %v7024_v56  ;;  %v7151_v56 = vld [vmem:[%s9576_s1 + $0x2a4] ss:$8 sps:$4 sm:$0xff]  }
  0x44   : > { %2817 = vmatpush1.bf16.msra.mxu0 %v7025_v57  ;;  %1536 = vmatprep.subr.bf16.mxu1 %v7026_v58  ;;  %v7160_v57 = vld [vmem:[%s9576_s1 + $0x460] ss:$8 sps:$4 sm:$0xff]   ;;  %v8125_v58 = vld [vmem:[%s7910_s28 + $0xf8] ss:$24 sps:$4 sm:$0xff]  }
  0x45   : > { %2818 = vmatprep.subr.bf16.mxu0 %v7028_v59  ;;  %v7092_v59 = vld [vmem:[%s7910_s28 + $0x154] ss:$24 sps:$4 sm:$0xff]  }
  0x47   : > { %1537 = vmatpush1.bf16.msra.mxu1 %v7030_v60  ;;  %v8129_v60 = vld [vmem:[%s7910_s28 + $0x12c] ss:$24 sps:$4 sm:$0xff]  }
  0x48   : > { %2819 = vmatpush1.bf16.msra.mxu0 %v7031_v61  ;;  %1538 = vmatprep.subr.bf16.mxu1 %v7032_v62  ;;  %v7149_v61 = vld [vmem:[%s9576_s1 + $0x2a0] ss:$8 sps:$4 sm:$0xff]   ;;  %v7169_v62 = vld [vmem:[%s9576_s1 + $0x474] ss:$8 sps:$4 sm:$0xff]  }
  0x49   : > { %2820 = vmatprep.subr.bf16.mxu0 %v7034_v63  ;;  %v7166_v63 = vld [vmem:[%s9576_s1 + $0x2b4] ss:$8 sps:$4 sm:$0xff]  }
  0x4b   : > { %1539 = vmatpush1.bf16.msra.mxu1 %v7036_v0  ;;  %v7167_v0 = vld [vmem:[%s9576_s1 + $0x470] ss:$8 sps:$4 sm:$0xff]  }
  0x4c   : > { %2821 = vmatpush1.bf16.msra.mxu0 %v7037_v1  ;;  %1701 = vmatprep.subr.bf16.mxu1 %v7117_v23  ;;  %v7177_v1 = vld [vmem:[%s9576_s1 + $0x484] ss:$8 sps:$4 sm:$0xff]  }
  0x4d   : > { %2983 = vmatprep.subr.bf16.mxu0 %v7046_v2  ;;  %v7164_v2 = vld [vmem:[%s9576_s1 + $0x2b0] ss:$8 sps:$4 sm:$0xff]   ;;  %v8194_v23 = vld [vmem:[%s7910_s28 + $0x18c] ss:$24 sps:$4 sm:$0xff]  }
  0x4e   : > { %1541 = vmatmul.mubr.bf16.vlgmr.msra.gmra.mrb[0].mxu1 %v7038_v3  ;;  %v7096_v3 = vld [vmem:[%s7910_s28 + $0x150] ss:$24 sps:$4 sm:$0xff]  }
  0x4f   : > { %2823 = vmatmul.mubr.bf16.vlgmr.msra.gmra.mrb[0].mxu0 %v7041_v4  ;;  %1550 = vmatprep.mubr.bf16.mxu1 %v7047_v6  ;;  %v7175_v4 = vld [vmem:[%s9576_s1 + $0x480] ss:$8 sps:$4 sm:$0xff]  }
  0x50   : > { %2984 = vmatpush1.bf16.msra.mxu0 %v7044_v5  ;;  %2832 = vmatprep.mubr.bf16.mxu0 %v7981_v7  ;;  %v7181_v5 = vld [vmem:[%s9576_s1 + $0x2c4] ss:$8 sps:$4 sm:$0xff]   ;;  %v8159_v6 = vld [vmem:[%s7910_s28 + $0x128] ss:$24 sps:$4 sm:$0xff]  }
  0x51   : > { %2985 = vmatprep.subr.bf16.mxu0 %v7055_v8  ;;  %1702 = vmatpush1.bf16.msra.mxu1 %v7115_v20  ;;  %v7101_v8 = vld [vmem:[%s7910_s28 + $0x184] ss:$24 sps:$4 sm:$0xff]   ;;  %v7194_v20 = vld [vmem:[%s9576_s1 + $0x2d0] ss:$8 sps:$4 sm:$0xff]  }
  0x52   : > { %1703 = vmatprep.subr.bf16.mxu1 %v7124_v27  ;;  %v7209_v27 = vld [vmem:[%s9576_s1 + $0x2e0] ss:$8 sps:$4 sm:$0xff]  }
  0x54   : > { %2986 = vmatpush1.bf16.msra.mxu0 %v7053_v9  ;;  %v8163_v9 = vld [vmem:[%s7910_s28 + $0x15c] ss:$24 sps:$4 sm:$0xff]  }
  0x55   : > { %2987 = vmatprep.subr.bf16.mxu0 %v7064_v10  ;;  %1704 = vmatpush1.bf16.msra.mxu1 %v7122_v28  ;;  %v7179_v10 = vld [vmem:[%s9576_s1 + $0x2c0] ss:$8 sps:$4 sm:$0xff]   ;;  %v7197_v28 = vld [vmem:[%s9576_s1 + $0x4b0] ss:$8 sps:$4 sm:$0xff]  }
  0x56   : > { %1551 = vmatmul.mubr.bf16.gmra.mrb[4].mxu1 %v7051_v11  ;;  %1705 = vmatprep.subr.bf16.mxu1 %v7132_v29  ;;  %v7184_v11 = vld [vmem:[%s9576_s1 + $0x494] ss:$8 sps:$4 sm:$0xff]   ;;  %v7207_v29 = vld [vmem:[%s9576_s1 + $0x4c4] ss:$8 sps:$4 sm:$0xff]  }
  0x57   : > { %2833 = vmatmul.mubr.bf16.gmra.mrb[4].mxu0 %v7995_v12  ;;  %1560 = vmatprep.mubr.bf16.mxu1 %v7056_v13  ;;  %v7182_v13 = vld [vmem:[%s9576_s1 + $0x490] ss:$8 sps:$4 sm:$0xff]  }
  0x58   : > { %2842 = vmatprep.mubr.bf16.mxu0 %v7999_v14  ;;  %2988 = vmatpush1.bf16.msra.mxu0 %v7062_v15  ;;  %v7196_v15 = vld [vmem:[%s9576_s1 + $0x2d4] ss:$8 sps:$4 sm:$0xff]  }
  0x59   : > { %2989 = vmatprep.subr.bf16.mxu0 %v7073_v16  ;;  %1706 = vmatpush1.bf16.msra.mxu1 %v7130_v35  ;;  %v7192_v16 = vld [vmem:[%s9576_s1 + $0x4a4] ss:$8 sps:$4 sm:$0xff]   ;;  %v8224_v35 = vld [vmem:[%s7910_s28 + $0x188] ss:$24 sps:$4 sm:$0xff]  }
  0x5a   : > { %1707 = vmatprep.subr.bf16.mxu1 %v7139_v39  ;;  %v7214_v39 = vld [vmem:[%s9576_s1 + $0x4d4] ss:$8 sps:$4 sm:$0xff]  }
  0x5c   : > { %2990 = vmatpush1.bf16.msra.mxu0 %v7071_v17  ;;  %v7105_v17 = vld [vmem:[%s7910_s28 + $0x180] ss:$24 sps:$4 sm:$0xff]  }
  0x5d   : > { %2991 = vmatprep.subr.bf16.mxu0 %v7082_v22  ;;  %1708 = vmatpush1.bf16.msra.mxu1 %v7137_v40  ;;  %v7190_v22 = vld [vmem:[%s9576_s1 + $0x4a0] ss:$8 sps:$4 sm:$0xff]   ;;  %v7212_v40 = vld [vmem:[%s9576_s1 + $0x4d0] ss:$8 sps:$4 sm:$0xff]  }
  0x5e   : > { %1561 = vmatmul.mubr.bf16.gmra.mrb[8].mxu1 %v7060_v18  ;;  %1709 = vmatprep.subr.bf16.mxu1 %v7147_v41  ;;  %v8184_v18 = vld [vmem:[%s7910_s28 + $0x158] ss:$24 sps:$4 sm:$0xff]   ;;  %v7235_v41 = vld [vmem:[%s9576_s1 + $0x604] ss:$8 sps:$4 sm:$0xff]  }
  0x5f   : > { %2843 = vmatmul.mubr.bf16.gmra.mrb[8].mxu0 %v8014_v19  ;;  %1570 = vmatprep.mubr.bf16.mxu1 %v7065_v21  ;;  %v7110_v21 = vld [vmem:[%s7910_s28 + $0x1b4] ss:$24 sps:$4 sm:$0xff]  }
  0x60   : > { %2852 = vmatprep.mubr.bf16.mxu0 %v8027_v24  ;;  %2992 = vmatpush1.bf16.msra.mxu0 %v7080_v25  ;;  %v7211_v25 = vld [vmem:[%s9576_s1 + $0x2e4] ss:$8 sps:$4 sm:$0xff]  }
  0x61   : > { %2993 = vmatprep.subr.bf16.mxu0 %v7091_v26  ;;  %1710 = vmatpush1.bf16.msra.mxu1 %v7145_v46  ;;  %v7199_v26 = vld [vmem:[%s9576_s1 + $0x4b4] ss:$8 sps:$4 sm:$0xff]   ;;  %v8249_v46 = vld [vmem:[%s7910_s28 + $0x1b8] ss:$24 sps:$4 sm:$0xff]  }
  0x62   : > { %1711 = vmatprep.subr.bf16.mxu1 %v7154_v50  ;;  %v7229_v50 = vld [vmem:[%s9576_s1 + $0x4f4] ss:$8 sps:$4 sm:$0xff]  }
  0x64   : > { %2994 = vmatpush1.bf16.msra.mxu0 %v7089_v32  ;;  %v7205_v32 = vld [vmem:[%s9576_s1 + $0x4c0] ss:$8 sps:$4 sm:$0xff]  }
  0x65   : > { %2995 = vmatprep.subr.bf16.mxu0 %v7100_v34  ;;  %1712 = vmatpush1.bf16.msra.mxu1 %v7152_v52  ;;  %v7226_v34 = vld [vmem:[%s9576_s1 + $0x2f4] ss:$8 sps:$4 sm:$0xff]   ;;  %v7144_v52 = vld [vmem:[%s7910_s28 + $0x210] ss:$24 sps:$4 sm:$0xff]  }
  0x66   : > { %1571 = vmatmul.mubr.bf16.gmra.mrb[12].mxu1 %v7069_v30  ;;  %1713 = vmatprep.subr.bf16.mxu1 %v7162_v53  ;;  %v7114_v30 = vld [vmem:[%s7910_s28 + $0x1b0] ss:$24 sps:$4 sm:$0xff]  }
  0x67   : > { %2853 = vmatmul.mubr.bf16.gmra.mrb[12].mxu0 %v8048_v31  ;;  %1580 = vmatprep.mubr.bf16.mxu1 %v7074_v33  ;;  %v7224_v33 = vld [vmem:[%s9576_s1 + $0x2f0] ss:$8 sps:$4 sm:$0xff]   ;;  %v8265_v53 = vld [vmem:[%s7910_s28 + $0x1e8] ss:$24 sps:$4 sm:$0xff]  }
  0x68   : > { %2862 = vmatprep.mubr.bf16.mxu0 %v8061_v36  ;;  %2996 = vmatpush1.bf16.msra.mxu0 %v7098_v37  ;;  %v7125_v37 = vld [vmem:[%s7910_s28 + $0x1e4] ss:$24 sps:$4 sm:$0xff]  }
  0x69   : > { %2997 = vmatprep.subr.bf16.mxu0 %v7109_v38  ;;  %1714 = vmatpush1.bf16.msra.mxu1 %v7160_v57  ;;  %v8228_v38 = vld [vmem:[%s7910_s28 + $0x1bc] ss:$24 sps:$4 sm:$0xff]   ;;  %v8275_v57 = vld [vmem:[%s7910_s28 + $0x218] ss:$24 sps:$4 sm:$0xff]  }
  0x6a   : > { %1715 = vmatprep.subr.bf16.mxu1 %v7169_v62  ;;  %v8282_v62 = vld [vmem:[%s7910_s28 + $0x24c] ss:$24 sps:$4 sm:$0xff]  }
  0x6c   : > { %2998 = vmatpush1.bf16.msra.mxu0 %v7107_v44  ;;  %v7129_v44 = vld [vmem:[%s7910_s28 + $0x1e0] ss:$24 sps:$4 sm:$0xff]  }
  0x6d   : > { %2999 = vmatprep.subr.bf16.mxu0 %v7121_v45  ;;  %1716 = vmatpush1.bf16.msra.mxu1 %v7167_v0  ;;  %v7220_v45 = vld [vmem:[%s9576_s1 + $0x4e0] ss:$8 sps:$4 sm:$0xff]  }
  0x6e   : > { %1581 = vmatmul.mubr.bf16.gmra.mrb[16].mxu1 %v7078_v42  ;;  %1717 = vmatprep.subr.bf16.mxu1 %v7177_v1  ;;  %v7222_v42 = vld [vmem:[%s9576_s1 + $0x4e4] ss:$8 sps:$4 sm:$0xff]   ;;  %v8288_v0 = vld [vmem:[%s7910_s28 + $0x248] ss:$24 sps:$4 sm:$0xff]  }
  0x6f   : > { %2863 = vmatmul.mubr.bf16.gmra.mrb[16].mxu0 %v8082_v43  ;;  %1590 = vmatprep.mubr.bf16.mxu1 %v7083_v47  ;;  %v7140_v47 = vld [vmem:[%s7910_s28 + $0x214] ss:$24 sps:$4 sm:$0xff]   ;;  %v7185_v1 = vld [vmem:[%s7910_s28 + $0x2a4] ss:$24 sps:$4 sm:$0xff]  }
  0x70   : > { %2872 = vmatprep.mubr.bf16.mxu0 %v8095_v48  ;;  %3000 = vmatpush1.bf16.msra.mxu0 %v7119_v49  ;;  %v8253_v49 = vld [vmem:[%s7910_s28 + $0x1ec] ss:$24 sps:$4 sm:$0xff]  }
  0x71   : > { %3001 = vmatprep.subr.bf16.mxu0 %v7136_v51  ;;  %1718 = vmatpush1.bf16.msra.mxu1 %v7175_v4  ;;  %v7227_v51 = vld [vmem:[%s9576_s1 + $0x4f0] ss:$8 sps:$4 sm:$0xff]  }
  0x72   : > { %1719 = vmatprep.subr.bf16.mxu1 %v7184_v11  ;;  %v8298_v4 = vld [vmem:[%s7910_s28 + $0x278] ss:$24 sps:$4 sm:$0xff]   ;;  %v8308_v11 = vld [vmem:[%s7910_s28 + $0x2a8] ss:$24 sps:$4 sm:$0xff]  }
  0x74   : > { %3002 = vmatpush1.bf16.msra.mxu0 %v7134_v54  ;;  %v7155_v54 = vld [vmem:[%s7910_s28 + $0x244] ss:$24 sps:$4 sm:$0xff]  }
  0x75   : > { %3003 = vmatprep.subr.bf16.mxu0 %v7151_v56  ;;  %1720 = vmatpush1.bf16.msra.mxu1 %v7182_v13  ;;  %v7159_v56 = vld [vmem:[%s7910_s28 + $0x240] ss:$24 sps:$4 sm:$0xff]   ;;  %v7215_v13 = vld [vmem:[%s7910_s28 + $0x304] ss:$24 sps:$4 sm:$0xff]  }
  0x76   : > { %1591 = vmatmul.mubr.bf16.gmra.mrb[20].mxu1 %v7087_v55  ;;  %1721 = vmatprep.subr.bf16.mxu1 %v7192_v16  ;;  %v8269_v55 = vld [vmem:[%s7910_s28 + $0x21c] ss:$24 sps:$4 sm:$0xff]   ;;  %v7219_v16 = vld [vmem:[%s7910_s28 + $0x300] ss:$24 sps:$4 sm:$0xff]  }
  0x77   : > { %2873 = vmatmul.mubr.bf16.gmra.mrb[20].mxu0 %v8125_v58  ;;  %1600 = vmatprep.mubr.bf16.mxu1 %v7092_v59  ;;  %v7170_v59 = vld [vmem:[%s7910_s28 + $0x274] ss:$24 sps:$4 sm:$0xff]  }
  0x78   : > { %2882 = vmatprep.mubr.bf16.mxu0 %v8129_v60  ;;  %3004 = vmatpush1.bf16.msra.mxu0 %v7149_v61  ;;  %v7282_v61 = vld [vmem:[%s9576_s1 + $0x504] ss:$8 sps:$4 sm:$0xff]  }
  0x79   : > { %3005 = vmatprep.subr.bf16.mxu0 %v7166_v63  ;;  %1722 = vmatpush1.bf16.msra.mxu1 %v7190_v22  ;;  %v7174_v63 = vld [vmem:[%s7910_s28 + $0x270] ss:$24 sps:$4 sm:$0xff]  }
  0x7a   : > { %1723 = vmatprep.subr.bf16.mxu1 %v7199_v26  ;;  %v7233_v22 = vld [vmem:[%s9576_s1 + $0x600] ss:$8 sps:$4 sm:$0xff]   ;;  %v7241_v26 = vld [vmem:[%s9576_s1 + $0x614] ss:$8 sps:$4 sm:$0xff]  }
  0x7c   : > { %3006 = vmatpush1.bf16.msra.mxu0 %v7164_v2  ;;  %v8292_v2 = vld [vmem:[%s7910_s28 + $0x27c] ss:$24 sps:$4 sm:$0xff]  }
  0x7d   : > { %3007 = vmatprep.subr.bf16.mxu0 %v7181_v5  ;;  %1724 = vmatpush1.bf16.msra.mxu1 %v7197_v28  ;;  %v7200_v5 = vld [vmem:[%s7910_s28 + $0x2d4] ss:$24 sps:$4 sm:$0xff]  }
  0x7e   : > { %1601 = vmatmul.mubr.bf16.gmra.mrb[24].mxu1 %v7096_v3  ;;  %1725 = vmatprep.subr.bf16.mxu1 %v7207_v29  ;;  %v7189_v3 = vld [vmem:[%s7910_s28 + $0x2a0] ss:$24 sps:$4 sm:$0xff]   ;;  %v7247_v28 = vld [vmem:[%s9576_s1 + $0x624] ss:$8 sps:$4 sm:$0xff]   ;;  %v7289_v29 = vld [vmem:[%s9576_s1 + $0x514] ss:$8 sps:$4 sm:$0xff]  }
  0x7f   : > { %2883 = vmatmul.mubr.bf16.gmra.mrb[24].mxu0 %v8159_v6  ;;  %1610 = vmatprep.mubr.bf16.mxu1 %v7101_v8  ;;  %v8302_v8 = vld [vmem:[%s7910_s28 + $0x2ac] ss:$24 sps:$4 sm:$0xff]  }
  0x80   : > { %2892 = vmatprep.mubr.bf16.mxu0 %v8163_v9  ;;  %3008 = vmatpush1.bf16.msra.mxu0 %v7179_v10  ;;  %v7204_v10 = vld [vmem:[%s7910_s28 + $0x2d0] ss:$24 sps:$4 sm:$0xff]  }
  0x81   : > { %3009 = vmatprep.subr.bf16.mxu0 %v7196_v15  ;;  %1726 = vmatpush1.bf16.msra.mxu1 %v7205_v32  ;;  %v8312_v15 = vld [vmem:[%s7910_s28 + $0x2dc] ss:$24 sps:$4 sm:$0xff]   ;;  %v8352_v32 = vld [vmem:[%s7910_s28 + $0x40] ss:$24 sps:$4 sm:$0xff]  }
  0x82   : > { %1727 = vmatprep.subr.bf16.mxu1 %v7214_v39  ;;  %v7251_v39 = vld [vmem:[%s9576_s1 + $0x630] ss:$8 sps:$4 sm:$0xff]  }
  0x84   : > { %3010 = vmatpush1.bf16.msra.mxu0 %v7194_v20  ;;  %v7232_v20 = vld [vmem:[%s7910_s28 + $0x14] ss:$24 sps:$4 sm:$0xff]  }
  0x85   : > { %3011 = vmatprep.subr.bf16.mxu0 %v7211_v25  ;;  %1728 = vmatpush1.bf16.msra.mxu1 %v7212_v40  ;;  %v8328_v25 = vld [vmem:[%s7910_s28 + $0x44] ss:$24 sps:$4 sm:$0xff]  }
  0x86   : > { %1611 = vmatmul.mubr.bf16.gmra.mrb[28].mxu1 %v7105_v17  ;;  %1729 = vmatprep.subr.bf16.mxu1 %v7222_v42  ;;  %v8318_v17 = vld [vmem:[%s7910_s28 + $0x2d8] ss:$24 sps:$4 sm:$0xff]   ;;  %v7301_v40 = vld [vmem:[%s9576_s1 + $0x534] ss:$8 sps:$4 sm:$0xff]  }
  0x87   : > { %2893 = vmatmul.mubr.bf16.gmra.mrb[28].mxu0 %v8184_v18  ;;  %1620 = vmatprep.mubr.bf16.mxu1 %v7110_v21  ;;  %v7230_v21 = vld [vmem:[%s7910_s28 + $0x10] ss:$24 sps:$4 sm:$0xff]  }
  0x88   : > { %2902 = vmatprep.mubr.bf16.mxu0 %v8194_v23  ;;  %3012 = vmatpush1.bf16.msra.mxu0 %v7209_v27  ;;  %v7239_v27 = vld [vmem:[%s9576_s1 + $0x610] ss:$8 sps:$4 sm:$0xff]  }
  0x89   : > { %3013 = vmatprep.subr.bf16.mxu0 %v7226_v34  ;;  %1730 = vmatpush1.bf16.msra.mxu1 %v7220_v45  ;;  %v7292_v34 = vld [vmem:[%s9576_s1 + $0x520] ss:$8 sps:$4 sm:$0xff]   ;;  %v7265_v45 = vld [vmem:[%s9576_s1 + $0x654] ss:$8 sps:$4 sm:$0xff]  }
  0x8a   : > { %1731 = vmatprep.subr.bf16.mxu1 %v7229_v50  ;;  %v8386_v42 = vld [vmem:[%s7910_s28 + $0x70] ss:$24 sps:$4 sm:$0xff]   ;;  %v7306_v50 = vld [vmem:[%s9576_s1 + $0x544] ss:$8 sps:$4 sm:$0xff]  }
  0x8c   : > { %3014 = vmatpush1.bf16.msra.mxu0 %v7224_v33  ;;  %v7245_v33 = vld [vmem:[%s9576_s1 + $0x620] ss:$8 sps:$4 sm:$0xff]  }
  0x8d   : > { %4329 = vmatprep.subr.bf16.mxu0 %v7235_v41  ;;  %1732 = vmatpush1.bf16.msra.mxu1 %v7227_v51  ;;  %v7259_v41 = vld [vmem:[%s9576_s1 + $0x644] ss:$8 sps:$4 sm:$0xff]   ;;  %v7263_v51 = vld [vmem:[%s9576_s1 + $0x650] ss:$8 sps:$4 sm:$0xff]  }
  0x8e   : > { %1621 = vmatmul.mubr.bf16.gmra.mrb[32].mxu1 %v7114_v30  ;;  %1894 = vmatprep.subr.bf16.mxu1 %v7282_v61  ;;  %v7287_v30 = vld [vmem:[%s9576_s1 + $0x510] ss:$8 sps:$4 sm:$0xff]   ;;  %v7277_v61 = vld [vmem:[%s9576_s1 + $0x674] ss:$8 sps:$4 sm:$0xff]  }
  0x8f   : > { %2903 = vmatmul.mubr.bf16.gmra.mrb[32].mxu0 %v8224_v35  ;;  %1630 = vmatprep.mubr.bf16.mxu1 %v7125_v37  ;;  %v7294_v37 = vld [vmem:[%s9576_s1 + $0x524] ss:$8 sps:$4 sm:$0xff]  }
  0x90   : > { %2912 = vmatprep.mubr.bf16.mxu0 %v8228_v38 }
  0x96   : > { %1631 = vmatmul.mubr.bf16.gmra.mrb[36].mxu1 %v7129_v44  ;;  %v8389_v44 = vld [vmem:[%s7910_s28 + $0xa4] ss:$24 sps:$4 sm:$0xff]  }
  0x97   : > { %2913 = vmatmul.mubr.bf16.gmra.mrb[36].mxu0 %v8249_v46  ;;  %1640 = vmatprep.mubr.bf16.mxu1 %v7140_v47  ;;  %v7304_v47 = vld [vmem:[%s9576_s1 + $0x540] ss:$8 sps:$4 sm:$0xff]  }
  0x98   : > { %2922 = vmatprep.mubr.bf16.mxu0 %v8253_v49 }
  0x9e   : > { %1641 = vmatmul.mubr.bf16.gmra.mrb[40].mxu1 %v7144_v52  ;;  %v7313_v52 = vld [vmem:[%s9576_s1 + $0x554] ss:$8 sps:$4 sm:$0xff]  }
  0x9f   : > { %2923 = vmatmul.mubr.bf16.gmra.mrb[40].mxu0 %v8265_v53  ;;  %1650 = vmatprep.mubr.bf16.mxu1 %v7155_v54  ;;  %v7271_v54 = vld [vmem:[%s9576_s1 + $0x664] ss:$8 sps:$4 sm:$0xff]  }
  0xa0   : > { %2932 = vmatprep.mubr.bf16.mxu0 %v8269_v55 }
  0xa6   : > { %1651 = vmatmul.mubr.bf16.gmra.mrb[44].mxu1 %v7159_v56  ;;  %v8420_v56 = vld [vmem:[%s7910_s28 + $0xa0] ss:$24 sps:$4 sm:$0xff]  }
  0xa7   : > { %2933 = vmatmul.mubr.bf16.gmra.mrb[44].mxu0 %v8275_v57  ;;  %1660 = vmatprep.mubr.bf16.mxu1 %v7170_v59  ;;  %v8423_v59 = vld [vmem:[%s7910_s28 + $0xd4] ss:$24 sps:$4 sm:$0xff]  }
  0xa8   : > { %2942 = vmatprep.mubr.bf16.mxu0 %v8282_v62 }
  0xae   : > { %1661 = vmatmul.mubr.bf16.gmra.mrb[48].mxu1 %v7174_v63  ;;  %v7316_v63 = vld [vmem:[%s9576_s1 + $0x560] ss:$8 sps:$4 sm:$0xff]  }
  0xaf   : > { %2943 = vmatmul.mubr.bf16.gmra.mrb[48].mxu0 %v8288_v0  ;;  %1670 = vmatprep.mubr.bf16.mxu1 %v7185_v1  ;;  %v7318_v1 = vld [vmem:[%s9576_s1 + $0x564] ss:$8 sps:$4 sm:$0xff]  }
  0xb0   : > { %2952 = vmatprep.mubr.bf16.mxu0 %v8292_v2 }
  0xb6   : > { %1671 = vmatmul.mubr.bf16.gmra.mrb[52].mxu1 %v7189_v3  ;;  %v7275_v3 = vld [vmem:[%s9576_s1 + $0x670] ss:$8 sps:$4 sm:$0xff]  }
  0xb7   : > { %2953 = vmatmul.mubr.bf16.gmra.mrb[52].mxu0 %v8298_v4  ;;  %1680 = vmatprep.mubr.bf16.mxu1 %v7200_v5  ;;  %v7325_v5 = vld [vmem:[%s9576_s1 + $0x574] ss:$8 sps:$4 sm:$0xff]  }
  0xb8   : > { %2962 = vmatprep.mubr.bf16.mxu0 %v8302_v8 }
  0xbe   : > { %1681 = vmatmul.mubr.bf16.gmra.mrb[56].mxu1 %v7204_v10  ;;  %v7286_v10 = vld [vmem:[%s9576_s1 + $0x684] ss:$8 sps:$4 sm:$0xff]  }
  0xbf   : > { %2963 = vmatmul.mubr.bf16.gmra.mrb[56].mxu0 %v8308_v11  ;;  %1690 = vmatprep.mubr.bf16.mxu1 %v7215_v13  ;;  %v8454_v13 = vld [vmem:[%s7910_s28 + $0xd0] ss:$24 sps:$4 sm:$0xff]  }
  0xc0   : > { %2972 = vmatprep.mubr.bf16.mxu0 %v8312_v15 }
  0xc6   : > { %1691 = vmatmul.mubr.bf16.gmra.mrb[60].mxu1 %v7219_v16  ;;  %v8457_v16 = vld [vmem:[%s7910_s28 + $0x104] ss:$24 sps:$4 sm:$0xff]  }
  0xc7   : > { %2973 = vmatmul.mubr.bf16.gmra.mrb[60].mxu0 %v8318_v17  ;;  %1733 = vmatprep.mubr.bf16.mxu1 %v7981_v7  ;;  %v7280_v7 = vld [vmem:[%s9576_s1 + $0x500] ss:$8 sps:$4 sm:$0xff]  }
  0xc8   : > { %3015 = vmatprep.mubr.bf16.mxu0 %v7232_v20  ;;  %v7298_v20 = vld [vmem:[%s9576_s1 + $0x694] ss:$8 sps:$4 sm:$0xff]  }
  0xce   : > { %1734 = vmatmul.mubr.bf16.vlgmr.msra.gmra.mrb[0].mxu1 %v7995_v12  ;;  %v8355_v12 = vld [vmem:[%s7910_s28 + $0x74] ss:$24 sps:$4 sm:$0xff]  }
  0xcf   : > { %3016 = vmatmul.mubr.bf16.vlgmr.msra.gmra.mrb[0].mxu0 %v7230_v21  ;;  %1743 = vmatprep.mubr.bf16.mxu1 %v7999_v14  ;;  %v7253_v14 = vld [vmem:[%s9576_s1 + $0x634] ss:$8 sps:$4 sm:$0xff]   ;;  %v7328_v21 = vld [vmem:[%s9576_s1 + $0x580] ss:$8 sps:$4 sm:$0xff]  }
  0xd0   : > { %4330 = vmatpush1.bf16.msra.mxu0 %v7233_v22  ;;  %3025 = vmatprep.mubr.bf16.mxu0 %v8328_v25  ;;  %v7330_v22 = vld [vmem:[%s9576_s1 + $0x584] ss:$8 sps:$4 sm:$0xff]  }
  0xd1   : > { %4331 = vmatprep.subr.bf16.mxu0 %v7241_v26  ;;  %1895 = vmatpush1.bf16.msra.mxu1 %v7280_v7  ;;  %v7296_v26 = vld [vmem:[%s9576_s1 + $0x690] ss:$8 sps:$4 sm:$0xff]   ;;  %v7310_v7 = vld [vmem:[%s9576_s1 + $0x6a4] ss:$8 sps:$4 sm:$0xff]  }
  0xd2   : > { %1896 = vmatprep.subr.bf16.mxu1 %v7289_v29  ;;  %v8491_v29 = vld [vmem:[%s7910_s28 + $0x134] ss:$24 sps:$4 sm:$0xff]  }
  0xd4   : > { %4332 = vmatpush1.bf16.msra.mxu0 %v7239_v27  ;;  %v7337_v27 = vld [vmem:[%s9576_s1 + $0x594] ss:$8 sps:$4 sm:$0xff]  }
  0xd5   : > { %4333 = vmatprep.subr.bf16.mxu0 %v7247_v28  ;;  %1897 = vmatpush1.bf16.msra.mxu1 %v7287_v30  ;;  %v8488_v28 = vld [vmem:[%s7910_s28 + $0x100] ss:$24 sps:$4 sm:$0xff]   ;;  %v7322_v30 = vld [vmem:[%s9576_s1 + $0x6b4] ss:$8 sps:$4 sm:$0xff]  }
  0xd6   : > { %1744 = vmatmul.mubr.bf16.gmra.mrb[4].mxu1 %v8014_v19  ;;  %v7299_v19 = vld [vmem:[%s9576_s1 + $0x530] ss:$8 sps:$4 sm:$0xff]   ;;  %1898 = vmatprep.subr.bf16.mxu1 %v7294_v37  ;;  %v7349_v37 = vld [vmem:[%s9576_s1 + $0x5b4] ss:$8 sps:$4 sm:$0xff]  }
  0xd7   : > { %3026 = vmatmul.mubr.bf16.gmra.mrb[4].mxu0 %v8352_v32  ;;  %1753 = vmatprep.mubr.bf16.mxu1 %v8027_v24  ;;  %v7257_v24 = vld [vmem:[%s9576_s1 + $0x640] ss:$8 sps:$4 sm:$0xff]  }
  0xd8   : > { %3035 = vmatprep.mubr.bf16.mxu0 %v8355_v12  ;;  %4334 = vmatpush1.bf16.msra.mxu0 %v7245_v33  ;;  %v7340_v33 = vld [vmem:[%s9576_s1 + $0x5a0] ss:$8 sps:$4 sm:$0xff]  }
  0xd9   : > { %4335 = vmatprep.subr.bf16.mxu0 %v7253_v14  ;;  %1899 = vmatpush1.bf16.msra.mxu1 %v7292_v34  ;;  %v7342_v14 = vld [vmem:[%s9576_s1 + $0x5a4] ss:$8 sps:$4 sm:$0xff]   ;;  %v7320_v34 = vld [vmem:[%s9576_s1 + $0x6b0] ss:$8 sps:$4 sm:$0xff]  }
  0xda   : > { %1900 = vmatprep.subr.bf16.mxu1 %v7301_v40  ;;  %v8522_v40 = vld [vmem:[%s7910_s28 + $0x130] ss:$24 sps:$4 sm:$0xff]  }
  0xdc   : > { %4336 = vmatpush1.bf16.msra.mxu0 %v7251_v39  ;;  %v7334_v39 = vld [vmem:[%s9576_s1 + $0x6c4] ss:$8 sps:$4 sm:$0xff]  }
  0xdd   : > { %4337 = vmatprep.subr.bf16.mxu0 %v7259_v41  ;;  %1901 = vmatpush1.bf16.msra.mxu1 %v7299_v19  ;;  %v8525_v41 = vld [vmem:[%s7910_s28 + $0x164] ss:$24 sps:$4 sm:$0xff]  }
  0xde   : > { %1754 = vmatmul.mubr.bf16.gmra.mrb[8].mxu1 %v8048_v31  ;;  %v7311_v31 = vld [vmem:[%s9576_s1 + $0x550] ss:$8 sps:$4 sm:$0xff]   ;;  %1902 = vmatprep.subr.bf16.mxu1 %v7306_v50  ;;  %v7346_v19 = vld [vmem:[%s9576_s1 + $0x6d4] ss:$8 sps:$4 sm:$0xff]  }
  0xdf   : > { %3036 = vmatmul.mubr.bf16.gmra.mrb[8].mxu0 %v8386_v42  ;;  %1763 = vmatprep.mubr.bf16.mxu1 %v8061_v36  ;;  %v7269_v36 = vld [vmem:[%s9576_s1 + $0x660] ss:$8 sps:$4 sm:$0xff]   ;;  %v7361_v50 = vld [vmem:[%s9576_s1 + $0x5d4] ss:$8 sps:$4 sm:$0xff]  }
  0xe0   : > { %3045 = vmatprep.mubr.bf16.mxu0 %v8389_v44  ;;  %4338 = vmatpush1.bf16.msra.mxu0 %v7257_v24  ;;  %v7352_v24 = vld [vmem:[%s9576_s1 + $0x5c0] ss:$8 sps:$4 sm:$0xff]  }
  0xe1   : > { %4339 = vmatprep.subr.bf16.mxu0 %v7265_v45  ;;  %1903 = vmatpush1.bf16.msra.mxu1 %v7304_v47  ;;  %v7354_v45 = vld [vmem:[%s9576_s1 + $0x5c4] ss:$8 sps:$4 sm:$0xff]   ;;  %v7344_v47 = vld [vmem:[%s9576_s1 + $0x6d0] ss:$8 sps:$4 sm:$0xff]  }
  0xe2   : > { %1904 = vmatprep.subr.bf16.mxu1 %v7313_v52  ;;  %v8556_v52 = vld [vmem:[%s7910_s28 + $0x160] ss:$24 sps:$4 sm:$0xff]  }
  0xe4   : > { %4340 = vmatpush1.bf16.msra.mxu0 %v7263_v51  ;;  %v7358_v51 = vld [vmem:[%s9576_s1 + $0x6e4] ss:$8 sps:$4 sm:$0xff]  }
  0xe5   : > { %4341 = vmatprep.subr.bf16.mxu0 %v7271_v54  ;;  %1905 = vmatpush1.bf16.msra.mxu1 %v7311_v31  ;;  %v8559_v54 = vld [vmem:[%s7910_s28 + $0x194] ss:$24 sps:$4 sm:$0xff]  }
  0xe6   : > { %1764 = vmatmul.mubr.bf16.gmra.mrb[12].mxu1 %v8082_v43  ;;  %v7323_v43 = vld [vmem:[%s9576_s1 + $0x570] ss:$8 sps:$4 sm:$0xff]   ;;  %1906 = vmatprep.subr.bf16.mxu1 %v7318_v1  ;;  %v7369_v31 = vld [vmem:[%s9576_s1 + $0x5e4] ss:$8 sps:$4 sm:$0xff]   ;;  %v7376_v1 = vld [vmem:[%s9576_s1 + $0x5f4] ss:$8 sps:$4 sm:$0xff]  }
  0xe7   : > { %3046 = vmatmul.mubr.bf16.gmra.mrb[12].mxu0 %v8420_v56  ;;  %1773 = vmatprep.mubr.bf16.mxu1 %v8095_v48  ;;  %v7284_v48 = vld [vmem:[%s9576_s1 + $0x680] ss:$8 sps:$4 sm:$0xff]  }
  0xe8   : > { %3055 = vmatprep.mubr.bf16.mxu0 %v8423_v59  ;;  %4342 = vmatpush1.bf16.msra.mxu0 %v7269_v36  ;;  %v7367_v36 = vld [vmem:[%s9576_s1 + $0x5e0] ss:$8 sps:$4 sm:$0xff]  }
  0xe9   : > { %4343 = vmatprep.subr.bf16.mxu0 %v7277_v61  ;;  %1907 = vmatpush1.bf16.msra.mxu1 %v7316_v63  ;;  %v7373_v61 = vld [vmem:[%s9576_s1 + $0x6f4] ss:$8 sps:$4 sm:$0xff]   ;;  %v7371_v63 = vld [vmem:[%s9576_s1 + $0x6f0] ss:$8 sps:$4 sm:$0xff]  }
  0xea   : > { %1908 = vmatprep.subr.bf16.mxu1 %v7325_v5  ;;  %v8590_v5 = vld [vmem:[%s7910_s28 + $0x190] ss:$24 sps:$4 sm:$0xff]  }
  0xec   : > { %4344 = vmatpush1.bf16.msra.mxu0 %v7275_v3  ;;  %v7374_v3 = vld [vmem:[%s9576_s1 + $0x5f0] ss:$8 sps:$4 sm:$0xff]  }
  0xed   : > { %4345 = vmatprep.subr.bf16.mxu0 %v7286_v10  ;;  %1909 = vmatpush1.bf16.msra.mxu1 %v7323_v43  ;;  %v8593_v10 = vld [vmem:[%s7910_s28 + $0x1c4] ss:$24 sps:$4 sm:$0xff]   ;;  %v8603_v43 = vld [vmem:[%s7910_s28 + $0x1c0] ss:$24 sps:$4 sm:$0xff]  }
  0xee   : > { %1774 = vmatmul.mubr.bf16.gmra.mrb[16].mxu1 %v8125_v58  ;;  %v7335_v58 = vld [vmem:[%s9576_s1 + $0x590] ss:$8 sps:$4 sm:$0xff]   ;;  %1910 = vmatprep.subr.bf16.mxu1 %v7330_v22 }
  0xef   : > { %3056 = vmatmul.mubr.bf16.gmra.mrb[16].mxu0 %v8454_v13  ;;  %1783 = vmatprep.mubr.bf16.mxu1 %v8129_v60  ;;  %v7308_v60 = vld [vmem:[%s9576_s1 + $0x6a0] ss:$8 sps:$4 sm:$0xff]  }
  0xf0   : > { %3065 = vmatprep.mubr.bf16.mxu0 %v8457_v16  ;;  %4346 = vmatpush1.bf16.msra.mxu0 %v7284_v48  ;;  %v8606_v48 = vld [vmem:[%s7910_s28 + $0x1f4] ss:$24 sps:$4 sm:$0xff]   ;;  %v7377_v22 = vld [vmem:[%s7910_s28 + $0x60] ss:$24 sps:$4 sm:$0xff]  }
  0xf1   : > { %4347 = vmatprep.subr.bf16.mxu0 %v7298_v20  ;;  %1911 = vmatpush1.bf16.msra.mxu1 %v7328_v21  ;;  %v8626_v20 = vld [vmem:[%s7910_s28 + $0x254] ss:$24 sps:$4 sm:$0xff]   ;;  %v8664_v21 = vld [vmem:[%s7910_s28 + $0x2e0] ss:$24 sps:$4 sm:$0xff]  }
  0xf2   : > { %1912 = vmatprep.subr.bf16.mxu1 %v7337_v27  ;;  %v7388_v27 = vld [vmem:[%s9576_s1 + $0x714] ss:$8 sps:$4 sm:$0xff]  }
  0xf4   : > { %4348 = vmatpush1.bf16.msra.mxu0 %v7296_v26  ;;  %v7383_v26 = vld [vmem:[%s7910_s28 + $0x94] ss:$24 sps:$4 sm:$0xff]  }
  0xf5   : > { %4349 = vmatprep.subr.bf16.mxu0 %v7310_v7  ;;  %1913 = vmatpush1.bf16.msra.mxu1 %v7335_v58  ;;  %v7427_v7 = vld [vmem:[%s9576_s1] ss:$8 sps:$4 sm:$0xff]   ;;  %v7386_v58 = vld [vmem:[%s9576_s1 + $0x710] ss:$8 sps:$4 sm:$0xff]  }
  0xf6   : > { %1784 = vmatmul.mubr.bf16.gmra.mrb[20].mxu1 %v8159_v6  ;;  %v7347_v6 = vld [vmem:[%s9576_s1 + $0x5b0] ss:$8 sps:$4 sm:$0xff]   ;;  %1914 = vmatprep.subr.bf16.mxu1 %v7342_v14  ;;  %v7441_v14 = vld [vmem:[%s9576_s1 + $0x24] ss:$8 sps:$4 sm:$0xff]  }
  0xf7   : > { %3066 = vmatmul.mubr.bf16.gmra.mrb[20].mxu0 %v8488_v28  ;;  %1793 = vmatprep.mubr.bf16.mxu1 %v8163_v9  ;;  %v7332_v9 = vld [vmem:[%s9576_s1 + $0x6c0] ss:$8 sps:$4 sm:$0xff]  }
  0xf8   : > { %3075 = vmatprep.mubr.bf16.mxu0 %v8491_v29  ;;  %4350 = vmatpush1.bf16.msra.mxu0 %v7308_v60  ;;  %v7394_v60 = vld [vmem:[%s9576_s1 + $0x724] ss:$8 sps:$4 sm:$0xff]  }
  0xf9   : > { %4351 = vmatprep.subr.bf16.mxu0 %v7322_v30  ;;  %1915 = vmatpush1.bf16.msra.mxu1 %v7340_v33  ;;  %v7385_v30 = vld [vmem:[%s7910_s28 + $0x90] ss:$24 sps:$4 sm:$0xff]   ;;  %v7389_v33 = vld [vmem:[%s7910_s28 + $0xc4] ss:$24 sps:$4 sm:$0xff]  }
  0xfa   : > { %1916 = vmatprep.subr.bf16.mxu1 %v7349_v37  ;;  %v7439_v37 = vld [vmem:[%s9576_s1 + $0x20] ss:$8 sps:$4 sm:$0xff]  }
  0xfc   : > { %4352 = vmatpush1.bf16.msra.mxu0 %v7320_v34  ;;  %v7400_v34 = vld [vmem:[%s9576_s1 + $0x734] ss:$8 sps:$4 sm:$0xff]  }
  0xfd   : > { %4353 = vmatprep.subr.bf16.mxu0 %v7334_v39  ;;  %1917 = vmatpush1.bf16.msra.mxu1 %v7347_v6  ;;  %v7448_v39 = vld [vmem:[%s9576_s1 + $0x34] ss:$8 sps:$4 sm:$0xff]   ;;  %v7398_v6 = vld [vmem:[%s9576_s1 + $0x730] ss:$8 sps:$4 sm:$0xff]  }
  0xfe   : > { %1794 = vmatmul.mubr.bf16.gmra.mrb[24].mxu1 %v8184_v18  ;;  %v7359_v18 = vld [vmem:[%s9576_s1 + $0x5d0] ss:$8 sps:$4 sm:$0xff]   ;;  %1918 = vmatprep.subr.bf16.mxu1 %v7354_v45  ;;  %v7453_v45 = vld [vmem:[%s9576_s1 + $0x44] ss:$8 sps:$4 sm:$0xff]  }
  0xff   : > { %3076 = vmatmul.mubr.bf16.gmra.mrb[24].mxu0 %v8522_v40  ;;  %1803 = vmatprep.mubr.bf16.mxu1 %v8194_v23  ;;  %v7356_v23 = vld [vmem:[%s9576_s1 + $0x6e0] ss:$8 sps:$4 sm:$0xff]  }
 0x100   : > { %3085 = vmatprep.mubr.bf16.mxu0 %v8525_v41  ;;  %4354 = vmatpush1.bf16.msra.mxu0 %v7332_v9  ;;  %v7406_v9 = vld [vmem:[%s9576_s1 + $0x744] ss:$8 sps:$4 sm:$0xff]  }
 0x101   : > { %4355 = vmatprep.subr.bf16.mxu0 %v7346_v19  ;;  %1919 = vmatpush1.bf16.msra.mxu1 %v7352_v24  ;;  %v7391_v19 = vld [vmem:[%s7910_s28 + $0xc0] ss:$24 sps:$4 sm:$0xff]  }
 0x102   : > { %1920 = vmatprep.subr.bf16.mxu1 %v7361_v50  ;;  %v7404_v24 = vld [vmem:[%s9576_s1 + $0x740] ss:$8 sps:$4 sm:$0xff]  }
 0x103   : > { %v7451_v50 = vld [vmem:[%s9576_s1 + $0x40] ss:$8 sps:$4 sm:$0xff]  }
 0x104   : > { %4356 = vmatpush1.bf16.msra.mxu0 %v7344_v47  ;;  %v7412_v47 = vld [vmem:[%s9576_s1 + $0x754] ss:$8 sps:$4 sm:$0xff]  }
 0x105   : > { %4357 = vmatprep.subr.bf16.mxu0 %v7358_v51  ;;  %1921 = vmatpush1.bf16.msra.mxu1 %v7359_v18  ;;  %v7460_v51 = vld [vmem:[%s9576_s1 + $0x54] ss:$8 sps:$4 sm:$0xff]   ;;  %v7410_v18 = vld [vmem:[%s9576_s1 + $0x750] ss:$8 sps:$4 sm:$0xff]  }
 0x106   : > { %1804 = vmatmul.mubr.bf16.gmra.mrb[28].mxu1 %v8224_v35  ;;  %v7382_v35 = vld [vmem:[%s9576_s1 + $0x704] ss:$8 sps:$4 sm:$0xff]   ;;  %1922 = vmatprep.subr.bf16.mxu1 %v7369_v31  ;;  %v7397_v31 = vld [vmem:[%s7910_s28 + $0xf0] ss:$24 sps:$4 sm:$0xff]  }
 0x107   : > { %3086 = vmatmul.mubr.bf16.gmra.mrb[28].mxu0 %v8556_v52  ;;  %1813 = vmatprep.mubr.bf16.mxu1 %v8228_v38  ;;  %v7429_v38 = vld [vmem:[%s9576_s1 + $0x4] ss:$8 sps:$4 sm:$0xff]  }
 0x108   : > { %3095 = vmatprep.mubr.bf16.mxu0 %v8559_v54  ;;  %4358 = vmatpush1.bf16.msra.mxu0 %v7356_v23  ;;  %v7418_v23 = vld [vmem:[%s9576_s1 + $0x764] ss:$8 sps:$4 sm:$0xff]  }
 0x109   : > { %4359 = vmatprep.subr.bf16.mxu0 %v7373_v61  ;;  %1923 = vmatpush1.bf16.msra.mxu1 %v7367_v36  ;;  %v7416_v36 = vld [vmem:[%s9576_s1 + $0x760] ss:$8 sps:$4 sm:$0xff]   ;;  %v7465_v61 = vld [vmem:[%s9576_s1 + $0x64] ss:$8 sps:$4 sm:$0xff]  }
 0x10a   : > { %1924 = vmatprep.subr.bf16.mxu1 %v7376_v1  ;;  %v7463_v1 = vld [vmem:[%s9576_s1 + $0x60] ss:$8 sps:$4 sm:$0xff]  }
 0x10c   : > { %4360 = vmatpush1.bf16.msra.mxu0 %v7371_v63  ;;  %v7424_v63 = vld [vmem:[%s9576_s1 + $0x774] ss:$8 sps:$4 sm:$0xff]  }
 0x10d   : > { %1925 = vmatpush1.bf16.msra.mxu1 %v7374_v3  ;;  %4522 = vmatprep.subr.bf16.mxu0 %v7382_v35  ;;  %v7472_v3 = vld [vmem:[%s9576_s1 + $0x74] ss:$8 sps:$4 sm:$0xff]   ;;  %v7422_v35 = vld [vmem:[%s9576_s1 + $0x770] ss:$8 sps:$4 sm:$0xff]  }
 0x10e   : > { %1814 = vmatmul.mubr.bf16.gmra.mrb[32].mxu1 %v8249_v46  ;;  %2597 = vmatprep.subr.bf16.mxu1 %v7429_v38  ;;  %v8613_v46 = vld [vmem:[%s7910_s28 + $0x1f0] ss:$24 sps:$4 sm:$0xff]   ;;  %v7433_v38 = vld [vmem:[%s9576_s1 + $0x784] ss:$8 sps:$4 sm:$0xff]  }
 0x10f   : > { %3096 = vmatmul.mubr.bf16.gmra.mrb[32].mxu0 %v8590_v5  ;;  %1823 = vmatprep.mubr.bf16.mxu1 %v8253_v49  ;;  %v8616_v49 = vld [vmem:[%s7910_s28 + $0x224] ss:$24 sps:$4 sm:$0xff]  }
 0x110   : > { %3105 = vmatprep.mubr.bf16.mxu0 %v8593_v10 }
 0x116   : > { %1824 = vmatmul.mubr.bf16.gmra.mrb[36].mxu1 %v8265_v53  ;;  %v8623_v53 = vld [vmem:[%s7910_s28 + $0x220] ss:$24 sps:$4 sm:$0xff]  }
 0x117   : > { %3106 = vmatmul.mubr.bf16.gmra.mrb[36].mxu0 %v8603_v43  ;;  %1833 = vmatprep.mubr.bf16.mxu1 %v8269_v55  ;;  %v8633_v55 = vld [vmem:[%s7910_s28 + $0x250] ss:$24 sps:$4 sm:$0xff]  }
 0x118   : > { %3115 = vmatprep.mubr.bf16.mxu0 %v8606_v48 }
 0x11e   : > { %1834 = vmatmul.mubr.bf16.gmra.mrb[40].mxu1 %v8275_v57  ;;  %v8636_v57 = vld [vmem:[%s7910_s28 + $0x284] ss:$24 sps:$4 sm:$0xff]  }
 0x11f   : > { %3116 = vmatmul.mubr.bf16.gmra.mrb[40].mxu0 %v8613_v46  ;;  %1843 = vmatprep.mubr.bf16.mxu1 %v8282_v62  ;;  %v8643_v62 = vld [vmem:[%s7910_s28 + $0x280] ss:$24 sps:$4 sm:$0xff]  }
 0x120   : > { %3125 = vmatprep.mubr.bf16.mxu0 %v8616_v49 }
 0x126   : > { %1844 = vmatmul.mubr.bf16.gmra.mrb[44].mxu1 %v8288_v0  ;;  %v8646_v0 = vld [vmem:[%s7910_s28 + $0x2b4] ss:$24 sps:$4 sm:$0xff]  }
 0x127   : > { %3126 = vmatmul.mubr.bf16.gmra.mrb[44].mxu0 %v8623_v53  ;;  %1853 = vmatprep.mubr.bf16.mxu1 %v8292_v2  ;;  %v8653_v2 = vld [vmem:[%s7910_s28 + $0x2b0] ss:$24 sps:$4 sm:$0xff]  }
 0x128   : > { %3135 = vmatprep.mubr.bf16.mxu0 %v8626_v20 }
 0x12e   : > { %1854 = vmatmul.mubr.bf16.gmra.mrb[48].mxu1 %v8298_v4  ;;  %v7362_v4 = vld [vmem:[%s7910_s28 + $0x30c] ss:$24 sps:$4 sm:$0xff]  }
 0x12f   : > { %3136 = vmatmul.mubr.bf16.gmra.mrb[48].mxu0 %v8633_v55  ;;  %1863 = vmatprep.mubr.bf16.mxu1 %v8302_v8  ;;  %v8657_v8 = vld [vmem:[%s7910_s28 + $0x2e4] ss:$24 sps:$4 sm:$0xff]  }
 0x130   : > { %3145 = vmatprep.mubr.bf16.mxu0 %v8636_v57 }
 0x136   : > { %1864 = vmatmul.mubr.bf16.gmra.mrb[52].mxu1 %v8308_v11  ;;  %v7366_v11 = vld [vmem:[%s7910_s28 + $0x308] ss:$24 sps:$4 sm:$0xff]  }
 0x137   : > { %3146 = vmatmul.mubr.bf16.gmra.mrb[52].mxu0 %v8643_v62  ;;  %1873 = vmatprep.mubr.bf16.mxu1 %v8312_v15  ;;  %v7379_v15 = vld [vmem:[%s7910_s28 + $0x64] ss:$24 sps:$4 sm:$0xff]  }
 0x138   : > { %3155 = vmatprep.mubr.bf16.mxu0 %v8646_v0 }
 0x13e   : > { %1874 = vmatmul.mubr.bf16.gmra.mrb[56].mxu1 %v8318_v17  ;;  %v7380_v17 = vld [vmem:[%s9576_s1 + $0x700] ss:$8 sps:$4 sm:$0xff]  }
 0x13f   : > { %3156 = vmatmul.mubr.bf16.gmra.mrb[56].mxu0 %v8653_v2  ;;  %1883 = vmatprep.mubr.bf16.mxu1 %v7362_v4  ;;  %v7403_v4 = vld [vmem:[%s7910_s28 + $0x120] ss:$24 sps:$4 sm:$0xff]  }
 0x140   : > { %3165 = vmatprep.mubr.bf16.mxu0 %v8657_v8 }
 0x146   : > { %1884 = vmatmul.mubr.bf16.gmra.mrb[60].mxu1 %v7366_v11  ;;  %v7431_v11 = vld [vmem:[%s9576_s1 + $0x780] ss:$8 sps:$4 sm:$0xff]  }
 0x147   : > { %3166 = vmatmul.mubr.bf16.gmra.mrb[60].mxu0 %v8664_v21  ;;  %1926 = vmatprep.mubr.bf16.mxu1 %v8328_v25  ;;  %v7436_v25 = vld [vmem:[%s9576_s1 + $0x14] ss:$8 sps:$4 sm:$0xff]  }
 0x148   : > { %4361 = vmatprep.mubr.bf16.mxu0 %v7379_v15  ;;  %v7477_v15 = vld [vmem:[%s9576_s1 + $0x84] ss:$8 sps:$4 sm:$0xff]  }
 0x14e   : > { %1927 = vmatmul.mubr.bf16.vlgmr.msra.gmra.mrb[0].mxu1 %v8352_v32  ;;  %v7434_v32 = vld [vmem:[%s9576_s1 + $0x10] ss:$8 sps:$4 sm:$0xff]  }
 0x14f   : > { %4362 = vmatmul.mubr.bf16.vlgmr.msra.gmra.mrb[0].mxu0 %v7377_v22  ;;  %1936 = vmatprep.mubr.bf16.mxu1 %v8355_v12  ;;  %v7392_v12 = vld [vmem:[%s9576_s1 + $0x720] ss:$8 sps:$4 sm:$0xff]   ;;  %v7445_v22 = vld [vmem:[%s9576_s1 + $0x794] ss:$8 sps:$4 sm:$0xff]  }
 0x150   : > { %4523 = vmatpush1.bf16.msra.mxu0 %v7380_v17  ;;  %4371 = vmatprep.mubr.bf16.mxu0 %v7383_v26  ;;  %v7475_v17 = vld [vmem:[%s9576_s1 + $0x80] ss:$8 sps:$4 sm:$0xff]   ;;  %v7484_v26 = vld [vmem:[%s9576_s1 + $0x94] ss:$8 sps:$4 sm:$0xff]  }
 0x151   : > { %4524 = vmatprep.subr.bf16.mxu0 %v7388_v27  ;;  %2598 = vmatpush1.bf16.msra.mxu1 %v7427_v7  ;;  %v7443_v27 = vld [vmem:[%s9576_s1 + $0x790] ss:$8 sps:$4 sm:$0xff]   ;;  %v7457_v7 = vld [vmem:[%s9576_s1 + $0x7a4] ss:$8 sps:$4 sm:$0xff]  }
 0x152   : > { %2599 = vmatprep.subr.bf16.mxu1 %v7436_v25  ;;  %v7409_v25 = vld [vmem:[%s7910_s28 + $0x150] ss:$24 sps:$4 sm:$0xff]  }
 0x154   : > { %4525 = vmatpush1.bf16.msra.mxu0 %v7386_v58  ;;  %v7455_v58 = vld [vmem:[%s9576_s1 + $0x7a0] ss:$8 sps:$4 sm:$0xff]  }
 0x155   : > { %4526 = vmatprep.subr.bf16.mxu0 %v7394_v60  ;;  %2600 = vmatpush1.bf16.msra.mxu1 %v7434_v32  ;;  %v7489_v60 = vld [vmem:[%s9576_s1 + $0xa4] ss:$8 sps:$4 sm:$0xff]   ;;  %v7469_v32 = vld [vmem:[%s9576_s1 + $0x7b4] ss:$8 sps:$4 sm:$0xff]  }
 0x156   : > { %1937 = vmatmul.mubr.bf16.gmra.mrb[4].mxu1 %v8386_v42  ;;  %2601 = vmatprep.subr.bf16.mxu1 %v7441_v14  ;;  %v7446_v42 = vld [vmem:[%s9576_s1 + $0x30] ss:$8 sps:$4 sm:$0xff]   ;;  %v7481_v14 = vld [vmem:[%s9576_s1 + $0x7c4] ss:$8 sps:$4 sm:$0xff]  }
 0x157   : > { %4372 = vmatmul.mubr.bf16.gmra.mrb[4].mxu0 %v7385_v30  ;;  %1946 = vmatprep.mubr.bf16.mxu1 %v8389_v44  ;;  %v7395_v44 = vld [vmem:[%s7910_s28 + $0xf4] ss:$24 sps:$4 sm:$0xff]   ;;  %v7487_v30 = vld [vmem:[%s9576_s1 + $0xa0] ss:$8 sps:$4 sm:$0xff]  }
 0x158   : > { %4381 = vmatprep.mubr.bf16.mxu0 %v7389_v33  ;;  %4527 = vmatpush1.bf16.msra.mxu0 %v7392_v12  ;;  %v7496_v33 = vld [vmem:[%s9576_s1 + $0xb4] ss:$8 sps:$4 sm:$0xff]   ;;  %v7467_v12 = vld [vmem:[%s9576_s1 + $0x7b0] ss:$8 sps:$4 sm:$0xff]  }
 0x159   : > { %4528 = vmatprep.subr.bf16.mxu0 %v7400_v34  ;;  %2602 = vmatpush1.bf16.msra.mxu1 %v7439_v37  ;;  %v7415_v34 = vld [vmem:[%s7910_s28 + $0x180] ss:$24 sps:$4 sm:$0xff]  }
 0x15a   : > { %2603 = vmatprep.subr.bf16.mxu1 %v7448_v39  ;;  %v7479_v37 = vld [vmem:[%s9576_s1 + $0x7c0] ss:$8 sps:$4 sm:$0xff]   ;;  %v7501_v39 = vld [vmem:[%s9576_s1 + $0xc4] ss:$8 sps:$4 sm:$0xff]  }
 0x15c   : > { %4529 = vmatpush1.bf16.msra.mxu0 %v7398_v6  ;;  %v7493_v6 = vld [vmem:[%s9576_s1 + $0x7d4] ss:$8 sps:$4 sm:$0xff]  }
 0x15d   : > { %4530 = vmatprep.subr.bf16.mxu0 %v7406_v9  ;;  %2604 = vmatpush1.bf16.msra.mxu1 %v7446_v42  ;;  %v7499_v9 = vld [vmem:[%s9576_s1 + $0xc0] ss:$8 sps:$4 sm:$0xff]   ;;  %v7508_v42 = vld [vmem:[%s9576_s1 + $0xd4] ss:$8 sps:$4 sm:$0xff]  }
 0x15e   : > { %1947 = vmatmul.mubr.bf16.gmra.mrb[8].mxu1 %v8420_v56  ;;  %2605 = vmatprep.subr.bf16.mxu1 %v7453_v45  ;;  %v7458_v56 = vld [vmem:[%s9576_s1 + $0x50] ss:$8 sps:$4 sm:$0xff]   ;;  %v7503_v45 = vld [vmem:[%s9576_s1 + $0x7e0] ss:$8 sps:$4 sm:$0xff]  }
 0x15f   : > { %4382 = vmatmul.mubr.bf16.gmra.mrb[8].mxu0 %v7391_v19  ;;  %1956 = vmatprep.mubr.bf16.mxu1 %v8423_v59  ;;  %v7401_v59 = vld [vmem:[%s7910_s28 + $0x124] ss:$24 sps:$4 sm:$0xff]   ;;  %v7491_v19 = vld [vmem:[%s9576_s1 + $0x7d0] ss:$8 sps:$4 sm:$0xff]  }
 0x160   : > { %4391 = vmatprep.mubr.bf16.mxu0 %v7395_v44  ;;  %4531 = vmatpush1.bf16.msra.mxu0 %v7404_v24  ;;  %v7505_v44 = vld [vmem:[%s9576_s1 + $0x7e4] ss:$8 sps:$4 sm:$0xff]   ;;  %v7421_v24 = vld [vmem:[%s7910_s28 + $0x1b0] ss:$24 sps:$4 sm:$0xff]  }
 0x161   : > { %4532 = vmatprep.subr.bf16.mxu0 %v7412_v47  ;;  %2606 = vmatpush1.bf16.msra.mxu1 %v7451_v50  ;;  %v7516_v47 = vld [vmem:[%s9576_s1 + $0xe4] ss:$8 sps:$4 sm:$0xff]   ;;  %v7514_v50 = vld [vmem:[%s9576_s1 + $0xe0] ss:$8 sps:$4 sm:$0xff]  }
 0x162   : > { %2607 = vmatprep.subr.bf16.mxu1 %v7460_v51  ;;  %v7520_v51 = vld [vmem:[%s9576_s1 + $0x7f4] ss:$8 sps:$4 sm:$0xff]  }
 0x164   : > { %4533 = vmatpush1.bf16.msra.mxu0 %v7410_v18  ;;  %v7523_v18 = vld [vmem:[%s9576_s1 + $0xf4] ss:$8 sps:$4 sm:$0xff]  }
 0x165   : > { %4534 = vmatprep.subr.bf16.mxu0 %v7418_v23  ;;  %2608 = vmatpush1.bf16.msra.mxu1 %v7458_v56  ;;  %v7518_v23 = vld [vmem:[%s9576_s1 + $0x7f0] ss:$8 sps:$4 sm:$0xff]   ;;  %v7532_v56 = vld [vmem:[%s9576_s1 + $0x804] ss:$8 sps:$4 sm:$0xff]  }
 0x166   : > { %1957 = vmatmul.mubr.bf16.gmra.mrb[12].mxu1 %v8454_v13  ;;  %2609 = vmatprep.subr.bf16.mxu1 %v7465_v61  ;;  %v7470_v13 = vld [vmem:[%s9576_s1 + $0x70] ss:$8 sps:$4 sm:$0xff]  }
 0x167   : > { %4392 = vmatmul.mubr.bf16.gmra.mrb[12].mxu0 %v7397_v31  ;;  %1966 = vmatprep.mubr.bf16.mxu1 %v8457_v16  ;;  %v7407_v16 = vld [vmem:[%s7910_s28 + $0x154] ss:$24 sps:$4 sm:$0xff]   ;;  %v7454_v61 = vld [vmem:[%s7910_s28 + $0x240] ss:$24 sps:$4 sm:$0xff]  }
 0x168   : > { %4401 = vmatprep.mubr.bf16.mxu0 %v7401_v59  ;;  %4535 = vmatpush1.bf16.msra.mxu0 %v7416_v36  ;;  %v7437_v31 = vld [vmem:[%s7910_s28 + $0x214] ss:$24 sps:$4 sm:$0xff]   ;;  %v7442_v59 = vld [vmem:[%s7910_s28 + $0x210] ss:$24 sps:$4 sm:$0xff]   ;;  %v7449_v36 = vld [vmem:[%s7910_s28 + $0x244] ss:$24 sps:$4 sm:$0xff]  }
 0x169   : > { %4536 = vmatprep.subr.bf16.mxu0 %v7424_v63  ;;  %2610 = vmatpush1.bf16.msra.mxu1 %v7463_v1  ;;  %v7461_v63 = vld [vmem:[%s7910_s28 + $0x274] ss:$24 sps:$4 sm:$0xff]   ;;  %v7526_v1 = vld [vmem:[%s7910_s28 + $0x4] ss:$24 sps:$4 sm:$0xff]  }
 0x16a   : > { %2611 = vmatprep.subr.bf16.mxu1 %v7472_v3  ;;  %v7524_v3 = vld [vmem:[%s7910_s28] ss:$24 sps:$4 sm:$0xff]  }
 0x16c   : > { %4537 = vmatpush1.bf16.msra.mxu0 %v7422_v35  ;;  %v7527_v35 = vld [vmem:[%s7910_s28 + $0x68] ss:$24 sps:$4 sm:$0xff]  }
 0x16d   : > { %4538 = vmatprep.subr.bf16.mxu0 %v7433_v38  ;;  %2612 = vmatpush1.bf16.msra.mxu1 %v7470_v13  ;;  %v7533_v38 = vld [vmem:[%s7910_s28 + $0x9c] ss:$24 sps:$4 sm:$0xff]  }
 0x16e   : > { %1967 = vmatmul.mubr.bf16.gmra.mrb[16].mxu1 %v8488_v28  ;;  %2613 = vmatprep.subr.bf16.mxu1 %v7477_v15  ;;  %v7482_v28 = vld [vmem:[%s9576_s1 + $0x90] ss:$8 sps:$4 sm:$0xff]   ;;  %v7538_v13 = vld [vmem:[%s9576_s1 + $0x814] ss:$8 sps:$4 sm:$0xff]  }
 0x16f   : > { %4402 = vmatmul.mubr.bf16.gmra.mrb[16].mxu0 %v7403_v4  ;;  %1976 = vmatprep.mubr.bf16.mxu1 %v8491_v29  ;;  %v7413_v29 = vld [vmem:[%s7910_s28 + $0x184] ss:$24 sps:$4 sm:$0xff]   ;;  %v7684_v4 = vld [vmem:[%s7910_s28 + $0x34] ss:$24 sps:$4 sm:$0xff]   ;;  %v7535_v15 = vld [vmem:[%s7910_s28 + $0x98] ss:$24 sps:$4 sm:$0xff]  }
 0x170   : > { %4411 = vmatprep.mubr.bf16.mxu0 %v7407_v16  ;;  %4539 = vmatpush1.bf16.msra.mxu0 %v7431_v11  ;;  %v7536_v16 = vld [vmem:[%s9576_s1 + $0x810] ss:$8 sps:$4 sm:$0xff]   ;;  %v7544_v11 = vld [vmem:[%s9576_s1 + $0x824] ss:$8 sps:$4 sm:$0xff]  }
 0x171   : > { %4540 = vmatprep.subr.bf16.mxu0 %v7445_v22  ;;  %2614 = vmatpush1.bf16.msra.mxu1 %v7475_v17  ;;  %v7539_v22 = vld [vmem:[%s7910_s28 + $0xcc] ss:$24 sps:$4 sm:$0xff]   ;;  %v7542_v17 = vld [vmem:[%s9576_s1 + $0x820] ss:$8 sps:$4 sm:$0xff]  }
 0x172   : > { %2615 = vmatprep.subr.bf16.mxu1 %v7484_v26  ;;  %v7550_v26 = vld [vmem:[%s9576_s1 + $0x834] ss:$8 sps:$4 sm:$0xff]  }
 0x174   : > { %4541 = vmatpush1.bf16.msra.mxu0 %v7443_v27  ;;  %v7685_v27 = vld [vmem:[%s7910_s28 + $0x30] ss:$24 sps:$4 sm:$0xff]  }
 0x175   : > { %4542 = vmatprep.subr.bf16.mxu0 %v7457_v7  ;;  %2616 = vmatpush1.bf16.msra.mxu1 %v7482_v28  ;;  %v7686_v7 = vld [vmem:[%s7910_s28 + $0x64] ss:$24 sps:$4 sm:$0xff]   ;;  %v7548_v28 = vld [vmem:[%s9576_s1 + $0x830] ss:$8 sps:$4 sm:$0xff]  }
 0x176   : > { %1977 = vmatmul.mubr.bf16.gmra.mrb[20].mxu1 %v8522_v40  ;;  %2617 = vmatprep.subr.bf16.mxu1 %v7489_v60  ;;  %v7494_v40 = vld [vmem:[%s9576_s1 + $0xb0] ss:$8 sps:$4 sm:$0xff]   ;;  %v7554_v60 = vld [vmem:[%s9576_s1 + $0x840] ss:$8 sps:$4 sm:$0xff]  }
 0x177   : > { %4412 = vmatmul.mubr.bf16.gmra.mrb[20].mxu0 %v7409_v25  ;;  %1986 = vmatprep.mubr.bf16.mxu1 %v8525_v41  ;;  %v7419_v41 = vld [vmem:[%s7910_s28 + $0x1b4] ss:$24 sps:$4 sm:$0xff]  }
 0x178   : > { %4421 = vmatprep.mubr.bf16.mxu0 %v7413_v29  ;;  %4543 = vmatpush1.bf16.msra.mxu0 %v7455_v58  ;;  %v7556_v25 = vld [vmem:[%s9576_s1 + $0x844] ss:$8 sps:$4 sm:$0xff]   ;;  %v7541_v29 = vld [vmem:[%s7910_s28 + $0xc8] ss:$24 sps:$4 sm:$0xff]   ;;  %v7545_v58 = vld [vmem:[%s7910_s28 + $0xfc] ss:$24 sps:$4 sm:$0xff]  }
 0x179   : > { %4544 = vmatprep.subr.bf16.mxu0 %v7469_v32  ;;  %2618 = vmatpush1.bf16.msra.mxu1 %v7487_v30  ;;  %v7562_v32 = vld [vmem:[%s9576_s1 + $0x854] ss:$8 sps:$4 sm:$0xff]   ;;  %v7687_v30 = vld [vmem:[%s7910_s28 + $0x60] ss:$24 sps:$4 sm:$0xff]  }
 0x17a   : > { %2619 = vmatprep.subr.bf16.mxu1 %v7496_v33  ;;  %v7688_v33 = vld [vmem:[%s7910_s28 + $0x94] ss:$24 sps:$4 sm:$0xff]  }
 0x17c   : > { %4545 = vmatpush1.bf16.msra.mxu0 %v7467_v12  ;;  %v7560_v12 = vld [vmem:[%s9576_s1 + $0x850] ss:$8 sps:$4 sm:$0xff]  }
 0x17d   : > { %4546 = vmatprep.subr.bf16.mxu0 %v7481_v14  ;;  %2620 = vmatpush1.bf16.msra.mxu1 %v7494_v40  ;;  %v7568_v14 = vld [vmem:[%s9576_s1 + $0x864] ss:$8 sps:$4 sm:$0xff]   ;;  %v7547_v40 = vld [vmem:[%s7910_s28 + $0xf8] ss:$24 sps:$4 sm:$0xff]  }
 0x17e   : > { %1987 = vmatmul.mubr.bf16.gmra.mrb[24].mxu1 %v8556_v52  ;;  %2621 = vmatprep.subr.bf16.mxu1 %v7501_v39  ;;  %v7506_v52 = vld [vmem:[%s9576_s1 + $0xd0] ss:$8 sps:$4 sm:$0xff]  }
 0x17f   : > { %4422 = vmatmul.mubr.bf16.gmra.mrb[24].mxu0 %v7415_v34  ;;  %1996 = vmatprep.mubr.bf16.mxu1 %v8559_v54  ;;  %v7425_v54 = vld [vmem:[%s7910_s28 + $0x1e4] ss:$24 sps:$4 sm:$0xff]   ;;  %v7689_v39 = vld [vmem:[%s7910_s28 + $0x90] ss:$24 sps:$4 sm:$0xff]  }
 0x180   : > { %4431 = vmatprep.mubr.bf16.mxu0 %v7419_v41  ;;  %4547 = vmatpush1.bf16.msra.mxu0 %v7479_v37  ;;  %v7551_v34 = vld [vmem:[%s7910_s28 + $0x12c] ss:$24 sps:$4 sm:$0xff]   ;;  %v7566_v41 = vld [vmem:[%s9576_s1 + $0x860] ss:$8 sps:$4 sm:$0xff]   ;;  %v7574_v37 = vld [vmem:[%s9576_s1 + $0x874] ss:$8 sps:$4 sm:$0xff]  }
 0x181   : > { %4548 = vmatprep.subr.bf16.mxu0 %v7493_v6  ;;  %2622 = vmatpush1.bf16.msra.mxu1 %v7499_v9  ;;  %v7690_v6 = vld [vmem:[%s7910_s28 + $0xc4] ss:$24 sps:$4 sm:$0xff]   ;;  %v7572_v9 = vld [vmem:[%s9576_s1 + $0x870] ss:$8 sps:$4 sm:$0xff]  }
 0x182   : > { %2623 = vmatprep.subr.bf16.mxu1 %v7508_v42  ;;  %v7580_v42 = vld [vmem:[%s9576_s1 + $0x884] ss:$8 sps:$4 sm:$0xff]  }
 0x184   : > { %4549 = vmatpush1.bf16.msra.mxu0 %v7491_v19  ;;  %v7553_v19 = vld [vmem:[%s7910_s28 + $0x128] ss:$24 sps:$4 sm:$0xff]  }
 0x185   : > { %4550 = vmatprep.subr.bf16.mxu0 %v7505_v44  ;;  %2624 = vmatpush1.bf16.msra.mxu1 %v7506_v52  ;;  %v7557_v44 = vld [vmem:[%s7910_s28 + $0x15c] ss:$24 sps:$4 sm:$0xff]   ;;  %v7578_v52 = vld [vmem:[%s9576_s1 + $0x880] ss:$8 sps:$4 sm:$0xff]  }
 0x186   : > { %1997 = vmatmul.mubr.bf16.gmra.mrb[28].mxu1 %v8590_v5  ;;  %2625 = vmatprep.subr.bf16.mxu1 %v7516_v47  ;;  %v7521_v5 = vld [vmem:[%s9576_s1 + $0xf0] ss:$8 sps:$4 sm:$0xff]  }
 0x187   : > { %4432 = vmatmul.mubr.bf16.gmra.mrb[28].mxu0 %v7421_v24  ;;  %2006 = vmatprep.mubr.bf16.mxu1 %v8593_v10  ;;  %v7430_v10 = vld [vmem:[%s7910_s28 + $0x1e0] ss:$24 sps:$4 sm:$0xff]   ;;  %v7586_v24 = vld [vmem:[%s9576_s1 + $0x894] ss:$8 sps:$4 sm:$0xff]  }
 0x188   : > { %4441 = vmatprep.mubr.bf16.mxu0 %v7425_v54  ;;  %4551 = vmatpush1.bf16.msra.mxu0 %v7503_v45  ;;  %v7691_v54 = vld [vmem:[%s7910_s28 + $0xc0] ss:$24 sps:$4 sm:$0xff]   ;;  %v7692_v45 = vld [vmem:[%s7910_s28 + $0xf4] ss:$24 sps:$4 sm:$0xff]  }
 0x189   : > { %4552 = vmatprep.subr.bf16.mxu0 %v7520_v51  ;;  %2626 = vmatpush1.bf16.msra.mxu1 %v7514_v50  ;;  %v7584_v47 = vld [vmem:[%s9576_s1 + $0x890] ss:$8 sps:$4 sm:$0xff]   ;;  %v7592_v50 = vld [vmem:[%s9576_s1 + $0x8a4] ss:$8 sps:$4 sm:$0xff]  }
 0x18a   : > { %2627 = vmatprep.subr.bf16.mxu1 %v7523_v18  ;;  %v7559_v51 = vld [vmem:[%s7910_s28 + $0x158] ss:$24 sps:$4 sm:$0xff]   ;;  %v7563_v18 = vld [vmem:[%s7910_s28 + $0x18c] ss:$24 sps:$4 sm:$0xff]  }
 0x18c   : > { %4553 = vmatpush1.bf16.msra.mxu0 %v7518_v23  ;;  %v7590_v23 = vld [vmem:[%s9576_s1 + $0x8a0] ss:$8 sps:$4 sm:$0xff]  }
 0x18d   : > { %2628 = vmatpush1.bf16.msra.mxu1 %v7521_v5  ;;  %4715 = vmatprep.subr.bf16.mxu0 %v7532_v56  ;;  %v7598_v5 = vld [vmem:[%s9576_s1 + $0x8b4] ss:$8 sps:$4 sm:$0xff]   ;;  %v7693_v56 = vld [vmem:[%s7910_s28 + $0xf0] ss:$24 sps:$4 sm:$0xff]  }
 0x18e   : > { %2007 = vmatmul.mubr.bf16.gmra.mrb[32].mxu1 %v8603_v43  ;;  %v7466_v43 = vld [vmem:[%s7910_s28 + $0x270] ss:$24 sps:$4 sm:$0xff]  }
 0x18f   : > { %4442 = vmatmul.mubr.bf16.gmra.mrb[32].mxu0 %v7430_v10  ;;  %2016 = vmatprep.mubr.bf16.mxu1 %v8606_v48  ;;  %v7473_v48 = vld [vmem:[%s7910_s28 + $0x2a4] ss:$24 sps:$4 sm:$0xff]  }
 0x190   : > { %4451 = vmatprep.mubr.bf16.mxu0 %v7437_v31  ;;  %v7694_v10 = vld [vmem:[%s7910_s28 + $0x124] ss:$24 sps:$4 sm:$0xff]   ;;  %v7596_v31 = vld [vmem:[%s9576_s1 + $0x8b0] ss:$8 sps:$4 sm:$0xff]  }
 0x196   : > { %2017 = vmatmul.mubr.bf16.gmra.mrb[36].mxu1 %v8613_v46  ;;  %v7478_v46 = vld [vmem:[%s7910_s28 + $0x2a0] ss:$24 sps:$4 sm:$0xff]  }
 0x197   : > { %4452 = vmatmul.mubr.bf16.gmra.mrb[36].mxu0 %v7442_v59  ;;  %2026 = vmatprep.mubr.bf16.mxu1 %v8616_v49  ;;  %v7485_v49 = vld [vmem:[%s7910_s28 + $0x2d4] ss:$24 sps:$4 sm:$0xff]  }
 0x198   : > { %4461 = vmatprep.mubr.bf16.mxu0 %v7449_v36  ;;  %v7604_v59 = vld [vmem:[%s9576_s1 + $0x8c4] ss:$8 sps:$4 sm:$0xff]   ;;  %v7565_v36 = vld [vmem:[%s7910_s28 + $0x188] ss:$24 sps:$4 sm:$0xff]  }
 0x19e   : > { %2027 = vmatmul.mubr.bf16.gmra.mrb[40].mxu1 %v8623_v53  ;;  %v7490_v53 = vld [vmem:[%s7910_s28 + $0x2d0] ss:$24 sps:$4 sm:$0xff]  }
 0x19f   : > { %4462 = vmatmul.mubr.bf16.gmra.mrb[40].mxu0 %v7454_v61  ;;  %2036 = vmatprep.mubr.bf16.mxu1 %v8626_v20  ;;  %v7497_v20 = vld [vmem:[%s7910_s28 + $0x304] ss:$24 sps:$4 sm:$0xff]  }
 0x1a0   : > { %4471 = vmatprep.mubr.bf16.mxu0 %v7461_v63  ;;  %v7569_v61 = vld [vmem:[%s7910_s28 + $0x1bc] ss:$24 sps:$4 sm:$0xff]   ;;  %v7602_v63 = vld [vmem:[%s9576_s1 + $0x8c0] ss:$8 sps:$4 sm:$0xff]  }
 0x1a6   : > { %2037 = vmatmul.mubr.bf16.gmra.mrb[44].mxu1 %v8633_v55  ;;  %v7502_v55 = vld [vmem:[%s7910_s28 + $0x300] ss:$24 sps:$4 sm:$0xff]  }
 0x1a7   : > { %4472 = vmatmul.mubr.bf16.gmra.mrb[44].mxu0 %v7466_v43  ;;  %2046 = vmatprep.mubr.bf16.mxu1 %v8636_v57  ;;  %v8916_v57 = vld [vmem:[%s7910_s28 + $0x314] ss:$24 sps:$4 sm:$0xff]  }
 0x1a8   : > { %4481 = vmatprep.mubr.bf16.mxu0 %v7473_v48  ;;  %v7610_v43 = vld [vmem:[%s9576_s1 + $0x8d4] ss:$8 sps:$4 sm:$0xff]   ;;  %v7695_v48 = vld [vmem:[%s7910_s28 + $0x120] ss:$24 sps:$4 sm:$0xff]  }
 0x1ae   : > { %2047 = vmatmul.mubr.bf16.gmra.mrb[48].mxu1 %v8643_v62  ;;  %v7511_v62 = vld [vmem:[%s7910_s28 + $0x334] ss:$24 sps:$4 sm:$0xff]  }
 0x1af   : > { %4482 = vmatmul.mubr.bf16.gmra.mrb[48].mxu0 %v7478_v46  ;;  %2056 = vmatprep.mubr.bf16.mxu1 %v8646_v0  ;;  %v8922_v0 = vld [vmem:[%s7910_s28 + $0x310] ss:$24 sps:$4 sm:$0xff]   ;;  %v7696_v46 = vld [vmem:[%s7910_s28 + $0x154] ss:$24 sps:$4 sm:$0xff]  }
 0x1b0   : > { %4491 = vmatprep.mubr.bf16.mxu0 %v7485_v49  ;;  %v7608_v49 = vld [vmem:[%s9576_s1 + $0x8d0] ss:$8 sps:$4 sm:$0xff]  }
 0x1b6   : > { %2057 = vmatmul.mubr.bf16.gmra.mrb[52].mxu1 %v8653_v2  ;;  %v7517_v2 = vld [vmem:[%s7910_s28 + $0x330] ss:$24 sps:$4 sm:$0xff]  }
 0x1b7   : > { %4492 = vmatmul.mubr.bf16.gmra.mrb[52].mxu0 %v7490_v53  ;;  %2066 = vmatprep.mubr.bf16.mxu1 %v8657_v8  ;;  %v7529_v8 = vld [vmem:[%s7910_s28 + $0x6c] ss:$24 sps:$4 sm:$0xff]  }
 0x1b8   : > { %4501 = vmatprep.mubr.bf16.mxu0 %v7497_v20  ;;  %v7616_v53 = vld [vmem:[%s9576_s1 + $0x8e4] ss:$8 sps:$4 sm:$0xff]   ;;  %v7571_v20 = vld [vmem:[%s7910_s28 + $0x1b8] ss:$24 sps:$4 sm:$0xff]  }
 0x1be   : > { %2067 = vmatmul.mubr.bf16.gmra.mrb[56].mxu1 %v8664_v21  ;;  %v7530_v21 = vld [vmem:[%s9576_s1 + $0x800] ss:$8 sps:$4 sm:$0xff]  }
 0x1bf   : > { %4502 = vmatmul.mubr.bf16.gmra.mrb[56].mxu0 %v7502_v55  ;;  %2076 = vmatprep.mubr.bf16.mxu1 %v8916_v57  ;;  %v7575_v55 = vld [vmem:[%s7910_s28 + $0x1ec] ss:$24 sps:$4 sm:$0xff]  }
 0x1c0   : > { %4511 = vmatprep.mubr.bf16.mxu0 %v7511_v62  ;;  %v7614_v62 = vld [vmem:[%s9576_s1 + $0x8e0] ss:$8 sps:$4 sm:$0xff]  }
 0x1c6   : > { %2077 = vmatmul.mubr.bf16.gmra.mrb[60].mxu1 %v8922_v0 }
 0x1c7   : > { %4512 = vmatmul.mubr.bf16.gmra.mrb[60].mxu0 %v7517_v2  ;;  %2629 = vmatprep.mubr.bf16.mxu1 %v7526_v1  ;;  %v7622_v2 = vld [vmem:[%s9576_s1 + $0x8f4] ss:$8 sps:$4 sm:$0xff]   ;;  %v7697_v1 = vld [vmem:[%s7910_s28 + $0x150] ss:$24 sps:$4 sm:$0xff]  }
 0x1c8   : > { %4554 = vmatprep.mubr.bf16.mxu0 %v7529_v8  ;;  %v7698_v8 = vld [vmem:[%s7910_s28 + $0x184] ss:$24 sps:$4 sm:$0xff]  }
 0x1ce   : > { %2630 = vmatmul.mubr.bf16.vlgmr.msra.gmra.mrb[0].mxu1 %v7524_v3  ;;  %v7620_v3 = vld [vmem:[%s9576_s1 + $0x8f0] ss:$8 sps:$4 sm:$0xff]  }
 0x1cf   : > { %4555 = vmatmul.mubr.bf16.vlgmr.msra.gmra.mrb[0].mxu0 %v7527_v35  ;;  %2639 = vmatprep.mubr.bf16.mxu1 %v7684_v4  ;;  %v7577_v35 = vld [vmem:[%s7910_s28 + $0x1e8] ss:$24 sps:$4 sm:$0xff]   ;;  %v7583_v4 = vld [vmem:[%s7910_s28 + $0x218] ss:$24 sps:$4 sm:$0xff]  }
 0x1d0   : > { %4716 = vmatpush1.bf16.msra.mxu0 %v7530_v21  ;;  %4564 = vmatprep.mubr.bf16.mxu0 %v7533_v38  ;;  %v7581_v21 = vld [vmem:[%s7910_s28 + $0x21c] ss:$24 sps:$4 sm:$0xff]   ;;  %v7699_v38 = vld [vmem:[%s7910_s28 + $0x180] ss:$24 sps:$4 sm:$0xff]  }
 0x1d1   : > { %4717 = vmatprep.subr.bf16.mxu0 %v7538_v13  ;;  %v7700_v13 = vld [vmem:[%s7910_s28 + $0x1b4] ss:$24 sps:$4 sm:$0xff]  }
 0x1d4   : > { %4718 = vmatpush1.bf16.msra.mxu0 %v7536_v16  ;;  %v7587_v16 = vld [vmem:[%s7910_s28 + $0x24c] ss:$24 sps:$4 sm:$0xff]  }
 0x1d5   : > { %4719 = vmatprep.subr.bf16.mxu0 %v7544_v11  ;;  %v7701_v11 = vld [vmem:[%s7910_s28 + $0x1b0] ss:$24 sps:$4 sm:$0xff]  }
 0x1d6   : > { %2640 = vmatmul.mubr.bf16.gmra.mrb[4].mxu1 %v7685_v27  ;;  %v7704_v27 = vld [vmem:[%s7910_s28 + $0x214] ss:$24 sps:$4 sm:$0xff]  }
 0x1d7   : > { %4565 = vmatmul.mubr.bf16.gmra.mrb[4].mxu0 %v7535_v15  ;;  %2649 = vmatprep.mubr.bf16.mxu1 %v7686_v7  ;;  %v7702_v15 = vld [vmem:[%s7910_s28 + $0x1e4] ss:$24 sps:$4 sm:$0xff]   ;;  %v7595_v7 = vld [vmem:[%s7910_s28 + $0x278] ss:$24 sps:$4 sm:$0xff]  }
 0x1d8   : > { %4574 = vmatprep.mubr.bf16.mxu0 %v7539_v22  ;;  %4720 = vmatpush1.bf16.msra.mxu0 %v7542_v17  ;;  %v7589_v22 = vld [vmem:[%s7910_s28 + $0x248] ss:$24 sps:$4 sm:$0xff]   ;;  %v7593_v17 = vld [vmem:[%s7910_s28 + $0x27c] ss:$24 sps:$4 sm:$0xff]  }
 0x1d9   : > { %4721 = vmatprep.subr.bf16.mxu0 %v7550_v26  ;;  %v7703_v26 = vld [vmem:[%s7910_s28 + $0x1e0] ss:$24 sps:$4 sm:$0xff]  }
 0x1dc   : > { %4722 = vmatpush1.bf16.msra.mxu0 %v7548_v28  ;;  %v7599_v28 = vld [vmem:[%s7910_s28 + $0x2ac] ss:$24 sps:$4 sm:$0xff]  }
 0x1dd   : > { %4723 = vmatprep.subr.bf16.mxu0 %v7556_v25  ;;  %v7705_v25 = vld [vmem:[%s7910_s28 + $0x210] ss:$24 sps:$4 sm:$0xff]  }
 0x1de   : > { %2650 = vmatmul.mubr.bf16.gmra.mrb[8].mxu1 %v7687_v30  ;;  %v7662_v30 = vld [vmem:[%s9579_s4 + $0x40] sm:$0xff]  }
 0x1df   : > { %4575 = vmatmul.mubr.bf16.gmra.mrb[8].mxu0 %v7541_v29  ;;  %2659 = vmatprep.mubr.bf16.mxu1 %v7688_v33  ;;  %v7706_v29 = vld [vmem:[%s7910_s28 + $0x244] ss:$24 sps:$4 sm:$0xff]   ;;  %v7708_v33 = vld [vmem:[%s7910_s28 + $0x274] ss:$24 sps:$4 sm:$0xff]  }
 0x1e0   : > { %4584 = vmatprep.mubr.bf16.mxu0 %v7545_v58  ;;  %4724 = vmatpush1.bf16.msra.mxu0 %v7554_v60  ;;  %v7601_v58 = vld [vmem:[%s7910_s28 + $0x2a8] ss:$24 sps:$4 sm:$0xff]   ;;  %v7605_v60 = vld [vmem:[%s7910_s28 + $0x2dc] ss:$24 sps:$4 sm:$0xff]  }
 0x1e1   : > { %4725 = vmatprep.subr.bf16.mxu0 %v7562_v32  ;;  %v7707_v32 = vld [vmem:[%s7910_s28 + $0x240] ss:$24 sps:$4 sm:$0xff]   ;;  %6309 = vmatprep.subr.bf16.mxu1 %v7662_v30 }
 0x1e4   : > { %4726 = vmatpush1.bf16.msra.mxu0 %v7560_v12  ;;  %v7663_v12 = vld [vmem:[%s9579_s4] sm:$0xff]  }
 0x1e5   : > { %4727 = vmatprep.subr.bf16.mxu0 %v7568_v14  ;;  %v7607_v14 = vld [vmem:[%s7910_s28 + $0x2d8] ss:$24 sps:$4 sm:$0xff]   ;;  %6310 = vmatpush3.bf16.msra.mxu1 %v7663_v12 }
 0x1e6   : > { %2660 = vmatmul.mubr.bf16.gmra.mrb[12].mxu1 %v7689_v39  ;;  %v7617_v39 = vld [vmem:[%s7910_s28 + $0x33c] ss:$24 sps:$4 sm:$0xff]   ;;  %v7666_v12 = vld [vmem:[%s7910_s28 + $0x2e0] ss:$24 sps:$4 sm:$0xff]  }
 0x1e7   : > { %4585 = vmatmul.mubr.bf16.gmra.mrb[12].mxu0 %v7547_v40  ;;  %2669 = vmatprep.mubr.bf16.mxu1 %v7690_v6  ;;  %v7611_v40 = vld [vmem:[%s7910_s28 + $0x30c] ss:$24 sps:$4 sm:$0xff]   ;;  %v7711_v6 = vld [vmem:[%s7910_s28 + $0x2a0] ss:$24 sps:$4 sm:$0xff]  }
 0x1e8   : > { %4594 = vmatprep.mubr.bf16.mxu0 %v7551_v34  ;;  %4728 = vmatpush1.bf16.msra.mxu0 %v7566_v41  ;;  %v7709_v34 = vld [vmem:[%s7910_s28 + $0x270] ss:$24 sps:$4 sm:$0xff]   ;;  %v7710_v41 = vld [vmem:[%s7910_s28 + $0x2a4] ss:$24 sps:$4 sm:$0xff]  }
 0x1e9   : > { %4729 = vmatprep.subr.bf16.mxu0 %v7574_v37  ;;  %v7613_v37 = vld [vmem:[%s7910_s28 + $0x308] ss:$24 sps:$4 sm:$0xff]  }
 0x1ec   : > { %4730 = vmatpush1.bf16.msra.mxu0 %v7572_v9  ;;  %v7667_v9 = vld [vmem:[%s9579_s4 + $0x48] sm:$0xff]  }
 0x1ed   : > { %4731 = vmatprep.subr.bf16.mxu0 %v7580_v42  ;;  %v7712_v42 = vld [vmem:[%s7910_s28 + $0x2d4] ss:$24 sps:$4 sm:$0xff]   ;;  %6311 = vmatprep.subr.bf16.mxu1 %v7667_v9 }
 0x1ee   : > { %2670 = vmatmul.mubr.bf16.gmra.mrb[16].mxu1 %v7691_v54  ;;  %v7623_v54 = vld [vmem:[%s7910_s28 + $0x70] ss:$24 sps:$4 sm:$0xff]  }
 0x1ef   : > { %4595 = vmatmul.mubr.bf16.gmra.mrb[16].mxu0 %v7553_v19  ;;  %2679 = vmatprep.mubr.bf16.mxu1 %v7692_v45  ;;  %v7668_v19 = vld [vmem:[%s9579_s4 + $0x8] sm:$0xff]   ;;  %v7626_v45 = vld [vmem:[%s7910_s28 + $0xa4] ss:$24 sps:$4 sm:$0xff]  }
 0x1f0   : > { %4604 = vmatprep.mubr.bf16.mxu0 %v7557_v44  ;;  %4732 = vmatpush1.bf16.msra.mxu0 %v7578_v52  ;;  %v7619_v44 = vld [vmem:[%s7910_s28 + $0x338] ss:$24 sps:$4 sm:$0xff]   ;;  %v7625_v52 = vld [vmem:[%s7910_s28 + $0x74] ss:$24 sps:$4 sm:$0xff]  }
 0x1f1   : > { %4733 = vmatprep.subr.bf16.mxu0 %v7586_v24  ;;  %6312 = vmatpush3.bf16.msra.mxu1 %v7668_v19  ;;  %v7713_v24 = vld [vmem:[%s7910_s28 + $0x2d0] ss:$24 sps:$4 sm:$0xff]   ;;  %v7671_v19 = vld [vmem:[%s7910_s28 + $0x340] ss:$24 sps:$4 sm:$0xff]  }
 0x1f4   : > { %4734 = vmatpush1.bf16.msra.mxu0 %v7584_v47  ;;  %v7672_v47 = vld [vmem:[%s9579_s4 + $0x50] sm:$0xff]  }
 0x1f5   : > { %4735 = vmatprep.subr.bf16.mxu0 %v7592_v50  ;;  %6313 = vmatprep.subr.bf16.mxu1 %v7672_v47  ;;  %v7673_v50 = vld [vmem:[%s9579_s4 + $0x10] sm:$0xff]  }
 0x1f6   : > { %2680 = vmatmul.mubr.bf16.gmra.mrb[20].mxu1 %v7693_v56  ;;  %v7674_v56 = vld [vmem:[%s9579_s4 + $0x58] sm:$0xff]  }
 0x1f7   : > { %4605 = vmatmul.mubr.bf16.gmra.mrb[20].mxu0 %v7559_v51  ;;  %2689 = vmatprep.mubr.bf16.mxu1 %v7694_v10  ;;  %v7628_v51 = vld [vmem:[%s7910_s28 + $0xa0] ss:$24 sps:$4 sm:$0xff]  }
 0x1f8   : > { %4614 = vmatprep.mubr.bf16.mxu0 %v7563_v18  ;;  %4736 = vmatpush1.bf16.msra.mxu0 %v7590_v23  ;;  %v7629_v18 = vld [vmem:[%s7910_s28 + $0xd4] ss:$24 sps:$4 sm:$0xff]   ;;  %v7631_v23 = vld [vmem:[%s7910_s28 + $0xd0] ss:$24 sps:$4 sm:$0xff]   ;;  %v7675_v10 = vld [vmem:[%s9579_s4 + $0x18] sm:$0xff]  }
 0x1f9   : > { %4737 = vmatprep.subr.bf16.mxu0 %v7598_v5  ;;  %6314 = vmatpush3.bf16.msra.mxu1 %v7673_v50  ;;  %v7632_v5 = vld [vmem:[%s7910_s28 + $0x104] ss:$24 sps:$4 sm:$0xff]  }
 0x1fa   : > { %6315 = vmatprep.subr.bf16.mxu1 %v7674_v56 }
 0x1fc   : > { %4738 = vmatpush1.bf16.msra.mxu0 %v7596_v31  ;;  %v7634_v31 = vld [vmem:[%s7910_s28 + $0x100] ss:$24 sps:$4 sm:$0xff]  }
 0x1fd   : > { %4739 = vmatprep.subr.bf16.mxu0 %v7604_v59  ;;  %v7635_v59 = vld [vmem:[%s7910_s28 + $0x134] ss:$24 sps:$4 sm:$0xff]   ;;  %6316 = vmatpush3.bf16.msra.mxu1 %v7675_v10 }
 0x1fe   : > { %2690 = vmatmul.mubr.bf16.gmra.mrb[24].mxu1 %v7695_v48  ;;  %v7640_v48 = vld [vmem:[%s7910_s28 + $0x160] ss:$24 sps:$4 sm:$0xff]  }
 0x1ff   : > { %4615 = vmatmul.mubr.bf16.gmra.mrb[24].mxu0 %v7565_v36  ;;  %2699 = vmatprep.mubr.bf16.mxu1 %v7696_v46  ;;  %v7637_v36 = vld [vmem:[%s7910_s28 + $0x130] ss:$24 sps:$4 sm:$0xff]   ;;  %v7641_v46 = vld [vmem:[%s7910_s28 + $0x194] ss:$24 sps:$4 sm:$0xff]  }
 0x200   : > { %4624 = vmatprep.mubr.bf16.mxu0 %v7569_v61  ;;  %4740 = vmatpush1.bf16.msra.mxu0 %v7602_v63  ;;  %v7638_v61 = vld [vmem:[%s7910_s28 + $0x164] ss:$24 sps:$4 sm:$0xff]  }
 0x201   : > { %4741 = vmatprep.subr.bf16.mxu0 %v7610_v43  ;;  %v7676_v63 = vld [vmem:[%s9579_s4 + $0x60] sm:$0xff]  }
 0x202   : > { %6317 = vmatprep.subr.bf16.mxu1 %v7676_v63  ;;  %v7677_v43 = vld [vmem:[%s9579_s4 + $0x20] sm:$0xff]  }
 0x203   : > { %6318 = vmatpush3.bf16.msra.mxu1 %v7677_v43 }
 0x204   : > { %4742 = vmatpush1.bf16.msra.mxu0 %v7608_v49  ;;  %v7643_v49 = vld [vmem:[%s7910_s28 + $0x190] ss:$24 sps:$4 sm:$0xff]  }
 0x205   : > { %4743 = vmatprep.subr.bf16.mxu0 %v7616_v53  ;;  %v7644_v53 = vld [vmem:[%s7910_s28 + $0x1c4] ss:$24 sps:$4 sm:$0xff]  }
 0x206   : > { %2700 = vmatmul.mubr.bf16.gmra.mrb[28].mxu1 %v7697_v1  ;;  %v7649_v1 = vld [vmem:[%s7910_s28 + $0x1f0] ss:$24 sps:$4 sm:$0xff]  }
 0x207   : > { %4625 = vmatmul.mubr.bf16.gmra.mrb[28].mxu0 %v7571_v20  ;;  %2709 = vmatprep.mubr.bf16.mxu1 %v7698_v8  ;;  %v7678_v20 = vld [vmem:[%s9579_s4 + $0x68] sm:$0xff]   ;;  %v7650_v8 = vld [vmem:[%s7910_s28 + $0x224] ss:$24 sps:$4 sm:$0xff]  }
 0x208   : > { %4634 = vmatprep.mubr.bf16.mxu0 %v7575_v55  ;;  %4744 = vmatpush1.bf16.msra.mxu0 %v7614_v62  ;;  %v7679_v55 = vld [vmem:[%s9579_s4 + $0x28] sm:$0xff]   ;;  %v7646_v62 = vld [vmem:[%s7910_s28 + $0x1c0] ss:$24 sps:$4 sm:$0xff]  }
 0x209   : > { %4745 = vmatprep.subr.bf16.mxu0 %v7622_v2  ;;  %6319 = vmatprep.subr.bf16.mxu1 %v7678_v20  ;;  %v7647_v2 = vld [vmem:[%s7910_s28 + $0x1f4] ss:$24 sps:$4 sm:$0xff]  }
 0x20a   : > { %6320 = vmatpush3.bf16.msra.mxu1 %v7679_v55 }
 0x20c   : > { %4746 = vmatpush1.bf16.msra.mxu0 %v7620_v3  ;;  %v7680_v3 = vld [vmem:[%s9579_s4 + $0x70] sm:$0xff]  }
 0x20d   : > { %6321 = vmatprep.subr.bf16.mxu1 %v7680_v3 }
 0x20e   : > { %2710 = vmatmul.mubr.bf16.gmra.mrb[32].mxu1 %v7699_v38  ;;  %v7653_v38 = vld [vmem:[%s7910_s28 + $0x254] ss:$24 sps:$4 sm:$0xff]  }
 0x20f   : > { %4635 = vmatmul.mubr.bf16.gmra.mrb[32].mxu0 %v7577_v35  ;;  %2719 = vmatprep.mubr.bf16.mxu1 %v7700_v13  ;;  %v7681_v35 = vld [vmem:[%s9579_s4 + $0x30] sm:$0xff]  }
 0x210   : > { %4644 = vmatprep.mubr.bf16.mxu0 %v7581_v21  ;;  %v7652_v21 = vld [vmem:[%s7910_s28 + $0x220] ss:$24 sps:$4 sm:$0xff]   ;;  %6322 = vmatpush3.bf16.msra.mxu1 %v7681_v35  ;;  %v7655_v13 = vld [vmem:[%s7910_s28 + $0x250] ss:$24 sps:$4 sm:$0xff]  }
 0x216   : > { %2720 = vmatmul.mubr.bf16.gmra.mrb[36].mxu1 %v7701_v11 }
 0x217   : > { %4645 = vmatmul.mubr.bf16.gmra.mrb[36].mxu0 %v7583_v4  ;;  %2729 = vmatprep.mubr.bf16.mxu1 %v7702_v15  ;;  %v7656_v4 = vld [vmem:[%s7910_s28 + $0x284] ss:$24 sps:$4 sm:$0xff]  }
 0x218   : > { %4654 = vmatprep.mubr.bf16.mxu0 %v7587_v16  ;;  %v7682_v16 = vld [vmem:[%s9579_s4 + $0x78] sm:$0xff]  }
 0x219   : > { %6323 = vmatprep.subr.bf16.mxu1 %v7682_v16 }
 0x21e   : > { %2730 = vmatmul.mubr.bf16.gmra.mrb[40].mxu1 %v7703_v26  ;;  %v7659_v26 = vld [vmem:[%s7910_s28 + $0x2b4] ss:$24 sps:$4 sm:$0xff]  }
 0x21f   : > { %4655 = vmatmul.mubr.bf16.gmra.mrb[40].mxu0 %v7589_v22  ;;  %2739 = vmatprep.mubr.bf16.mxu1 %v7704_v27  ;;  %v7658_v22 = vld [vmem:[%s7910_s28 + $0x280] ss:$24 sps:$4 sm:$0xff]  }
 0x220   : > { %4664 = vmatprep.mubr.bf16.mxu0 %v7593_v17 }
 0x226   : > { %2740 = vmatmul.mubr.bf16.gmra.mrb[44].mxu1 %v7705_v25 }
 0x227   : > { %4665 = vmatmul.mubr.bf16.gmra.mrb[44].mxu0 %v7595_v7  ;;  %2749 = vmatprep.mubr.bf16.mxu1 %v7706_v29  ;;  %v7683_v7 = vld [vmem:[%s9579_s4 + $0x38] sm:$0xff]   ;;  %v7661_v29 = vld [vmem:[%s7910_s28 + $0x2b0] ss:$24 sps:$4 sm:$0xff]  }
 0x228   : > { %4674 = vmatprep.mubr.bf16.mxu0 %v7599_v28  ;;  %6324 = vmatpush3.bf16.msra.mxu1 %v7683_v7 }
 0x22e   : > { %2750 = vmatmul.mubr.bf16.gmra.mrb[48].mxu1 %v7707_v32 }
 0x22f   : > { %4675 = vmatmul.mubr.bf16.gmra.mrb[48].mxu0 %v7601_v58  ;;  %2759 = vmatprep.mubr.bf16.mxu1 %v7708_v33 }
 0x230   : > { %4684 = vmatprep.mubr.bf16.mxu0 %v7605_v60  ;;  %v7664_v60 = vld [vmem:[%s7910_s28 + $0x2e4] ss:$24 sps:$4 sm:$0xff]  }
 0x236   : > { %2760 = vmatmul.mubr.bf16.gmra.mrb[52].mxu1 %v7709_v34 }
 0x237   : > { %4685 = vmatmul.mubr.bf16.gmra.mrb[52].mxu0 %v7607_v14  ;;  %2769 = vmatprep.mubr.bf16.mxu1 %v7710_v41 }
 0x238   : > { %4694 = vmatprep.mubr.bf16.mxu0 %v7611_v40 }
 0x23e   : > { %2770 = vmatmul.mubr.bf16.gmra.mrb[56].mxu1 %v7711_v6 }
 0x23f   : > { %4695 = vmatmul.mubr.bf16.gmra.mrb[56].mxu0 %v7613_v37  ;;  %2779 = vmatprep.mubr.bf16.mxu1 %v7712_v42 }
 0x240   : > { %4704 = vmatprep.mubr.bf16.mxu0 %v7617_v39  ;;  %v7669_v39 = vld [vmem:[%s7910_s28 + $0x344] ss:$24 sps:$4 sm:$0xff]  }
 0x246   : > { %2780 = vmatmul.mubr.bf16.gmra.mrb[60].mxu1 %v7713_v24 }
 0x247   : > { %4705 = vmatmul.mubr.bf16.gmra.mrb[60].mxu0 %v7619_v44 }
 0x248   : > { %4747 = vmatprep.mubr.bf16.mxu0 %v7625_v52 }
 0x24f   : > { %4748 = vmatmul.mubr.bf16.vlgmr.msra.gmra.mrb[0].mxu0 %v7623_v54 }
 0x250   : > { %4757 = vmatprep.mubr.bf16.mxu0 %v7626_v45 }
 0x257   : > { %4758 = vmatmul.mubr.bf16.gmra.mrb[4].mxu0 %v7628_v51 }
 0x258   : > { %4767 = vmatprep.mubr.bf16.mxu0 %v7629_v18 }
 0x25f   : > { %4768 = vmatmul.mubr.bf16.gmra.mrb[8].mxu0 %v7631_v23 }
 0x260   : > { %4777 = vmatprep.mubr.bf16.mxu0 %v7632_v5 }
 0x267   : > { %4778 = vmatmul.mubr.bf16.gmra.mrb[12].mxu0 %v7634_v31 }
 0x268   : > { %4787 = vmatprep.mubr.bf16.mxu0 %v7635_v59 }
 0x26f   : > { %4788 = vmatmul.mubr.bf16.gmra.mrb[16].mxu0 %v7637_v36 }
 0x270   : > { %4797 = vmatprep.mubr.bf16.mxu0 %v7638_v61 }
 0x277   : > { %4798 = vmatmul.mubr.bf16.gmra.mrb[20].mxu0 %v7640_v48 }
 0x278   : > { %4807 = vmatprep.mubr.bf16.mxu0 %v7641_v46 }
 0x27f   : > { %4808 = vmatmul.mubr.bf16.gmra.mrb[24].mxu0 %v7643_v49 }
 0x280   : > { %4817 = vmatprep.mubr.bf16.mxu0 %v7644_v53 }
 0x287   : > { %4818 = vmatmul.mubr.bf16.gmra.mrb[28].mxu0 %v7646_v62 }
 0x288   : > { %4827 = vmatprep.mubr.bf16.mxu0 %v7647_v2 }
 0x28f   : > { %4828 = vmatmul.mubr.bf16.gmra.mrb[32].mxu0 %v7649_v1 }
 0x290   : > { %4837 = vmatprep.mubr.bf16.mxu0 %v7650_v8 }
 0x297   : > { %4838 = vmatmul.mubr.bf16.gmra.mrb[36].mxu0 %v7652_v21 }
 0x298   : > { %4847 = vmatprep.mubr.bf16.mxu0 %v7653_v38 }
 0x29f   : > { %4848 = vmatmul.mubr.bf16.gmra.mrb[40].mxu0 %v7655_v13 }
 0x2a0   : > { %4857 = vmatprep.mubr.bf16.mxu0 %v7656_v4 }
 0x2a1   : > { %v9151_v11 = vpop.f32.mrb[0].mxu1 }
 0x2a2   : > { %v9153_v15 = vpop.f32.mrb[1].mxu1 }
 0x2a3   : > { %v9156_v17 = vpop.f32.mrb[2].mxu1 }
 0x2a4   : > { %v9159_v27 = vpop.f32.mrb[3].mxu1 }
 0x2a7   : > { %4858 = vmatmul.mubr.bf16.gmra.mrb[44].mxu0 %v7658_v22 }
 0x2a8   : > { %4867 = vmatprep.mubr.bf16.mxu0 %v7659_v26 }
 0x2a9   : > { %v9164_v28 = vpop.f32.mrb[4].mxu1 }
 0x2aa   : > { %v9166_v25 = vpop.f32.mrb[5].mxu1 }
 0x2ab   : > { %v9169_v58 = vpop.f32.mrb[6].mxu1 }
 0x2ac   : > { %v9172_v32 = vpop.f32.mrb[7].mxu1 }
 0x2af   : > { %4868 = vmatmul.mubr.bf16.gmra.mrb[48].mxu0 %v7661_v29 }
 0x2b0   : > { %4877 = vmatprep.mubr.bf16.mxu0 %v7664_v60  ;;  %v4974_v60 = vlaneseq }
 0x2b1   : > { %v9174_v30 = vpop.f32.mrb[8].mxu1 }
 0x2b2   : > { %v9176_v33 = vpop.f32.mrb[9].mxu1 }
 0x2b3   : > { %v9179_v14 = vpop.f32.mrb[10].mxu1 }
 0x2b4   : > { %v9181_v40 = vpop.f32.mrb[11].mxu1 }
 0x2b7   : > { %4878 = vmatmul.mubr.bf16.gmra.mrb[52].mxu0 %v7666_v12  ;;  %v4975_v12 = vshrl.u32 %v4974_v60, 7 }
 0x2b8   : > { %4887 = vmatprep.mubr.bf16.mxu0 %v8916_v57 }
 0x2b9   : > { %v9184_v34 = vpop.f32.mrb[12].mxu1 }
 0x2ba   : > { %v9186_v41 = vpop.f32.mrb[13].mxu1 }
 0x2bb   : > { %v9188_v37 = vpop.f32.mrb[14].mxu1 }
 0x2bc   : > { %v9191_v6 = vpop.f32.mrb[15].mxu1 }
 0x2bf   : > { %4888 = vmatmul.mubr.bf16.gmra.mrb[56].mxu0 %v8922_v0 }
 0x2c0   : > { %4897 = vmatprep.mubr.bf16.mxu0 %v7669_v39 }
 0x2c1   : > { %v9194_v9 = vpop.f32.mrb[16].mxu1 }
 0x2c2   : > { %v9196_v42 = vpop.f32.mrb[17].mxu1 }
 0x2c3   : > { %v9199_v44 = vpop.f32.mrb[18].mxu1 }
 0x2c4   : > { %v9201_v57 = vpop.f32.mrb[19].mxu1 }
 0x2c7   : > { %4898 = vmatmul.mubr.bf16.gmra.mrb[60].mxu0 %v7671_v19 }
 0x2c9   : > { %v9203_v52 = vpop.f32.mrb[20].mxu1 }
 0x2ca   : > { %v9205_v24 = vpop.f32.mrb[21].mxu1 }
 0x2cb   : > { %v9207_v54 = vpop.f32.mrb[22].mxu1 }
 0x2cc   : > { %v9209_v45 = vpop.f32.mrb[23].mxu1 }
 0x2d1   : > { %v9211_v0 = vpop.f32.mrb[24].mxu1 }
 0x2d2   : > { %v9213_v47 = vpop.f32.mrb[25].mxu1 }
 0x2d3   : > { %v9215_v50 = vpop.f32.mrb[26].mxu1 }
 0x2d4   : > { %v9217_v51 = vpop.f32.mrb[27].mxu1 }
 0x2d9   : > { %v9219_v18 = vpop.f32.mrb[28].mxu1 }
 0x2da   : > { %v9221_v23 = vpop.f32.mrb[29].mxu1 }
 0x2db   : > { %v9223_v5 = vpop.f32.mrb[30].mxu1 }
 0x2dc   : > { %v9225_v56 = vpop.f32.mrb[31].mxu1 }
 0x2e1   : > { %v9227_v10 = vpop.f32.mrb[32].mxu1 }
 0x2e2   : > { %v9229_v31 = vpop.f32.mrb[33].mxu1 }
 0x2e3   : > { %v9231_v59 = vpop.f32.mrb[34].mxu1 }
 0x2e4   : > { %v9233_v36 = vpop.f32.mrb[35].mxu1 }
 0x2e9   : > { %v9235_v61 = vpop.f32.mrb[36].mxu1 }
 0x2ea   : > { %v9237_v63 = vpop.f32.mrb[37].mxu1 }
 0x2eb   : > { %v9239_v43 = vpop.f32.mrb[38].mxu1 }
 0x2ec   : > { %v9241_v48 = vpop.f32.mrb[39].mxu1 }
 0x2f1   : > { %v9243_v46 = vpop.f32.mrb[40].mxu1 }
 0x2f2   : > { %v9245_v49 = vpop.f32.mrb[41].mxu1 }
 0x2f3   : > { %v9247_v53 = vpop.f32.mrb[42].mxu1 }
 0x2f4   : > { %v9249_v20 = vpop.f32.mrb[43].mxu1 }
 0x2f9   : > { %v9251_v55 = vpop.f32.mrb[44].mxu1 }
 0x2fa   : > { %v9253_v62 = vpop.f32.mrb[45].mxu1 }
 0x2fb   : > { %9582 = vst [vmem:[#allocation2_spill] sm:$0xff] %v9253_v62  ;;  %v9255_v2 = vpop.f32.mrb[46].mxu1 }
 0x2fc   : > { %9583 = vst [vmem:[#allocation3_spill] sm:$0xff] %v9255_v2  ;;  %v9257_v1 = vpop.f32.mrb[47].mxu1 }
 0x2fd   : > { %9584 = vst [vmem:[#allocation4_spill] sm:$0xff] %v9257_v1 }
 0x301   : > { %v9259_v8 = vpop.f32.mrb[48].mxu1 }
 0x302   : > { %9585 = vst [vmem:[#allocation5_spill] sm:$0xff] %v9259_v8  ;;  %v9261_v3 = vpop.f32.mrb[49].mxu1 }
 0x303   : > { %9586 = vst [vmem:[#allocation6_spill] sm:$0xff] %v9261_v3  ;;  %v9263_v35 = vpop.f32.mrb[50].mxu1 }
 0x304   : > { %9587 = vst [vmem:[#allocation7_spill] sm:$0xff] %v9263_v35  ;;  %v9265_v21 = vpop.f32.mrb[51].mxu1 }
 0x305   : > { %9588 = vst [vmem:[#allocation8_spill] sm:$0xff] %v9265_v21 }
 0x309   : > { %v9267_v38 = vpop.f32.mrb[52].mxu1 }
 0x30a   : > { %9589 = vst [vmem:[#allocation9_spill] sm:$0xff] %v9267_v38  ;;  %v9269_v13 = vpop.f32.mrb[53].mxu1 }
 0x30b   : > { %9590 = vst [vmem:[#allocation10_spill] sm:$0xff] %v9269_v13  ;;  %v9271_v4 = vpop.f32.mrb[54].mxu1 }
 0x30c   : > { %9591 = vst [vmem:[#allocation11_spill] sm:$0xff] %v9271_v4  ;;  %v9273_v16 = vpop.f32.mrb[55].mxu1  ;;  %v4976_v4 = vsub.s32 0, %v4975_v12 }
 0x30d   : > { %9592 = vst [vmem:[#allocation12_spill] sm:$0xff] %v9273_v16 }
 0x311   : > { %v9275_v22 = vpop.f32.mrb[56].mxu1 }
 0x312   : > { %9593 = vst [vmem:[#allocation13_spill] sm:$0xff] %v9275_v22  ;;  %v9277_v26 = vpop.f32.mrb[57].mxu1  ;;  %v4972_v22 = vld [vmem:[%s9577_s2] sm:$0x3] }
 0x313   : > { %9594 = vst [vmem:[#allocation14_spill] sm:$0xff] %v9277_v26  ;;  %v9279_v7 = vpop.f32.mrb[58].mxu1  ;;  %v4980_v26 = vsub.s32 1, %v4975_v12 }
 0x314   : > { %9595 = vst [vmem:[#allocation15_spill] sm:$0xff] %v9279_v7  ;;  %v9281_v29 = vpop.f32.mrb[59].mxu1  ;;  %v9297_v7 = vrot.slane %v4972_v22, %v4976_v4 }
 0x315   : > { %9596 = vst [vmem:[#allocation16_spill] sm:$0xff] %v9281_v29  ;;  %v5048_v29 = vld [vmem:[%s9578_s3] sm:$0x3] }
 0x316   : > { %v9305_v21 = vrot.slane %v5048_v29, %v4980_v26 }
 0x319   : > { %v9283_v39 = vpop.f32.mrb[60].mxu1 }
 0x31a   : > { %9597 = vst [vmem:[#allocation17_spill] sm:$0xff] %v9283_v39  ;;  %v9285_v19 = vpop.f32.mrb[61].mxu1  ;;  %v9299_v39 = vrot.slane %v4972_v22, %v4980_v26 }
 0x31b   : > { %9598 = vst [vmem:[#allocation18_spill] sm:$0xff] %v9285_v19  ;;  %v9287_v38 = vpop.f32.mrb[62].mxu1 }
 0x31c   : > { %9599 = vst [vmem:[#allocation19_spill] sm:$0xff] %v9287_v38  ;;  %v9289_v13 = vpop.f32.mrb[63].mxu1  ;;  %v9302_v38 = vrot.slane %v5048_v29, %v4976_v4 }
 0x31d   : > { %9600 = vst [vmem:[#allocation20_spill] sm:$0xff] %v9289_v13 }
 0x322   : > { %v4749_v60 = vpop.f32.mrb[0].mxu0 }
 0x323   : > { %v6421_v19 = vadd.f32 %v4749_v60, %v9151_v11  ;;  %v4751_v13 = vpop.f32.mrb[1].mxu0 }
 0x324   : > { %v6422_v16 = vadd.f32 %v4751_v13, %v9153_v15  ;;  %v4753_v35 = vpop.f32.mrb[2].mxu0 }
 0x325   : > { %v4984_v12 = vmul.f32 %v6421_v19, %v9297_v7  ;;  %v6423_v3 = vadd.f32 %v4753_v35, %v9156_v17  ;;  %v4755_v8 = vpop.f32.mrb[3].mxu0 }
 0x326   : > { %v4985_v1 = vmul.f32 %v6422_v16, %v9299_v39  ;;  %v6424_v22 = vadd.f32 %v4755_v8, %v9159_v27 }
 0x327   : > { %v5060_v2 = vadd.f32 %v9302_v38, %v4984_v12  ;;  %v4986_v11 = vmul.f32 %v6423_v3, %v9297_v7 }
 0x328   : > { %v5061_v4 = vadd.f32 %v9305_v21, %v4985_v1  ;;  %v4987_v15 = vmul.f32 %v6424_v22, %v9299_v39 }
 0x329   : > { %v5062_v13 = vadd.f32 %v9302_v38, %v4986_v11  ;;  %v5124_v19 = vmax.f32 %v5060_v2, 0.0 }
 0x32a   : > { %v5063_v26 = vadd.f32 %v9305_v21, %v4987_v15  ;;  %v4759_v29 = vpop.f32.mrb[4].mxu0  ;;  %v5125_v60 = vmax.f32 %v5061_v4, 0.0 }
 0x32b   : > { %v5126_v17 = vmax.f32 %v5062_v13, 0.0  ;;  %v6425_v35 = vadd.f32 %v4759_v29, %v9164_v28  ;;  %v4761_v16 = vpop.f32.mrb[5].mxu0 }
 0x32c   : > { %v5127_v27 = vmax.f32 %v5063_v26, 0.0  ;;  %v6426_v8 = vadd.f32 %v4761_v16, %v9166_v25  ;;  %v4763_v12 = vpop.f32.mrb[6].mxu0 }
 0x32d   : > { %v5188_v3 = vpack.c.bf16 %v5126_v17, %v5124_v19  ;;  %v4988_v1 = vmul.f32 %v6425_v35, %v9297_v7  ;;  %v6427_v22 = vadd.f32 %v4763_v12, %v9169_v58  ;;  %v4765_v62 = vpop.f32.mrb[7].mxu0 }
 0x32e   : > { %v4989_v11 = vmul.f32 %v6426_v8, %v9299_v39  ;;  %v6428_v15 = vadd.f32 %v4765_v62, %v9172_v32  ;;  %v5189_v2 = vpack.c.bf16 %v5127_v27, %v5125_v60 }
 0x32f   : > { %v5064_v13 = vadd.f32 %v9302_v38, %v4988_v1  ;;  %v4990_v28 = vmul.f32 %v6427_v22, %v9297_v7 }
 0x330   : > { %v5065_v4 = vadd.f32 %v9305_v21, %v4989_v11  ;;  %v4991_v25 = vmul.f32 %v6428_v15, %v9299_v39  ;;  %5387 = vmatprep.mubr.bf16.mxu1 %v5189_v2 }
 0x331   : > { %v5066_v26 = vadd.f32 %v9302_v38, %v4990_v28  ;;  %5388 = vmatmul.mubr.bf16.vlgmr.msra.gmra.mrb[64].mxu1 %v5188_v3  ;;  %v5128_v19 = vmax.f32 %v5064_v13, 0.0 }
 0x332   : > { %v5067_v58 = vadd.f32 %v9305_v21, %v4991_v25  ;;  %v4769_v29 = vpop.f32.mrb[8].mxu0  ;;  %v5129_v35 = vmax.f32 %v5065_v4, 0.0 }
 0x333   : > { %v5130_v17 = vmax.f32 %v5066_v26, 0.0  ;;  %v6429_v32 = vadd.f32 %v4769_v29, %v9174_v30  ;;  %v4771_v62 = vpop.f32.mrb[9].mxu0 }
 0x334   : > { %v5131_v16 = vmax.f32 %v5067_v58, 0.0  ;;  %v6430_v60 = vadd.f32 %v4771_v62, %v9176_v33  ;;  %v4773_v27 = vpop.f32.mrb[10].mxu0 }
 0x335   : > { %v4992_v8 = vmul.f32 %v6429_v32, %v9297_v7  ;;  %v6431_v12 = vadd.f32 %v4773_v27, %v9179_v14  ;;  %v4775_v1 = vpop.f32.mrb[11].mxu0  ;;  %v5190_v22 = vpack.c.bf16 %v5130_v17, %v5128_v19 }
 0x336   : > { %v4993_v3 = vmul.f32 %v6430_v60, %v9299_v39  ;;  %v6432_v11 = vadd.f32 %v4775_v1, %v9181_v40  ;;  %v5191_v15 = vpack.c.bf16 %v5131_v16, %v5129_v35 }
 0x337   : > { %v5068_v2 = vadd.f32 %v9302_v38, %v4992_v8  ;;  %v4994_v30 = vmul.f32 %v6431_v12, %v9297_v7 }
 0x338   : > { %v5069_v13 = vadd.f32 %v9305_v21, %v4993_v3  ;;  %v4995_v33 = vmul.f32 %v6432_v11, %v9299_v39  ;;  %5395 = vmatprep.mubr.bf16.mxu1 %v5191_v15 }
 0x339   : > { %v5070_v28 = vadd.f32 %v9302_v38, %v4994_v30  ;;  %5396 = vmatmul.mubr.bf16.gmra.mrb[68].mxu1 %v5190_v22  ;;  %v5132_v25 = vmax.f32 %v5068_v2, 0.0 }
 0x33a   : > { %v5071_v14 = vadd.f32 %v9305_v21, %v4995_v33  ;;  %v4779_v4 = vpop.f32.mrb[12].mxu0  ;;  %v5133_v29 = vmax.f32 %v5069_v13, 0.0 }
 0x33b   : > { %v5134_v26 = vmax.f32 %v5070_v28, 0.0  ;;  %v6433_v40 = vadd.f32 %v4779_v4, %v9184_v34  ;;  %v4781_v58 = vpop.f32.mrb[13].mxu0 }
 0x33c   : > { %v5135_v19 = vmax.f32 %v5071_v14, 0.0  ;;  %v6434_v17 = vadd.f32 %v4781_v58, %v9186_v41  ;;  %v4783_v32 = vpop.f32.mrb[14].mxu0 }
 0x33d   : > { %v4996_v62 = vmul.f32 %v6433_v40, %v9297_v7  ;;  %v6435_v35 = vadd.f32 %v4783_v32, %v9188_v37  ;;  %v4785_v16 = vpop.f32.mrb[15].mxu0  ;;  %v5192_v60 = vpack.c.bf16 %v5134_v26, %v5132_v25 }
 0x33e   : > { %v4997_v27 = vmul.f32 %v6434_v17, %v9299_v39  ;;  %v6436_v8 = vadd.f32 %v4785_v16, %v9191_v6  ;;  %v5193_v12 = vpack.c.bf16 %v5135_v19, %v5133_v29 }
 0x33f   : > { %v5072_v1 = vadd.f32 %v9302_v38, %v4996_v62  ;;  %v4998_v34 = vmul.f32 %v6435_v35, %v9297_v7 }
 0x340   : > { %v5073_v22 = vadd.f32 %v9305_v21, %v4997_v27  ;;  %v4999_v41 = vmul.f32 %v6436_v8, %v9299_v39  ;;  %5403 = vmatprep.mubr.bf16.mxu1 %v5193_v12 }
 0x341   : > { %v5074_v3 = vadd.f32 %v9302_v38, %v4998_v34  ;;  %5404 = vmatmul.mubr.bf16.gmra.mrb[72].mxu1 %v5192_v60  ;;  %v5136_v15 = vmax.f32 %v5072_v1, 0.0 }
 0x342   : > { %v5075_v37 = vadd.f32 %v9305_v21, %v4999_v41  ;;  %v4789_v11 = vpop.f32.mrb[16].mxu0  ;;  %v5137_v13 = vmax.f32 %v5073_v22, 0.0 }
 0x343   : > { %v5138_v2 = vmax.f32 %v5074_v3, 0.0  ;;  %v6437_v6 = vadd.f32 %v4789_v11, %v9194_v9  ;;  %v4791_v30 = vpop.f32.mrb[17].mxu0 }
 0x344   : > { %v5139_v33 = vmax.f32 %v5075_v37, 0.0  ;;  %v6438_v28 = vadd.f32 %v4791_v30, %v9196_v42  ;;  %v4793_v14 = vpop.f32.mrb[18].mxu0 }
 0x345   : > { %v5000_v4 = vmul.f32 %v6437_v6, %v9297_v7  ;;  %v6439_v25 = vadd.f32 %v4793_v14, %v9199_v44  ;;  %v4795_v26 = vpop.f32.mrb[19].mxu0  ;;  %v5194_v40 = vpack.c.bf16 %v5138_v2, %v5136_v15 }
 0x346   : > { %v5001_v58 = vmul.f32 %v6438_v28, %v9299_v39  ;;  %v6440_v29 = vadd.f32 %v4795_v26, %v9201_v57  ;;  %v5195_v19 = vpack.c.bf16 %v5139_v33, %v5137_v13 }
 0x347   : > { %v5076_v17 = vadd.f32 %v9302_v38, %v5000_v4  ;;  %v5002_v9 = vmul.f32 %v6439_v25, %v9297_v7 }
 0x348   : > { %v5077_v32 = vadd.f32 %v9305_v21, %v5001_v58  ;;  %v5003_v42 = vmul.f32 %v6440_v29, %v9299_v39  ;;  %5411 = vmatprep.mubr.bf16.mxu1 %v5195_v19 }
 0x349   : > { %v5078_v62 = vadd.f32 %v9302_v38, %v5002_v9  ;;  %5412 = vmatmul.mubr.bf16.gmra.mrb[76].mxu1 %v5194_v40  ;;  %v5140_v16 = vmax.f32 %v5076_v17, 0.0 }
 0x34a   : > { %v5079_v44 = vadd.f32 %v9305_v21, %v5003_v42  ;;  %v4799_v35 = vpop.f32.mrb[20].mxu0  ;;  %v5141_v8 = vmax.f32 %v5077_v32, 0.0 }
 0x34b   : > { %v5142_v60 = vmax.f32 %v5078_v62, 0.0  ;;  %v6441_v57 = vadd.f32 %v4799_v35, %v9203_v52  ;;  %v4801_v27 = vpop.f32.mrb[21].mxu0 }
 0x34c   : > { %v5143_v12 = vmax.f32 %v5079_v44, 0.0  ;;  %v6442_v1 = vadd.f32 %v4801_v27, %v9205_v24  ;;  %v4803_v34 = vpop.f32.mrb[22].mxu0 }
 0x34d   : > { %v5004_v22 = vmul.f32 %v6441_v57, %v9297_v7  ;;  %v6443_v41 = vadd.f32 %v4803_v34, %v9207_v54  ;;  %v4805_v3 = vpop.f32.mrb[23].mxu0  ;;  %v5196_v37 = vpack.c.bf16 %v5142_v60, %v5140_v16 }
 0x34e   : > { %v5005_v11 = vmul.f32 %v6442_v1, %v9299_v39  ;;  %v6444_v15 = vadd.f32 %v4805_v3, %v9209_v45  ;;  %v5197_v2 = vpack.c.bf16 %v5143_v12, %v5141_v8 }
 0x34f   : > { %v5080_v6 = vadd.f32 %v9302_v38, %v5004_v22  ;;  %v5006_v52 = vmul.f32 %v6443_v41, %v9297_v7 }
 0x350   : > { %v5081_v30 = vadd.f32 %v9305_v21, %v5005_v11  ;;  %v5007_v24 = vmul.f32 %v6444_v15, %v9299_v39  ;;  %5419 = vmatprep.mubr.bf16.mxu1 %v5197_v2 }
 0x351   : > { %v5082_v13 = vadd.f32 %v9302_v38, %v5006_v52  ;;  %5420 = vmatmul.mubr.bf16.gmra.mrb[80].mxu1 %v5196_v37  ;;  %v5144_v28 = vmax.f32 %v5080_v6, 0.0 }
 0x352   : > { %v5083_v54 = vadd.f32 %v9305_v21, %v5007_v24  ;;  %v4809_v33 = vpop.f32.mrb[24].mxu0  ;;  %v5145_v25 = vmax.f32 %v5081_v30, 0.0 }
 0x353   : > { %v5146_v14 = vmax.f32 %v5082_v13, 0.0  ;;  %v6445_v45 = vadd.f32 %v4809_v33, %v9211_v0  ;;  %v4811_v4 = vpop.f32.mrb[25].mxu0 }
 0x354   : > { %v5147_v26 = vmax.f32 %v5083_v54, 0.0  ;;  %v6446_v40 = vadd.f32 %v4811_v4, %v9213_v47  ;;  %v4813_v58 = vpop.f32.mrb[26].mxu0 }
 0x355   : > { %v5008_v29 = vmul.f32 %v6445_v45, %v9297_v7  ;;  %v6447_v19 = vadd.f32 %v4813_v58, %v9215_v50  ;;  %v4815_v17 = vpop.f32.mrb[27].mxu0  ;;  %v5198_v9 = vpack.c.bf16 %v5146_v14, %v5144_v28 }
 0x356   : > { %v5009_v32 = vmul.f32 %v6446_v40, %v9299_v39  ;;  %v6448_v42 = vadd.f32 %v4815_v17, %v9217_v51  ;;  %v5199_v62 = vpack.c.bf16 %v5147_v26, %v5145_v25 }
 0x357   : > { %v5084_v44 = vadd.f32 %v9302_v38, %v5008_v29  ;;  %v5010_v0 = vmul.f32 %v6447_v19, %v9297_v7 }
 0x358   : > { %v5085_v35 = vadd.f32 %v9305_v21, %v5009_v32  ;;  %v5011_v47 = vmul.f32 %v6448_v42, %v9299_v39  ;;  %5427 = vmatprep.mubr.bf16.mxu1 %v5199_v62 }
 0x359   : > { %v5086_v16 = vadd.f32 %v9302_v38, %v5010_v0  ;;  %5428 = vmatmul.mubr.bf16.gmra.mrb[84].mxu1 %v5198_v9  ;;  %v5148_v57 = vmax.f32 %v5084_v44, 0.0 }
 0x35a   : > { %v5087_v50 = vadd.f32 %v9305_v21, %v5011_v47  ;;  %v4819_v60 = vpop.f32.mrb[28].mxu0  ;;  %v5149_v12 = vmax.f32 %v5085_v35, 0.0 }
 0x35b   : > { %v5150_v27 = vmax.f32 %v5086_v16, 0.0  ;;  %v6449_v51 = vadd.f32 %v4819_v60, %v9219_v18  ;;  %v4821_v8 = vpop.f32.mrb[29].mxu0 }
 0x35c   : > { %v5151_v1 = vmax.f32 %v5087_v50, 0.0  ;;  %v6450_v34 = vadd.f32 %v4821_v8, %v9221_v23  ;;  %v4823_v22 = vpop.f32.mrb[30].mxu0 }
 0x35d   : > { %v5012_v41 = vmul.f32 %v6449_v51, %v9297_v7  ;;  %v6451_v3 = vadd.f32 %v4823_v22, %v9223_v5  ;;  %v4825_v37 = vpop.f32.mrb[31].mxu0  ;;  %v5200_v11 = vpack.c.bf16 %v5150_v27, %v5148_v57 }
 0x35e   : > { %v5013_v15 = vmul.f32 %v6450_v34, %v9299_v39  ;;  %v6452_v2 = vadd.f32 %v4825_v37, %v9225_v56  ;;  %v5201_v6 = vpack.c.bf16 %v5151_v1, %v5149_v12 }
 0x35f   : > { %v5088_v52 = vadd.f32 %v9302_v38, %v5012_v41  ;;  %v5014_v18 = vmul.f32 %v6451_v3, %v9297_v7 }
 0x360   : > { %v5089_v30 = vadd.f32 %v9305_v21, %v5013_v15  ;;  %v5015_v23 = vmul.f32 %v6452_v2, %v9299_v39  ;;  %5435 = vmatprep.mubr.bf16.mxu1 %v5201_v6 }
 0x361   : > { %v5090_v24 = vadd.f32 %v9302_v38, %v5014_v18  ;;  %5436 = vmatmul.mubr.bf16.gmra.mrb[88].mxu1 %v5200_v11  ;;  %v5152_v54 = vmax.f32 %v5088_v52, 0.0 }
 0x362   : > { %v5091_v5 = vadd.f32 %v9305_v21, %v5015_v23  ;;  %v4829_v13 = vpop.f32.mrb[32].mxu0  ;;  %v5153_v14 = vmax.f32 %v5089_v30, 0.0 }
 0x363   : > { %v5154_v33 = vmax.f32 %v5090_v24, 0.0  ;;  %v6453_v56 = vadd.f32 %v4829_v13, %v9227_v10  ;;  %v4831_v28 = vpop.f32.mrb[33].mxu0 }
 0x364   : > { %v5155_v45 = vmax.f32 %v5091_v5, 0.0  ;;  %v6454_v4 = vadd.f32 %v4831_v28, %v9229_v31  ;;  %v4833_v25 = vpop.f32.mrb[34].mxu0 }
 0x365   : > { %v5016_v26 = vmul.f32 %v6453_v56, %v9297_v7  ;;  %v6455_v40 = vadd.f32 %v4833_v25, %v9231_v59  ;;  %v4835_v58 = vpop.f32.mrb[35].mxu0  ;;  %v5202_v29 = vpack.c.bf16 %v5154_v33, %v5152_v54 }
 0x366   : > { %v5017_v19 = vmul.f32 %v6454_v4, %v9299_v39  ;;  %v6456_v17 = vadd.f32 %v4835_v58, %v9233_v36  ;;  %v5203_v9 = vpack.c.bf16 %v5155_v45, %v5153_v14 }
 0x367   : > { %v5092_v32 = vadd.f32 %v9302_v38, %v5016_v26  ;;  %v5018_v10 = vmul.f32 %v6455_v40, %v9297_v7 }
 0x368   : > { %v5093_v42 = vadd.f32 %v9305_v21, %v5017_v19  ;;  %v5019_v31 = vmul.f32 %v6456_v17, %v9299_v39  ;;  %5443 = vmatprep.mubr.bf16.mxu1 %v5203_v9  ;;  %v9601_v17 = vld [vmem:[#allocation2_spill] sm:$0xff] }
 0x369   : > { %v5094_v62 = vadd.f32 %v9302_v38, %v5018_v10  ;;  %5444 = vmatmul.mubr.bf16.gmra.mrb[92].mxu1 %v5202_v29  ;;  %v5156_v0 = vmax.f32 %v5092_v32, 0.0 }
 0x36a   : > { %v5095_v59 = vadd.f32 %v9305_v21, %v5019_v31  ;;  %v4839_v44 = vpop.f32.mrb[36].mxu0  ;;  %v5157_v16 = vmax.f32 %v5093_v42, 0.0  ;;  %v9602_v42 = vld [vmem:[#allocation3_spill] sm:$0xff] }
 0x36b   : > { %v5158_v35 = vmax.f32 %v5094_v62, 0.0  ;;  %v6457_v36 = vadd.f32 %v4839_v44, %v9235_v61  ;;  %v4841_v47 = vpop.f32.mrb[37].mxu0 }
 0x36c   : > { %v5159_v50 = vmax.f32 %v5095_v59, 0.0  ;;  %v6458_v60 = vadd.f32 %v4841_v47, %v9237_v63  ;;  %v4843_v57 = vpop.f32.mrb[38].mxu0 }
 0x36d   : > { %v5020_v27 = vmul.f32 %v6457_v36, %v9297_v7  ;;  %v6459_v51 = vadd.f32 %v4843_v57, %v9239_v43  ;;  %v4845_v8 = vpop.f32.mrb[39].mxu0  ;;  %v5204_v12 = vpack.c.bf16 %v5158_v35, %v5156_v0  ;;  %v9603_v0 = vld [vmem:[#allocation4_spill] sm:$0xff] }
 0x36e   : > { %v5021_v1 = vmul.f32 %v6458_v60, %v9299_v39  ;;  %v6460_v34 = vadd.f32 %v4845_v8, %v9241_v48  ;;  %v5205_v22 = vpack.c.bf16 %v5159_v50, %v5157_v16 }
 0x36f   : > { %v5096_v41 = vadd.f32 %v9302_v38, %v5020_v27  ;;  %v5022_v61 = vmul.f32 %v6459_v51, %v9297_v7 }
 0x370   : > { %v5097_v3 = vadd.f32 %v9305_v21, %v5021_v1  ;;  %v5023_v63 = vmul.f32 %v6460_v34, %v9299_v39  ;;  %5451 = vmatprep.mubr.bf16.mxu1 %v5205_v22 }
 0x371   : > { %v5098_v37 = vadd.f32 %v9302_v38, %v5022_v61  ;;  %5452 = vmatmul.mubr.bf16.gmra.mrb[96].mxu1 %v5204_v12  ;;  %v5160_v15 = vmax.f32 %v5096_v41, 0.0  ;;  %v9604_v12 = vld [vmem:[#allocation5_spill] sm:$0xff]  ;;  %v9605_v61 = vld [vmem:[#allocation6_spill] sm:$0xff] }
 0x372   : > { %v5099_v43 = vadd.f32 %v9305_v21, %v5023_v63  ;;  %v4849_v11 = vpop.f32.mrb[40].mxu0  ;;  %v5161_v52 = vmax.f32 %v5097_v3, 0.0 }
 0x373   : > { %v5162_v2 = vmax.f32 %v5098_v37, 0.0  ;;  %v6461_v48 = vadd.f32 %v4849_v11, %v9243_v46  ;;  %v4851_v6 = vpop.f32.mrb[41].mxu0 }
 0x374   : > { %v5163_v18 = vmax.f32 %v5099_v43, 0.0  ;;  %v6462_v30 = vadd.f32 %v4851_v6, %v9245_v49  ;;  %v4853_v23 = vpop.f32.mrb[42].mxu0  ;;  %v9606_v43 = vld [vmem:[#allocation7_spill] sm:$0xff]  ;;  %v9607_v6 = vld [vmem:[#allocation8_spill] sm:$0xff] }
 0x375   : > { %v5024_v24 = vmul.f32 %v6461_v48, %v9297_v7  ;;  %v6463_v5 = vadd.f32 %v4853_v23, %v9247_v53  ;;  %v4855_v13 = vpop.f32.mrb[43].mxu0  ;;  %v5206_v54 = vpack.c.bf16 %v5162_v2, %v5160_v15 }
 0x376   : > { %v5025_v33 = vmul.f32 %v6462_v30, %v9299_v39  ;;  %v6464_v56 = vadd.f32 %v4855_v13, %v9249_v20  ;;  %v5207_v28 = vpack.c.bf16 %v5163_v18, %v5161_v52 }
 0x377   : > { %v5100_v14 = vadd.f32 %v9302_v38, %v5024_v24  ;;  %v5026_v46 = vmul.f32 %v6463_v5, %v9297_v7 }
 0x378   : > { %v5101_v45 = vadd.f32 %v9305_v21, %v5025_v33  ;;  %v5027_v49 = vmul.f32 %v6464_v56, %v9299_v39  ;;  %5459 = vmatprep.mubr.bf16.mxu1 %v5207_v28 }
 0x379   : > { %v5102_v4 = vadd.f32 %v9302_v38, %v5026_v46  ;;  %5460 = vmatmul.mubr.bf16.gmra.mrb[100].mxu1 %v5206_v54  ;;  %v5164_v26 = vmax.f32 %v5100_v14, 0.0  ;;  %v9608_v14 = vld [vmem:[#allocation9_spill] sm:$0xff] }
 0x37a   : > { %v5103_v53 = vadd.f32 %v9305_v21, %v5027_v49  ;;  %v4859_v25 = vpop.f32.mrb[44].mxu0  ;;  %v5165_v29 = vmax.f32 %v5101_v45, 0.0 }
 0x37b   : > { %v5166_v40 = vmax.f32 %v5102_v4, 0.0  ;;  %v6465_v20 = vadd.f32 %v4859_v25, %v9251_v55  ;;  %v4861_v58 = vpop.f32.mrb[45].mxu0 }
 0x37c   : > { %v5167_v19 = vmax.f32 %v5103_v53, 0.0  ;;  %v6466_v9 = vadd.f32 %v4861_v58, %v9601_v17  ;;  %v4863_v32 = vpop.f32.mrb[46].mxu0  ;;  %v9609_v53 = vld [vmem:[#allocation10_spill] sm:$0xff] }
 0x37d   : > { %v5028_v10 = vmul.f32 %v6465_v20, %v9297_v7  ;;  %v6467_v31 = vadd.f32 %v4863_v32, %v9602_v42  ;;  %v4865_v62 = vpop.f32.mrb[47].mxu0  ;;  %v5208_v59 = vpack.c.bf16 %v5166_v40, %v5164_v26  ;;  %v9610_v20 = vld [vmem:[#allocation11_spill] sm:$0xff] }
 0x37e   : > { %v5029_v44 = vmul.f32 %v6466_v9, %v9299_v39  ;;  %v6468_v35 = vadd.f32 %v4865_v62, %v9603_v0  ;;  %v5209_v36 = vpack.c.bf16 %v5167_v19, %v5165_v29  ;;  %v9611_v9 = vld [vmem:[#allocation12_spill] sm:$0xff] }
 0x37f   : > { %v5104_v47 = vadd.f32 %v9302_v38, %v5028_v10  ;;  %v5030_v55 = vmul.f32 %v6467_v31, %v9297_v7 }
 0x380   : > { %v5105_v16 = vadd.f32 %v9305_v21, %v5029_v44  ;;  %v5031_v50 = vmul.f32 %v6468_v35, %v9299_v39  ;;  %5467 = vmatprep.mubr.bf16.mxu1 %v5209_v36 }
 0x381   : > { %v5106_v60 = vadd.f32 %v9302_v38, %v5030_v55  ;;  %5468 = vmatmul.mubr.bf16.gmra.mrb[104].mxu1 %v5208_v59  ;;  %v5168_v51 = vmax.f32 %v5104_v47, 0.0  ;;  %v9612_v55 = vld [vmem:[#allocation13_spill] sm:$0xff] }
 0x382   : > { %v5107_v57 = vadd.f32 %v9305_v21, %v5031_v50  ;;  %v4869_v27 = vpop.f32.mrb[48].mxu0  ;;  %v5169_v22 = vmax.f32 %v5105_v16, 0.0 }
 0x383   : > { %v5170_v8 = vmax.f32 %v5106_v60, 0.0  ;;  %v6469_v1 = vadd.f32 %v4869_v27, %v9604_v12  ;;  %v4871_v34 = vpop.f32.mrb[49].mxu0  ;;  %v9613_v27 = vld [vmem:[#allocation14_spill] sm:$0xff] }
 0x384   : > { %v5171_v41 = vmax.f32 %v5107_v57, 0.0  ;;  %v6470_v3 = vadd.f32 %v4871_v34, %v9605_v61  ;;  %v4873_v63 = vpop.f32.mrb[50].mxu0 }
 0x385   : > { %v5032_v37 = vmul.f32 %v6469_v1, %v9297_v7  ;;  %v6471_v11 = vadd.f32 %v4873_v63, %v9606_v43  ;;  %v4875_v15 = vpop.f32.mrb[51].mxu0  ;;  %v5210_v2 = vpack.c.bf16 %v5170_v8, %v5168_v51  ;;  %v9614_v1 = vld [vmem:[#allocation15_spill] sm:$0xff] }
 0x386   : > { %v5033_v48 = vmul.f32 %v6470_v3, %v9299_v39  ;;  %v6472_v52 = vadd.f32 %v4875_v15, %v9607_v6  ;;  %v5211_v18 = vpack.c.bf16 %v5171_v41, %v5169_v22  ;;  %v9615_v3 = vld [vmem:[#allocation16_spill] sm:$0xff] }
 0x387   : > { %v5108_v30 = vadd.f32 %v9302_v38, %v5032_v37  ;;  %v5034_v23 = vmul.f32 %v6471_v11, %v9297_v7 }
 0x388   : > { %v5109_v24 = vadd.f32 %v9305_v21, %v5033_v48  ;;  %v5035_v5 = vmul.f32 %v6472_v52, %v9299_v39  ;;  %5475 = vmatprep.mubr.bf16.mxu1 %v5211_v18 }
 0x389   : > { %v5110_v13 = vadd.f32 %v9302_v38, %v5034_v23  ;;  %5476 = vmatmul.mubr.bf16.gmra.mrb[108].mxu1 %v5210_v2  ;;  %v5172_v56 = vmax.f32 %v5108_v30, 0.0  ;;  %v9616_v23 = vld [vmem:[#allocation17_spill] sm:$0xff] }
 0x38a   : > { %v5111_v54 = vadd.f32 %v9305_v21, %v5035_v5  ;;  %v4879_v33 = vpop.f32.mrb[52].mxu0  ;;  %v5173_v49 = vmax.f32 %v5109_v24, 0.0 }
 0x38b   : > { %v5174_v28 = vmax.f32 %v5110_v13, 0.0  ;;  %v6473_v46 = vadd.f32 %v4879_v33, %v9608_v14  ;;  %v4881_v45 = vpop.f32.mrb[53].mxu0  ;;  %v9617_v33 = vld [vmem:[#allocation18_spill] sm:$0xff] }
 0x38c   : > { %v5175_v4 = vmax.f32 %v5111_v54, 0.0  ;;  %v6474_v25 = vadd.f32 %v4881_v45, %v9609_v53  ;;  %v4883_v26 = vpop.f32.mrb[54].mxu0 }
 0x38d   : > { %v5036_v40 = vmul.f32 %v6473_v46, %v9297_v7  ;;  %v6475_v58 = vadd.f32 %v4883_v26, %v9610_v20  ;;  %v4885_v29 = vpop.f32.mrb[55].mxu0  ;;  %v5212_v19 = vpack.c.bf16 %v5174_v28, %v5172_v56  ;;  %v9618_v46 = vld [vmem:[#allocation19_spill] sm:$0xff] }
 0x38e   : > { %v5037_v17 = vmul.f32 %v6474_v25, %v9299_v39  ;;  %v6476_v32 = vadd.f32 %v4885_v29, %v9611_v9  ;;  %v5213_v10 = vpack.c.bf16 %v5175_v4, %v5173_v49  ;;  %v9619_v25 = vld [vmem:[#allocation20_spill] sm:$0xff] }
 0x38f   : > { %v5112_v42 = vadd.f32 %v9302_v38, %v5036_v40  ;;  %v5038_v31 = vmul.f32 %v6475_v58, %v9297_v7 }
 0x390   : > { %v5113_v62 = vadd.f32 %v9305_v21, %v5037_v17  ;;  %v5039_v59 = vmul.f32 %v6476_v32, %v9299_v39  ;;  %5483 = vmatprep.mubr.bf16.mxu1 %v5213_v10 }
 0x391   : > { %v5114_v44 = vadd.f32 %v9302_v38, %v5038_v31  ;;  %5484 = vmatmul.mubr.bf16.gmra.mrb[112].mxu1 %v5212_v19  ;;  %v5176_v36 = vmax.f32 %v5112_v42, 0.0 }
 0x392   : > { %v5115_v0 = vadd.f32 %v9305_v21, %v5039_v59  ;;  %v4889_v35 = vpop.f32.mrb[56].mxu0  ;;  %v5177_v60 = vmax.f32 %v5113_v62, 0.0 }
 0x393   : > { %v5178_v47 = vmax.f32 %v5114_v44, 0.0  ;;  %v6477_v16 = vadd.f32 %v4889_v35, %v9612_v55  ;;  %v4891_v50 = vpop.f32.mrb[57].mxu0 }
 0x394   : > { %v5179_v57 = vmax.f32 %v5115_v0, 0.0  ;;  %v6478_v51 = vadd.f32 %v4891_v50, %v9613_v27  ;;  %v4893_v8 = vpop.f32.mrb[58].mxu0 }
 0x395   : > { %v5040_v12 = vmul.f32 %v6477_v16, %v9297_v7  ;;  %v6479_v34 = vadd.f32 %v4893_v8, %v9614_v1  ;;  %v4895_v22 = vpop.f32.mrb[59].mxu0  ;;  %v5214_v41 = vpack.c.bf16 %v5178_v47, %v5176_v36 }
 0x396   : > { %v5041_v61 = vmul.f32 %v6478_v51, %v9299_v39  ;;  %v6480_v63 = vadd.f32 %v4895_v22, %v9615_v3  ;;  %v5215_v37 = vpack.c.bf16 %v5179_v57, %v5177_v60 }
 0x397   : > { %v5116_v43 = vadd.f32 %v9302_v38, %v5040_v12  ;;  %v5042_v11 = vmul.f32 %v6479_v34, %v9297_v7 }
 0x398   : > { %v5117_v15 = vadd.f32 %v9305_v21, %v5041_v61  ;;  %v5043_v2 = vmul.f32 %v6480_v63, %v9299_v39  ;;  %5491 = vmatprep.mubr.bf16.mxu1 %v5215_v37 }
 0x399   : > { %v5118_v48 = vadd.f32 %v9302_v38, %v5042_v11  ;;  %5492 = vmatmul.mubr.bf16.gmra.mrb[116].mxu1 %v5214_v41  ;;  %v5180_v18 = vmax.f32 %v5116_v43, 0.0 }
 0x39a   : > { %v5119_v6 = vadd.f32 %v9305_v21, %v5043_v2  ;;  %v4899_v52 = vpop.f32.mrb[60].mxu0  ;;  %v5181_v13 = vmax.f32 %v5117_v15, 0.0 }
 0x39b   : > { %v5182_v30 = vmax.f32 %v5118_v48, 0.0  ;;  %v6481_v24 = vadd.f32 %v4899_v52, %v9616_v23  ;;  %v4901_v5 = vpop.f32.mrb[61].mxu0 }
 0x39c   : > { %v5183_v54 = vmax.f32 %v5119_v6, 0.0  ;;  %v6482_v56 = vadd.f32 %v4901_v5, %v9617_v33  ;;  %v4903_v28 = vpop.f32.mrb[62].mxu0 }
 0x39d   : > { %v5044_v14 = vmul.f32 %v6481_v24, %v9297_v7  ;;  %v6483_v45 = vadd.f32 %v4903_v28, %v9618_v46  ;;  %v4905_v49 = vpop.f32.mrb[63].mxu0  ;;  %v5216_v4 = vpack.c.bf16 %v5182_v30, %v5180_v18 }
 0x39e   : > { %v5045_v53 = vmul.f32 %v6482_v56, %v9299_v39  ;;  %v6484_v26 = vadd.f32 %v4905_v49, %v9619_v25  ;;  %v5217_v40 = vpack.c.bf16 %v5183_v54, %v5181_v13 }
 0x39f   : > { %v5120_v20 = vadd.f32 %v9302_v38, %v5044_v14  ;;  %v5046_v58 = vmul.f32 %v6483_v45, %v9297_v7 }
 0x3a0   : > { %v5121_v29 = vadd.f32 %v9305_v21, %v5045_v53  ;;  %v5047_v19 = vmul.f32 %v6484_v26, %v9299_v39  ;;  %5499 = vmatprep.mubr.bf16.mxu1 %v5217_v40  ;;  %v9501_v39 = vld [vmem:[%s9580_s5] ss:$0 sm:$0xff] }
 0x3a1   : > { %v5122_v17 = vadd.f32 %v9302_v38, %v5046_v58  ;;  %5500 = vmatmul.mubr.bf16.gmra.mrb[120].mxu1 %v5216_v4  ;;  %v5184_v32 = vmax.f32 %v5120_v20, 0.0 }
 0x3a2   : > { %v5123_v9 = vadd.f32 %v9305_v21, %v5047_v19  ;;  %v5185_v42 = vmax.f32 %v5121_v29, 0.0 }
 0x3a3   : > { %v5186_v10 = vmax.f32 %v5122_v17, 0.0 }
 0x3a4   : > { %v5187_v31 = vmax.f32 %v5123_v9, 0.0 }
 0x3a5   : > { %v5218_v62 = vpack.c.bf16 %v5186_v10, %v5184_v32 }
 0x3a6   : > { %v5219_v59 = vpack.c.bf16 %v5187_v31, %v5185_v42 }
 0x3a8   : > { %5507 = vmatprep.mubr.bf16.mxu1 %v5219_v59 }
 0x3a9   : > { %5508 = vmatmul.mubr.bf16.gmra.mrb[124].mxu1 %v5218_v62 }
 0x404   : > { %v6325_v7 = vpop.f32.mrb[64].mxu1 }
 0x405   : > { %v6326_v44 = vpop.f32.mrb[65].mxu1 }
 0x406   : > { %v6327_v38 = vadd.f32 %v6326_v44, %v6325_v7  ;;  %v6328_v0 = vpop.f32.mrb[66].mxu1 }
 0x407   : > { %v6329_v21 = vpop.f32.mrb[67].mxu1 }
 0x408   : > { %v5390_v35 = vadd.f32 %v6327_v38, %v9501_v39  ;;  %v6330_v36 = vadd.f32 %v6329_v21, %v6328_v0 }
 0x40a   : > { %5516 = vst [vmem:[%s9506_s30] sm:$0xff] %v5390_v35  ;;  %v5393_v47 = vadd.f32 %v6330_v36, %v9501_v39 }
 0x40c   : > { %5517 = vst [vmem:[%s9506_s30 + $0x8] sm:$0xff] %v5393_v47  ;;  %v6331_v55 = vpop.f32.mrb[68].mxu1 }
 0x40d   : > { %v6332_v16 = vpop.f32.mrb[69].mxu1 }
 0x40e   : > { %v6333_v50 = vadd.f32 %v6332_v16, %v6331_v55  ;;  %v6334_v60 = vpop.f32.mrb[70].mxu1 }
 0x40f   : > { %v6335_v57 = vpop.f32.mrb[71].mxu1 }
 0x410   : > { %v5398_v27 = vadd.f32 %v6333_v50, %v9501_v39  ;;  %v6336_v51 = vadd.f32 %v6335_v57, %v6334_v60 }
 0x412   : > { %5518 = vst [vmem:[%s9506_s30 + $0x10] sm:$0xff] %v5398_v27  ;;  %v5401_v8 = vadd.f32 %v6336_v51, %v9501_v39 }
 0x414   : > { %5519 = vst [vmem:[%s9506_s30 + $0x18] sm:$0xff] %v5401_v8  ;;  %v6337_v12 = vpop.f32.mrb[72].mxu1 }
 0x415   : > { %v6338_v1 = vpop.f32.mrb[73].mxu1 }
 0x416   : > { %v6339_v34 = vadd.f32 %v6338_v1, %v6337_v12  ;;  %v6340_v22 = vpop.f32.mrb[74].mxu1 }
 0x417   : > { %v6341_v41 = vpop.f32.mrb[75].mxu1 }
 0x418   : > { %v5406_v61 = vadd.f32 %v6339_v34, %v9501_v39  ;;  %v6342_v3 = vadd.f32 %v6341_v41, %v6340_v22 }
 0x41a   : > { %5520 = vst [vmem:[%s9506_s30 + $0x20] sm:$0xff] %v5406_v61  ;;  %v5409_v63 = vadd.f32 %v6342_v3, %v9501_v39 }
 0x41c   : > { %5521 = vst [vmem:[%s9506_s30 + $0x28] sm:$0xff] %v5409_v63  ;;  %v6343_v37 = vpop.f32.mrb[76].mxu1 }
 0x41d   : > { %v6344_v43 = vpop.f32.mrb[77].mxu1 }
 0x41e   : > { %v6345_v11 = vadd.f32 %v6344_v43, %v6343_v37  ;;  %v6346_v15 = vpop.f32.mrb[78].mxu1 }
 0x41f   : > { %v6347_v2 = vpop.f32.mrb[79].mxu1 }
 0x420   : > { %v5414_v48 = vadd.f32 %v6345_v11, %v9501_v39  ;;  %v6348_v6 = vadd.f32 %v6347_v2, %v6346_v15 }
 0x422   : > { %5522 = vst [vmem:[%s9506_s30 + $0x30] sm:$0xff] %v5414_v48  ;;  %v5417_v52 = vadd.f32 %v6348_v6, %v9501_v39 }
 0x424   : > { %5523 = vst [vmem:[%s9506_s30 + $0x38] sm:$0xff] %v5417_v52  ;;  %v6349_v18 = vpop.f32.mrb[80].mxu1 }
 0x425   : > { %v6350_v30 = vpop.f32.mrb[81].mxu1 }
 0x426   : > { %v6351_v23 = vadd.f32 %v6350_v30, %v6349_v18  ;;  %v6352_v24 = vpop.f32.mrb[82].mxu1 }
 0x427   : > { %v6353_v5 = vpop.f32.mrb[83].mxu1 }
 0x428   : > { %v5422_v13 = vadd.f32 %v6351_v23, %v9501_v39  ;;  %v6354_v54 = vadd.f32 %v6353_v5, %v6352_v24 }
 0x42a   : > { %5524 = vst [vmem:[%s9506_s30 + $0x40] sm:$0xff] %v5422_v13  ;;  %v5425_v33 = vadd.f32 %v6354_v54, %v9501_v39 }
 0x42c   : > { %5525 = vst [vmem:[%s9506_s30 + $0x48] sm:$0xff] %v5425_v33  ;;  %v6355_v56 = vpop.f32.mrb[84].mxu1 }
 0x42d   : > { %v6356_v28 = vpop.f32.mrb[85].mxu1 }
 0x42e   : > { %v6357_v14 = vadd.f32 %v6356_v28, %v6355_v56  ;;  %v6358_v46 = vpop.f32.mrb[86].mxu1 }
 0x42f   : > { %v6359_v45 = vpop.f32.mrb[87].mxu1 }
 0x430   : > { %v5430_v49 = vadd.f32 %v6357_v14, %v9501_v39  ;;  %v6360_v4 = vadd.f32 %v6359_v45, %v6358_v46 }
 0x432   : > { %5526 = vst [vmem:[%s9506_s30 + $0x50] sm:$0xff] %v5430_v49  ;;  %v5433_v53 = vadd.f32 %v6360_v4, %v9501_v39 }
 0x434   : > { %5527 = vst [vmem:[%s9506_s30 + $0x58] sm:$0xff] %v5433_v53  ;;  %v6361_v25 = vpop.f32.mrb[88].mxu1 }
 0x435   : > { %v6362_v26 = vpop.f32.mrb[89].mxu1 }
 0x436   : > { %v6363_v40 = vadd.f32 %v6362_v26, %v6361_v25  ;;  %v6364_v20 = vpop.f32.mrb[90].mxu1 }
 0x437   : > { %v6365_v58 = vpop.f32.mrb[91].mxu1 }
 0x438   : > { %v5438_v29 = vadd.f32 %v6363_v40, %v9501_v39  ;;  %v6366_v19 = vadd.f32 %v6365_v58, %v6364_v20 }
 0x43a   : > { %5528 = vst [vmem:[%s9506_s30 + $0x60] sm:$0xff] %v5438_v29  ;;  %v5441_v17 = vadd.f32 %v6366_v19, %v9501_v39 }
 0x43c   : > { %5529 = vst [vmem:[%s9506_s30 + $0x68] sm:$0xff] %v5441_v17  ;;  %v6367_v9 = vpop.f32.mrb[92].mxu1 }
 0x43d   : > { %v6368_v32 = vpop.f32.mrb[93].mxu1 }
 0x43e   : > { %v6369_v10 = vadd.f32 %v6368_v32, %v6367_v9  ;;  %v6370_v42 = vpop.f32.mrb[94].mxu1 }
 0x43f   : > { %v6371_v31 = vpop.f32.mrb[95].mxu1 }
 0x440   : > { %v5446_v62 = vadd.f32 %v6369_v10, %v9501_v39  ;;  %v6372_v59 = vadd.f32 %v6371_v31, %v6370_v42 }
 0x442   : > { %5530 = vst [vmem:[%s9506_s30 + $0x70] sm:$0xff] %v5446_v62  ;;  %v5449_v7 = vadd.f32 %v6372_v59, %v9501_v39 }
 0x444   : > { %5531 = vst [vmem:[%s9506_s30 + $0x78] sm:$0xff] %v5449_v7  ;;  %v6373_v44 = vpop.f32.mrb[96].mxu1 }
 0x445   : > { %v6374_v38 = vpop.f32.mrb[97].mxu1 }
 0x446   : > { %v6375_v0 = vadd.f32 %v6374_v38, %v6373_v44  ;;  %v6376_v21 = vpop.f32.mrb[98].mxu1 }
 0x447   : > { %v6377_v35 = vpop.f32.mrb[99].mxu1 }
 0x448   : > { %v5454_v36 = vadd.f32 %v6375_v0, %v9501_v39  ;;  %v6378_v47 = vadd.f32 %v6377_v35, %v6376_v21 }
 0x44a   : > { %5532 = vst [vmem:[%s9506_s30 + $0x80] sm:$0xff] %v5454_v36  ;;  %v5457_v55 = vadd.f32 %v6378_v47, %v9501_v39 }
 0x44c   : > { %5533 = vst [vmem:[%s9506_s30 + $0x88] sm:$0xff] %v5457_v55  ;;  %v6379_v16 = vpop.f32.mrb[100].mxu1 }
 0x44d   : > { %v6380_v50 = vpop.f32.mrb[101].mxu1 }
 0x44e   : > { %v6381_v60 = vadd.f32 %v6380_v50, %v6379_v16  ;;  %v6382_v57 = vpop.f32.mrb[102].mxu1 }
 0x44f   : > { %v6383_v27 = vpop.f32.mrb[103].mxu1 }
 0x450   : > { %v5462_v51 = vadd.f32 %v6381_v60, %v9501_v39  ;;  %v6384_v8 = vadd.f32 %v6383_v27, %v6382_v57 }
 0x452   : > { %5534 = vst [vmem:[%s9506_s30 + $0x90] sm:$0xff] %v5462_v51  ;;  %v5465_v12 = vadd.f32 %v6384_v8, %v9501_v39 }
 0x454   : > { %5535 = vst [vmem:[%s9506_s30 + $0x98] sm:$0xff] %v5465_v12  ;;  %v6385_v1 = vpop.f32.mrb[104].mxu1 }
 0x455   : > { %v6386_v34 = vpop.f32.mrb[105].mxu1 }
 0x456   : > { %v6387_v22 = vadd.f32 %v6386_v34, %v6385_v1  ;;  %v6388_v41 = vpop.f32.mrb[106].mxu1 }
 0x457   : > { %v6389_v61 = vpop.f32.mrb[107].mxu1 }
 0x458   : > { %v5470_v3 = vadd.f32 %v6387_v22, %v9501_v39  ;;  %v6390_v63 = vadd.f32 %v6389_v61, %v6388_v41 }
 0x45a   : > { %5536 = vst [vmem:[%s9506_s30 + $0xa0] sm:$0xff] %v5470_v3  ;;  %v5473_v37 = vadd.f32 %v6390_v63, %v9501_v39 }
 0x45c   : > { %5537 = vst [vmem:[%s9506_s30 + $0xa8] sm:$0xff] %v5473_v37  ;;  %v6391_v43 = vpop.f32.mrb[108].mxu1 }
 0x45d   : > { %v6392_v11 = vpop.f32.mrb[109].mxu1 }
 0x45e   : > { %v6393_v15 = vadd.f32 %v6392_v11, %v6391_v43  ;;  %v6394_v2 = vpop.f32.mrb[110].mxu1 }
 0x45f   : > { %v6395_v48 = vpop.f32.mrb[111].mxu1 }
 0x460   : > { %v5478_v6 = vadd.f32 %v6393_v15, %v9501_v39  ;;  %v6396_v52 = vadd.f32 %v6395_v48, %v6394_v2 }
 0x462   : > { %5538 = vst [vmem:[%s9506_s30 + $0xb0] sm:$0xff] %v5478_v6  ;;  %v5481_v18 = vadd.f32 %v6396_v52, %v9501_v39 }
 0x464   : > { %5539 = vst [vmem:[%s9506_s30 + $0xb8] sm:$0xff] %v5481_v18  ;;  %v6397_v30 = vpop.f32.mrb[112].mxu1 }
 0x465   : > { %v6398_v23 = vpop.f32.mrb[113].mxu1 }
 0x466   : > { %v6399_v24 = vadd.f32 %v6398_v23, %v6397_v30  ;;  %v6400_v5 = vpop.f32.mrb[114].mxu1 }
 0x467   : > { %v6401_v13 = vpop.f32.mrb[115].mxu1 }
 0x468   : > { %v5486_v54 = vadd.f32 %v6399_v24, %v9501_v39  ;;  %v6402_v33 = vadd.f32 %v6401_v13, %v6400_v5 }
 0x46a   : > { %5540 = vst [vmem:[%s9506_s30 + $0xc0] sm:$0xff] %v5486_v54  ;;  %v5489_v56 = vadd.f32 %v6402_v33, %v9501_v39 }
 0x46c   : > { %5541 = vst [vmem:[%s9506_s30 + $0xc8] sm:$0xff] %v5489_v56  ;;  %v6403_v28 = vpop.f32.mrb[116].mxu1 }
 0x46d   : > { %v6404_v14 = vpop.f32.mrb[117].mxu1 }
 0x46e   : > { %v6405_v46 = vadd.f32 %v6404_v14, %v6403_v28  ;;  %v6406_v45 = vpop.f32.mrb[118].mxu1 }
 0x46f   : > { %v6407_v49 = vpop.f32.mrb[119].mxu1 }
 0x470   : > { %v5494_v4 = vadd.f32 %v6405_v46, %v9501_v39  ;;  %v6408_v53 = vadd.f32 %v6407_v49, %v6406_v45 }
 0x472   : > { %5542 = vst [vmem:[%s9506_s30 + $0xd0] sm:$0xff] %v5494_v4  ;;  %v5497_v25 = vadd.f32 %v6408_v53, %v9501_v39 }
 0x474   : > { %5543 = vst [vmem:[%s9506_s30 + $0xd8] sm:$0xff] %v5497_v25  ;;  %v6409_v26 = vpop.f32.mrb[120].mxu1 }
 0x475   : > { %v6410_v40 = vpop.f32.mrb[121].mxu1 }
 0x476   : > { %v6411_v20 = vadd.f32 %v6410_v40, %v6409_v26  ;;  %v6412_v58 = vpop.f32.mrb[122].mxu1 }
 0x477   : > { %v6413_v29 = vpop.f32.mrb[123].mxu1 }
 0x478   : > { %v5502_v19 = vadd.f32 %v6411_v20, %v9501_v39  ;;  %v6414_v17 = vadd.f32 %v6413_v29, %v6412_v58 }
 0x47a   : > { %5544 = vst [vmem:[%s9506_s30 + $0xe0] sm:$0xff] %v5502_v19  ;;  %v5505_v9 = vadd.f32 %v6414_v17, %v9501_v39 }
 0x47c   : > { %5545 = vst [vmem:[%s9506_s30 + $0xe8] sm:$0xff] %v5505_v9  ;;  %v6415_v32 = vpop.f32.mrb[124].mxu1 }
 0x47d   : > { %v6416_v10 = vpop.f32.mrb[125].mxu1 }
 0x47e   : > { %v6417_v42 = vadd.f32 %v6416_v10, %v6415_v32  ;;  %v6418_v31 = vpop.f32.mrb[126].mxu1 }
 0x47f   : > { %v6419_v62 = vpop.f32.mrb[127].mxu1 }
 0x480   : > { %v5510_v59 = vadd.f32 %v6417_v42, %v9501_v39  ;;  %v6420_v7 = vadd.f32 %v6419_v62, %v6418_v31 }
 0x482   : > { %5546 = vst [vmem:[%s9506_s30 + $0xf0] sm:$0xff] %v5510_v59  ;;  %v5513_v44 = vadd.f32 %v6420_v7, %v9501_v39 }
 0x484   : > { %5547 = vst [vmem:[%s9506_s30 + $0xf8] sm:$0xff] %v5513_v44 }
 0x485 PF: > { %s16_s21 = sadd.s32 1, %s7720_s21  }
 0x486   : > { %p13_p4 = scmp.ge.s32.totalorder %s16_s21, 4  }
 0x488   :  { %15 = sbr.rel (!%p13_p4) target bundleno = 1 (0x1), region = 76 }

</bundles_post_ra>
